<compile_context>
chip_gen: v5e
topology: v5e:2x2
jax: 0.10.0
libtpu: 0.0.40
codegen_flags: <defaults>
</compile_context>

<pallas_src>
import functools

import numpy as np
import jax
import jax.numpy as jnp
from jax.experimental import pallas as pl
from jax.experimental.pallas import tpu as pltpu

_CHANNELS = [3, 8, 16, 32, 64, 128]
_NUM_CLASSES = 9
_EPS = 1e-5
_CIN_PAD = 8          # layer-0 input channels zero-padded 3 -> 8 (sublane aligned)


# ----------------------------------------------------------------------------
# Static layout bookkeeping (per layer, per image).
#   Flat column j < base maps to (y, xp) = (j // P, j % P), P = W + 2,
#   xp = 0 and xp = P-1 are zero padding columns, real pixel x = xp - 1.
#   The flat axis carries F = P+1 leading zeros and E = 2P+2 trailing zeros so
#   every conv / pool tap is an in-bounds static lane slice reading zeros
#   whenever it falls outside the image.
# ----------------------------------------------------------------------------
def _layer_dims(h, w):
    p = w + 2
    base = h * p
    f = p + 1
    return dict(H=h, W=w, P=p, base=base, F=f,
                L_in=base + 3 * p + 3,     # F + base + E
                Lo=base + p + 1)           # conv/ReLU output length


def _all_layer_dims(h, w):
    dims = []
    for _ in range(5):
        dims.append(_layer_dims(h, w))
        h //= 2
        w //= 2
    return tuple(dims), (h, w)


def _pool_select_matrix(dims, l):
    """0/1 matrix: maxpool-anchor columns of layer l -> padded layout of layer
    l+1 (or AdaptiveAvgPool2d(1) weights for the last layer)."""
    d = dims[l]
    h, w, p = d["H"], d["W"], d["P"]
    ho, wo = h // 2, w // 2
    if l + 1 < len(dims):
        dn = dims[l + 1]
        sel = np.zeros((d["base"], dn["L_in"]), np.float32)
        for yo in range(ho):
            for xo in range(wo):
                src = (2 * yo) * p + (2 * xo + 1)
                dst = dn["F"] + yo * dn["P"] + (xo + 1)
                sel[src, dst] = 1.0
    else:
        sel = np.zeros((d["base"], 1), np.float32)
        for yo in range(ho):
            for xo in range(wo):
                src = (2 * yo) * p + (2 * xo + 1)
                sel[src, 0] = 1.0 / (ho * wo)   # maxpool + adaptive avg pool
    return sel


# ----------------------------------------------------------------------------
# Fused kernel body.
# ----------------------------------------------------------------------------
def _network2_kernel(x_ref, *refs, dims, b_tile):
    out_ref = refs[-1]
    wfc_ref, bfc_ref = refs[-3], refs[-2]
    layer_refs = refs[:-3]                               # (w_flat, bias, sel) * 5

    xs = [x_ref[b] for b in range(b_tile)]               # each (Cin0, L_in0) f32

    for l in range(5):
        w_ref, b_ref, s_ref = layer_refs[3 * l:3 * l + 3]
        d = dims[l]
        p, base, f, lo = d["P"], d["base"], d["F"], d["Lo"]
        cout = w_ref.shape[0]

        m4s = []
        for b in range(b_tile):
            x = xs[b]                                     # (Cin, L_in) f32
            # 9 static lane-shifted tap slices, stacked along sublanes.
            taps = [x[:, f + dy * p + dx: f + dy * p + dx + lo]
                    for dy in (-1, 0, 1) for dx in (-1, 0, 1)]
            stacked = jnp.concatenate(taps, axis=0).astype(jnp.bfloat16)   # (9*Cin, Lo)
            # One deep-K MXU matmul per layer per image (BN scale pre-folded).
            acc = jnp.dot(w_ref[...], stacked,
                          preferred_element_type=jnp.float32)              # (Cout, Lo)
            o = jnp.maximum(acc + b_ref[...], 0.0)        # folded-BN bias + ReLU (f32)
            # 2x2 max-pool taps; downsample/re-pad happens in the sel matmul below.
            m4s.append(jnp.maximum(
                jnp.maximum(o[:, 0:base], o[:, 1:base + 1]),
                jnp.maximum(o[:, p:p + base], o[:, p + 1:p + 1 + base])))

        # Batch the selection matmul over the image tile (sublane concat).
        m4b = jnp.concatenate(m4s, axis=0).astype(jnp.bfloat16)            # (B*Cout, base)
        yb = jnp.dot(m4b, s_ref[...], preferred_element_type=jnp.float32)  # (B*Cout, L_next)
        xs = [yb[b * cout:(b + 1) * cout, :] for b in range(b_tile)]

    # xs[b] is the (128, 1) pooled feature of image b.  Batched Linear(128, 9)
    # head producing a lane-dense (B, 128) slab (classes in lanes 0..8).
    feats = jnp.concatenate(xs, axis=1).astype(jnp.bfloat16)               # (128, B)
    logits = jax.lax.dot_general(
        feats, wfc_ref[...],
        dimension_numbers=(((0,), (0,)), ((), ())),
        preferred_element_type=jnp.float32)                                # (B, 128)
    out_ref[0] = logits + bfc_ref[...]


# ----------------------------------------------------------------------------
# Wrapper: parameter folding + single pallas_call.
# ----------------------------------------------------------------------------
def _const_spec(shape):
    nd = len(shape)
    return pl.BlockSpec(tuple(shape), lambda i, _nd=nd: (0,) * _nd)


def prepare_kernel_params(params, h, w):
    """Fold BN into conv weights, build pooling/selection matrices, cast to bf16."""
    dims, _ = _all_layer_dims(h, w)
    kp = {"w": [], "bias": [], "pool": []}
    for l, blk in enumerate(params["blocks"]):
        cout, cin = blk["w"].shape[:2]
        s = blk["gamma"] / jnp.sqrt(blk["var"] + _EPS)
        wgt = blk["w"] * s[:, None, None, None]                   # fold BN scale
        if l == 0 and cin < _CIN_PAD:
            wgt = jnp.pad(wgt, ((0, 0), (0, _CIN_PAD - cin), (0, 0), (0, 0)))
        cin_p = wgt.shape[1]
        # (Cout,Cin,3,3) -> (Cout,3,3,Cin) -> (Cout, 9*Cin), tap-major (dy, dx).
        w_flat = jnp.transpose(wgt, (0, 2, 3, 1)).reshape(cout, 9 * cin_p)
        kp["w"].append(w_flat.astype(jnp.bfloat16))
        bias = ((blk["b"] - blk["mean"]) * s + blk["beta"]).reshape(cout, 1)
        kp["bias"].append(bias.astype(jnp.float32))
        kp["pool"].append(jnp.asarray(_pool_select_matrix(dims, l), jnp.bfloat16))
    # FC head, padded to a lane-dense (128ch, 128out) weight (classes 0..8).
    fc_w_pad = jnp.zeros((128, 128), jnp.float32).at[:_NUM_CLASSES, :].set(params["fc_w"])
    kp["fc_wT"] = fc_w_pad.T.astype(jnp.bfloat16)                 # (128ch, 128out)
    kp["fc_b"] = jnp.zeros((1, 128), jnp.float32).at[0, :_NUM_CLASSES].set(params["fc_b"])
    return kp


@functools.partial(jax.jit, static_argnames=("b_tile",))
def network2_forward(x_nchw, kparams, b_tile=2):
    n, cin, h, w = x_nchw.shape
    assert cin == _CHANNELS[0]
    assert h % 32 == 0 and w % 32 == 0, "spatial dims must be multiples of 32"
    assert n % b_tile == 0, "batch must be divisible by b_tile"
    dims, _ = _all_layer_dims(h, w)
    d0 = dims[0]

    # Layer-0 input in the kernel's padded flat layout (channels padded 3 -> 8):
    # per image/channel: F zeros ++ [0, row, 0] * H ++ E zeros.
    xp = jnp.pad(x_nchw, ((0, 0), (0, _CIN_PAD - cin), (0, 0), (1, 1)))  # (N,8,H,W+2)
    flat = xp.reshape(n, _CIN_PAD, d0["base"])
    tail = d0["L_in"] - d0["F"] - d0["base"]
    x_ext = jnp.pad(flat, ((0, 0), (0, 0), (d0["F"], tail)))             # (N,8,L_in)

    inputs = [x_ext]
    in_specs = [pl.BlockSpec((b_tile, _CIN_PAD, d0["L_in"]), lambda i: (i, 0, 0))]
    for l in range(5):
        for name in ("w", "bias", "pool"):
            arr = kparams[name][l]
            inputs.append(arr)
            in_specs.append(_const_spec(arr.shape))
    for name in ("fc_wT", "fc_b"):
        arr = kparams[name]
        inputs.append(arr)
        in_specs.append(_const_spec(arr.shape))

    kernel = functools.partial(_network2_kernel, dims=dims, b_tile=b_tile)
    n_steps = n // b_tile
    out = pl.pallas_call(
        kernel,
        out_shape=jax.ShapeDtypeStruct((n_steps, b_tile, 128), jnp.float32),
        grid=(n_steps,),
        in_specs=in_specs,
        out_specs=pl.BlockSpec((1, b_tile, 128), lambda i: (i, 0, 0)),
        compiler_params=pltpu.CompilerParams(
            dimension_semantics=("parallel",)),
    )(*inputs)
    return out.reshape(n, 128)[:, :_NUM_CLASSES]                         # (N, 9)


# ----------------------------------------------------------------------------
# Synthetic (deterministic) parameters and pure-JAX references for validation.
# ----------------------------------------------------------------------------
def init_params(key):
    params = {"blocks": []}
    for i in range(5):
        cin, cout = _CHANNELS[i], _CHANNELS[i + 1]
        key, kw, kb, kg, kbe, km, kv = jax.random.split(key, 7)
        params["blocks"].append({
            "w": 0.1 * jax.random.normal(kw, (cout, cin, 3, 3), jnp.float32),
            "b": 0.05 * jax.random.normal(kb, (cout,), jnp.float32),
            "gamma": 1.0 + 0.1 * jax.random.normal(kg, (cout,), jnp.float32),
            "beta": 0.1 * jax.random.normal(kbe, (cout,), jnp.float32),
            "mean": 0.1 * jax.random.normal(km, (cout,), jnp.float32),
            "var": 1.0 + 0.1 * jnp.abs(jax.random.normal(kv, (cout,), jnp.float32)),
        })
    key, kw, kb = jax.random.split(key, 3)
    params["fc_w"] = 0.1 * jax.random.normal(kw, (_NUM_CLASSES, 128), jnp.float32)
    params["fc_b"] = 0.05 * jax.random.normal(kb, (_NUM_CLASSES,), jnp.float32)
    return params


def network2_reference(x, params, matmul_dtype=None):
    """matmul_dtype=None -> pure f32 like the PyTorch module (unfolded BN);
    matmul_dtype=jnp.bfloat16 -> mirrors the kernel's bf16/f32 casting."""
    a = x
    for blk in params["blocks"]:
        s = blk["gamma"] / jnp.sqrt(blk["var"] + _EPS)
        if matmul_dtype is None:
            conv = jax.lax.conv_general_dilated(
                a, blk["w"], (1, 1), ((1, 1), (1, 1)),
                dimension_numbers=("NCHW", "OIHW", "NCHW"),
                precision=jax.lax.Precision.HIGHEST)
            conv = conv + blk["b"][None, :, None, None]
            y = (conv - blk["mean"][None, :, None, None]) * s[None, :, None, None] \
                + blk["beta"][None, :, None, None]
        else:
            w_fold = blk["w"] * s[:, None, None, None]
            b_fold = (blk["b"] - blk["mean"]) * s + blk["beta"]
            conv = jax.lax.conv_general_dilated(
                a.astype(matmul_dtype), w_fold.astype(matmul_dtype),
                (1, 1), ((1, 1), (1, 1)),
                dimension_numbers=("NCHW", "OIHW", "NCHW"),
                preferred_element_type=jnp.float32)
            y = conv + b_fold[None, :, None, None]
        a = jnp.maximum(y, 0.0)
        a = jax.lax.reduce_window(a, -jnp.inf, jax.lax.max,
                                  (1, 1, 2, 2), (1, 1, 2, 2), "VALID")
    feat = jnp.mean(a, axis=(2, 3))
    if matmul_dtype is None:
        return feat @ params["fc_w"].T + params["fc_b"]
    return jnp.dot(feat.astype(matmul_dtype), params["fc_w"].T.astype(matmul_dtype),
                   preferred_element_type=jnp.float32) + params["fc_b"]


if __name__ == "__main__":
    key = jax.random.PRNGKey(0)
    key, kx = jax.random.split(key)
    # 32x32 spatial so 5 maxpools reduce to 1x1 (matches the 128-feature head).
    # batch=4 with b_tile=2 -> grid of 2 steps (keeps both v7x TCs busy).
    x = jax.random.normal(kx, (4, 3, 32, 32), jnp.float32)       # NCHW like PyTorch
    params = init_params(key)
    kparams = prepare_kernel_params(params, 32, 32)

    out = network2_forward(x, kparams, b_tile=2)
    out = jax.block_until_ready(out)
    assert out.shape == (4, _NUM_CLASSES)

    # Tight check against a bf16-matched reference (catches layout/index bugs).
    ref_bf16 = network2_reference(x, params, matmul_dtype=jnp.bfloat16)
    assert jnp.allclose(out, ref_bf16, rtol=5e-3, atol=5e-3), \
        "kernel / bf16-matched reference mismatch"
    # Loose sanity check against the exact f32 PyTorch-equivalent reference.
    ref_f32 = network2_reference(x, params)
    assert jnp.allclose(out, ref_f32, rtol=1e-1, atol=1e-1), \
        "kernel / f32 reference mismatch"
    print("KERNEL_OK")
</pallas_src>

<mosaic_0001>
module attributes {stable_mosaic.version = 11 : i64} {
  func.func @_network2_kernel(%arg0: i32, %arg1: memref<2x8x1193xf32, #tpu.memory_space<vmem>>, %arg2: memref<8x72xbf16, #tpu.memory_space<vmem>>, %arg3: memref<8x1xf32, #tpu.memory_space<vmem>>, %arg4: memref<1088x345xbf16, #tpu.memory_space<vmem>>, %arg5: memref<16x72xbf16, #tpu.memory_space<vmem>>, %arg6: memref<16x1xf32, #tpu.memory_space<vmem>>, %arg7: memref<288x113xbf16, #tpu.memory_space<vmem>>, %arg8: memref<32x144xbf16, #tpu.memory_space<vmem>>, %arg9: memref<32x1xf32, #tpu.memory_space<vmem>>, %arg10: memref<80x45xbf16, #tpu.memory_space<vmem>>, %arg11: memref<64x288xbf16, #tpu.memory_space<vmem>>, %arg12: memref<64x1xf32, #tpu.memory_space<vmem>>, %arg13: memref<24x23xbf16, #tpu.memory_space<vmem>>, %arg14: memref<128x576xbf16, #tpu.memory_space<vmem>>, %arg15: memref<128x1xf32, #tpu.memory_space<vmem>>, %arg16: memref<8x1xbf16, #tpu.memory_space<vmem>>, %arg17: memref<128x128xbf16, #tpu.memory_space<vmem>>, %arg18: memref<1x128xf32, #tpu.memory_space<vmem>>, %arg19: memref<1x2x128xf32, #tpu.memory_space<vmem>>) attributes {dimension_semantics = [#tpu.dimension_semantics<parallel>], iteration_bounds = array<i64: 2>, scalar_prefetch = 0 : i64, scratch_operands = 0 : i64, tpu.core_type = #tpu.core_type<tc>, window_params = [{transform_indices = @transform_0, window_bounds = array<i64: 2, 8, 1193>}, {pipeline_mode = #tpu.pipeline_mode<synchronous>, transform_indices = @transform_1, window_bounds = array<i64: 8, 72>}, {pipeline_mode = #tpu.pipeline_mode<synchronous>, transform_indices = @transform_2, window_bounds = array<i64: 8, 1>}, {pipeline_mode = #tpu.pipeline_mode<synchronous>, transform_indices = @transform_3, window_bounds = array<i64: 1088, 345>}, {pipeline_mode = #tpu.pipeline_mode<synchronous>, transform_indices = @transform_4, window_bounds = array<i64: 16, 72>}, {pipeline_mode = #tpu.pipeline_mode<synchronous>, transform_indices = @transform_5, window_bounds = array<i64: 16, 1>}, {pipeline_mode = #tpu.pipeline_mode<synchronous>, transform_indices = @transform_6, window_bounds = array<i64: 288, 113>}, {pipeline_mode = #tpu.pipeline_mode<synchronous>, transform_indices = @transform_7, window_bounds = array<i64: 32, 144>}, {pipeline_mode = #tpu.pipeline_mode<synchronous>, transform_indices = @transform_8, window_bounds = array<i64: 32, 1>}, {pipeline_mode = #tpu.pipeline_mode<synchronous>, transform_indices = @transform_9, window_bounds = array<i64: 80, 45>}, {pipeline_mode = #tpu.pipeline_mode<synchronous>, transform_indices = @transform_10, window_bounds = array<i64: 64, 288>}, {pipeline_mode = #tpu.pipeline_mode<synchronous>, transform_indices = @transform_11, window_bounds = array<i64: 64, 1>}, {pipeline_mode = #tpu.pipeline_mode<synchronous>, transform_indices = @transform_12, window_bounds = array<i64: 24, 23>}, {pipeline_mode = #tpu.pipeline_mode<synchronous>, transform_indices = @transform_13, window_bounds = array<i64: 128, 576>}, {pipeline_mode = #tpu.pipeline_mode<synchronous>, transform_indices = @transform_14, window_bounds = array<i64: 128, 1>}, {pipeline_mode = #tpu.pipeline_mode<synchronous>, transform_indices = @transform_15, window_bounds = array<i64: 8, 1>}, {pipeline_mode = #tpu.pipeline_mode<synchronous>, transform_indices = @transform_16, window_bounds = array<i64: 128, 128>}, {pipeline_mode = #tpu.pipeline_mode<synchronous>, transform_indices = @transform_17, window_bounds = array<i64: 1, 128>}, {transform_indices = @transform_18, window_bounds = array<i64: 1, 2, 128>}]} {
    %c0 = arith.constant 0 : index
    %c0_0 = arith.constant 0 : index
    %c0_1 = arith.constant 0 : index
    %0 = vector.load %arg1[%c0, %c0_0, %c0_1] : memref<2x8x1193xf32, #tpu.memory_space<vmem>>, vector<1x8x1193xf32>
    %1 = vector.shape_cast %0 : vector<1x8x1193xf32> to vector<8x1193xf32>
    %c1 = arith.constant 1 : index
    %c0_2 = arith.constant 0 : index
    %c0_3 = arith.constant 0 : index
    %2 = vector.load %arg1[%c1, %c0_2, %c0_3] : memref<2x8x1193xf32, #tpu.memory_space<vmem>>, vector<1x8x1193xf32>
    %3 = vector.shape_cast %2 : vector<1x8x1193xf32> to vector<8x1193xf32>
    %4 = vector.extract_strided_slice %1 {offsets = [0, 0], sizes = [8, 1123], strides = [1, 1]} : vector<8x1193xf32> to vector<8x1123xf32>
    %5 = vector.extract_strided_slice %1 {offsets = [0, 1], sizes = [8, 1123], strides = [1, 1]} : vector<8x1193xf32> to vector<8x1123xf32>
    %6 = vector.extract_strided_slice %1 {offsets = [0, 2], sizes = [8, 1123], strides = [1, 1]} : vector<8x1193xf32> to vector<8x1123xf32>
    %7 = vector.extract_strided_slice %1 {offsets = [0, 34], sizes = [8, 1123], strides = [1, 1]} : vector<8x1193xf32> to vector<8x1123xf32>
    %8 = vector.extract_strided_slice %1 {offsets = [0, 35], sizes = [8, 1123], strides = [1, 1]} : vector<8x1193xf32> to vector<8x1123xf32>
    %9 = vector.extract_strided_slice %1 {offsets = [0, 36], sizes = [8, 1123], strides = [1, 1]} : vector<8x1193xf32> to vector<8x1123xf32>
    %10 = vector.extract_strided_slice %1 {offsets = [0, 68], sizes = [8, 1123], strides = [1, 1]} : vector<8x1193xf32> to vector<8x1123xf32>
    %11 = vector.extract_strided_slice %1 {offsets = [0, 69], sizes = [8, 1123], strides = [1, 1]} : vector<8x1193xf32> to vector<8x1123xf32>
    %12 = vector.extract_strided_slice %1 {offsets = [0, 70], sizes = [8, 1123], strides = [1, 1]} : vector<8x1193xf32> to vector<8x1123xf32>
    %13 = tpu.concatenate %4, %5, %6, %7, %8, %9, %10, %11, %12 in 0 : vector<8x1123xf32>, vector<8x1123xf32>, vector<8x1123xf32>, vector<8x1123xf32>, vector<8x1123xf32>, vector<8x1123xf32>, vector<8x1123xf32>, vector<8x1123xf32>, vector<8x1123xf32> -> vector<72x1123xf32>
    %14 = arith.truncf %13 : vector<72x1123xf32> to vector<72x1123xbf16>
    %c0_4 = arith.constant 0 : index
    %c0_5 = arith.constant 0 : index
    %15 = vector.load %arg2[%c0_4, %c0_5] : memref<8x72xbf16, #tpu.memory_space<vmem>>, vector<8x72xbf16>
    %cst = arith.constant dense<0.000000e+00> : vector<8x1123xf32>
    %16 = tpu.matmul %15, %14, %cst {dimension_numbers = #tpu.dot_dimension_numbers<[1], [0], [0], [1], [0, 0, 1, 1], [], []>} : vector<8x72xbf16>, vector<72x1123xbf16>, vector<8x1123xf32> -> vector<8x1123xf32>
    %c0_6 = arith.constant 0 : index
    %c0_7 = arith.constant 0 : index
    %17 = vector.load %arg3[%c0_6, %c0_7] : memref<8x1xf32, #tpu.memory_space<vmem>>, vector<8x1xf32>
    %18 = vector.broadcast %17 : vector<8x1xf32> to vector<8x1123xf32>
    %19 = arith.addf %16, %18 : vector<8x1123xf32>
    %cst_8 = arith.constant 0.000000e+00 : f32
    %20 = vector.broadcast %cst_8 : f32 to vector<8x1123xf32>
    %21 = arith.maximumf %19, %20 : vector<8x1123xf32>
    %22 = vector.extract_strided_slice %21 {offsets = [0, 0], sizes = [8, 1088], strides = [1, 1]} : vector<8x1123xf32> to vector<8x1088xf32>
    %23 = vector.extract_strided_slice %21 {offsets = [0, 1], sizes = [8, 1088], strides = [1, 1]} : vector<8x1123xf32> to vector<8x1088xf32>
    %24 = arith.maximumf %22, %23 : vector<8x1088xf32>
    %25 = vector.extract_strided_slice %21 {offsets = [0, 34], sizes = [8, 1088], strides = [1, 1]} : vector<8x1123xf32> to vector<8x1088xf32>
    %26 = vector.extract_strided_slice %21 {offsets = [0, 35], sizes = [8, 1088], strides = [1, 1]} : vector<8x1123xf32> to vector<8x1088xf32>
    %27 = arith.maximumf %25, %26 : vector<8x1088xf32>
    %28 = arith.maximumf %24, %27 : vector<8x1088xf32>
    %29 = vector.extract_strided_slice %3 {offsets = [0, 0], sizes = [8, 1123], strides = [1, 1]} : vector<8x1193xf32> to vector<8x1123xf32>
    %30 = vector.extract_strided_slice %3 {offsets = [0, 1], sizes = [8, 1123], strides = [1, 1]} : vector<8x1193xf32> to vector<8x1123xf32>
    %31 = vector.extract_strided_slice %3 {offsets = [0, 2], sizes = [8, 1123], strides = [1, 1]} : vector<8x1193xf32> to vector<8x1123xf32>
    %32 = vector.extract_strided_slice %3 {offsets = [0, 34], sizes = [8, 1123], strides = [1, 1]} : vector<8x1193xf32> to vector<8x1123xf32>
    %33 = vector.extract_strided_slice %3 {offsets = [0, 35], sizes = [8, 1123], strides = [1, 1]} : vector<8x1193xf32> to vector<8x1123xf32>
    %34 = vector.extract_strided_slice %3 {offsets = [0, 36], sizes = [8, 1123], strides = [1, 1]} : vector<8x1193xf32> to vector<8x1123xf32>
    %35 = vector.extract_strided_slice %3 {offsets = [0, 68], sizes = [8, 1123], strides = [1, 1]} : vector<8x1193xf32> to vector<8x1123xf32>
    %36 = vector.extract_strided_slice %3 {offsets = [0, 69], sizes = [8, 1123], strides = [1, 1]} : vector<8x1193xf32> to vector<8x1123xf32>
    %37 = vector.extract_strided_slice %3 {offsets = [0, 70], sizes = [8, 1123], strides = [1, 1]} : vector<8x1193xf32> to vector<8x1123xf32>
    %38 = tpu.concatenate %29, %30, %31, %32, %33, %34, %35, %36, %37 in 0 : vector<8x1123xf32>, vector<8x1123xf32>, vector<8x1123xf32>, vector<8x1123xf32>, vector<8x1123xf32>, vector<8x1123xf32>, vector<8x1123xf32>, vector<8x1123xf32>, vector<8x1123xf32> -> vector<72x1123xf32>
    %39 = arith.truncf %38 : vector<72x1123xf32> to vector<72x1123xbf16>
    %c0_9 = arith.constant 0 : index
    %c0_10 = arith.constant 0 : index
    %40 = vector.load %arg2[%c0_9, %c0_10] : memref<8x72xbf16, #tpu.memory_space<vmem>>, vector<8x72xbf16>
    %cst_11 = arith.constant dense<0.000000e+00> : vector<8x1123xf32>
    %41 = tpu.matmul %40, %39, %cst_11 {dimension_numbers = #tpu.dot_dimension_numbers<[1], [0], [0], [1], [0, 0, 1, 1], [], []>} : vector<8x72xbf16>, vector<72x1123xbf16>, vector<8x1123xf32> -> vector<8x1123xf32>
    %c0_12 = arith.constant 0 : index
    %c0_13 = arith.constant 0 : index
    %42 = vector.load %arg3[%c0_12, %c0_13] : memref<8x1xf32, #tpu.memory_space<vmem>>, vector<8x1xf32>
    %43 = vector.broadcast %42 : vector<8x1xf32> to vector<8x1123xf32>
    %44 = arith.addf %41, %43 : vector<8x1123xf32>
    %cst_14 = arith.constant 0.000000e+00 : f32
    %45 = vector.broadcast %cst_14 : f32 to vector<8x1123xf32>
    %46 = arith.maximumf %44, %45 : vector<8x1123xf32>
    %47 = vector.extract_strided_slice %46 {offsets = [0, 0], sizes = [8, 1088], strides = [1, 1]} : vector<8x1123xf32> to vector<8x1088xf32>
    %48 = vector.extract_strided_slice %46 {offsets = [0, 1], sizes = [8, 1088], strides = [1, 1]} : vector<8x1123xf32> to vector<8x1088xf32>
    %49 = arith.maximumf %47, %48 : vector<8x1088xf32>
    %50 = vector.extract_strided_slice %46 {offsets = [0, 34], sizes = [8, 1088], strides = [1, 1]} : vector<8x1123xf32> to vector<8x1088xf32>
    %51 = vector.extract_strided_slice %46 {offsets = [0, 35], sizes = [8, 1088], strides = [1, 1]} : vector<8x1123xf32> to vector<8x1088xf32>
    %52 = arith.maximumf %50, %51 : vector<8x1088xf32>
    %53 = arith.maximumf %49, %52 : vector<8x1088xf32>
    %54 = tpu.concatenate %28, %53 in 0 : vector<8x1088xf32>, vector<8x1088xf32> -> vector<16x1088xf32>
    %55 = arith.truncf %54 : vector<16x1088xf32> to vector<16x1088xbf16>
    %c0_15 = arith.constant 0 : index
    %c0_16 = arith.constant 0 : index
    %56 = vector.load %arg4[%c0_15, %c0_16] : memref<1088x345xbf16, #tpu.memory_space<vmem>>, vector<1088x345xbf16>
    %cst_17 = arith.constant dense<0.000000e+00> : vector<16x345xf32>
    %57 = tpu.matmul %55, %56, %cst_17 {dimension_numbers = #tpu.dot_dimension_numbers<[1], [0], [0], [1], [0, 0, 1, 1], [], []>} : vector<16x1088xbf16>, vector<1088x345xbf16>, vector<16x345xf32> -> vector<16x345xf32>
    %58 = vector.extract_strided_slice %57 {offsets = [0, 0], sizes = [8, 345], strides = [1, 1]} : vector<16x345xf32> to vector<8x345xf32>
    %59 = vector.extract_strided_slice %57 {offsets = [8, 0], sizes = [8, 345], strides = [1, 1]} : vector<16x345xf32> to vector<8x345xf32>
    %60 = vector.extract_strided_slice %58 {offsets = [0, 0], sizes = [8, 307], strides = [1, 1]} : vector<8x345xf32> to vector<8x307xf32>
    %61 = vector.extract_strided_slice %58 {offsets = [0, 1], sizes = [8, 307], strides = [1, 1]} : vector<8x345xf32> to vector<8x307xf32>
    %62 = vector.extract_strided_slice %58 {offsets = [0, 2], sizes = [8, 307], strides = [1, 1]} : vector<8x345xf32> to vector<8x307xf32>
    %63 = vector.extract_strided_slice %58 {offsets = [0, 18], sizes = [8, 307], strides = [1, 1]} : vector<8x345xf32> to vector<8x307xf32>
    %64 = vector.extract_strided_slice %58 {offsets = [0, 19], sizes = [8, 307], strides = [1, 1]} : vector<8x345xf32> to vector<8x307xf32>
    %65 = vector.extract_strided_slice %58 {offsets = [0, 20], sizes = [8, 307], strides = [1, 1]} : vector<8x345xf32> to vector<8x307xf32>
    %66 = vector.extract_strided_slice %58 {offsets = [0, 36], sizes = [8, 307], strides = [1, 1]} : vector<8x345xf32> to vector<8x307xf32>
    %67 = vector.extract_strided_slice %58 {offsets = [0, 37], sizes = [8, 307], strides = [1, 1]} : vector<8x345xf32> to vector<8x307xf32>
    %68 = vector.extract_strided_slice %58 {offsets = [0, 38], sizes = [8, 307], strides = [1, 1]} : vector<8x345xf32> to vector<8x307xf32>
    %69 = tpu.concatenate %60, %61, %62, %63, %64, %65, %66, %67, %68 in 0 : vector<8x307xf32>, vector<8x307xf32>, vector<8x307xf32>, vector<8x307xf32>, vector<8x307xf32>, vector<8x307xf32>, vector<8x307xf32>, vector<8x307xf32>, vector<8x307xf32> -> vector<72x307xf32>
    %70 = arith.truncf %69 : vector<72x307xf32> to vector<72x307xbf16>
    %c0_18 = arith.constant 0 : index
    %c0_19 = arith.constant 0 : index
    %71 = vector.load %arg5[%c0_18, %c0_19] : memref<16x72xbf16, #tpu.memory_space<vmem>>, vector<16x72xbf16>
    %cst_20 = arith.constant dense<0.000000e+00> : vector<16x307xf32>
    %72 = tpu.matmul %71, %70, %cst_20 {dimension_numbers = #tpu.dot_dimension_numbers<[1], [0], [0], [1], [0, 0, 1, 1], [], []>} : vector<16x72xbf16>, vector<72x307xbf16>, vector<16x307xf32> -> vector<16x307xf32>
    %c0_21 = arith.constant 0 : index
    %c0_22 = arith.constant 0 : index
    %73 = vector.load %arg6[%c0_21, %c0_22] : memref<16x1xf32, #tpu.memory_space<vmem>>, vector<16x1xf32>
    %74 = vector.broadcast %73 : vector<16x1xf32> to vector<16x307xf32>
    %75 = arith.addf %72, %74 : vector<16x307xf32>
    %cst_23 = arith.constant 0.000000e+00 : f32
    %76 = vector.broadcast %cst_23 : f32 to vector<16x307xf32>
    %77 = arith.maximumf %75, %76 : vector<16x307xf32>
    %78 = vector.extract_strided_slice %77 {offsets = [0, 0], sizes = [16, 288], strides = [1, 1]} : vector<16x307xf32> to vector<16x288xf32>
    %79 = vector.extract_strided_slice %77 {offsets = [0, 1], sizes = [16, 288], strides = [1, 1]} : vector<16x307xf32> to vector<16x288xf32>
    %80 = arith.maximumf %78, %79 : vector<16x288xf32>
    %81 = vector.extract_strided_slice %77 {offsets = [0, 18], sizes = [16, 288], strides = [1, 1]} : vector<16x307xf32> to vector<16x288xf32>
    %82 = vector.extract_strided_slice %77 {offsets = [0, 19], sizes = [16, 288], strides = [1, 1]} : vector<16x307xf32> to vector<16x288xf32>
    %83 = arith.maximumf %81, %82 : vector<16x288xf32>
    %84 = arith.maximumf %80, %83 : vector<16x288xf32>
    %85 = vector.extract_strided_slice %59 {offsets = [0, 0], sizes = [8, 307], strides = [1, 1]} : vector<8x345xf32> to vector<8x307xf32>
    %86 = vector.extract_strided_slice %59 {offsets = [0, 1], sizes = [8, 307], strides = [1, 1]} : vector<8x345xf32> to vector<8x307xf32>
    %87 = vector.extract_strided_slice %59 {offsets = [0, 2], sizes = [8, 307], strides = [1, 1]} : vector<8x345xf32> to vector<8x307xf32>
    %88 = vector.extract_strided_slice %59 {offsets = [0, 18], sizes = [8, 307], strides = [1, 1]} : vector<8x345xf32> to vector<8x307xf32>
    %89 = vector.extract_strided_slice %59 {offsets = [0, 19], sizes = [8, 307], strides = [1, 1]} : vector<8x345xf32> to vector<8x307xf32>
    %90 = vector.extract_strided_slice %59 {offsets = [0, 20], sizes = [8, 307], strides = [1, 1]} : vector<8x345xf32> to vector<8x307xf32>
    %91 = vector.extract_strided_slice %59 {offsets = [0, 36], sizes = [8, 307], strides = [1, 1]} : vector<8x345xf32> to vector<8x307xf32>
    %92 = vector.extract_strided_slice %59 {offsets = [0, 37], sizes = [8, 307], strides = [1, 1]} : vector<8x345xf32> to vector<8x307xf32>
    %93 = vector.extract_strided_slice %59 {offsets = [0, 38], sizes = [8, 307], strides = [1, 1]} : vector<8x345xf32> to vector<8x307xf32>
    %94 = tpu.concatenate %85, %86, %87, %88, %89, %90, %91, %92, %93 in 0 : vector<8x307xf32>, vector<8x307xf32>, vector<8x307xf32>, vector<8x307xf32>, vector<8x307xf32>, vector<8x307xf32>, vector<8x307xf32>, vector<8x307xf32>, vector<8x307xf32> -> vector<72x307xf32>
    %95 = arith.truncf %94 : vector<72x307xf32> to vector<72x307xbf16>
    %c0_24 = arith.constant 0 : index
    %c0_25 = arith.constant 0 : index
    %96 = vector.load %arg5[%c0_24, %c0_25] : memref<16x72xbf16, #tpu.memory_space<vmem>>, vector<16x72xbf16>
    %cst_26 = arith.constant dense<0.000000e+00> : vector<16x307xf32>
    %97 = tpu.matmul %96, %95, %cst_26 {dimension_numbers = #tpu.dot_dimension_numbers<[1], [0], [0], [1], [0, 0, 1, 1], [], []>} : vector<16x72xbf16>, vector<72x307xbf16>, vector<16x307xf32> -> vector<16x307xf32>
    %c0_27 = arith.constant 0 : index
    %c0_28 = arith.constant 0 : index
    %98 = vector.load %arg6[%c0_27, %c0_28] : memref<16x1xf32, #tpu.memory_space<vmem>>, vector<16x1xf32>
    %99 = vector.broadcast %98 : vector<16x1xf32> to vector<16x307xf32>
    %100 = arith.addf %97, %99 : vector<16x307xf32>
    %cst_29 = arith.constant 0.000000e+00 : f32
    %101 = vector.broadcast %cst_29 : f32 to vector<16x307xf32>
    %102 = arith.maximumf %100, %101 : vector<16x307xf32>
    %103 = vector.extract_strided_slice %102 {offsets = [0, 0], sizes = [16, 288], strides = [1, 1]} : vector<16x307xf32> to vector<16x288xf32>
    %104 = vector.extract_strided_slice %102 {offsets = [0, 1], sizes = [16, 288], strides = [1, 1]} : vector<16x307xf32> to vector<16x288xf32>
    %105 = arith.maximumf %103, %104 : vector<16x288xf32>
    %106 = vector.extract_strided_slice %102 {offsets = [0, 18], sizes = [16, 288], strides = [1, 1]} : vector<16x307xf32> to vector<16x288xf32>
    %107 = vector.extract_strided_slice %102 {offsets = [0, 19], sizes = [16, 288], strides = [1, 1]} : vector<16x307xf32> to vector<16x288xf32>
    %108 = arith.maximumf %106, %107 : vector<16x288xf32>
    %109 = arith.maximumf %105, %108 : vector<16x288xf32>
    %110 = tpu.concatenate %84, %109 in 0 : vector<16x288xf32>, vector<16x288xf32> -> vector<32x288xf32>
    %111 = arith.truncf %110 : vector<32x288xf32> to vector<32x288xbf16>
    %c0_30 = arith.constant 0 : index
    %c0_31 = arith.constant 0 : index
    %112 = vector.load %arg7[%c0_30, %c0_31] : memref<288x113xbf16, #tpu.memory_space<vmem>>, vector<288x113xbf16>
    %cst_32 = arith.constant dense<0.000000e+00> : vector<32x113xf32>
    %113 = tpu.matmul %111, %112, %cst_32 {dimension_numbers = #tpu.dot_dimension_numbers<[1], [0], [0], [1], [0, 0, 1, 1], [], []>} : vector<32x288xbf16>, vector<288x113xbf16>, vector<32x113xf32> -> vector<32x113xf32>
    %114 = vector.extract_strided_slice %113 {offsets = [0, 0], sizes = [16, 113], strides = [1, 1]} : vector<32x113xf32> to vector<16x113xf32>
    %115 = vector.extract_strided_slice %113 {offsets = [16, 0], sizes = [16, 113], strides = [1, 1]} : vector<32x113xf32> to vector<16x113xf32>
    %116 = vector.extract_strided_slice %114 {offsets = [0, 0], sizes = [16, 91], strides = [1, 1]} : vector<16x113xf32> to vector<16x91xf32>
    %117 = vector.extract_strided_slice %114 {offsets = [0, 1], sizes = [16, 91], strides = [1, 1]} : vector<16x113xf32> to vector<16x91xf32>
    %118 = vector.extract_strided_slice %114 {offsets = [0, 2], sizes = [16, 91], strides = [1, 1]} : vector<16x113xf32> to vector<16x91xf32>
    %119 = vector.extract_strided_slice %114 {offsets = [0, 10], sizes = [16, 91], strides = [1, 1]} : vector<16x113xf32> to vector<16x91xf32>
    %120 = vector.extract_strided_slice %114 {offsets = [0, 11], sizes = [16, 91], strides = [1, 1]} : vector<16x113xf32> to vector<16x91xf32>
    %121 = vector.extract_strided_slice %114 {offsets = [0, 12], sizes = [16, 91], strides = [1, 1]} : vector<16x113xf32> to vector<16x91xf32>
    %122 = vector.extract_strided_slice %114 {offsets = [0, 20], sizes = [16, 91], strides = [1, 1]} : vector<16x113xf32> to vector<16x91xf32>
    %123 = vector.extract_strided_slice %114 {offsets = [0, 21], sizes = [16, 91], strides = [1, 1]} : vector<16x113xf32> to vector<16x91xf32>
    %124 = vector.extract_strided_slice %114 {offsets = [0, 22], sizes = [16, 91], strides = [1, 1]} : vector<16x113xf32> to vector<16x91xf32>
    %125 = tpu.concatenate %116, %117, %118, %119, %120, %121, %122, %123, %124 in 0 : vector<16x91xf32>, vector<16x91xf32>, vector<16x91xf32>, vector<16x91xf32>, vector<16x91xf32>, vector<16x91xf32>, vector<16x91xf32>, vector<16x91xf32>, vector<16x91xf32> -> vector<144x91xf32>
    %126 = arith.truncf %125 : vector<144x91xf32> to vector<144x91xbf16>
    %c0_33 = arith.constant 0 : index
    %c0_34 = arith.constant 0 : index
    %127 = vector.load %arg8[%c0_33, %c0_34] : memref<32x144xbf16, #tpu.memory_space<vmem>>, vector<32x144xbf16>
    %cst_35 = arith.constant dense<0.000000e+00> : vector<32x91xf32>
    %128 = tpu.matmul %127, %126, %cst_35 {dimension_numbers = #tpu.dot_dimension_numbers<[1], [0], [0], [1], [0, 0, 1, 1], [], []>} : vector<32x144xbf16>, vector<144x91xbf16>, vector<32x91xf32> -> vector<32x91xf32>
    %c0_36 = arith.constant 0 : index
    %c0_37 = arith.constant 0 : index
    %129 = vector.load %arg9[%c0_36, %c0_37] : memref<32x1xf32, #tpu.memory_space<vmem>>, vector<32x1xf32>
    %130 = vector.broadcast %129 : vector<32x1xf32> to vector<32x91xf32>
    %131 = arith.addf %128, %130 : vector<32x91xf32>
    %cst_38 = arith.constant 0.000000e+00 : f32
    %132 = vector.broadcast %cst_38 : f32 to vector<32x91xf32>
    %133 = arith.maximumf %131, %132 : vector<32x91xf32>
    %134 = vector.extract_strided_slice %133 {offsets = [0, 0], sizes = [32, 80], strides = [1, 1]} : vector<32x91xf32> to vector<32x80xf32>
    %135 = vector.extract_strided_slice %133 {offsets = [0, 1], sizes = [32, 80], strides = [1, 1]} : vector<32x91xf32> to vector<32x80xf32>
    %136 = arith.maximumf %134, %135 : vector<32x80xf32>
    %137 = vector.extract_strided_slice %133 {offsets = [0, 10], sizes = [32, 80], strides = [1, 1]} : vector<32x91xf32> to vector<32x80xf32>
    %138 = vector.extract_strided_slice %133 {offsets = [0, 11], sizes = [32, 80], strides = [1, 1]} : vector<32x91xf32> to vector<32x80xf32>
    %139 = arith.maximumf %137, %138 : vector<32x80xf32>
    %140 = arith.maximumf %136, %139 : vector<32x80xf32>
    %141 = vector.extract_strided_slice %115 {offsets = [0, 0], sizes = [16, 91], strides = [1, 1]} : vector<16x113xf32> to vector<16x91xf32>
    %142 = vector.extract_strided_slice %115 {offsets = [0, 1], sizes = [16, 91], strides = [1, 1]} : vector<16x113xf32> to vector<16x91xf32>
    %143 = vector.extract_strided_slice %115 {offsets = [0, 2], sizes = [16, 91], strides = [1, 1]} : vector<16x113xf32> to vector<16x91xf32>
    %144 = vector.extract_strided_slice %115 {offsets = [0, 10], sizes = [16, 91], strides = [1, 1]} : vector<16x113xf32> to vector<16x91xf32>
    %145 = vector.extract_strided_slice %115 {offsets = [0, 11], sizes = [16, 91], strides = [1, 1]} : vector<16x113xf32> to vector<16x91xf32>
    %146 = vector.extract_strided_slice %115 {offsets = [0, 12], sizes = [16, 91], strides = [1, 1]} : vector<16x113xf32> to vector<16x91xf32>
    %147 = vector.extract_strided_slice %115 {offsets = [0, 20], sizes = [16, 91], strides = [1, 1]} : vector<16x113xf32> to vector<16x91xf32>
    %148 = vector.extract_strided_slice %115 {offsets = [0, 21], sizes = [16, 91], strides = [1, 1]} : vector<16x113xf32> to vector<16x91xf32>
    %149 = vector.extract_strided_slice %115 {offsets = [0, 22], sizes = [16, 91], strides = [1, 1]} : vector<16x113xf32> to vector<16x91xf32>
    %150 = tpu.concatenate %141, %142, %143, %144, %145, %146, %147, %148, %149 in 0 : vector<16x91xf32>, vector<16x91xf32>, vector<16x91xf32>, vector<16x91xf32>, vector<16x91xf32>, vector<16x91xf32>, vector<16x91xf32>, vector<16x91xf32>, vector<16x91xf32> -> vector<144x91xf32>
    %151 = arith.truncf %150 : vector<144x91xf32> to vector<144x91xbf16>
    %c0_39 = arith.constant 0 : index
    %c0_40 = arith.constant 0 : index
    %152 = vector.load %arg8[%c0_39, %c0_40] : memref<32x144xbf16, #tpu.memory_space<vmem>>, vector<32x144xbf16>
    %cst_41 = arith.constant dense<0.000000e+00> : vector<32x91xf32>
    %153 = tpu.matmul %152, %151, %cst_41 {dimension_numbers = #tpu.dot_dimension_numbers<[1], [0], [0], [1], [0, 0, 1, 1], [], []>} : vector<32x144xbf16>, vector<144x91xbf16>, vector<32x91xf32> -> vector<32x91xf32>
    %c0_42 = arith.constant 0 : index
    %c0_43 = arith.constant 0 : index
    %154 = vector.load %arg9[%c0_42, %c0_43] : memref<32x1xf32, #tpu.memory_space<vmem>>, vector<32x1xf32>
    %155 = vector.broadcast %154 : vector<32x1xf32> to vector<32x91xf32>
    %156 = arith.addf %153, %155 : vector<32x91xf32>
    %cst_44 = arith.constant 0.000000e+00 : f32
    %157 = vector.broadcast %cst_44 : f32 to vector<32x91xf32>
    %158 = arith.maximumf %156, %157 : vector<32x91xf32>
    %159 = vector.extract_strided_slice %158 {offsets = [0, 0], sizes = [32, 80], strides = [1, 1]} : vector<32x91xf32> to vector<32x80xf32>
    %160 = vector.extract_strided_slice %158 {offsets = [0, 1], sizes = [32, 80], strides = [1, 1]} : vector<32x91xf32> to vector<32x80xf32>
    %161 = arith.maximumf %159, %160 : vector<32x80xf32>
    %162 = vector.extract_strided_slice %158 {offsets = [0, 10], sizes = [32, 80], strides = [1, 1]} : vector<32x91xf32> to vector<32x80xf32>
    %163 = vector.extract_strided_slice %158 {offsets = [0, 11], sizes = [32, 80], strides = [1, 1]} : vector<32x91xf32> to vector<32x80xf32>
    %164 = arith.maximumf %162, %163 : vector<32x80xf32>
    %165 = arith.maximumf %161, %164 : vector<32x80xf32>
    %166 = tpu.concatenate %140, %165 in 0 : vector<32x80xf32>, vector<32x80xf32> -> vector<64x80xf32>
    %167 = arith.truncf %166 : vector<64x80xf32> to vector<64x80xbf16>
    %c0_45 = arith.constant 0 : index
    %c0_46 = arith.constant 0 : index
    %168 = vector.load %arg10[%c0_45, %c0_46] : memref<80x45xbf16, #tpu.memory_space<vmem>>, vector<80x45xbf16>
    %cst_47 = arith.constant dense<0.000000e+00> : vector<64x45xf32>
    %169 = tpu.matmul %167, %168, %cst_47 {dimension_numbers = #tpu.dot_dimension_numbers<[1], [0], [0], [1], [0, 0, 1, 1], [], []>} : vector<64x80xbf16>, vector<80x45xbf16>, vector<64x45xf32> -> vector<64x45xf32>
    %170 = vector.extract_strided_slice %169 {offsets = [0, 0], sizes = [32, 45], strides = [1, 1]} : vector<64x45xf32> to vector<32x45xf32>
    %171 = vector.extract_strided_slice %169 {offsets = [32, 0], sizes = [32, 45], strides = [1, 1]} : vector<64x45xf32> to vector<32x45xf32>
    %172 = vector.extract_strided_slice %170 {offsets = [0, 0], sizes = [32, 31], strides = [1, 1]} : vector<32x45xf32> to vector<32x31xf32>
    %173 = vector.extract_strided_slice %170 {offsets = [0, 1], sizes = [32, 31], strides = [1, 1]} : vector<32x45xf32> to vector<32x31xf32>
    %174 = vector.extract_strided_slice %170 {offsets = [0, 2], sizes = [32, 31], strides = [1, 1]} : vector<32x45xf32> to vector<32x31xf32>
    %175 = vector.extract_strided_slice %170 {offsets = [0, 6], sizes = [32, 31], strides = [1, 1]} : vector<32x45xf32> to vector<32x31xf32>
    %176 = vector.extract_strided_slice %170 {offsets = [0, 7], sizes = [32, 31], strides = [1, 1]} : vector<32x45xf32> to vector<32x31xf32>
    %177 = vector.extract_strided_slice %170 {offsets = [0, 8], sizes = [32, 31], strides = [1, 1]} : vector<32x45xf32> to vector<32x31xf32>
    %178 = vector.extract_strided_slice %170 {offsets = [0, 12], sizes = [32, 31], strides = [1, 1]} : vector<32x45xf32> to vector<32x31xf32>
    %179 = vector.extract_strided_slice %170 {offsets = [0, 13], sizes = [32, 31], strides = [1, 1]} : vector<32x45xf32> to vector<32x31xf32>
    %180 = vector.extract_strided_slice %170 {offsets = [0, 14], sizes = [32, 31], strides = [1, 1]} : vector<32x45xf32> to vector<32x31xf32>
    %181 = tpu.concatenate %172, %173, %174, %175, %176, %177, %178, %179, %180 in 0 : vector<32x31xf32>, vector<32x31xf32>, vector<32x31xf32>, vector<32x31xf32>, vector<32x31xf32>, vector<32x31xf32>, vector<32x31xf32>, vector<32x31xf32>, vector<32x31xf32> -> vector<288x31xf32>
    %182 = arith.truncf %181 : vector<288x31xf32> to vector<288x31xbf16>
    %c0_48 = arith.constant 0 : index
    %c0_49 = arith.constant 0 : index
    %183 = vector.load %arg11[%c0_48, %c0_49] : memref<64x288xbf16, #tpu.memory_space<vmem>>, vector<64x288xbf16>
    %cst_50 = arith.constant dense<0.000000e+00> : vector<64x31xf32>
    %184 = tpu.matmul %183, %182, %cst_50 {dimension_numbers = #tpu.dot_dimension_numbers<[1], [0], [0], [1], [0, 0, 1, 1], [], []>} : vector<64x288xbf16>, vector<288x31xbf16>, vector<64x31xf32> -> vector<64x31xf32>
    %c0_51 = arith.constant 0 : index
    %c0_52 = arith.constant 0 : index
    %185 = vector.load %arg12[%c0_51, %c0_52] : memref<64x1xf32, #tpu.memory_space<vmem>>, vector<64x1xf32>
    %186 = vector.broadcast %185 : vector<64x1xf32> to vector<64x31xf32>
    %187 = arith.addf %184, %186 : vector<64x31xf32>
    %cst_53 = arith.constant 0.000000e+00 : f32
    %188 = vector.broadcast %cst_53 : f32 to vector<64x31xf32>
    %189 = arith.maximumf %187, %188 : vector<64x31xf32>
    %190 = vector.extract_strided_slice %189 {offsets = [0, 0], sizes = [64, 24], strides = [1, 1]} : vector<64x31xf32> to vector<64x24xf32>
    %191 = vector.extract_strided_slice %189 {offsets = [0, 1], sizes = [64, 24], strides = [1, 1]} : vector<64x31xf32> to vector<64x24xf32>
    %192 = arith.maximumf %190, %191 : vector<64x24xf32>
    %193 = vector.extract_strided_slice %189 {offsets = [0, 6], sizes = [64, 24], strides = [1, 1]} : vector<64x31xf32> to vector<64x24xf32>
    %194 = vector.extract_strided_slice %189 {offsets = [0, 7], sizes = [64, 24], strides = [1, 1]} : vector<64x31xf32> to vector<64x24xf32>
    %195 = arith.maximumf %193, %194 : vector<64x24xf32>
    %196 = arith.maximumf %192, %195 : vector<64x24xf32>
    %197 = vector.extract_strided_slice %171 {offsets = [0, 0], sizes = [32, 31], strides = [1, 1]} : vector<32x45xf32> to vector<32x31xf32>
    %198 = vector.extract_strided_slice %171 {offsets = [0, 1], sizes = [32, 31], strides = [1, 1]} : vector<32x45xf32> to vector<32x31xf32>
    %199 = vector.extract_strided_slice %171 {offsets = [0, 2], sizes = [32, 31], strides = [1, 1]} : vector<32x45xf32> to vector<32x31xf32>
    %200 = vector.extract_strided_slice %171 {offsets = [0, 6], sizes = [32, 31], strides = [1, 1]} : vector<32x45xf32> to vector<32x31xf32>
    %201 = vector.extract_strided_slice %171 {offsets = [0, 7], sizes = [32, 31], strides = [1, 1]} : vector<32x45xf32> to vector<32x31xf32>
    %202 = vector.extract_strided_slice %171 {offsets = [0, 8], sizes = [32, 31], strides = [1, 1]} : vector<32x45xf32> to vector<32x31xf32>
    %203 = vector.extract_strided_slice %171 {offsets = [0, 12], sizes = [32, 31], strides = [1, 1]} : vector<32x45xf32> to vector<32x31xf32>
    %204 = vector.extract_strided_slice %171 {offsets = [0, 13], sizes = [32, 31], strides = [1, 1]} : vector<32x45xf32> to vector<32x31xf32>
    %205 = vector.extract_strided_slice %171 {offsets = [0, 14], sizes = [32, 31], strides = [1, 1]} : vector<32x45xf32> to vector<32x31xf32>
    %206 = tpu.concatenate %197, %198, %199, %200, %201, %202, %203, %204, %205 in 0 : vector<32x31xf32>, vector<32x31xf32>, vector<32x31xf32>, vector<32x31xf32>, vector<32x31xf32>, vector<32x31xf32>, vector<32x31xf32>, vector<32x31xf32>, vector<32x31xf32> -> vector<288x31xf32>
    %207 = arith.truncf %206 : vector<288x31xf32> to vector<288x31xbf16>
    %c0_54 = arith.constant 0 : index
    %c0_55 = arith.constant 0 : index
    %208 = vector.load %arg11[%c0_54, %c0_55] : memref<64x288xbf16, #tpu.memory_space<vmem>>, vector<64x288xbf16>
    %cst_56 = arith.constant dense<0.000000e+00> : vector<64x31xf32>
    %209 = tpu.matmul %208, %207, %cst_56 {dimension_numbers = #tpu.dot_dimension_numbers<[1], [0], [0], [1], [0, 0, 1, 1], [], []>} : vector<64x288xbf16>, vector<288x31xbf16>, vector<64x31xf32> -> vector<64x31xf32>
    %c0_57 = arith.constant 0 : index
    %c0_58 = arith.constant 0 : index
    %210 = vector.load %arg12[%c0_57, %c0_58] : memref<64x1xf32, #tpu.memory_space<vmem>>, vector<64x1xf32>
    %211 = vector.broadcast %210 : vector<64x1xf32> to vector<64x31xf32>
    %212 = arith.addf %209, %211 : vector<64x31xf32>
    %cst_59 = arith.constant 0.000000e+00 : f32
    %213 = vector.broadcast %cst_59 : f32 to vector<64x31xf32>
    %214 = arith.maximumf %212, %213 : vector<64x31xf32>
    %215 = vector.extract_strided_slice %214 {offsets = [0, 0], sizes = [64, 24], strides = [1, 1]} : vector<64x31xf32> to vector<64x24xf32>
    %216 = vector.extract_strided_slice %214 {offsets = [0, 1], sizes = [64, 24], strides = [1, 1]} : vector<64x31xf32> to vector<64x24xf32>
    %217 = arith.maximumf %215, %216 : vector<64x24xf32>
    %218 = vector.extract_strided_slice %214 {offsets = [0, 6], sizes = [64, 24], strides = [1, 1]} : vector<64x31xf32> to vector<64x24xf32>
    %219 = vector.extract_strided_slice %214 {offsets = [0, 7], sizes = [64, 24], strides = [1, 1]} : vector<64x31xf32> to vector<64x24xf32>
    %220 = arith.maximumf %218, %219 : vector<64x24xf32>
    %221 = arith.maximumf %217, %220 : vector<64x24xf32>
    %222 = tpu.concatenate %196, %221 in 0 : vector<64x24xf32>, vector<64x24xf32> -> vector<128x24xf32>
    %223 = arith.truncf %222 : vector<128x24xf32> to vector<128x24xbf16>
    %c0_60 = arith.constant 0 : index
    %c0_61 = arith.constant 0 : index
    %224 = vector.load %arg13[%c0_60, %c0_61] : memref<24x23xbf16, #tpu.memory_space<vmem>>, vector<24x23xbf16>
    %cst_62 = arith.constant dense<0.000000e+00> : vector<128x23xf32>
    %225 = tpu.matmul %223, %224, %cst_62 {dimension_numbers = #tpu.dot_dimension_numbers<[1], [0], [0], [1], [0, 0, 1, 1], [], []>} : vector<128x24xbf16>, vector<24x23xbf16>, vector<128x23xf32> -> vector<128x23xf32>
    %226 = vector.extract_strided_slice %225 {offsets = [0, 0], sizes = [64, 23], strides = [1, 1]} : vector<128x23xf32> to vector<64x23xf32>
    %227 = vector.extract_strided_slice %225 {offsets = [64, 0], sizes = [64, 23], strides = [1, 1]} : vector<128x23xf32> to vector<64x23xf32>
    %228 = vector.extract_strided_slice %226 {offsets = [0, 0], sizes = [64, 13], strides = [1, 1]} : vector<64x23xf32> to vector<64x13xf32>
    %229 = vector.extract_strided_slice %226 {offsets = [0, 1], sizes = [64, 13], strides = [1, 1]} : vector<64x23xf32> to vector<64x13xf32>
    %230 = vector.extract_strided_slice %226 {offsets = [0, 2], sizes = [64, 13], strides = [1, 1]} : vector<64x23xf32> to vector<64x13xf32>
    %231 = vector.extract_strided_slice %226 {offsets = [0, 4], sizes = [64, 13], strides = [1, 1]} : vector<64x23xf32> to vector<64x13xf32>
    %232 = vector.extract_strided_slice %226 {offsets = [0, 5], sizes = [64, 13], strides = [1, 1]} : vector<64x23xf32> to vector<64x13xf32>
    %233 = vector.extract_strided_slice %226 {offsets = [0, 6], sizes = [64, 13], strides = [1, 1]} : vector<64x23xf32> to vector<64x13xf32>
    %234 = vector.extract_strided_slice %226 {offsets = [0, 8], sizes = [64, 13], strides = [1, 1]} : vector<64x23xf32> to vector<64x13xf32>
    %235 = vector.extract_strided_slice %226 {offsets = [0, 9], sizes = [64, 13], strides = [1, 1]} : vector<64x23xf32> to vector<64x13xf32>
    %236 = vector.extract_strided_slice %226 {offsets = [0, 10], sizes = [64, 13], strides = [1, 1]} : vector<64x23xf32> to vector<64x13xf32>
    %237 = tpu.concatenate %228, %229, %230, %231, %232, %233, %234, %235, %236 in 0 : vector<64x13xf32>, vector<64x13xf32>, vector<64x13xf32>, vector<64x13xf32>, vector<64x13xf32>, vector<64x13xf32>, vector<64x13xf32>, vector<64x13xf32>, vector<64x13xf32> -> vector<576x13xf32>
    %238 = arith.truncf %237 : vector<576x13xf32> to vector<576x13xbf16>
    %c0_63 = arith.constant 0 : index
    %c0_64 = arith.constant 0 : index
    %239 = vector.load %arg14[%c0_63, %c0_64] : memref<128x576xbf16, #tpu.memory_space<vmem>>, vector<128x576xbf16>
    %cst_65 = arith.constant dense<0.000000e+00> : vector<128x13xf32>
    %240 = tpu.matmul %239, %238, %cst_65 {dimension_numbers = #tpu.dot_dimension_numbers<[1], [0], [0], [1], [0, 0, 1, 1], [], []>} : vector<128x576xbf16>, vector<576x13xbf16>, vector<128x13xf32> -> vector<128x13xf32>
    %c0_66 = arith.constant 0 : index
    %c0_67 = arith.constant 0 : index
    %241 = vector.load %arg15[%c0_66, %c0_67] : memref<128x1xf32, #tpu.memory_space<vmem>>, vector<128x1xf32>
    %242 = vector.broadcast %241 : vector<128x1xf32> to vector<128x13xf32>
    %243 = arith.addf %240, %242 : vector<128x13xf32>
    %cst_68 = arith.constant 0.000000e+00 : f32
    %244 = vector.broadcast %cst_68 : f32 to vector<128x13xf32>
    %245 = arith.maximumf %243, %244 : vector<128x13xf32>
    %246 = vector.extract_strided_slice %245 {offsets = [0, 0], sizes = [128, 8], strides = [1, 1]} : vector<128x13xf32> to vector<128x8xf32>
    %247 = vector.extract_strided_slice %245 {offsets = [0, 1], sizes = [128, 8], strides = [1, 1]} : vector<128x13xf32> to vector<128x8xf32>
    %248 = arith.maximumf %246, %247 : vector<128x8xf32>
    %249 = vector.extract_strided_slice %245 {offsets = [0, 4], sizes = [128, 8], strides = [1, 1]} : vector<128x13xf32> to vector<128x8xf32>
    %250 = vector.extract_strided_slice %245 {offsets = [0, 5], sizes = [128, 8], strides = [1, 1]} : vector<128x13xf32> to vector<128x8xf32>
    %251 = arith.maximumf %249, %250 : vector<128x8xf32>
    %252 = arith.maximumf %248, %251 : vector<128x8xf32>
    %253 = vector.extract_strided_slice %227 {offsets = [0, 0], sizes = [64, 13], strides = [1, 1]} : vector<64x23xf32> to vector<64x13xf32>
    %254 = vector.extract_strided_slice %227 {offsets = [0, 1], sizes = [64, 13], strides = [1, 1]} : vector<64x23xf32> to vector<64x13xf32>
    %255 = vector.extract_strided_slice %227 {offsets = [0, 2], sizes = [64, 13], strides = [1, 1]} : vector<64x23xf32> to vector<64x13xf32>
    %256 = vector.extract_strided_slice %227 {offsets = [0, 4], sizes = [64, 13], strides = [1, 1]} : vector<64x23xf32> to vector<64x13xf32>
    %257 = vector.extract_strided_slice %227 {offsets = [0, 5], sizes = [64, 13], strides = [1, 1]} : vector<64x23xf32> to vector<64x13xf32>
    %258 = vector.extract_strided_slice %227 {offsets = [0, 6], sizes = [64, 13], strides = [1, 1]} : vector<64x23xf32> to vector<64x13xf32>
    %259 = vector.extract_strided_slice %227 {offsets = [0, 8], sizes = [64, 13], strides = [1, 1]} : vector<64x23xf32> to vector<64x13xf32>
    %260 = vector.extract_strided_slice %227 {offsets = [0, 9], sizes = [64, 13], strides = [1, 1]} : vector<64x23xf32> to vector<64x13xf32>
    %261 = vector.extract_strided_slice %227 {offsets = [0, 10], sizes = [64, 13], strides = [1, 1]} : vector<64x23xf32> to vector<64x13xf32>
    %262 = tpu.concatenate %253, %254, %255, %256, %257, %258, %259, %260, %261 in 0 : vector<64x13xf32>, vector<64x13xf32>, vector<64x13xf32>, vector<64x13xf32>, vector<64x13xf32>, vector<64x13xf32>, vector<64x13xf32>, vector<64x13xf32>, vector<64x13xf32> -> vector<576x13xf32>
    %263 = arith.truncf %262 : vector<576x13xf32> to vector<576x13xbf16>
    %c0_69 = arith.constant 0 : index
    %c0_70 = arith.constant 0 : index
    %264 = vector.load %arg14[%c0_69, %c0_70] : memref<128x576xbf16, #tpu.memory_space<vmem>>, vector<128x576xbf16>
    %cst_71 = arith.constant dense<0.000000e+00> : vector<128x13xf32>
    %265 = tpu.matmul %264, %263, %cst_71 {dimension_numbers = #tpu.dot_dimension_numbers<[1], [0], [0], [1], [0, 0, 1, 1], [], []>} : vector<128x576xbf16>, vector<576x13xbf16>, vector<128x13xf32> -> vector<128x13xf32>
    %c0_72 = arith.constant 0 : index
    %c0_73 = arith.constant 0 : index
    %266 = vector.load %arg15[%c0_72, %c0_73] : memref<128x1xf32, #tpu.memory_space<vmem>>, vector<128x1xf32>
    %267 = vector.broadcast %266 : vector<128x1xf32> to vector<128x13xf32>
    %268 = arith.addf %265, %267 : vector<128x13xf32>
    %cst_74 = arith.constant 0.000000e+00 : f32
    %269 = vector.broadcast %cst_74 : f32 to vector<128x13xf32>
    %270 = arith.maximumf %268, %269 : vector<128x13xf32>
    %271 = vector.extract_strided_slice %270 {offsets = [0, 0], sizes = [128, 8], strides = [1, 1]} : vector<128x13xf32> to vector<128x8xf32>
    %272 = vector.extract_strided_slice %270 {offsets = [0, 1], sizes = [128, 8], strides = [1, 1]} : vector<128x13xf32> to vector<128x8xf32>
    %273 = arith.maximumf %271, %272 : vector<128x8xf32>
    %274 = vector.extract_strided_slice %270 {offsets = [0, 4], sizes = [128, 8], strides = [1, 1]} : vector<128x13xf32> to vector<128x8xf32>
    %275 = vector.extract_strided_slice %270 {offsets = [0, 5], sizes = [128, 8], strides = [1, 1]} : vector<128x13xf32> to vector<128x8xf32>
    %276 = arith.maximumf %274, %275 : vector<128x8xf32>
    %277 = arith.maximumf %273, %276 : vector<128x8xf32>
    %278 = tpu.concatenate %252, %277 in 0 : vector<128x8xf32>, vector<128x8xf32> -> vector<256x8xf32>
    %279 = arith.truncf %278 : vector<256x8xf32> to vector<256x8xbf16>
    %c0_75 = arith.constant 0 : index
    %c0_76 = arith.constant 0 : index
    %280 = vector.load %arg16[%c0_75, %c0_76] : memref<8x1xbf16, #tpu.memory_space<vmem>>, vector<8x1xbf16>
    %cst_77 = arith.constant dense<0.000000e+00> : vector<256x1xf32>
    %281 = tpu.matmul %279, %280, %cst_77 {dimension_numbers = #tpu.dot_dimension_numbers<[1], [0], [0], [1], [0, 0, 1, 1], [], []>} : vector<256x8xbf16>, vector<8x1xbf16>, vector<256x1xf32> -> vector<256x1xf32>
    %282 = vector.extract_strided_slice %281 {offsets = [0, 0], sizes = [128, 1], strides = [1, 1]} : vector<256x1xf32> to vector<128x1xf32>
    %283 = vector.extract_strided_slice %281 {offsets = [128, 0], sizes = [128, 1], strides = [1, 1]} : vector<256x1xf32> to vector<128x1xf32>
    %284 = tpu.concatenate %282, %283 in 1 : vector<128x1xf32>, vector<128x1xf32> -> vector<128x2xf32>
    %285 = arith.truncf %284 : vector<128x2xf32> to vector<128x2xbf16>
    %c0_78 = arith.constant 0 : index
    %c0_79 = arith.constant 0 : index
    %286 = vector.load %arg17[%c0_78, %c0_79] : memref<128x128xbf16, #tpu.memory_space<vmem>>, vector<128x128xbf16>
    %cst_80 = arith.constant dense<0.000000e+00> : vector<2x128xf32>
    %287 = tpu.matmul %285, %286, %cst_80 {dimension_numbers = #tpu.dot_dimension_numbers<[0], [0], [1], [1], [0, 1, 1, 1], [], []>} : vector<128x2xbf16>, vector<128x128xbf16>, vector<2x128xf32> -> vector<2x128xf32>
    %c0_81 = arith.constant 0 : index
    %c0_82 = arith.constant 0 : index
    %288 = vector.load %arg18[%c0_81, %c0_82] : memref<1x128xf32, #tpu.memory_space<vmem>>, vector<1x128xf32>
    %289 = vector.broadcast %288 : vector<1x128xf32> to vector<2x128xf32>
    %290 = arith.addf %287, %289 : vector<2x128xf32>
    %c0_83 = arith.constant 0 : index
    %c0_84 = arith.constant 0 : index
    %c0_85 = arith.constant 0 : index
    %291 = vector.load %arg19[%c0_83, %c0_84, %c0_85] : memref<1x2x128xf32, #tpu.memory_space<vmem>>, vector<1x2x128xf32>
    %292 = vector.shape_cast %291 : vector<1x2x128xf32> to vector<2x128xf32>
    %293 = vector.shape_cast %290 : vector<2x128xf32> to vector<1x2x128xf32>
    tpu.vector_store %arg19[%c0_83, %c0_84, %c0_85], %293 {strides = array<i32>} : memref<1x2x128xf32, #tpu.memory_space<vmem>>, vector<1x2x128xf32>,
    return
  }
  func.func @transform_0(%arg0: i32) -> (i32, i32, i32) {
    %c0_i32 = arith.constant 0 : i32
    %c0_i32_0 = arith.constant 0 : i32
    %c0_i32_1 = arith.constant 0 : i32
    return %arg0, %c0_i32, %c0_i32_0 : i32, i32, i32
  }
  func.func @transform_1(%arg0: i32) -> (i32, i32) {
    %c0_i32 = arith.constant 0 : i32
    %c0_i32_0 = arith.constant 0 : i32
    %c0_i32_1 = arith.constant 0 : i32
    return %c0_i32, %c0_i32_0 : i32, i32
  }
  func.func @transform_2(%arg0: i32) -> (i32, i32) {
    %c0_i32 = arith.constant 0 : i32
    %c0_i32_0 = arith.constant 0 : i32
    %c0_i32_1 = arith.constant 0 : i32
    return %c0_i32, %c0_i32_0 : i32, i32
  }
  func.func @transform_3(%arg0: i32) -> (i32, i32) {
    %c0_i32 = arith.constant 0 : i32
    %c0_i32_0 = arith.constant 0 : i32
    %c0_i32_1 = arith.constant 0 : i32
    return %c0_i32, %c0_i32_0 : i32, i32
  }
  func.func @transform_4(%arg0: i32) -> (i32, i32) {
    %c0_i32 = arith.constant 0 : i32
    %c0_i32_0 = arith.constant 0 : i32
    %c0_i32_1 = arith.constant 0 : i32
    return %c0_i32, %c0_i32_0 : i32, i32
  }
  func.func @transform_5(%arg0: i32) -> (i32, i32) {
    %c0_i32 = arith.constant 0 : i32
    %c0_i32_0 = arith.constant 0 : i32
    %c0_i32_1 = arith.constant 0 : i32
    return %c0_i32, %c0_i32_0 : i32, i32
  }
  func.func @transform_6(%arg0: i32) -> (i32, i32) {
    %c0_i32 = arith.constant 0 : i32
    %c0_i32_0 = arith.constant 0 : i32
    %c0_i32_1 = arith.constant 0 : i32
    return %c0_i32, %c0_i32_0 : i32, i32
  }
  func.func @transform_7(%arg0: i32) -> (i32, i32) {
    %c0_i32 = arith.constant 0 : i32
    %c0_i32_0 = arith.constant 0 : i32
    %c0_i32_1 = arith.constant 0 : i32
    return %c0_i32, %c0_i32_0 : i32, i32
  }
  func.func @transform_8(%arg0: i32) -> (i32, i32) {
    %c0_i32 = arith.constant 0 : i32
    %c0_i32_0 = arith.constant 0 : i32
    %c0_i32_1 = arith.constant 0 : i32
    return %c0_i32, %c0_i32_0 : i32, i32
  }
  func.func @transform_9(%arg0: i32) -> (i32, i32) {
    %c0_i32 = arith.constant 0 : i32
    %c0_i32_0 = arith.constant 0 : i32
    %c0_i32_1 = arith.constant 0 : i32
    return %c0_i32, %c0_i32_0 : i32, i32
  }
  func.func @transform_10(%arg0: i32) -> (i32, i32) {
    %c0_i32 = arith.constant 0 : i32
    %c0_i32_0 = arith.constant 0 : i32
    %c0_i32_1 = arith.constant 0 : i32
    return %c0_i32, %c0_i32_0 : i32, i32
  }
  func.func @transform_11(%arg0: i32) -> (i32, i32) {
    %c0_i32 = arith.constant 0 : i32
    %c0_i32_0 = arith.constant 0 : i32
    %c0_i32_1 = arith.constant 0 : i32
    return %c0_i32, %c0_i32_0 : i32, i32
  }
  func.func @transform_12(%arg0: i32) -> (i32, i32) {
    %c0_i32 = arith.constant 0 : i32
    %c0_i32_0 = arith.constant 0 : i32
    %c0_i32_1 = arith.constant 0 : i32
    return %c0_i32, %c0_i32_0 : i32, i32
  }
  func.func @transform_13(%arg0: i32) -> (i32, i32) {
    %c0_i32 = arith.constant 0 : i32
    %c0_i32_0 = arith.constant 0 : i32
    %c0_i32_1 = arith.constant 0 : i32
    return %c0_i32, %c0_i32_0 : i32, i32
  }
  func.func @transform_14(%arg0: i32) -> (i32, i32) {
    %c0_i32 = arith.constant 0 : i32
    %c0_i32_0 = arith.constant 0 : i32
    %c0_i32_1 = arith.constant 0 : i32
    return %c0_i32, %c0_i32_0 : i32, i32
  }
  func.func @transform_15(%arg0: i32) -> (i32, i32) {
    %c0_i32 = arith.constant 0 : i32
    %c0_i32_0 = arith.constant 0 : i32
    %c0_i32_1 = arith.constant 0 : i32
    return %c0_i32, %c0_i32_0 : i32, i32
  }
  func.func @transform_16(%arg0: i32) -> (i32, i32) {
    %c0_i32 = arith.constant 0 : i32
    %c0_i32_0 = arith.constant 0 : i32
    %c0_i32_1 = arith.constant 0 : i32
    return %c0_i32, %c0_i32_0 : i32, i32
  }
  func.func @transform_17(%arg0: i32) -> (i32, i32) {
    %c0_i32 = arith.constant 0 : i32
    %c0_i32_0 = arith.constant 0 : i32
    %c0_i32_1 = arith.constant 0 : i32
    return %c0_i32, %c0_i32_0 : i32, i32
  }
  func.func @transform_18(%arg0: i32) -> (i32, i32, i32) {
    %c0_i32 = arith.constant 0 : i32
    %c0_i32_0 = arith.constant 0 : i32
    %c0_i32_1 = arith.constant 0 : i32
    return %arg0, %c0_i32, %c0_i32_0 : i32, i32, i32
  }
}

</mosaic_0001>

<bundles_post_ra>
// kernel: network2_forward.1
= control target key start
LH: loop header
LB: loop body
LE: loop exit
PB: predicated region body
PF: predicated region fallthrough
CT: control target
= control target key end

     0   :  { %s15935_s0 = inlined_call_operand.vmem [shape: f32[4,8,1193], index: 0, kind: input, shape index: {}]   ;;  %s15936_s1 = inlined_call_operand.vmem [shape: bf16[8,72], index: 1, kind: input, shape index: {}]   ;;  %s15937_s2 = inlined_call_operand.vmem [shape: f32[8,1], index: 2, kind: input, shape index: {}]   ;;  %s15938_s3 = inlined_call_operand.vmem [shape: bf16[1088,345], index: 3, kind: input, shape index: {}]   ;;  %s15939_s4 = inlined_call_operand.vmem [shape: bf16[16,72], index: 4, kind: input, shape index: {}]   ;;  %s15940_s5 = inlined_call_operand.vmem [shape: f32[16,1], index: 5, kind: input, shape index: {}]   ;;  %s15941_s6 = inlined_call_operand.vmem [shape: bf16[288,113], index: 6, kind: input, shape index: {}]   ;;  %s15942_s7 = inlined_call_operand.vmem [shape: bf16[32,144], index: 7, kind: input, shape index: {}]   ;;  %s15943_s8 = inlined_call_operand.vmem [shape: f32[32,1], index: 8, kind: input, shape index: {}]   ;;  %s15944_s9 = inlined_call_operand.vmem [shape: bf16[80,45], index: 9, kind: input, shape index: {}]   ;;  %s15945_s10 = inlined_call_operand.vmem [shape: bf16[64,288], index: 10, kind: input, shape index: {}]   ;;  %s15946_s11 = inlined_call_operand.vmem [shape: f32[64,1], index: 11, kind: input, shape index: {}]   ;;  %s15947_s12 = inlined_call_operand.vmem [shape: bf16[24,23], index: 12, kind: input, shape index: {}]   ;;  %s15948_s13 = inlined_call_operand.vmem [shape: bf16[128,576], index: 13, kind: input, shape index: {}]   ;;  %s15949_s14 = inlined_call_operand.vmem [shape: f32[128,1], index: 14, kind: input, shape index: {}]   ;;  %s15950_s15 = inlined_call_operand.vmem [shape: bf16[8,1], index: 15, kind: input, shape index: {}]   ;;  %s15951_s16 = inlined_call_operand.vmem [shape: bf16[128,128], index: 16, kind: input, shape index: {}]   ;;  %s15952_s17 = inlined_call_operand.vmem [shape: f32[1,128], index: 17, kind: input, shape index: {}]   ;;  %s15953_s18 = inlined_call_operand.hbm [shape: f32[2,2,128], index: 18, kind: output, shape index: {}]  }
   0x1   :  { %16034 = sst [smem:[#allocation22_spill]] %s15935_s0 }
   0x2   :  { %16035 = sst [smem:[#allocation23_spill]] %s15936_s1 }
   0x3   :  { %16036 = sst [smem:[#allocation24_spill]] %s15937_s2 }
   0x4   :  { %16037 = sst [smem:[#allocation25_spill]] %s15938_s3 }
   0x5   :  { %16038 = sst [smem:[#allocation26_spill]] %s15952_s17 }
   0x6   :  { %16039 = sst [smem:[#allocation27_spill]] %s15953_s18 }
   0x7   :  { %23 = vsyncpa [#allocation3], 0 }
   0x8   :  { %25 = vsyncpa [#allocation3 + $0x1], 0  ;;  %s10985_s27 = smov 0   ;;  %s10987_s28 = smov 0  }
   0x9   :  { %s10989_s29 = smov 0   ;;  %s10991_s30 = smov 0  }
   0xa LB: > { %16040 = sst [smem:[#allocation5_spill]] %s10847_s27  ;;  %s7640_s0 = sadd.s32 4294967295, %s10859_s30   ;;  %s10859_s30 = sphi %s10991_s30, %s16138_s30   ;;  %s10855_s29 = sphi %s10989_s29, %s16140_s29   ;;  %s10851_s28 = sphi %s10987_s28, %s16142_s28   ;;  %s10847_s27 = sphi %s10985_s27, %s16141_s27  }
   0xb   : > { %16041 = sst [smem:[#allocation6_spill]] %s10855_s29  ;;  %s7641_s19 = sadd.s32 4294967294, %s10859_s30  }
   0xc   : > { %16042 = sst [smem:[#allocation7_spill]] %s10859_s30  ;;  %s11008_s1 = sadd.s32 1, %s10859_s30  }
   0xd   : > { %16043 = sst [smem:[#allocation8_spill]] %s11008_s1  ;;  %s421_s20 = sadd.s32 1, %s10855_s29 }
   0xe   : > { %s418_s21 = ssub.s32 %s10859_s30, %s11008_s1  ;;  %p431_p0 = scmp.ne.s32.totalorder %s10855_s29, %s10851_s28 }
   0xf   : > { %p419_p1 = scmp.eq.s32.totalorder %s418_s21, 0  ;;  %p432_p2 = scmp.eq.s32.totalorder %s7640_s0, 1 }
  0x10   : > { %p437_p3 = scmp.ne.s32.totalorder %s10851_s28, %s10847_s27  ;;  %p438_p4 = scmp.eq.s32.totalorder %s7641_s19, 1 }
  0x11   : > { %s11018_s22 = scalar_select %p419_p1, %s10855_s29, %s421_s20  }
  0x12   : > { %p11020_p5 = por %p432_p2, %p431_p0  ;;  %p11024_p6 = por %p438_p4, %p437_p3 }
  0x13   : > { %16044 = sst [smem:[#allocation9_spill]] %s11018_s22  ;;  %p7644_p7 = scmp.ge.s32.totalorder %s10859_s30, 1 }
  0x14   : > { %s16045_s2 = scalar_select %p11020_p5, 1, 0 }
  0x15   : > { %s16047_s23 = scalar_select %p11024_p6, 1, 0 }
  0x16   : > { %16046 = sst [smem:[#allocation10_spill]] %s16045_s2  ;;  %p517_p8 = scmp.lt.s32.totalorder %s10859_s30, 3 }
  0x17   : > { %16048 = sst [smem:[#allocation11_spill]] %s16047_s23 }
  0x18   : > { %p518_p9 = pnand %p7644_p7, %p517_p8 }
  0x1a   : > { %521 = sbr.rel (%p518_p9) target bundleno = 4837 (0x12e5), region = 92 }
  0x1f   : > { %s11030_s24 = sshll.u32 %s7640_s0, 1  ;;  %s16049_s21 = sld [smem:[#allocation22_spill]]  ;;  %vm898_vm0 = vcmask 474112   ;;  %vm973_vm1 = vcmask 1043456   ;;  %vm859_vm2 = vcmask 482304   ;;  %vm742_vm3 = vcmask 760832  }
  0x20   : > { %p573_p10 = scmp.lt.s32.totalorder %s11030_s24, 3  ;;  %s15966_s0 = smov 93   ;;  %vm820_vm4 = vcmask 490496   ;;  %vm781_vm5 = vcmask 752640   ;;  %vm703_vm6 = vcmask 769024   ;;  %vm664_vm7 = vcmask 1031168  }
  0x21   : > { %s15964_s19 = smov 58   ;;  %s15960_s20 = smov 60   ;;  %vm628_vm8 = vcmask 1039360   ;;  %vm969_vm9 = vcmask 588800   ;;  %vm3214_vm10 = vcmask 523264   ;;  %vm3686_vm11 = vcmask 736256  }
  0x22   : > { %s574_s25 = scalar_select %p573_p10, %s11030_s24, 3  ;;  %vm3674_vm12 = vcmask 744448   ;;  %vm3639_vm13 = vcmask 891904   ;;  %vm3651_vm14 = vcmask 883712   ;;  %vm3627_vm15 = vcmask 900096  }
  0x23   : > { %s15968_s29 = smov 127   ;;  %s16057_s27 = sld [smem:[#allocation23_spill]] }
  0x24   : > { %s9234_s26 = smul.u32 80, %s574_s25  ;;  %s15955_s25 = smov 59  }
  0x25   : > { %s16059_s30 = smov 94   ;;  %s16060_s1 = sld [smem:[#allocation24_spill]] }
  0x26   : > { %s11037_s22 = scalar_lea.vmem %s16049_s21, %s9234_s26  ;;  %s15958_s26 = smov 92  }
  0x27   : > { %v11040_v0 = vld [vmem:[%s11037_s22 + $0x10] sm:$0xff]  ;;  %v11043_v1 = vld [vmem:[%s11037_s22 + $0x18] sm:$0xff]  ;;  %v11051_v3 = vld [vmem:[%s11037_s22 + $0x8] sm:$0xff]  ;;  %s15970_s21 = smov 94   ;;  %s16094_s3 = sld [smem:[#allocation25_spill]] }
  0x28   : > { %v9322_v2 = vpack.i.bf16 %v11043_v1, %v11040_v0  ;;  %v584_v4 = vld [vmem:[%s11037_s22 + $0x20] sm:$0xff]  ;;  %v11065_v6 = vld [vmem:[%s11037_s22 + $0x30] sm:$0xff]  ;;  %v11068_v7 = vld [vmem:[%s11037_s22 + $0x38] sm:$0xff]  ;;  %s10874_s18 = smov 110   ;;  %s16017_s23 = smov 123  }
  0x29   : > { %v9317_v5 = vpack.i.bf16 %v11051_v3, %v584_v4  ;;  %v9367_v8 = vpack.i.bf16 %v11068_v7, %v11065_v6  ;;  %v11076_v9 = vld [vmem:[%s11037_s22 + $0x28] sm:$0xff]  ;;  %v588_v10 = vld [vmem:[%s11037_s22 + $0x40] sm:$0xff]  ;;  %v11095_v12 = vld [vmem:[%s11037_s22 + $0x58] sm:$0xff]  ;;  %s16058_s17 = smov %s16057_s27 }
  0x2a   : > { %9323 = vrot.lane.b32.xlu2 %v9322_v2, %s15966_s0  ;;  %9313 = vrot.lane.b32.xlu1 %v9322_v2, %s15955_s25  ;;  %s15962_s25 = smov 126   ;;  %v9382_v11 = vpack.i.bf16 %v11076_v9, %v588_v10  ;;  %v11099_v13 = vld [vmem:[%s11037_s22 + $0x60] sm:$0xff]  ;;  %v7651_v15 = vld [vmem:[%s11037_s22 + $0x68] sm:$0xff] }
  0x2b   : > { %9303 = vrot.lane.b32.xlu0 %v9322_v2, %s15964_s19  ;;  %v11102_v14 = vld [vmem:[%s11037_s22] sm:$0xff]  ;;  %v11107_v16 = vpack.i.bf16 %v11099_v13, %v11095_v12  ;;  %v11123_v18 = vld [vmem:[%s11037_s22 + $0x50] sm:$0xff]  ;;  %v7653_v19 = vld [vmem:[%s11037_s22 + $0x78] sm:$0xff] }
  0x2c   : > { %v11110_v17 = vpack.i.bf16 %v11102_v14, %v7651_v15  ;;  %v11129_v21 = vpack.i.bf16 %v7653_v19, %v11123_v18  ;;  %v11240_v19 = vld [vmem:[%s11037_s22 + $0x80] sm:$0xff] }
  0x32   : > { %9328 = vrot.lane.b32.xlu2 %v9322_v2, %s15958_s26  ;;  %9318 = vrot.lane.b32.xlu1 %v9317_v5, %s15964_s19  ;;  %s16050_s26 = smov 59  }
  0x33   : > { %9308 = vrot.lane.b32.xlu0 %v9322_v2, %s15960_s20 }
  0x3a   : > { %9343 = vrot.lane.b32.xlu2 %v9317_v5, %s15960_s20  ;;  %9338 = vrot.lane.b32.xlu1 %v9322_v2, %s15970_s21  ;;  %s16051_s20 = smov 92  }
  0x3b   : > { %9333 = vrot.lane.b32.xlu0 %v9322_v2, %s15962_s25 }
  0x42   : > { %9358 = vrot.lane.b32.xlu2 %v9317_v5, %s15966_s0  ;;  %9353 = vrot.lane.b32.xlu1 %v9322_v2, %s15968_s29 }
  0x43   : > { %9348 = vrot.lane.b32.xlu0 %v9317_v5, %s16050_s26 }
  0x4a   : > { %9373 = vrot.lane.b32.xlu2 %v9317_v5, %s15962_s25  ;;  %9368 = vrot.lane.b32.xlu1 %v9367_v8, %s15964_s19  ;;  %s16052_s25 = smov 60  }
  0x4b   : > { %9363 = vrot.lane.b32.xlu0 %v9317_v5, %s16051_s20 }
  0x52   : > { %9388 = vrot.lane.b32.xlu2 %v9317_v5, %s15968_s29  ;;  %9383 = vrot.lane.b32.xlu1 %v9382_v11, %s15964_s19  ;;  %s16053_s19 = smov 126  }
  0x53   : > { %9378 = vrot.lane.b32.xlu0 %v9317_v5, %s15970_s21 }
  0x5a   : > { %9403 = vrot.lane.b32.xlu2 %v9367_v8, %s15966_s0  ;;  %9398 = vrot.lane.b32.xlu1 %v9367_v8, %s16050_s26 }
  0x5b   : > { %9393 = vrot.lane.b32.xlu0 %v9367_v8, %s16052_s25 }
  0x62   : > { %9418 = vrot.lane.b32.xlu2 %v9382_v11, %s16050_s26  ;;  %9413 = vrot.lane.b32.xlu1 %v9382_v11, %s16052_s25 }
  0x63   : > { %9408 = vrot.lane.b32.xlu0 %v9367_v8, %s16051_s20 }
  0x6a   : > { %9433 = vrot.lane.b32.xlu2 %v9382_v11, %s15966_s0  ;;  %9428 = vrot.lane.b32.xlu1 %v9367_v8, %s15970_s21  ;;  %s16054_s0 = smov 58  }
  0x6b   : > { %9423 = vrot.lane.b32.xlu0 %v9367_v8, %s16053_s19 }
  0x72   : > { %9448 = vrot.lane.b32.xlu2 %v9382_v11, %s16053_s19  ;;  %9443 = vrot.lane.b32.xlu1 %v9367_v8, %s15968_s29 }
  0x73   : > { %9438 = vrot.lane.b32.xlu0 %v9382_v11, %s16051_s20 }
  0x7a   : > { %9458 = vrot.lane.b32.xlu1 %v11107_v16, %s16054_s0  ;;  %9463 = vrot.lane.b32.xlu2 %v11110_v17, %s16054_s0 }
  0x7b   : > { %9453 = vrot.lane.b32.xlu0 %v9382_v11, %s15970_s21 }
  0x82   : > { %9473 = vrot.lane.b32.xlu1 %v11107_v16, %s16052_s25  ;;  %9478 = vrot.lane.b32.xlu2 %v11110_v17, %s16052_s25 }
  0x83   : > { %9468 = vrot.lane.b32.xlu0 %v9382_v11, %s15968_s29  ;;  %s16055_s29 = smov 93  }
  0x84   : > { %v11126_v20 = vpop.permute.xlu2 %9323 }
  0x85   : > { %v9326_v31 = vunpack.i.h.bf16 %v11126_v20  ;;  %v9325_v33 = vunpack.i.l.bf16 %v11126_v20 }
  0x87   : > { %v745_v54 = vsel %vm742_vm3, %v9325_v33, %v9326_v31 }
  0x8a   : > { %9488 = vrot.lane.b32.xlu1 %v11110_v17, %s16050_s26  ;;  %9493 = vrot.lane.b32.xlu2 %v11129_v21, %s16054_s0 }
  0x8b   : > { %9483 = vrot.lane.b32.xlu0 %v11107_v16, %s16050_s26 }
  0x8c   : > { %v11137_v22 = vpop.permute.xlu2 %9328 }
  0x8d   : > { %v9331_v41 = vunpack.i.h.bf16 %v11137_v22  ;;  %v9330_v42 = vunpack.i.l.bf16 %v11137_v22 }
  0x8f   : > { %v784_v55 = vsel %vm781_vm5, %v9330_v42, %v9331_v41 }
  0x90   : > { %v937_v61 = vpack.c.bf16 %v784_v55, %v745_v54  ;;  %v11291_v54 = vld [vmem:[%s11037_s22 + $0x48] sm:$0xff]  ;;  %v11294_v55 = vld [vmem:[%s11037_s22 + $0x70] sm:$0xff] }
  0x92   : > { %9503 = vrot.lane.b32.xlu1 %v11110_v17, %s16055_s29  ;;  %9508 = vrot.lane.b32.xlu2 %v11107_v16, %s16051_s20 }
  0x93   : > { %9498 = vrot.lane.b32.xlu0 %v11107_v16, %s16055_s29 }
  0x94   : > { %v11145_v23 = vpop.permute.xlu2 %9343 }
  0x95   : > { %v9346_v8 = vunpack.i.h.bf16 %v11145_v23  ;;  %v9345_v10 = vunpack.i.l.bf16 %v11145_v23 }
  0x9a   : > { %9518 = vrot.lane.b32.xlu1 %v11129_v21, %s16052_s25  ;;  %9523 = vrot.lane.b32.xlu2 %v11129_v21, %s16050_s26 }
  0x9b   : > { %9513 = vrot.lane.b32.xlu0 %v11110_v17, %s16051_s20 }
  0x9c   : > { %v11153_v24 = vpop.permute.xlu1 %9313  ;;  %v11155_v25 = vpop.permute.xlu2 %9358 }
  0x9d   : > { %v9304_v26 = vpop.permute.xlu0 %9303  ;;  %v9316_v34 = vunpack.i.h.bf16 %v11153_v24  ;;  %v9315_v35 = vunpack.i.l.bf16 %v11153_v24  ;;  %v9360_v24 = vunpack.i.l.bf16 %v11155_v25 }
  0x9e   : > { %v9306_v27 = vunpack.i.h.bf16 %v9304_v26  ;;  %v9305_v28 = vunpack.i.l.bf16 %v9304_v26  ;;  %v7655_v26 = vld [vmem:[%s11037_s22 + $0x88] sm:$0xff] }
  0x9f   : > { %v862_v48 = vsel %vm859_vm2, %v9315_v35, %v9316_v34 }
  0xa0   : > { %v901_v29 = vsel %vm898_vm0, %v9305_v28, %v9306_v27 }
  0xa1   : > { %v955_v30 = vpack.c.bf16 %v901_v29, %v901_v29 }
  0xa2   : > { %9533 = vrot.lane.b32.xlu1 %v11110_v17, %s16053_s19  ;;  %9538 = vrot.lane.b32.xlu2 %v11107_v16, %s15970_s21 }
  0xa3   : > { %9528 = vrot.lane.b32.xlu0 %v11107_v16, %s16053_s19  ;;  %v981_v32 = vsel %vm973_vm1, %v955_v30, 0 }
  0xa4   : > { %1030 = vmatpush.bf16.msra.mxu2 %v981_v32  ;;  %v11169_v36 = vpop.permute.xlu2 %9373  ;;  %v11171_v37 = vpop.permute.xlu1 %9318 }
  0xa5   : > { %v9309_v38 = vpop.permute.xlu0 %9308  ;;  %v9321_v39 = vunpack.i.h.bf16 %v11171_v37  ;;  %v9320_v40 = vunpack.i.l.bf16 %v11171_v37 }
  0xa6   : > { %v9311_v43 = vunpack.i.h.bf16 %v9309_v38  ;;  %v9310_v44 = vunpack.i.l.bf16 %v9309_v38  ;;  %v11258_v38 = vpack.i.bf16 %v7655_v26, %v11240_v19 }
  0xa7   : > { %v900_v45 = vsel %vm898_vm0, %v9321_v39, %v9305_v28  ;;  %v902_v46 = vsel %vm898_vm0, %v9306_v27, %v9320_v40 }
  0xa8   : > { %v823_v47 = vsel %vm820_vm4, %v9310_v44, %v9311_v43  ;;  %v954_v49 = vpack.c.bf16 %v900_v45, %v900_v45  ;;  %v956_v50 = vpack.c.bf16 %v902_v46, %v902_v46  ;;  %v822_v30 = vsel %vm820_vm4, %v9346_v8, %v9310_v44 }
  0xa9   : > { %v946_v51 = vpack.c.bf16 %v862_v48, %v823_v47  ;;  %v824_v44 = vsel %vm820_vm4, %v9311_v43, %v9345_v10 }
  0xaa   : > { %9548 = vrot.lane.b32.xlu1 %v11129_v21, %s16055_s29  ;;  %9553 = vrot.lane.b32.xlu2 %v11129_v21, %s16051_s20  ;;  %v978_v52 = vsel %vm973_vm1, %v954_v49, 0  ;;  %v984_v53 = vsel %vm973_vm1, %v956_v50, 0  ;;  %v9361_v50 = vunpack.i.h.bf16 %v11155_v25 }
  0xab   : > { %1031 = vmatpush.bf16.msra.mxu2 %v946_v51  ;;  %9543 = vrot.lane.b32.xlu0 %v11110_v17, %s15970_s21  ;;  %s16056_s21 = smov 127  }
  0xac   : > { %1017 = vmatpush.bf16.msra.mxu1 %v978_v52  ;;  %1043 = vmatpush.bf16.msra.mxu3 %v984_v53  ;;  %v11207_v56 = vpop.permute.xlu2 %9388  ;;  %v11209_v57 = vpop.permute.xlu1 %9338 }
  0xad   : > { %v11211_v58 = vpop.permute.xlu0 %9333  ;;  %v9341_v59 = vunpack.i.h.bf16 %v11209_v57  ;;  %v9340_v60 = vunpack.i.l.bf16 %v11209_v57  ;;  %v15979_v22 = vunpack.i.h.bf16 %v11207_v56 }
  0xae   : > { %v9336_v62 = vunpack.i.h.bf16 %v11211_v58  ;;  %v9335_v63 = vunpack.i.l.bf16 %v11211_v58 }
  0xaf   : > { %1032 = vmatpush.bf16.msra.mxu2 %v937_v61  ;;  %v706_v2 = vsel %vm703_vm6, %v9340_v60, %v9341_v59 }
  0xb0   : > { %v667_v4 = vsel %vm664_vm7, %v9335_v63, %v9336_v62 }
  0xb1   : > { %v928_v5 = vpack.c.bf16 %v706_v2, %v667_v4  ;;  %v744_v2 = vsel %vm742_vm3, %v9361_v50, %v9325_v33  ;;  %v746_v4 = vsel %vm742_vm3, %v9326_v31, %v9360_v24  ;;  %v11326_v31 = vpack.i.bf16 %v11291_v54, %v11294_v55 }
  0xb2   : > { %9563 = vrot.lane.b32.xlu1 %v11110_v17, %s16056_s21  ;;  %9568 = vrot.lane.b32.xlu2 %v11129_v21, %s16053_s19 }
  0xb3   : > { %1033 = vmatpush.bf16.msra.mxu2 %v928_v5  ;;  %9558 = vrot.lane.b32.xlu0 %v11107_v16, %s16056_s21 }
  0xb4   : > { %v11235_v11 = vpop.permute.xlu2 %9403  ;;  %v11237_v15 = vpop.permute.xlu1 %9353 }
  0xb5   : > { %v11243_v17 = vpop.permute.xlu0 %9348  ;;  %v9356_v27 = vunpack.i.h.bf16 %v11237_v15  ;;  %v9355_v28 = vunpack.i.l.bf16 %v11237_v15 }
  0xb6   : > { %v9351_v29 = vunpack.i.h.bf16 %v11243_v17  ;;  %v9350_v16 = vunpack.i.l.bf16 %v11243_v17 }
  0xb7   : > { %v631_v32 = vsel %vm628_vm8, %v9355_v28, %v9356_v27 }
  0xb8   : > { %v861_v45 = vsel %vm859_vm2, %v9351_v29, %v9315_v35  ;;  %v919_v46 = vpack.c.bf16 %v631_v32, %v11040_v0  ;;  %v863_v47 = vsel %vm859_vm2, %v9316_v34, %v9350_v16  ;;  %v11278_v0 = vld [vmem:[%s16057_s27] sm:$0xf]  ;;  %s10870_s27 = smov 91  }
  0xb9   : > { %v945_v48 = vpack.c.bf16 %v861_v45, %v822_v30  ;;  %v947_v49 = vpack.c.bf16 %v863_v47, %v824_v44 }
  0xba   : > { %1034 = vmatpush.bf16.msra.mxu2 %v919_v46  ;;  %9578 = vrot.lane.b32.xlu1 %v11129_v21, %s16056_s21  ;;  %v9375_v46 = vunpack.i.l.bf16 %v11169_v36 }
  0xbb   : > { %1018 = vmatpush.bf16.msra.mxu1 %v945_v48  ;;  %1044 = vmatpush.bf16.msra.mxu3 %v947_v49 }
  0xbc   : > { %9573 = vrot.lane.b32.xlu0 %v11129_v21, %s16059_s30  ;;  %9583 = vrot.lane.b32.xlu2 %v11258_v38, %s16054_s0  ;;  %v11285_v34 = vpop.permute.xlu2 %9418  ;;  %v9369_v35 = vpop.permute.xlu1 %9368 }
  0xbd   : > { %v11287_v43 = vpop.permute.xlu0 %9363  ;;  %v9421_v51 = vunpack.i.h.bf16 %v11285_v34  ;;  %v9371_v52 = vunpack.i.h.bf16 %v9369_v35  ;;  %v9370_v53 = vunpack.i.l.bf16 %v9369_v35  ;;  %7660 = vmatmul.msk.bf16.vlgmr.msra.gmra.mxu2 %vm969_vm9, %v11278_v0 }
  0xbe   : > { %v9366_v21 = vunpack.i.h.bf16 %v11287_v43  ;;  %v9365_v61 = vunpack.i.l.bf16 %v11287_v43 }
  0xbf   : > { %v905_v5 = vsel %vm898_vm0, %v9370_v53, %v9371_v52  ;;  %v11312_v26 = vsel %vm859_vm2, %v9350_v16, %v9421_v51 }
  0xc0   : > { %v783_v30 = vsel %vm781_vm5, %v9366_v21, %v9330_v42  ;;  %v785_v20 = vsel %vm781_vm5, %v9331_v41, %v9365_v61  ;;  %v959_v33 = vpack.c.bf16 %v905_v5, %v905_v5  ;;  %v9376_v42 = vunpack.i.h.bf16 %v11169_v36 }
  0xc1   : > { %v936_v32 = vpack.c.bf16 %v783_v30, %v744_v2  ;;  %v938_v16 = vpack.c.bf16 %v785_v20, %v746_v4  ;;  %v15977_v2 = vunpack.i.l.bf16 %v11207_v56  ;;  %v668_v20 = vsel %vm664_vm7, %v9336_v62, %v9375_v46 }
  0xc2   : > { %9593 = vrot.lane.b32.xlu1 %v11258_v38, %s16050_s26  ;;  %v993_v45 = vsel %vm973_vm1, %v959_v33, 0  ;;  %v666_v30 = vsel %vm664_vm7, %v9376_v42, %v9335_v63  ;;  %v630_v33 = vsel %vm628_vm8, %v15979_v22, %v9355_v28 }
  0xc3   : > { %1019 = vmatpush.bf16.msra.mxu1 %v936_v32  ;;  %1045 = vmatpush.bf16.msra.mxu3 %v938_v16  ;;  %v632_v57 = vsel %vm628_vm8, %v9356_v27, %v15977_v2 }
  0xc4   : > { %9588 = vrot.lane.b32.xlu0 %v11258_v38, %s16052_s25  ;;  %9598 = vrot.lane.b32.xlu2 %v11326_v31, %s16054_s0  ;;  %v11338_v41 = vpop.permute.xlu2 %9433  ;;  %v11340_v44 = vpop.permute.xlu1 %9383 }
  0xc5   : > { %1082 = vmatpush.bf16.msra.mxu2 %v993_v45  ;;  %v11342_v47 = vpop.permute.xlu0 %9378  ;;  %v9436_v48 = vunpack.i.h.bf16 %v11338_v41  ;;  %v9386_v49 = vunpack.i.h.bf16 %v11340_v44  ;;  %v15978_v35 = vunpack.i.l.bf16 %v11340_v44 }
  0xc6   : > { %v15980_v4 = vunpack.i.h.bf16 %v11342_v47  ;;  %v9380_v5 = vunpack.i.l.bf16 %v11342_v47 }
  0xc7   : > { %v904_v62 = vsel %vm898_vm0, %v9386_v49, %v9370_v53  ;;  %v906_v63 = vsel %vm898_vm0, %v9371_v52, %v15978_v35  ;;  %v11380_v45 = vsel %vm898_vm0, %v9320_v40, %v9386_v49  ;;  %v918_v53 = vpack.c.bf16 %v630_v33, %v11051_v3 }
  0xc8   : > { %v705_v32 = vsel %vm703_vm6, %v15980_v4, %v9340_v60  ;;  %v707_v58 = vsel %vm703_vm6, %v9341_v59, %v9380_v5  ;;  %v11385_v60 = vsel %vm742_vm3, %v9360_v24, %v9436_v48  ;;  %v958_v59 = vpack.c.bf16 %v904_v62, %v904_v62 }
  0xc9   : > { %v927_v16 = vpack.c.bf16 %v705_v32, %v666_v30  ;;  %v929_v28 = vpack.c.bf16 %v707_v58, %v668_v20  ;;  %v960_v52 = vpack.c.bf16 %v906_v63, %v906_v63  ;;  %v920_v20 = vpack.c.bf16 %v632_v57, %v11043_v1 }
  0xca   : > { %9608 = vrot.lane.b32.xlu1 %v11258_v38, %s16051_s20  ;;  %v990_v62 = vsel %vm973_vm1, %v958_v59, 0  ;;  %v9405_v3 = vunpack.i.l.bf16 %v11235_v11  ;;  %v15981_v59 = vunpack.i.l.bf16 %v11285_v34 }
  0xcb   : > { %1020 = vmatpush.bf16.msra.mxu1 %v927_v16  ;;  %1046 = vmatpush.bf16.msra.mxu3 %v929_v28  ;;  %v996_v63 = vsel %vm973_vm1, %v960_v52, 0  ;;  %v9406_v28 = vunpack.i.h.bf16 %v11235_v11 }
  0xcc   : > { %9603 = vrot.lane.b32.xlu0 %v11258_v38, %s16055_s29  ;;  %9613 = vrot.lane.b32.xlu2 %v11326_v31, %s16052_s25  ;;  %v11398_v40 = vpop.permute.xlu2 %9448  ;;  %v9399_v24 = vpop.permute.xlu1 %9398 }
  0xcd   : > { %v9394_v49 = vpop.permute.xlu0 %9393  ;;  %v9451_v15 = vunpack.i.h.bf16 %v11398_v40  ;;  %v9401_v30 = vunpack.i.h.bf16 %v9399_v24  ;;  %v9400_v27 = vunpack.i.l.bf16 %v9399_v24  ;;  %v749_v24 = vsel %vm742_vm3, %v9405_v3, %v9406_v28 }
  0xce   : > { %v9396_v32 = vunpack.i.h.bf16 %v9394_v49  ;;  %v9395_v58 = vunpack.i.l.bf16 %v9394_v49 }
  0xcf   : > { %1021 = vmatpush.bf16.msra.mxu1 %v918_v53  ;;  %1047 = vmatpush.bf16.msra.mxu3 %v920_v20  ;;  %v866_v16 = vsel %vm859_vm2, %v9400_v27, %v9401_v30  ;;  %v11412_v1 = vsel %vm664_vm7, %v9375_v46, %v9451_v15 }
  0xd0   : > { %v827_v33 = vsel %vm820_vm4, %v9395_v58, %v9396_v32 }
  0xd1   : > { %v950_v57 = vpack.c.bf16 %v866_v16, %v827_v33  ;;  %v865_v33 = vsel %vm859_vm2, %v9421_v51, %v9400_v27 }
  0xd2   : > { %9623 = vrot.lane.b32.xlu1 %v11258_v38, %s16053_s19  ;;  %7659 = vmatmul.msk.bf16.vlgmr.msra.gmra.mxu1 %vm969_vm9, %v11278_v0 }
  0xd3   : > { %1069 = vmatpush.bf16.msrb.mxu1 %v990_v62  ;;  %1095 = vmatpush.bf16.msrb.mxu3 %v996_v63 }
  0xd4   : > { %1083 = vmatpush.bf16.msra.mxu2 %v950_v57  ;;  %7661 = vmatmul.msk.bf16.vlgmr.msra.gmra.mxu3 %vm969_vm9, %v11278_v0  ;;  %v11425_v46 = vpop.permute.xlu1 %9413  ;;  %v11427_v52 = vpop.permute.xlu2 %9463  ;;  %v867_v57 = vsel %vm859_vm2, %v9401_v30, %v15981_v59 }
  0xd5   : > { %9618 = vrot.lane.b32.xlu0 %v11326_v31, %s16050_s26  ;;  %9628 = vrot.lane.b32.xlu2 %v11258_v38, %s16059_s30  ;;  %v9409_v53 = vpop.permute.xlu0 %9408  ;;  %v9416_v49 = vunpack.i.h.bf16 %v11425_v46  ;;  %v15982_v20 = vunpack.i.l.bf16 %v11425_v46  ;;  %v9466_v62 = vunpack.i.h.bf16 %v11427_v52 }
  0xd6   : > { %v9411_v63 = vunpack.i.h.bf16 %v9409_v53  ;;  %v9410_v16 = vunpack.i.l.bf16 %v9409_v53 }
  0xd7   : > { %v826_v2 = vsel %vm820_vm4, %v9416_v49, %v9395_v58  ;;  %v828_v35 = vsel %vm820_vm4, %v9396_v32, %v15982_v20  ;;  %v899_v22 = vsel %vm898_vm0, %v9466_v62, %v9321_v39  ;;  %v11453_v53 = vsel %vm820_vm4, %v9345_v10, %v9416_v49 }
  0xd8   : > { %v949_v51 = vpack.c.bf16 %v865_v33, %v826_v2  ;;  %v788_v27 = vsel %vm781_vm5, %v9410_v16, %v9411_v63  ;;  %v951_v4 = vpack.c.bf16 %v867_v57, %v828_v35  ;;  %v953_v30 = vpack.c.bf16 %v899_v22, %v899_v22  ;;  %v11481_v33 = vld [vmem:[%s11037_s22 + $0x90] sm:$0xff]  ;;  %v11484_v57 = vld [vmem:[%s11037_s22 + $0x98] sm:$0xff] }
  0xd9   : > { %v941_v59 = vpack.c.bf16 %v788_v27, %v749_v24 }
  0xda   : > { %1070 = vmatpush.bf16.msrb.mxu1 %v949_v51  ;;  %1096 = vmatpush.bf16.msrb.mxu3 %v951_v4  ;;  %v975_v37 = vsel %vm973_vm1, %v953_v30, 0 }
  0xdb   : > { %1084 = vmatpush.bf16.msra.mxu2 %v941_v59  ;;  %9638 = vrot.lane.b32.xlu1 %v11326_v31, %s16051_s20 }
  0xdc   : > { %v9429_v39 = vpop.permute.xlu1 %9428  ;;  %v11465_v10 = vpop.permute.xlu2 %9478  ;;  %1004 = vmatpush.bf16.msra.mxu0 %v975_v37 }
  0xdd   : > { %9633 = vrot.lane.b32.xlu0 %v11326_v31, %s16055_s29  ;;  %9643 = vrot.lane.b32.xlu2 %v11258_v38, %s16056_s21  ;;  %v9424_v22 = vpop.permute.xlu0 %9423  ;;  %v9431_v35 = vunpack.i.h.bf16 %v9429_v39  ;;  %v9430_v2 = vunpack.i.l.bf16 %v9429_v39  ;;  %v15983_v31 = vunpack.i.l.bf16 %v11338_v41 }
  0xde   : > { %v9426_v4 = vunpack.i.h.bf16 %v9424_v22  ;;  %v9425_v32 = vunpack.i.l.bf16 %v9424_v22  ;;  %v748_v22 = vsel %vm742_vm3, %v9436_v48, %v9405_v3 }
  0xdf   : > { %v710_v59 = vsel %vm703_vm6, %v9430_v2, %v9431_v35 }
  0xe0   : > { %v671_v24 = vsel %vm664_vm7, %v9425_v32, %v9426_v4 }
  0xe1   : > { %v932_v49 = vpack.c.bf16 %v710_v59, %v671_v24  ;;  %v750_v24 = vsel %vm742_vm3, %v9406_v28, %v15983_v31 }
  0xe3   : > { %1085 = vmatpush.bf16.msra.mxu2 %v932_v49  ;;  %1321 = vrot.lane.b32.xlu1 %v11294_v55, %s16059_s30  ;;  %v9647_v49 = vpack.i.bf16 %v11484_v57, %v11481_v33 }
  0xe4   : > { %v11476_v38 = vpop.permute.xlu1 %9443  ;;  %v11478_v62 = vpop.permute.xlu2 %9493 }
  0xe5   : > { %1285 = vrot.lane.b32.xlu0 %v11294_v55, %s16053_s19  ;;  %1250 = vrot.lane.b32.xlu2 %v11294_v55, %s16056_s21  ;;  %v11486_v51 = vpop.permute.xlu0 %9438  ;;  %v9446_v27 = vunpack.i.h.bf16 %v11476_v38  ;;  %v9445_v30 = vunpack.i.l.bf16 %v11476_v38 }
  0xe6   : > { %v9441_v37 = vunpack.i.h.bf16 %v11486_v51  ;;  %v15984_v39 = vunpack.i.l.bf16 %v11486_v51 }
  0xe7   : > { %v635_v59 = vsel %vm628_vm8, %v9445_v30, %v9446_v27 }
  0xe8   : > { %v787_v38 = vsel %vm781_vm5, %v9441_v37, %v9410_v16  ;;  %v923_v20 = vpack.c.bf16 %v635_v59, %v11065_v6  ;;  %v789_v58 = vsel %vm781_vm5, %v9411_v63, %v15984_v39  ;;  %v11513_v48 = vsel %vm781_vm5, %v9365_v61, %v9441_v37 }
  0xe9   : > { %v940_v3 = vpack.c.bf16 %v787_v38, %v748_v22  ;;  %v942_v11 = vpack.c.bf16 %v789_v58, %v750_v24  ;;  %v15988_v16 = vunpack.i.l.bf16 %v11398_v40  ;;  %v670_v59 = vsel %vm664_vm7, %v9451_v15, %v9425_v32 }
  0xea   : > { %1086 = vmatpush.bf16.msra.mxu2 %v923_v20  ;;  %v9672_v24 = vpack.i.bf16 %v11481_v33, %v11291_v54  ;;  %v9495_v39 = vunpack.i.l.bf16 %v11478_v62 }
  0xeb   : > { %1071 = vmatpush.bf16.msrb.mxu1 %v940_v3  ;;  %1097 = vmatpush.bf16.msrb.mxu3 %v942_v11  ;;  %v672_v11 = vsel %vm664_vm7, %v9426_v4, %v15988_v16  ;;  %v963_v16 = vld [vmem:[%s16060_s1] sm:$0xff]  ;;  %s10873_s1 = smov 109  }
  0xec   : > { %9653 = vrot.lane.b32.xlu1 %v9647_v49, %s16052_s25  ;;  %v9459_v6 = vpop.permute.xlu1 %9458  ;;  %v11520_v63 = vpop.permute.xlu2 %9508  ;;  %s16013_s25 = smov 121  }
  0xed   : > { %9648 = vrot.lane.b32.xlu0 %v9647_v49, %s16054_s0  ;;  %9658 = vrot.lane.b32.xlu2 %v9647_v49, %s16050_s26  ;;  %v11523_v61 = vpop.permute.xlu0 %9453  ;;  %v9461_v58 = vunpack.i.h.bf16 %v9459_v6  ;;  %v9460_v37 = vunpack.i.l.bf16 %v9459_v6  ;;  %s10880_s0 = smov 122   ;;  %s10887_s26 = smov 119  }
  0xee   : > { %7664 = vmatmul.msk.bf16.vlgmr.msra.gmra.mxu2 %vm969_vm9, %v11278_v0  ;;  %v9456_v20 = vunpack.i.h.bf16 %v11523_v61  ;;  %v15990_v22 = vunpack.i.l.bf16 %v11523_v61 }
  0xef   : > { %v1524_v38 = vsel %vm898_vm0, %v9460_v37, %v9461_v58 }
  0xf0   : > { %v709_v3 = vsel %vm703_vm6, %v9456_v20, %v9430_v2  ;;  %v711_v6 = vsel %vm703_vm6, %v9431_v35, %v15990_v22  ;;  %v1578_v31 = vpack.c.bf16 %v1524_v38, %v1524_v38  ;;  %v11546_v54 = vsel %vm703_vm6, %v9380_v5, %v9456_v20 }
  0xf1   : > { %v931_v28 = vpack.c.bf16 %v709_v3, %v670_v59  ;;  %v933_v15 = vpack.c.bf16 %v711_v6, %v672_v11  ;;  %v15989_v2 = vunpack.i.l.bf16 %v11427_v52  ;;  %v9481_v6 = vunpack.i.h.bf16 %v11465_v10 }
  0xf2   : > { %v1590_v32 = vsel %vm973_vm1, %v1578_v31, 0  ;;  %v1523_v31 = vsel %vm898_vm0, %v9495_v39, %v9460_v37 }
  0xf3   : > { %1072 = vmatpush.bf16.msrb.mxu1 %v931_v28  ;;  %1098 = vmatpush.bf16.msrb.mxu3 %v933_v15  ;;  %v1525_v38 = vsel %vm898_vm0, %v9461_v58, %v15989_v2  ;;  %v1577_v3 = vpack.c.bf16 %v1523_v31, %v1523_v31 }
  0xf4   : > { %9668 = vrot.lane.b32.xlu1 %v9647_v49, %s16051_s20  ;;  %v11554_v35 = vpop.permute.xlu1 %9473  ;;  %v11556_v59 = vpop.permute.xlu2 %9523  ;;  %1629 = vmatpush.bf16.msra.mxu2 %v1590_v32  ;;  %v1579_v37 = vpack.c.bf16 %v1525_v38, %v1525_v38 }
  0xf5   : > { %9663 = vrot.lane.b32.xlu0 %v9647_v49, %s16055_s29  ;;  %9673 = vrot.lane.b32.xlu2 %v9672_v24, %s16059_s30  ;;  %v11559_v5 = vpop.permute.xlu0 %9468  ;;  %v9476_v15 = vunpack.i.h.bf16 %v11554_v35  ;;  %v9475_v58 = vunpack.i.l.bf16 %v11554_v35  ;;  %s10872_s29 = smov 108  }
  0xf6   : > { %v15993_v20 = vunpack.i.h.bf16 %v11559_v5  ;;  %v15987_v28 = vunpack.i.l.bf16 %v11559_v5  ;;  %v1593_v32 = vsel %vm973_vm1, %v1579_v37, 0 }
  0xf8   : > { %v634_v49 = vsel %vm628_vm8, %v15993_v20, %v9445_v30  ;;  %v636_v24 = vsel %vm628_vm8, %v9446_v27, %v15987_v28  ;;  %v15985_v30 = vunpack.i.l.bf16 %v11465_v10  ;;  %v16061_v20 = vunpack.i.h.bf16 %v11342_v47 }
  0xf9   : > { %v922_v11 = vpack.c.bf16 %v634_v49, %v11076_v9  ;;  %v924_v39 = vpack.c.bf16 %v636_v24, %v11068_v7  ;;  %v1587_v9 = vsel %vm973_vm1, %v1577_v3, 0  ;;  %v821_v24 = vsel %vm820_vm4, %v9481_v6, %v9346_v8 }
  0xfa   : > { %v9510_v6 = vunpack.i.l.bf16 %v11520_v63 }
  0xfb   : > { %1073 = vmatpush.bf16.msrb.mxu1 %v922_v11  ;;  %1099 = vmatpush.bf16.msrb.mxu3 %v924_v39  ;;  %v1448_v11 = vsel %vm820_vm4, %v9475_v58, %v9476_v15 }
  0xfc   : > { %1293 = vrot.lane.b32.xlu1 %v11481_v33, %s16053_s19  ;;  %v11584_v7 = vpop.permute.xlu1 %9488  ;;  %v11586_v27 = vpop.permute.xlu2 %9538 }
  0xfd   : > { %1331 = vrot.lane.b32.xlu0 %v11484_v57, %s16059_s30  ;;  %1258 = vrot.lane.b32.xlu2 %v11481_v33, %s16056_s21  ;;  %v9484_v35 = vpop.permute.xlu0 %9483  ;;  %v9491_v31 = vunpack.i.h.bf16 %v11584_v7  ;;  %v15986_v57 = vunpack.i.l.bf16 %v11584_v7 }
  0xfe   : > { %v9486_v38 = vunpack.i.h.bf16 %v9484_v35  ;;  %v9485_v49 = vunpack.i.l.bf16 %v9484_v35  ;;  %7663 = vmatmul.msk.bf16.vlgmr.msrb.gmra.mxu1 %vm969_vm9, %v11278_v0  ;;  %7665 = vmatmul.msk.bf16.vlgmr.msrb.gmra.mxu3 %vm969_vm9, %v11278_v0 }
  0xff   : > { %1616 = vmatpush.bf16.msra.mxu1 %v1587_v9  ;;  %1642 = vmatpush.bf16.msra.mxu3 %v1593_v32  ;;  %v860_v3 = vsel %vm859_vm2, %v9491_v31, %v9351_v29  ;;  %v1449_v9 = vsel %vm820_vm4, %v9476_v15, %v15985_v30  ;;  %v9511_v29 = vunpack.i.h.bf16 %v11520_v63 }
 0x100   : > { %v944_v39 = vpack.c.bf16 %v860_v3, %v821_v24  ;;  %v1486_v37 = vsel %vm859_vm2, %v9485_v49, %v9486_v38  ;;  %v1487_v23 = vsel %vm859_vm2, %v9486_v38, %v15986_v57 }
 0x101   : > { %v1569_v8 = vpack.c.bf16 %v1486_v37, %v1448_v11  ;;  %v1570_v17 = vpack.c.bf16 %v1487_v23, %v1449_v9  ;;  %v1410_v38 = vsel %vm781_vm5, %v9510_v6, %v9511_v29  ;;  %v9525_v37 = vunpack.i.l.bf16 %v11556_v59 }
 0x102   : > { %1005 = vmatpush.bf16.msra.mxu0 %v944_v39 }
 0x103   : > { %1630 = vmatpush.bf16.msra.mxu2 %v1569_v8  ;;  %1643 = vmatpush.bf16.msra.mxu3 %v1570_v17 }
 0x104   : > { %v11613_v32 = vpop.permute.xlu1 %9503  ;;  %v11615_v35 = vpop.permute.xlu2 %9553 }
 0x105   : > { %v9499_v31 = vpop.permute.xlu0 %9498  ;;  %v9506_v39 = vunpack.i.h.bf16 %v11613_v32  ;;  %v15992_v9 = vunpack.i.l.bf16 %v11613_v32 }
 0x106   : > { %v9501_v24 = vunpack.i.h.bf16 %v9499_v31  ;;  %v9500_v15 = vunpack.i.l.bf16 %v9499_v31 }
 0x108   : > { %v1372_v3 = vsel %vm742_vm3, %v9500_v15, %v9501_v24  ;;  %v1373_v28 = vsel %vm742_vm3, %v9501_v24, %v15992_v9  ;;  %v9541_v24 = vunpack.i.h.bf16 %v11586_v27 }
 0x109   : > { %v1560_v11 = vpack.c.bf16 %v1410_v38, %v1372_v3  ;;  %v1485_v38 = vsel %vm859_vm2, %v9525_v37, %v9485_v49  ;;  %v743_v3 = vsel %vm742_vm3, %v9506_v39, %v9361_v50  ;;  %v10869_v50 = vmov 0  }
 0x10a   : > { %9677 = vset.pattern.permute.xlu0 %v10869_v50  ;;  %9848 = vset.pattern.permute.xlu1 %v10869_v50  ;;  %v15994_v37 = vunpack.i.l.bf16 %v11586_v27 }
 0x10b   : > { %1631 = vmatpush.bf16.msra.mxu2 %v1560_v11  ;;  %966 = vperm.xlu0 %9677, %v963_v16  }
 0x10c   : > { %v11624_v23 = vpop.permute.xlu1 %9518  ;;  %v11626_v8 = vpop.permute.xlu2 %9568  ;;  %9849 = vset.pattern.permute.xlu2 %v10869_v50  ;;  %v1334_v16 = vsel %vm703_vm6, %v15994_v37, %v9541_v24 }
 0x10d   : > { %v11628_v17 = vpop.permute.xlu0 %9513  ;;  %v9520_v31 = vunpack.i.l.bf16 %v11624_v23 }
 0x10e   : > { %v9516_v30 = vunpack.i.h.bf16 %v11628_v17  ;;  %v15991_v57 = vunpack.i.l.bf16 %v11628_v17 }
 0x10f   : > { %v1447_v11 = vsel %vm820_vm4, %v9520_v31, %v9475_v58 }
 0x110   : > { %v782_v2 = vsel %vm781_vm5, %v9516_v30, %v9366_v21  ;;  %v1568_v22 = vpack.c.bf16 %v1485_v38, %v1447_v11  ;;  %v1411_v25 = vsel %vm781_vm5, %v9511_v29, %v15991_v57 }
 0x111   : > { %v935_v58 = vpack.c.bf16 %v782_v2, %v743_v3  ;;  %v1561_v49 = vpack.c.bf16 %v1411_v25, %v1373_v28  ;;  %v9555_v28 = vunpack.i.l.bf16 %v11615_v35 }
 0x112   : > { %1617 = vmatpush.bf16.msra.mxu1 %v1568_v22 }
 0x113   : > { %1006 = vmatpush.bf16.msra.mxu0 %v935_v58  ;;  %1644 = vmatpush.bf16.msra.mxu3 %v1561_v49  ;;  %v1409_v9 = vsel %vm781_vm5, %v9555_v28, %v9510_v6  ;;  %v957_v28 = vpack.c.bf16 %v11380_v45, %v11380_v45 }
 0x114   : > { %v11652_v43 = vpop.permute.xlu1 %9533 }
 0x115   : > { %v11654_v21 = vpop.permute.xlu0 %9528  ;;  %v9536_v31 = vunpack.i.h.bf16 %v11652_v43  ;;  %v16004_v38 = vunpack.i.l.bf16 %v11652_v43  ;;  %v987_v45 = vsel %vm973_vm1, %v957_v28, 0 }
 0x116   : > { %v9531_v30 = vunpack.i.h.bf16 %v11654_v21  ;;  %v15995_v29 = vunpack.i.l.bf16 %v11654_v21  ;;  %v11658_v39 = vpop.permute.xlu2 %9583 }
 0x117   : > { %v16003_v50 = vunpack.i.h.bf16 %v11658_v39 }
 0x118   : > { %v1296_v22 = vsel %vm664_vm7, %v15995_v29, %v9531_v30  ;;  %v1297_v29 = vsel %vm664_vm7, %v9531_v30, %v16004_v38  ;;  %v16072_v38 = vunpack.i.l.bf16 %v11285_v34 }
 0x119   : > { %v1551_v2 = vpack.c.bf16 %v1334_v16, %v1296_v22  ;;  %v9585_v22 = vunpack.i.l.bf16 %v11658_v39 }
 0x11b   : > { %1632 = vmatpush.bf16.msra.mxu2 %v1551_v2  ;;  %v665_v2 = vsel %vm664_vm7, %v9536_v31, %v9376_v42  ;;  %v1529_v63 = vsel %vm898_vm0, %v9585_v22, %v16003_v50 }
 0x11c   : > { %v11669_v3 = vpop.permute.xlu1 %9548 }
 0x11d   : > { %v11671_v11 = vpop.permute.xlu0 %9543  ;;  %v9550_v25 = vunpack.i.l.bf16 %v11669_v3 }
 0x11e   : > { %v9546_v58 = vunpack.i.h.bf16 %v11671_v11  ;;  %v9545_v49 = vunpack.i.l.bf16 %v11671_v11  ;;  %v11677_v16 = vpop.permute.xlu2 %9598 }
 0x11f   : > { %v1371_v57 = vsel %vm742_vm3, %v9550_v25, %v9500_v15 }
 0x120   : > { %v704_v4 = vsel %vm703_vm6, %v9546_v58, %v16061_v20  ;;  %v1559_v37 = vpack.c.bf16 %v1409_v9, %v1371_v57  ;;  %v1335_v36 = vsel %vm703_vm6, %v9541_v24, %v9545_v49  ;;  %v9496_v20 = vunpack.i.h.bf16 %v11478_v62 }
 0x121   : > { %v926_v42 = vpack.c.bf16 %v704_v4, %v665_v2  ;;  %v1552_v31 = vpack.c.bf16 %v1335_v36, %v1297_v29  ;;  %v1583_v9 = vpack.c.bf16 %v1529_v63, %v1529_v63 }
 0x122   : > { %1618 = vmatpush.bf16.msra.mxu1 %v1559_v37  ;;  %v16062_v37 = vunpack.i.h.bf16 %v11207_v56  ;;  %v1528_v25 = vsel %vm898_vm0, %v9496_v20, %v9585_v22  ;;  %v9570_v22 = vunpack.i.l.bf16 %v11626_v8 }
 0x123   : > { %1007 = vmatpush.bf16.msra.mxu0 %v926_v42  ;;  %1645 = vmatpush.bf16.msra.mxu3 %v1552_v31  ;;  %v1605_v31 = vsel %vm973_vm1, %v1583_v9, 0  ;;  %v1582_v63 = vpack.c.bf16 %v1528_v25, %v1528_v25  ;;  %v16065_v25 = vunpack.i.l.bf16 %v11586_v27 }
 0x124   : > { %v11699_v47 = vpop.permute.xlu1 %9563 }
 0x125   : > { %v9559_v57 = vpop.permute.xlu0 %9558  ;;  %v9566_v6 = vunpack.i.h.bf16 %v11699_v47  ;;  %v16001_v15 = vunpack.i.l.bf16 %v11699_v47 }
 0x126   : > { %v9561_v24 = vunpack.i.h.bf16 %v9559_v57  ;;  %v9560_v4 = vunpack.i.l.bf16 %v9559_v57  ;;  %v11704_v30 = vpop.permute.xlu2 %9613  ;;  %v9600_v57 = vunpack.i.l.bf16 %v11677_v16 }
 0x127   : > { %v629_v29 = vsel %vm628_vm8, %v9566_v6, %v16062_v37  ;;  %v1602_v6 = vsel %vm973_vm1, %v1582_v63, 0  ;;  %v16063_v37 = vpack.c.bf16 %v11312_v26, %v11453_v53  ;;  %v16066_v26 = vpack.c.bf16 %v11513_v48, %v11385_v60 }
 0x128   : > { %v917_v62 = vpack.c.bf16 %v629_v29, %v11102_v14  ;;  %v1261_v58 = vsel %vm628_vm8, %v9560_v4, %v9561_v24  ;;  %v1262_v2 = vsel %vm628_vm8, %v9561_v24, %v16001_v15  ;;  %v16064_v29 = vunpack.i.l.bf16 %v11654_v21 }
 0x129   : > { %v1542_v36 = vpack.c.bf16 %v1261_v58, %v11095_v12  ;;  %v1543_v42 = vpack.c.bf16 %v1262_v2, %v11099_v13  ;;  %v1527_v58 = vsel %vm898_vm0, %v9600_v57, %v9496_v20  ;;  %v9601_v2 = vunpack.i.h.bf16 %v11677_v16 }
 0x12a   : > { %1008 = vmatpush.bf16.msra.mxu0 %v917_v62  ;;  %v1295_v28 = vsel %vm664_vm7, %v9570_v22, %v16064_v29  ;;  %v1581_v21 = vpack.c.bf16 %v1527_v58, %v1527_v58  ;;  %v9526_v63 = vunpack.i.h.bf16 %v11556_v59  ;;  %v16067_v22 = vunpack.i.l.bf16 %v11340_v44 }
 0x12b   : > { %1633 = vmatpush.bf16.msra.mxu2 %v1542_v36  ;;  %1646 = vmatpush.bf16.msra.mxu3 %v1543_v42  ;;  %v9521_v48 = vunpack.i.h.bf16 %v11624_v23  ;;  %v16069_v29 = vunpack.i.h.bf16 %v11559_v5 }
 0x12c   : > { %v11721_v14 = vpop.permute.xlu1 %9578  ;;  %v907_v60 = vsel %vm898_vm0, %v16067_v22, %v9601_v2 }
 0x12d   : > { %7658 = vmatmul.msk.bf16.vlgmr.msra.gmra.mxu0 %vm969_vm9, %v11278_v0  ;;  %v9580_v24 = vunpack.i.l.bf16 %v11721_v14 }
 0x12e   : > { %1056 = vmatpush.bf16.msrb.mxu0 %v987_v45  ;;  %v11727_v12 = vpop.permute.xlu0 %9573  ;;  %7668 = vmatmul.msk.bf16.vlgmr.msra.gmra.mxu2 %vm969_vm9, %v11278_v0 }
 0x12f   : > { %1694 = vmatpush.bf16.msrb.mxu3 %v1605_v31  ;;  %v11729_v13 = vpop.permute.xlu2 %9628  ;;  %v9575_v9 = vunpack.i.l.bf16 %v11727_v12  ;;  %1681 = vmatpush.bf16.msra.mxu2 %v1602_v6  ;;  %v1260_v42 = vsel %vm628_vm8, %v9580_v24, %v9560_v4  ;;  %v16068_v24 = vpack.c.bf16 %v11546_v54, %v11412_v1 }
 0x130   : > { %7669 = vmatmul.msk.bf16.vlgmr.msra.gmra.mxu3 %vm969_vm9, %v11278_v0  ;;  %v1541_v4 = vpack.c.bf16 %v1260_v42, %v11123_v18 }
 0x131   : > { %v1333_v62 = vsel %vm703_vm6, %v9575_v9, %v16065_v25 }
 0x132   : > { %1057 = vmatpush.bf16.msrb.mxu0 %v16063_v37  ;;  %v1550_v36 = vpack.c.bf16 %v1333_v62, %v1295_v28  ;;  %v1599_v37 = vsel %vm973_vm1, %v1581_v21, 0  ;;  %v16070_v28 = vunpack.i.l.bf16 %v11207_v56  ;;  %v961_v62 = vpack.c.bf16 %v907_v60, %v907_v60 }
 0x134   : > { %1619 = vmatpush.bf16.msra.mxu1 %v1550_v36  ;;  %v11755_v53 = vpop.permute.xlu1 %9593  ;;  %v633_v25 = vsel %vm628_vm8, %v16070_v28, %v16069_v29  ;;  %v10791_v36 = vld [vmem:[%s11037_s22 + $0x20] sm:$0xff]  ;;  %v9576_v29 = vunpack.i.h.bf16 %v11727_v12  ;;  %v16000_v28 = vunpack.i.h.bf16 %v11729_v13 }
 0x135   : > { %v15998_v27 = vunpack.i.h.bf16 %v11755_v53  ;;  %v9595_v31 = vunpack.i.l.bf16 %v11755_v53  ;;  %v921_v42 = vpack.c.bf16 %v633_v25, %v10791_v36  ;;  %v16005_v36 = vunpack.i.h.bf16 %v11626_v8  ;;  %v10793_v12 = vld [vmem:[%s11037_s22 + $0x40] sm:$0xff] }
 0x136   : > { %1058 = vmatpush.bf16.msrb.mxu0 %v16066_v26  ;;  %v11760_v20 = vpop.permute.xlu0 %9588 }
 0x137   : > { %v11762_v45 = vpop.permute.xlu2 %9643  ;;  %v15999_v6 = vunpack.i.h.bf16 %v11760_v20  ;;  %v9590_v9 = vunpack.i.l.bf16 %v11760_v20  ;;  %v1490_v18 = vsel %vm859_vm2, %v9526_v63, %v9595_v31  ;;  %v1491_v44 = vsel %vm859_vm2, %v9595_v31, %v15998_v27 }
 0x138   : > { %1620 = vmatpush.bf16.msra.mxu1 %v1541_v4  ;;  %v999_v31 = vsel %vm973_vm1, %v961_v62, 0  ;;  %v9556_v4 = vunpack.i.h.bf16 %v11615_v35  ;;  %v16002_v62 = vunpack.i.h.bf16 %v11762_v45  ;;  %v16075_v35 = vunpack.i.l.bf16 %v11523_v61 }
 0x139   : > { %v1452_v1 = vsel %vm820_vm4, %v9521_v48, %v9590_v9  ;;  %v1453_v54 = vsel %vm820_vm4, %v9590_v9, %v15999_v6  ;;  %v9551_v9 = vunpack.i.h.bf16 %v11669_v3 }
 0x13a   : > { %1059 = vmatpush.bf16.msrb.mxu0 %v16068_v24  ;;  %v1573_v58 = vpack.c.bf16 %v1490_v18, %v1452_v1  ;;  %v1574_v2 = vpack.c.bf16 %v1491_v44, %v1453_v54  ;;  %v9630_v54 = vunpack.i.l.bf16 %v11729_v13 }
 0x13b   : > { %7667 = vmatmul.msk.bf16.vlgmr.msra.gmra.mxu1 %vm969_vm9, %v11278_v0 }
 0x13c   : > { %1668 = vmatpush.bf16.msrb.mxu1 %v1599_v37  ;;  %1682 = vmatpush.bf16.msra.mxu2 %v1573_v58  ;;  %v11795_v56 = vpop.permute.xlu1 %9608 }
 0x13d   : > { %1695 = vmatpush.bf16.msrb.mxu3 %v1574_v2  ;;  %v15996_v26 = vunpack.i.h.bf16 %v11795_v56  ;;  %v9610_v21 = vunpack.i.l.bf16 %v11795_v56 }
 0x13e   : > { %1060 = vmatpush.bf16.msrb.mxu0 %v921_v42  ;;  %v11801_v22 = vpop.permute.xlu0 %9603  ;;  %v9616_v42 = vunpack.i.h.bf16 %v11704_v30 }
 0x13f   : > { %v11803_v60 = vpop.permute.xlu2 %1250  ;;  %v15997_v24 = vunpack.i.h.bf16 %v11801_v22  ;;  %v9605_v37 = vunpack.i.l.bf16 %v11801_v22  ;;  %v1414_v18 = vsel %vm781_vm5, %v9556_v4, %v9610_v21  ;;  %v1415_v44 = vsel %vm781_vm5, %v9610_v21, %v15996_v26 }
 0x140   : > { %v9645_v21 = vunpack.i.l.bf16 %v11762_v45  ;;  %v9615_v26 = vunpack.i.l.bf16 %v11704_v30  ;;  %v16084_v30 = vunpack.i.l.bf16 %v11628_v17 }
 0x141   : > { %7662 = vmatmul.msk.bf16.vlgmr.msrb.gmra.mxu0 %vm969_vm9, %v11278_v0  ;;  %v1376_v25 = vsel %vm742_vm3, %v9551_v9, %v9605_v37  ;;  %v1377_v1 = vsel %vm742_vm3, %v9605_v37, %v15997_v24 }
 0x142   : > { %1108 = vmatpush.bf16.msra.mxu0 %v999_v31  ;;  %v1564_v58 = vpack.c.bf16 %v1414_v18, %v1376_v25  ;;  %v1565_v2 = vpack.c.bf16 %v1415_v44, %v1377_v1  ;;  %v1339_v18 = vsel %vm703_vm6, %v9630_v54, %v16000_v28  ;;  %v9581_v44 = vunpack.i.h.bf16 %v11721_v14 }
 0x143   : > { %v1338_v1 = vsel %vm703_vm6, %v9576_v29, %v9630_v54  ;;  %v16071_v54 = vunpack.i.l.bf16 %v11425_v46 }
 0x144   : > { %1683 = vmatpush.bf16.msra.mxu2 %v1564_v58  ;;  %1696 = vmatpush.bf16.msrb.mxu3 %v1565_v2  ;;  %v11829_v31 = vpop.permute.xlu1 %9623  ;;  %v1266_v58 = vsel %vm628_vm8, %v9645_v21, %v16002_v62  ;;  %v1265_v46 = vsel %vm628_vm8, %v9581_v44, %v9645_v21 }
 0x145   : > { %v16006_v37 = vunpack.i.h.bf16 %v11829_v31  ;;  %v9625_v24 = vunpack.i.l.bf16 %v11829_v31  ;;  %v829_v15 = vsel %vm820_vm4, %v16071_v54, %v9616_v42  ;;  %v1547_v34 = vpack.c.bf16 %v1266_v58, %v11240_v19 }
 0x147   : > { %v11838_v25 = vpop.permute.xlu0 %9618  ;;  %v11848_v6 = vpop.permute.xlu2 %9658  ;;  %v1300_v14 = vsel %vm664_vm7, %v16005_v36, %v9625_v24  ;;  %v1301_v28 = vsel %vm664_vm7, %v9625_v24, %v16006_v37  ;;  %v1451_v36 = vsel %vm820_vm4, %v9615_v26, %v9521_v48 }
 0x148   : > { %v9621_v2 = vunpack.i.h.bf16 %v11838_v25  ;;  %v9620_v27 = vunpack.i.l.bf16 %v11838_v25  ;;  %v1555_v62 = vpack.c.bf16 %v1338_v1, %v1300_v14  ;;  %v1556_v50 = vpack.c.bf16 %v1339_v18, %v1301_v28 }
 0x14a   : > { %v868_v25 = vsel %vm859_vm2, %v16072_v38, %v9621_v2  ;;  %v1489_v24 = vsel %vm859_vm2, %v9620_v27, %v9526_v63  ;;  %1684 = vmatpush.bf16.msra.mxu2 %v1555_v62  ;;  %1697 = vmatpush.bf16.msrb.mxu3 %v1556_v50  ;;  %v10792_v38 = vld [vmem:[%s11037_s22 + $0x78] sm:$0xff]  ;;  %v16073_v50 = vunpack.i.l.bf16 %v11486_v51 }
 0x14b   : > { %v952_v37 = vpack.c.bf16 %v868_v25, %v829_v15  ;;  %v1572_v42 = vpack.c.bf16 %v1489_v24, %v1451_v36  ;;  %v1546_v23 = vpack.c.bf16 %v1265_v46, %v10792_v38  ;;  %v16074_v36 = vunpack.i.l.bf16 %v11338_v41 }
 0x14c   : > { %v16076_v41 = vunpack.i.l.bf16 %v11427_v52  ;;  %v16078_v46 = vunpack.i.l.bf16 %v11652_v43  ;;  %v16079_v52 = vunpack.i.h.bf16 %v11626_v8  ;;  %v16081_v8 = vunpack.i.l.bf16 %v11584_v7 }
 0x14d   : > { %1109 = vmatpush.bf16.msra.mxu0 %v952_v37  ;;  %1669 = vmatpush.bf16.msrb.mxu1 %v1572_v42  ;;  %v9639_v28 = vpop.permute.xlu1 %9638  ;;  %v9660_v7 = vunpack.i.l.bf16 %v11848_v6 }
 0x14e   : > { %v9641_v1 = vunpack.i.h.bf16 %v9639_v28  ;;  %v9640_v48 = vunpack.i.l.bf16 %v9639_v28  ;;  %1685 = vmatpush.bf16.msra.mxu2 %v1546_v23  ;;  %1698 = vmatpush.bf16.msrb.mxu3 %v1547_v34  ;;  %v1526_v54 = vsel %vm898_vm0, %v16076_v41, %v9600_v57  ;;  %v1488_v23 = vsel %vm859_vm2, %v16081_v8, %v9620_v27 }
 0x14f   : > { %v9634_v18 = vpop.permute.xlu0 %9633  ;;  %v11873_v2 = vpop.permute.xlu2 %9673  ;;  %v1580_v11 = vpack.c.bf16 %v1526_v54, %v1526_v54  ;;  %v9661_v28 = vunpack.i.h.bf16 %v11848_v6 }
 0x150   : > { %v9636_v59 = vunpack.i.h.bf16 %v9634_v18  ;;  %v9635_v63 = vunpack.i.l.bf16 %v9634_v18  ;;  %v9675_v15 = vunpack.i.l.bf16 %v11873_v2  ;;  %v790_v19 = vsel %vm781_vm5, %v16073_v50, %v9641_v1  ;;  %v11947_v6 = vpop.f32.mrf.mxu2 }
 0x151   : > { %v1413_v62 = vsel %vm781_vm5, %v9640_v48, %v9556_v4  ;;  %7672 = vmatmul.msk.bf16.vlgmr.msra.gmra.mxu2 %vm969_vm9, %v11278_v0  ;;  %7673 = vmatmul.msk.bf16.vlgmr.msrb.gmra.mxu3 %vm969_vm9, %v11278_v0  ;;  %v1596_v43 = vsel %vm973_vm1, %v1580_v11, 0  ;;  %v10795_v11 = vld [vmem:[%s11037_s22 + $0x68] sm:$0xff] }
 0x152   : > { %v751_v21 = vsel %vm742_vm3, %v16074_v36, %v9636_v59  ;;  %v1375_v51 = vsel %vm742_vm3, %v9635_v63, %v9551_v9  ;;  %v712_v4 = vsel %vm703_vm6, %v16075_v35, %v9675_v15  ;;  %v16077_v9 = vunpack.i.l.bf16 %v11398_v40  ;;  %v11953_v36 = vpop.f32.mrf.mxu1 }
 0x153   : > { %v943_v37 = vpack.c.bf16 %v790_v19, %v751_v21  ;;  %v1563_v58 = vpack.c.bf16 %v1413_v62, %v1375_v51  ;;  %v16080_v40 = vunpack.i.l.bf16 %v11559_v5  ;;  %v16082_v5 = vunpack.i.l.bf16 %v11465_v10 }
 0x154   : > { %v934_v24 = vpack.c.bf16 %v712_v4, %v16077_v9  ;;  %v16083_v19 = vunpack.i.l.bf16 %v11613_v32  ;;  %v1412_v10 = vsel %vm781_vm5, %v16084_v30, %v9640_v48  ;;  %v1493_v48 = vsel %vm859_vm2, %v9660_v7, %v9661_v28 }
 0x155   : > { %1110 = vmatpush.bf16.msra.mxu0 %v943_v37  ;;  %1670 = vmatpush.bf16.msrb.mxu1 %v1563_v58  ;;  %v1322_v14 = vpop.permute.xlu1 %1321  ;;  %v16085_v4 = vunpack.i.h.bf16 %v11658_v39 }
 0x156   : > { %v1336_v3 = vsel %vm703_vm6, %v9545_v49, %v1322_v14  ;;  %v1337_v61 = vsel %vm703_vm6, %v1322_v14, %v9576_v29  ;;  %v1264_v49 = vsel %vm628_vm8, %v11803_v60, %v9581_v44  ;;  %v925_v29 = vpack.c.bf16 %v16080_v40, %v10793_v12 }
 0x157   : > { %v1286_v25 = vpop.permute.xlu0 %1285  ;;  %v1545_v38 = vpack.c.bf16 %v1264_v49, %v11294_v55  ;;  %v1450_v44 = vsel %vm820_vm4, %v16082_v5, %v9615_v26  ;;  %v1374_v62 = vsel %vm742_vm3, %v16083_v19, %v9635_v63  ;;  %v11942_v26 = vld [vmem:[%s16058_s17] sm:$0xf]  ;;  %v11949_v32 = vpop.f32.mrf.mxu3  ;;  %v9676_v12 = vunpack.i.h.bf16 %v11873_v2  ;;  %s10879_s17 = smov 106  }
 0x158   : > { %v1298_v16 = vsel %vm664_vm7, %v16078_v46, %v1286_v25  ;;  %v1299_v57 = vsel %vm664_vm7, %v1286_v25, %v16079_v52  ;;  %v1571_v55 = vpack.c.bf16 %v1488_v23, %v1450_v44  ;;  %v1562_v21 = vpack.c.bf16 %v1412_v10, %v1374_v62  ;;  %v1038_v39 = vpop.f32.mrf.mxu2  ;;  %v1259_v28 = vpop.permute.xlu2 %1258 }
 0x159   : > { %1111 = vmatpush.bf16.msra.mxu0 %v934_v24  ;;  %v1554_v42 = vpack.c.bf16 %v1337_v61, %v1299_v57  ;;  %v1553_v34 = vpack.c.bf16 %v1336_v3, %v1298_v16  ;;  %v16086_v61 = vunpack.i.l.bf16 %v11699_v47 }
 0x15b   : > { %1671 = vmatpush.bf16.msrb.mxu1 %v1554_v42  ;;  %v1263_v9 = vsel %vm628_vm8, %v16086_v61, %v11803_v60  ;;  %v1025_v42 = vpop.f32.mrf.mxu1  ;;  %v16087_v60 = vunpack.i.h.bf16 %v11760_v20 }
 0x15c   : > { %v1544_v49 = vpack.c.bf16 %v1263_v9, %v10795_v11 }
 0x15d   : > { %1112 = vmatpush.bf16.msra.mxu0 %v925_v29 }
 0x15e   : > { %v9654_v1 = vpop.permute.xlu1 %9653 }
 0x15f   : > { %v9649_v18 = vpop.permute.xlu0 %9648  ;;  %1672 = vmatpush.bf16.msrb.mxu1 %v1545_v38  ;;  %v9656_v50 = vunpack.i.h.bf16 %v9654_v1  ;;  %v9655_v27 = vunpack.i.l.bf16 %v9654_v1  ;;  %v1051_v52 = vpop.f32.mrf.mxu3  ;;  %v16088_v38 = vunpack.i.h.bf16 %v11755_v53  ;;  %v16090_v1 = vunpack.i.h.bf16 %v11795_v56 }
 0x160   : > { %v9651_v59 = vunpack.i.h.bf16 %v9649_v18  ;;  %v9650_v15 = vunpack.i.l.bf16 %v9649_v18  ;;  %7666 = vmatmul.msk.bf16.vlgmr.msra.gmra.mxu0 %vm969_vm9, %v11278_v0  ;;  %v16089_v18 = vunpack.i.h.bf16 %v11801_v22  ;;  %v1549_v53 = vpack.c.bf16 %v1259_v28, %v11481_v33 }
 0x161   : > { %1655 = vmatpush.bf16.msrb.mxu0 %v1596_v43  ;;  %v1455_v17 = vsel %vm820_vm4, %v9655_v27, %v9656_v50  ;;  %v1492_v8 = vsel %vm859_vm2, %v16088_v38, %v9660_v7  ;;  %v16092_v22 = vunpack.i.h.bf16 %v11729_v13  ;;  %v16093_v7 = vunpack.i.h.bf16 %v11762_v45 }
 0x162   : > { %7671 = vmatmul.msk.bf16.vlgmr.msrb.gmra.mxu1 %vm969_vm9, %v11942_v26  ;;  %v1531_v0 = vsel %vm898_vm0, %v9650_v15, %v9651_v59  ;;  %v1576_v37 = vpack.c.bf16 %v1493_v48, %v1455_v17  ;;  %v1530_v14 = vsel %vm898_vm0, %v16085_v4, %v9650_v15  ;;  %v16091_v15 = vunpack.i.h.bf16 %v11829_v31  ;;  %v10796_v31 = vld [vmem:[%s11037_s22 + $0x88] sm:$0xff]  ;;  %s10881_s22 = smov 115  }
 0x163   : > { %v1585_v63 = vpack.c.bf16 %v1531_v0, %v1531_v0  ;;  %v1584_v24 = vpack.c.bf16 %v1530_v14, %v1530_v14  ;;  %v1340_v56 = vsel %vm703_vm6, %v16092_v22, %v9676_v12  ;;  %vm4235_vm0 = vcmask 261120  }
 0x164   : > { %vm4404_vm2 = vcmask 130048  }
 0x165   : > { %1656 = vmatpush.bf16.msrb.mxu0 %v1571_v55  ;;  %v1611_v51 = vsel %vm973_vm1, %v1585_v63, 0  ;;  %v1608_v47 = vsel %vm973_vm1, %v1584_v24, 0 }
 0x166   : > { %1720 = vmatpush.bf16.msra.mxu1 %v1611_v51  ;;  %v9669_v35 = vpop.permute.xlu1 %9668 }
 0x167   : > { %v9664_v58 = vpop.permute.xlu0 %9663  ;;  %v9671_v25 = vunpack.i.h.bf16 %v9669_v35  ;;  %v9670_v3 = vunpack.i.l.bf16 %v9669_v35 }
 0x168   : > { %v9666_v41 = vunpack.i.h.bf16 %v9664_v58  ;;  %v9665_v54 = vunpack.i.l.bf16 %v9664_v58 }
 0x169   : > { %1657 = vmatpush.bf16.msrb.mxu0 %v1562_v21  ;;  %v1417_v16 = vsel %vm781_vm5, %v9670_v3, %v9671_v25  ;;  %v1416_v5 = vsel %vm781_vm5, %v16090_v1, %v9670_v3 }
 0x16a   : > { %1721 = vmatpush.bf16.msra.mxu1 %v1576_v37  ;;  %v1379_v46 = vsel %vm742_vm3, %v9665_v54, %v9666_v41  ;;  %v1378_v20 = vsel %vm742_vm3, %v16089_v18, %v9665_v54  ;;  %vm4678_vm3 = vcmask 654336  }
 0x16b   : > { %v1567_v57 = vpack.c.bf16 %v1417_v16, %v1379_v46  ;;  %v1566_v59 = vpack.c.bf16 %v1416_v5, %v1378_v20 }
 0x16d   : > { %1658 = vmatpush.bf16.msrb.mxu0 %v1553_v34  ;;  %v1454_v34 = vsel %vm820_vm4, %v16087_v60, %v9655_v27  ;;  %v1267_v27 = vsel %vm628_vm8, %v16093_v7, %v1259_v28  ;;  %vm5462_vm4 = vcmask 195584  }
 0x16e   : > { %1722 = vmatpush.bf16.msra.mxu1 %v1567_v57  ;;  %v1294_v29 = vpop.permute.xlu1 %1293  ;;  %v1575_v2 = vpack.c.bf16 %v1492_v8, %v1454_v34  ;;  %v1548_v62 = vpack.c.bf16 %v1267_v27, %v10796_v31 }
 0x16f   : > { %v1332_v40 = vpop.permute.xlu0 %1331  ;;  %v1302_v50 = vsel %vm664_vm7, %v16091_v15, %v1294_v29 }
 0x170   : > { %v1341_v43 = vsel %vm703_vm6, %v9676_v12, %v1332_v40  ;;  %v1557_v55 = vpack.c.bf16 %v1340_v56, %v1302_v50 }
 0x171   : > { %1659 = vmatpush.bf16.msrb.mxu0 %v1544_v49  ;;  %v1558_v23 = vpack.c.bf16 %v1341_v43, %v1294_v29  ;;  %v11983_v44 = vpop.f32.mrf.mxu2 }
 0x173   : > { %1723 = vmatpush.bf16.msra.mxu1 %v1558_v23 }
 0x174   : > { %7670 = vmatmul.msk.bf16.vlgmr.msrb.gmra.mxu0 %vm969_vm9, %v11942_v26 }
 0x175   : > { %1707 = vmatpush.bf16.msra.mxu0 %v1608_v47 }
 0x177   : > { %1724 = vmatpush.bf16.msra.mxu1 %v1549_v53 }
 0x179   : > { %1708 = vmatpush.bf16.msra.mxu0 %v1575_v2  ;;  %v1090_v33 = vpop.f32.mrf.mxu2 }
 0x17a   : > { %7675 = vmatmul.msk.bf16.vlgmr.msra.gmra.mxu1 %vm969_vm9, %v11942_v26 }
 0x17b   : > { %v1075_v19 = vpop.f32.mrf.mxu1 }
 0x17d   : > { %1709 = vmatpush.bf16.msra.mxu0 %v1566_v59  ;;  %v12002_v0 = vpop.permute.xlu0 %966 }
 0x17e   : > { %v12006_v45 = vadd.f32 %v11953_v36, %v12002_v0  ;;  %v12032_v54 = vadd.f32 %v11947_v6, %v12002_v0  ;;  %v12041_v16 = vadd.f32 %v1075_v19, %v12002_v0  ;;  %v12073_v2 = vadd.f32 %v11983_v44, %v12002_v0 }
 0x17f   : > { %v12097_v31 = vadd.f32 %v11949_v32, %v12002_v0 }
 0x180   : > { %v1119_v48 = vmax.f32 %v12006_v45, 0.0  ;;  %v1120_v24 = vmax.f32 %v12032_v54, 0.0  ;;  %v1123_v42 = vmax.f32 %v12041_v16, 0.0  ;;  %v1124_v1 = vmax.f32 %v12073_v2, 0.0  ;;  %v7690_v54 = vld [vmem:[%s16094_s3 + $0x18] sm:$0xf] }
 0x181   : > { %1710 = vmatpush.bf16.msra.mxu0 %v1557_v55  ;;  %v12000_v13 = vpop.f32.mrf.mxu3 }
 0x182   : > { %v12184_v16 = vadd.f32 %v12000_v13, %v12002_v0  ;;  %v8941_v13 = vld [vmem:[%s16094_s3 + $0xb0] sm:$0xf0] }
 0x183   : > { %v1077_v30 = vpop.f32.mrf.mxu1 }
 0x185   : > { %1711 = vmatpush.bf16.msra.mxu0 %v1548_v62 }
 0x188   : > { %7674 = vmatmul.msk.bf16.vlgmr.msra.gmra.mxu0 %vm969_vm9, %v11942_v26 }
 0x189   : > { %v1103_v10 = vpop.f32.mrf.mxu3 }
 0x1aa   : > { %v1010_v63 = vpop.f32.mrf.mxu0 }
 0x1ab   : > { %v12009_v17 = vadd.f32 %v1010_v63, %v12002_v0  ;;  %v1121_v63 = vmax.f32 %v12097_v31, 0.0 }
 0x1ad   : > { %v1118_v21 = vmax.f32 %v12009_v17, 0.0 }
 0x1af   : > { %v9678_v26 = vpack.i.bf16 %v1119_v48, %v1118_v21 }
 0x1b1   : > { %9679 = vrot.lane.b32.xlu1 %v9678_v26, %s16056_s21  ;;  %v1635_v51 = vpop.f32.mrf.mxu2 }
 0x1b2   : > { %v12019_v36 = vadd.f32 %v1635_v51, %v12002_v0  ;;  %v1012_v35 = vpop.f32.mrf.mxu0 }
 0x1b3   : > { %v1648_v37 = vpop.f32.mrf.mxu3 }
 0x1b4   : > { %v12022_v58 = vadd.f32 %v1648_v37, %v12002_v0  ;;  %v1731_v4 = vmax.f32 %v12019_v36, 0.0 }
 0x1b6   : > { %v1732_v14 = vmax.f32 %v12022_v58, 0.0  ;;  %v8923_v58 = vld [vmem:[%s16094_s3 + $0x20] sm:$0xf0] }
 0x1b8   : > { %v9688_v41 = vpack.i.bf16 %v1732_v14, %v1731_v4  ;;  %v1622_v25 = vpop.f32.mrf.mxu1 }
 0x1b9   : > { %v12035_v3 = vadd.f32 %v1622_v25, %v12002_v0  ;;  %v1637_v61 = vpop.f32.mrf.mxu2 }
 0x1ba   : > { %9689 = vrot.lane.b32.xlu1 %v9688_v41, %s16056_s21 }
 0x1bb   : > { %v1650_v9 = vpop.f32.mrf.mxu3  ;;  %v1730_v46 = vmax.f32 %v12035_v3, 0.0 }
 0x1bd   : > { %v9683_v6 = vpack.i.bf16 %v1730_v46, %v1120_v24 }
 0x1be   : > { %v1062_v39 = vpop.f32.mrf.mxu0 }
 0x1bf   : > { %v12048_v52 = vadd.f32 %v1062_v39, %v12002_v0  ;;  %9684 = vrot.lane.b32.xlu2 %v9683_v6, %s16056_s21 }
 0x1c0   : > { %v1624_v57 = vpop.f32.mrf.mxu1 }
 0x1c1   : > { %v1122_v11 = vmax.f32 %v12048_v52, 0.0 }
 0x1c3   : > { %v9693_v49 = vpack.i.bf16 %v1123_v42, %v1122_v11 }
 0x1c6   : > { %v1064_v12 = vpop.f32.mrf.mxu0 }
 0x1c7   : > { %9694 = vrot.lane.b32.xlu2 %v9693_v49, %s16056_s21 }
 0x1d4   : > { %v1687_v47 = vpop.f32.mrf.mxu2  ;;  %v1700_v60 = vpop.f32.mrf.mxu3 }
 0x1d5   : > { %v12059_v34 = vadd.f32 %v1687_v47, %v12002_v0  ;;  %v12062_v40 = vadd.f32 %v1700_v60, %v12002_v0 }
 0x1d7   : > { %v1735_v29 = vmax.f32 %v12059_v34, 0.0  ;;  %v1736_v43 = vmax.f32 %v12062_v40, 0.0 }
 0x1d9   : > { %v9703_v38 = vpack.i.bf16 %v1736_v43, %v1735_v29 }
 0x1db   : > { %9704 = vrot.lane.b32.xlu1 %v9703_v38, %s16056_s21 }
 0x1dc   : > { %v1689_v23 = vpop.f32.mrf.mxu2  ;;  %v1702_v28 = vpop.f32.mrf.mxu3 }
 0x1dd   : > { %v1114_v8 = vpop.f32.mrf.mxu0 }
 0x1de   : > { %v12081_v22 = vadd.f32 %v1114_v8, %v12002_v0 }
 0x1df   : > { %v1674_v18 = vpop.f32.mrf.mxu1 }
 0x1e0   : > { %v1675_v20 = vadd.f32 %v1674_v18, %v12002_v0  ;;  %v1126_v7 = vmax.f32 %v12081_v22, 0.0  ;;  %v7702_v22 = vld [vmem:[%s16094_s3 + $0x30] sm:$0xf] }
 0x1e2   : > { %v1734_v5 = vmax.f32 %v1675_v20, 0.0 }
 0x1e4   : > { %v9698_v53 = vpack.i.bf16 %v1734_v5, %v1124_v1 }
 0x1e5   : > { %v1116_v59 = vpop.f32.mrf.mxu0 }
 0x1e6   : > { %9699 = vrot.lane.b32.xlu0 %v9698_v53, %s16056_s21 }
 0x1e7   : > { %v1676_v15 = vpop.f32.mrf.mxu1 }
 0x1f1   : > { %v1661_v50 = vpop.f32.mrf.mxu0 }
 0x1f2   : > { %v12089_v33 = vadd.f32 %v1661_v50, %v12002_v0 }
 0x1f4   : > { %v1733_v10 = vmax.f32 %v12089_v33, 0.0  ;;  %v8920_v33 = vld [vmem:[%s16094_s3 + $0x8] sm:$0xf0] }
 0x1f6   : > { %v9733_v26 = vpack.i.bf16 %v1733_v10, %v1121_v63 }
 0x1f7   : > { %v1726_v56 = vpop.f32.mrf.mxu1 }
 0x1f8   : > { %v12084_v55 = vadd.f32 %v1726_v56, %v12002_v0 }
 0x1f9   : > { %v1663_v44 = vpop.f32.mrf.mxu0 }
 0x1fa   : > { %v1738_v27 = vmax.f32 %v12084_v55, 0.0 }
 0x1fc   : > { %v9718_v19 = vpack.i.bf16 %v1738_v27, %v1126_v7 }
 0x1fe   : > { %9719 = vrot.lane.b32.xlu1 %v9718_v19, %s16056_s21 }
 0x1ff   : > { %v1728_v30 = vpop.f32.mrf.mxu1 }
 0x205   : > { %v1713_v62 = vpop.f32.mrf.mxu0 }
 0x206   : > { %9734 = vrot.lane.b32.xlu1 %v9733_v26, %s16056_s21  ;;  %v12176_v26 = vadd.f32 %v1713_v62, %v12002_v0  ;;  %v7750_v0 = vld [vmem:[%s16094_s3 + $0x90] sm:$0xf]  ;;  %v8938_v62 = vld [vmem:[%s16094_s3 + $0x98] sm:$0xf0] }
 0x20d   : > { %v1715_v51 = vpop.f32.mrf.mxu0 }
 0x219   : > { %v12107_v37 = vpop.permute.xlu2 %9684 }
 0x21a   : > { %v9686_v35 = vunpack.i.l.bf16 %v12107_v37  ;;  %v9687_v12 = vunpack.i.h.bf16 %v12107_v37 }
 0x221   : > { %v9695_v8 = vpop.permute.xlu2 %9694 }
 0x222   : > { %v9697_v28 = vunpack.i.h.bf16 %v9695_v8  ;;  %v9696_v18 = vunpack.i.l.bf16 %v9695_v8 }
 0x223   : > { %v9680_v32 = vpop.permute.xlu1 %9679 }
 0x224   : > { %v9682_v41 = vunpack.i.h.bf16 %v9680_v32  ;;  %v9681_v25 = vunpack.i.l.bf16 %v9680_v32  ;;  %v1158_v53 = vsel %vm628_vm8, %v9696_v18, %v9697_v28  ;;  %v7751_v32 = vor.u32 %v8938_v62, %v7750_v0 }
 0x225   : > { %v12163_v44 = vmax.f32 %v1122_v11, %v1158_v53  ;;  %v1125_v11 = vmax.f32 %v12184_v16, 0.0 }
 0x226   : > { %v1154_v61 = vsel %vm628_vm8, %v9681_v25, %v9682_v41  ;;  %v1155_v9 = vsel %vm628_vm8, %v9682_v41, %v9686_v35  ;;  %v7738_v41 = vld [vmem:[%s16094_s3 + $0x78] sm:$0xf]  ;;  %v8935_v25 = vld [vmem:[%s16094_s3 + $0x80] sm:$0xf0] }
 0x227   : > { %v12116_v6 = vmax.f32 %v1118_v21, %v1154_v61  ;;  %v12120_v39 = vmax.f32 %v1119_v48, %v1155_v9  ;;  %v7739_v61 = vor.u32 %v8935_v25, %v7738_v41  ;;  %v7726_v9 = vld [vmem:[%s16094_s3 + $0x60] sm:$0xf]  ;;  %v8026_v41 = vld [vmem:[%s16094_s3 + $0x2b8] sm:$0xf]  ;;  %v9007_v25 = vld [vmem:[%s16094_s3 + $0x2c0] sm:$0xf0] }
 0x229   : > { %v9708_v57 = vpack.i.bf16 %v12120_v39, %v12116_v6 }
 0x22b   : > { %9709 = vrot.lane.b32.xlu2 %v9708_v57, %s16059_s30  ;;  %v8932_v57 = vld [vmem:[%s16094_s3 + $0x68] sm:$0xf0] }
 0x22c   : > { %v12125_v49 = vpop.permute.xlu1 %9689 }
 0x22d   : > { %v9692_v47 = vunpack.i.h.bf16 %v12125_v49  ;;  %v9691_v60 = vunpack.i.l.bf16 %v12125_v49  ;;  %v9013_v49 = vld [vmem:[%s16094_s3 + $0x2f0] sm:$0xf0] }
 0x22f   : > { %v1766_v17 = vsel %vm628_vm8, %v9687_v12, %v9691_v60  ;;  %v1767_v45 = vsel %vm628_vm8, %v9691_v60, %v9692_v47 }
 0x230   : > { %v12136_v48 = vmax.f32 %v1730_v46, %v1766_v17  ;;  %v12140_v21 = vmax.f32 %v1731_v4, %v1767_v45  ;;  %v7727_v45 = vor.u32 %v8932_v57, %v7726_v9  ;;  %v8027_v57 = vor.u32 %v9007_v25, %v8026_v41  ;;  %v7858_v41 = vld [vmem:[%s16094_s3 + $0x168] sm:$0xf]  ;;  %v8965_v25 = vld [vmem:[%s16094_s3 + $0x170] sm:$0xf0] }
 0x232   : > { %v9713_v38 = vpack.i.bf16 %v12140_v21, %v12136_v48 }
 0x234   : > { %9714 = vrot.lane.b32.xlu0 %v9713_v38, %s16059_s30 }
 0x24d   : > { %v12145_v23 = vpop.permute.xlu1 %9704 }
 0x24e   : > { %v9707_v20 = vunpack.i.h.bf16 %v12145_v23  ;;  %v9706_v3 = vunpack.i.l.bf16 %v12145_v23  ;;  %v9112_v23 = vld [vmem:[%s16094_s3 + $0x608] sm:$0xf0] }
 0x250   : > { %v1771_v59 = vsel %vm628_vm8, %v9706_v3, %v9707_v20 }
 0x251   : > { %v12173_v30 = vmax.f32 %v1735_v29, %v1771_v59  ;;  %v7762_v29 = vld [vmem:[%s16094_s3 + $0xa8] sm:$0xf] }
 0x258   : > { %v12149_v46 = vpop.permute.xlu0 %9699 }
 0x259   : > { %v9702_v36 = vunpack.i.h.bf16 %v12149_v46  ;;  %v9701_v4 = vunpack.i.l.bf16 %v12149_v46  ;;  %v8446_v46 = vld [vmem:[%s16094_s3 + $0x600] sm:$0xf] }
 0x25a   : > { %v8447_v40 = vor.u32 %v9112_v23, %v8446_v46  ;;  %v8314_v46 = vld [vmem:[%s16094_s3 + $0x4f8] sm:$0xf]  ;;  %v9079_v23 = vld [vmem:[%s16094_s3 + $0x500] sm:$0xf0] }
 0x25b   : > { %v1159_v15 = vsel %vm628_vm8, %v9697_v28, %v9701_v4  ;;  %v1770_v50 = vsel %vm628_vm8, %v9702_v36, %v9706_v3  ;;  %v7714_v28 = vld [vmem:[%s16094_s3 + $0x48] sm:$0xf]  ;;  %v8929_v3 = vld [vmem:[%s16094_s3 + $0x50] sm:$0xf0] }
 0x25c   : > { %v12167_v56 = vmax.f32 %v1123_v42, %v1159_v15  ;;  %v12169_v19 = vmax.f32 %v1734_v5, %v1770_v50  ;;  %v1737_v42 = vmax.f32 %v12176_v26, 0.0  ;;  %v7763_v5 = vor.u32 %v8941_v13, %v7762_v29 }
 0x25d   : > { %v7715_v55 = vor.u32 %v8929_v3, %v7714_v28  ;;  %v9004_v28 = vld [vmem:[%s16094_s3 + $0x2a8] sm:$0xf0] }
 0x25e   : > { %v9723_v51 = vpack.i.bf16 %v12167_v56, %v12163_v44  ;;  %v9728_v52 = vpack.i.bf16 %v12173_v30, %v12169_v19  ;;  %v9743_v34 = vpack.i.bf16 %v1737_v42, %v1125_v11  ;;  %3218 = vmatpush.bf16.msra.mxu2 %v7763_v5  ;;  %v9010_v5 = vld [vmem:[%s16094_s3 + $0x2d8] sm:$0xf0] }
 0x260   : > { %9724 = vrot.lane.b32.xlu2 %v9723_v51, %s16059_s30  ;;  %9729 = vrot.lane.b32.xlu0 %v9728_v52, %s16059_s30 }
 0x262   : > { %3219 = vmatpush.bf16.msra.mxu2 %v7751_v32 }
 0x266   : > { %3220 = vmatpush.bf16.msra.mxu2 %v7739_v61 }
 0x268   : > { %9744 = vrot.lane.b32.xlu0 %v9743_v34, %s16056_s21 }
 0x26a   : > { %3221 = vmatpush.bf16.msra.mxu2 %v7727_v45  ;;  %v8014_v45 = vld [vmem:[%s16094_s3 + $0x2a0] sm:$0xf] }
 0x26e   : > { %3222 = vmatpush.bf16.msra.mxu2 %v7715_v55 }
 0x270   : > { %v12219_v12 = vpop.permute.xlu1 %9719 }
 0x271   : > { %v9722_v60 = vunpack.i.h.bf16 %v12219_v12  ;;  %v9721_v17 = vunpack.i.l.bf16 %v12219_v12 }
 0x273   : > { %v12227_v38 = vmax.f32 %v1738_v27, %v9722_v60  ;;  %v12233_v8 = vmax.f32 %v1126_v7, %v9721_v17  ;;  %v8926_v7 = vld [vmem:[%s16094_s3 + $0x38] sm:$0xf0] }
 0x274   : > { %v7703_v50 = vor.u32 %v8926_v7, %v7702_v22  ;;  %v8015_v7 = vor.u32 %v9004_v28, %v8014_v45  ;;  %v7859_v45 = vor.u32 %v8965_v25, %v7858_v41  ;;  %v8989_v28 = vld [vmem:[%s16094_s3 + $0x230] sm:$0xf0]  ;;  %v7822_v25 = vld [vmem:[%s16094_s3 + $0x120] sm:$0xf] }
 0x275   : > { %v9738_v53 = vpack.i.bf16 %v12227_v38, %v12233_v8 }
 0x276   : > { %3223 = vmatpush.bf16.msra.mxu2 %v7703_v50  ;;  %3232 = vmatpush.bf16.msra.mxu3 %v7859_v45 }
 0x277   : > { %9739 = vrot.lane.b32.xlu2 %v9738_v53, %s16059_s30 }
 0x278   : > { %v9735_v27 = vpop.permute.xlu1 %9734 }
 0x279   : > { %v9737_v59 = vunpack.i.h.bf16 %v9735_v27  ;;  %v9736_v15 = vunpack.i.l.bf16 %v9735_v27  ;;  %v8146_v27 = vld [vmem:[%s16094_s3 + $0x3a8] sm:$0xf] }
 0x27b   : > { %v1157_v51 = vsel %vm628_vm8, %v9736_v15, %v9696_v18  ;;  %v1769_v52 = vsel %vm628_vm8, %v9737_v59, %v9702_v36  ;;  %v1156_v34 = vsel %vm628_vm8, %v9686_v35, %v9736_v15  ;;  %v1768_v29 = vsel %vm628_vm8, %v9692_v47, %v9737_v59  ;;  %v8038_v36 = vld [vmem:[%s16094_s3 + $0x2d0] sm:$0xf]  ;;  %v9037_v59 = vld [vmem:[%s16094_s3 + $0x3b0] sm:$0xf0] }
 0x27c   : > { %v12260_v13 = vmax.f32 %v1121_v63, %v1157_v51  ;;  %v12264_v0 = vmax.f32 %v1733_v10, %v1769_v52  ;;  %v12268_v18 = vmax.f32 %v1120_v24, %v1156_v34  ;;  %v12272_v37 = vmax.f32 %v1732_v14, %v1768_v29  ;;  %v7678_v14 = vld [vmem:[%s16094_s3] sm:$0xf]  ;;  %v8050_v63 = vld [vmem:[%s16094_s3 + $0x2e8] sm:$0xf]  ;;  %v8134_v29 = vld [vmem:[%s16094_s3 + $0x390] sm:$0xf] }
 0x27d   : > { %v7691_v24 = vor.u32 %v8923_v58, %v7690_v54  ;;  %v7679_v10 = vor.u32 %v8920_v33, %v7678_v14  ;;  %v8051_v47 = vor.u32 %v9013_v49, %v8050_v63  ;;  %v8039_v62 = vor.u32 %v9010_v5, %v8038_v36  ;;  %v8002_v54 = vld [vmem:[%s16094_s3 + $0x288] sm:$0xf]  ;;  %v9001_v58 = vld [vmem:[%s16094_s3 + $0x290] sm:$0xf0]  ;;  %v8110_v33 = vld [vmem:[%s16094_s3 + $0x360] sm:$0xf] }
 0x27e   : > { %v9753_v35 = vpack.i.bf16 %v12264_v0, %v12260_v13  ;;  %v9748_v31 = vpack.i.bf16 %v12272_v37, %v12268_v18  ;;  %v8147_v52 = vor.u32 %v9037_v59, %v8146_v27  ;;  %v7990_v63 = vld [vmem:[%s16094_s3 + $0x270] sm:$0xf]  ;;  %v8998_v49 = vld [vmem:[%s16094_s3 + $0x278] sm:$0xf0]  ;;  %v8098_v5 = vld [vmem:[%s16094_s3 + $0x348] sm:$0xf] }
 0x27f   : > { %3224 = vmatpush.bf16.msra.mxu2 %v7691_v24  ;;  %3260 = vmatpush.bf16.msrb.mxu1 %v8051_v47  ;;  %v8003_v24 = vor.u32 %v9001_v58, %v8002_v54  ;;  %v7991_v47 = vor.u32 %v8998_v49, %v7990_v63  ;;  %v9022_v27 = vld [vmem:[%s16094_s3 + $0x338] sm:$0xf0]  ;;  %v8074_v54 = vld [vmem:[%s16094_s3 + $0x318] sm:$0xf]  ;;  %v9019_v58 = vld [vmem:[%s16094_s3 + $0x320] sm:$0xf0] }
 0x280   : > { %9754 = vrot.lane.b32.xlu2 %v9753_v35, %s16059_s30  ;;  %9749 = vrot.lane.b32.xlu1 %v9748_v31, %s16059_s30  ;;  %v9034_v35 = vld [vmem:[%s16094_s3 + $0x398] sm:$0xf0]  ;;  %v7930_v63 = vld [vmem:[%s16094_s3 + $0x1f8] sm:$0xf]  ;;  %v8075_v49 = vor.u32 %v9019_v58, %v8074_v54 }
 0x281   : > { %v8135_v31 = vor.u32 %v9034_v35, %v8134_v29  ;;  %v8974_v58 = vld [vmem:[%s16094_s3 + $0x1b8] sm:$0xf0] }
 0x283   : > { %3225 = vmatpush.bf16.msra.mxu2 %v7679_v10  ;;  %3261 = vmatpush.bf16.msrb.mxu1 %v8039_v62  ;;  %v9028_v10 = vld [vmem:[%s16094_s3 + $0x368] sm:$0xf0]  ;;  %v9025_v62 = vld [vmem:[%s16094_s3 + $0x350] sm:$0xf0] }
 0x284   : > { %v8111_v36 = vor.u32 %v9028_v10, %v8110_v33  ;;  %v7834_v33 = vld [vmem:[%s16094_s3 + $0x138] sm:$0xf]  ;;  %v8959_v10 = vld [vmem:[%s16094_s3 + $0x140] sm:$0xf0] }
 0x285   : > { %v12304_v32 = vpop.permute.xlu2 %9709 }
 0x286   : > { %v9712_v61 = vunpack.i.h.bf16 %v12304_v32  ;;  %v9711_v9 = vunpack.i.l.bf16 %v12304_v32 }
 0x287   : > { %3262 = vmatpush.bf16.msrb.mxu1 %v8027_v57  ;;  %v8099_v57 = vor.u32 %v9025_v62, %v8098_v5  ;;  %v8062_v5 = vld [vmem:[%s16094_s3 + $0x300] sm:$0xf]  ;;  %v9016_v62 = vld [vmem:[%s16094_s3 + $0x308] sm:$0xf0] }
 0x288   : > { %v1207_v22 = vsel %vm703_vm6, %v9711_v9, %v9712_v61  ;;  %v7954_v9 = vld [vmem:[%s16094_s3 + $0x228] sm:$0xf]  ;;  %v8063_v45 = vor.u32 %v9016_v62, %v8062_v5 }
 0x289   : > { %v1224_v50 = vmax.f32 %v12116_v6, %v1207_v22  ;;  %v8122_v6 = vld [vmem:[%s16094_s3 + $0x378] sm:$0xf]  ;;  %v8995_v22 = vld [vmem:[%s16094_s3 + $0x260] sm:$0xf0]  ;;  %v7955_v59 = vor.u32 %v8989_v28, %v7954_v9  ;;  %v8956_v9 = vld [vmem:[%s16094_s3 + $0x128] sm:$0xf0] }
 0x28a   : > { %v7823_v28 = vor.u32 %v8956_v9, %v7822_v25  ;;  %v8482_v25 = vld [vmem:[%s16094_s3 + $0x648] sm:$0xf]  ;;  %v9121_v9 = vld [vmem:[%s16094_s3 + $0x650] sm:$0xf0] }
 0x28b   : > { %3263 = vmatpush.bf16.msrb.mxu1 %v8015_v7  ;;  %v8086_v7 = vld [vmem:[%s16094_s3 + $0x330] sm:$0xf]  ;;  %3246 = vmatpush.bf16.msrb.mxu0 %v7955_v59  ;;  %v8953_v59 = vld [vmem:[%s16094_s3 + $0x110] sm:$0xf0] }
 0x28c   : > { %v8087_v29 = vor.u32 %v9022_v27, %v8086_v7  ;;  %v7810_v27 = vld [vmem:[%s16094_s3 + $0x108] sm:$0xf] }
 0x28f   : > { %3264 = vmatpush.bf16.msrb.mxu1 %v8003_v24 }
 0x293   : > { %3265 = vmatpush.bf16.msrb.mxu1 %v7991_v47  ;;  %v7835_v47 = vor.u32 %v8959_v10, %v7834_v33  ;;  %v7786_v10 = vld [vmem:[%s16094_s3 + $0xd8] sm:$0xf] }
 0x2a6   : > { %v12320_v3 = vpop.permute.xlu0 %9714 }
 0x2a7   : > { %v9717_v53 = vunpack.i.h.bf16 %v12320_v3  ;;  %v9716_v55 = vunpack.i.l.bf16 %v12320_v3  ;;  %v8194_v3 = vld [vmem:[%s16094_s3 + $0x408] sm:$0xf] }
 0x2a9   : > { %v1819_v15 = vsel %vm703_vm6, %v9716_v55, %v9717_v53  ;;  %v7978_v55 = vld [vmem:[%s16094_s3 + $0x258] sm:$0xf] }
 0x2aa   : > { %v1836_v51 = vmax.f32 %v12136_v48, %v1819_v15  ;;  %v9031_v48 = vld [vmem:[%s16094_s3 + $0x380] sm:$0xf0]  ;;  %v7979_v15 = vor.u32 %v8995_v22, %v7978_v55  ;;  %v8980_v55 = vld [vmem:[%s16094_s3 + $0x1e8] sm:$0xf0] }
 0x2ab   : > { %v8123_v14 = vor.u32 %v9031_v48, %v8122_v6  ;;  %v7966_v6 = vld [vmem:[%s16094_s3 + $0x240] sm:$0xf]  ;;  %v8992_v48 = vld [vmem:[%s16094_s3 + $0x248] sm:$0xf0] }
 0x2ac   : > { %v12338_v34 = vpack.c.bf16 %v1836_v51, %v1224_v50  ;;  %3266 = vmatpush.bf16.msrb.mxu1 %v7979_v15  ;;  %v7846_v50 = vld [vmem:[%s16094_s3 + $0x150] sm:$0xf]  ;;  %v8962_v51 = vld [vmem:[%s16094_s3 + $0x158] sm:$0xf0]  ;;  %v7967_v24 = vor.u32 %v8992_v48, %v7966_v6  ;;  %v7906_v15 = vld [vmem:[%s16094_s3 + $0x1c8] sm:$0xf] }
 0x2ad   : > { %v7847_v35 = vor.u32 %v8962_v51, %v7846_v50  ;;  %v7811_v50 = vor.u32 %v8953_v59, %v7810_v27  ;;  %v8977_v51 = vld [vmem:[%s16094_s3 + $0x1d0] sm:$0xf0]  ;;  %v8944_v27 = vld [vmem:[%s16094_s3 + $0xc8] sm:$0xf0]  ;;  %v7870_v59 = vld [vmem:[%s16094_s3 + $0x180] sm:$0xf] }
 0x2ae   : > { %3226 = vmatmul.bf16.vlgmr.msra.gmra.mxu2 %v12338_v34 }
 0x2af   : > { %3274 = vmatpush.bf16.msra.mxu2 %v8147_v52  ;;  %v7942_v52 = vld [vmem:[%s16094_s3 + $0x210] sm:$0xf]  ;;  %3233 = vmatpush.bf16.msra.mxu3 %v7847_v35  ;;  %v8950_v35 = vld [vmem:[%s16094_s3 + $0xf8] sm:$0xf0] }
 0x2b0   : > { %3267 = vmatpush.bf16.msrb.mxu1 %v7967_v24 }
 0x2b3   : > { %3275 = vmatpush.bf16.msra.mxu2 %v8135_v31  ;;  %v8986_v31 = vld [vmem:[%s16094_s3 + $0x218] sm:$0xf0]  ;;  %3234 = vmatpush.bf16.msra.mxu3 %v7835_v47 }
 0x2b7   : > { %3276 = vmatpush.bf16.msra.mxu2 %v8123_v14  ;;  %v7943_v14 = vor.u32 %v8986_v31, %v7942_v52  ;;  %3235 = vmatpush.bf16.msra.mxu3 %v7823_v28  ;;  %v7907_v52 = vor.u32 %v8977_v51, %v7906_v15  ;;  %v7894_v31 = vld [vmem:[%s16094_s3 + $0x1b0] sm:$0xf]  ;;  %v8483_v15 = vor.u32 %v9121_v9, %v8482_v25  ;;  %v8968_v51 = vld [vmem:[%s16094_s3 + $0x188] sm:$0xf0] }
 0x2b9   : > { %3247 = vmatpush.bf16.msrb.mxu0 %v7943_v14  ;;  %v7895_v14 = vor.u32 %v8974_v58, %v7894_v31  ;;  %v9115_v31 = vld [vmem:[%s16094_s3 + $0x620] sm:$0xf0] }
 0x2ba   : > { %v12455_v7 = vpop.permute.xlu2 %9724 }
 0x2bb   : > { %3277 = vmatpush.bf16.msra.mxu2 %v8111_v36  ;;  %v8983_v36 = vld [vmem:[%s16094_s3 + $0x200] sm:$0xf0]  ;;  %3236 = vmatpush.bf16.msra.mxu3 %v7811_v50  ;;  %v9727_v6 = vunpack.i.h.bf16 %v12455_v7  ;;  %v9726_v48 = vunpack.i.l.bf16 %v12455_v7  ;;  %v8436_v7 = vld [vmem:[%s16094_s3 + $0x5f4] sm:$0xf0] }
 0x2bc   : > { %v7931_v41 = vor.u32 %v8983_v36, %v7930_v63  ;;  %v8947_v63 = vld [vmem:[%s16094_s3 + $0xe0] sm:$0xf0] }
 0x2bd   : > { %v1211_v5 = vsel %vm703_vm6, %v9726_v48, %v9727_v6  ;;  %v7787_v62 = vor.u32 %v8947_v63, %v7786_v10 }
 0x2be   : > { %3248 = vmatpush.bf16.msrb.mxu0 %v7931_v41  ;;  %v8971_v41 = vld [vmem:[%s16094_s3 + $0x1a0] sm:$0xf0]  ;;  %v1228_v28 = vmax.f32 %v12163_v44, %v1211_v5  ;;  %v8470_v44 = vld [vmem:[%s16094_s3 + $0x630] sm:$0xf] }
 0x2bf   : > { %3278 = vmatpush.bf16.msra.mxu2 %v8099_v57  ;;  %v7918_v57 = vld [vmem:[%s16094_s3 + $0x1e0] sm:$0xf] }
 0x2c0   : > { %v7919_v22 = vor.u32 %v8980_v55, %v7918_v57 }
 0x2c2   : > { %3249 = vmatpush.bf16.msrb.mxu0 %v7919_v22  ;;  %v7774_v22 = vld [vmem:[%s16094_s3 + $0xc0] sm:$0xf] }
 0x2c3   : > { %3279 = vmatpush.bf16.msra.mxu2 %v8087_v29  ;;  %v7798_v29 = vld [vmem:[%s16094_s3 + $0xf0] sm:$0xf]  ;;  %v7775_v50 = vor.u32 %v8944_v27, %v7774_v22  ;;  %v8958_v22 = vld [vmem:[%s16094_s3 + $0x13c] sm:$0xf]  ;;  %v7836_v27 = vld [vmem:[%s16094_s3 + $0x144] sm:$0xf0] }
 0x2c4   : > { %v7799_v54 = vor.u32 %v8950_v35, %v7798_v29  ;;  %v7871_v29 = vor.u32 %v8968_v51, %v7870_v59  ;;  %v8458_v35 = vld [vmem:[%s16094_s3 + $0x618] sm:$0xf]  ;;  %v8242_v59 = vld [vmem:[%s16094_s3 + $0x468] sm:$0xf]  ;;  %v9085_v51 = vld [vmem:[%s16094_s3 + $0x530] sm:$0xf0] }
 0x2c6   : > { %3250 = vmatpush.bf16.msrb.mxu0 %v7907_v52  ;;  %3237 = vmatpush.bf16.msra.mxu3 %v7799_v54 }
 0x2c7   : > { %3280 = vmatpush.bf16.msra.mxu2 %v8075_v49  ;;  %v7882_v49 = vld [vmem:[%s16094_s3 + $0x198] sm:$0xf] }
 0x2c8   : > { %v7883_v57 = vor.u32 %v8971_v41, %v7882_v49 }
 0x2ca   : > { %3251 = vmatpush.bf16.msrb.mxu0 %v7895_v14  ;;  %3238 = vmatpush.bf16.msra.mxu3 %v7787_v62  ;;  %v8459_v62 = vor.u32 %v9115_v31, %v8458_v35  ;;  %v9109_v35 = vld [vmem:[%s16094_s3 + $0x5f0] sm:$0xf0] }
 0x2cb   : > { %3281 = vmatpush.bf16.msra.mxu2 %v8063_v45 }
 0x2ce   : > { %3252 = vmatpush.bf16.msrb.mxu0 %v7883_v57  ;;  %3239 = vmatpush.bf16.msra.mxu3 %v7775_v50 }
 0x2d1   : > { %v12483_v24 = vpop.permute.xlu2 %9739 }
 0x2d2   : > { %v12485_v33 = vpop.permute.xlu0 %9729  ;;  %3253 = vmatpush.bf16.msrb.mxu0 %v7871_v29  ;;  %v8434_v29 = vld [vmem:[%s16094_s3 + $0x5e8] sm:$0xf] }
 0x2d3   : > { %v9732_v47 = vunpack.i.h.bf16 %v12485_v33  ;;  %v9731_v36 = vunpack.i.l.bf16 %v12485_v33 }
 0x2d5   : > { %v1823_v45 = vsel %vm703_vm6, %v9731_v36, %v9732_v47 }
 0x2d6   : > { %v1840_v55 = vmax.f32 %v12169_v19, %v1823_v45  ;;  %v9118_v19 = vld [vmem:[%s16094_s3 + $0x638] sm:$0xf0] }
 0x2d7   : > { %v8471_v14 = vor.u32 %v9118_v19, %v8470_v44  ;;  %v8338_v44 = vld [vmem:[%s16094_s3 + $0x528] sm:$0xf] }
 0x2d8   : > { %v12533_v52 = vpack.c.bf16 %v1840_v55, %v1228_v28  ;;  %v8339_v31 = vor.u32 %v9085_v51, %v8338_v44  ;;  %v7812_v44 = vld [vmem:[%s16094_s3 + $0x114] sm:$0xf0]  ;;  %v9076_v51 = vld [vmem:[%s16094_s3 + $0x4e8] sm:$0xf0] }
 0x2da   : > { %v12541_v54 = vpop.permute.xlu2 %9754  ;;  %v9745_v58 = vpop.permute.xlu0 %9744  ;;  %3282 = vmatmul.bf16.vlgmr.msra.gmra.mxu2 %v12533_v52  ;;  %3302 = vmatpush.bf16.msra.mxu0 %v8339_v31 }
 0x2db   : > { %v9757_v10 = vunpack.i.h.bf16 %v12541_v54  ;;  %v9756_v63 = vunpack.i.l.bf16 %v12541_v54  ;;  %v9747_v49 = vunpack.i.h.bf16 %v9745_v58  ;;  %v9746_v5 = vunpack.i.l.bf16 %v9745_v58  ;;  %3334 = vmatpush.bf16.msra.mxu2 %v8483_v15  ;;  %v9061_v15 = vld [vmem:[%s16094_s3 + $0x470] sm:$0xf0] }
 0x2dc   : > { %v8243_v50 = vor.u32 %v9061_v15, %v8242_v59  ;;  %v8435_v58 = vor.u32 %v9109_v35, %v8434_v29  ;;  %v8952_v59 = vld [vmem:[%s16094_s3 + $0x10c] sm:$0xf] }
 0x2dd   : > { %v1210_v41 = vsel %vm703_vm6, %v9756_v63, %v9726_v48  ;;  %v1822_v25 = vsel %vm703_vm6, %v9757_v10, %v9731_v36  ;;  %v1161_v9 = vsel %vm628_vm8, %v9746_v5, %v9721_v17  ;;  %v1773_v57 = vsel %vm628_vm8, %v9747_v49, %v9722_v60 }
 0x2de   : > { %v1227_v45 = vmax.f32 %v12260_v13, %v1210_v41  ;;  %v1839_v28 = vmax.f32 %v12264_v0, %v1822_v25  ;;  %v12562_v55 = vmax.f32 %v1125_v11, %v1161_v9  ;;  %v12566_v48 = vmax.f32 %v1737_v42, %v1773_v57  ;;  %3288 = vmatpush.bf16.msrb.mxu3 %v8243_v50  ;;  %v9082_v41 = vld [vmem:[%s16094_s3 + $0x518] sm:$0xf0]  ;;  %v8422_v25 = vld [vmem:[%s16094_s3 + $0x5d0] sm:$0xf]  ;;  %v8302_v50 = vld [vmem:[%s16094_s3 + $0x4e0] sm:$0xf] }
 0x2df   : > { %v9742_v36 = vunpack.i.h.bf16 %v12483_v24  ;;  %v9741_v17 = vunpack.i.l.bf16 %v12483_v24  ;;  %3335 = vmatpush.bf16.msra.mxu2 %v8471_v14  ;;  %v1160_v12 = vsel %vm628_vm8, %v9701_v4, %v9746_v5  ;;  %v1772_v60 = vsel %vm628_vm8, %v9707_v20, %v9747_v49  ;;  %v8964_v20 = vld [vmem:[%s16094_s3 + $0x16c] sm:$0xf]  ;;  %v7860_v4 = vld [vmem:[%s16094_s3 + $0x174] sm:$0xf0]  ;;  %v8230_v14 = vld [vmem:[%s16094_s3 + $0x450] sm:$0xf]  ;;  %3316 = vmatpush.bf16.msra.mxu1 %v8435_v58 }
 0x2e0   : > { %v9763_v16 = vpack.i.bf16 %v12566_v48, %v12562_v55  ;;  %v12580_v26 = vmax.f32 %v1124_v1, %v1160_v12  ;;  %v12584_v42 = vmax.f32 %v1736_v43, %v1772_v60  ;;  %v12586_v11 = vpack.c.bf16 %v1839_v28, %v1227_v45  ;;  %v9058_v49 = vld [vmem:[%s16094_s3 + $0x458] sm:$0xf0]  ;;  %v8326_v5 = vld [vmem:[%s16094_s3 + $0x510] sm:$0xf]  ;;  %v8218_v28 = vld [vmem:[%s16094_s3 + $0x438] sm:$0xf] }
 0x2e1   : > { %v1844_v43 = vmax.f32 %v12227_v38, %v9742_v36  ;;  %v1232_v1 = vmax.f32 %v12233_v8, %v9741_v17  ;;  %v7863_v13 = vor.u32 %v8964_v20, %v7860_v4  ;;  %v8961_v38 = vld [vmem:[%s16094_s3 + $0x154] sm:$0xf]  ;;  %v7848_v8 = vld [vmem:[%s16094_s3 + $0x15c] sm:$0xf0]  ;;  %v9106_v9 = vld [vmem:[%s16094_s3 + $0x5d8] sm:$0xf0]  ;;  %v8327_v57 = vor.u32 %v9082_v41, %v8326_v5 }
 0x2e2   : > { %9764 = vrot.lane.b32.xlu1 %v9763_v16, %s16059_s30  ;;  %v9758_v2 = vpack.i.bf16 %v12584_v42, %v12580_v26  ;;  %3268 = vmatmul.bf16.vlgmr.msrb.gmra.mxu1 %v12586_v11  ;;  %v7851_v19 = vor.u32 %v8961_v38, %v7848_v8  ;;  %v8423_v45 = vor.u32 %v9106_v9, %v8422_v25  ;;  %v9055_v12 = vld [vmem:[%s16094_s3 + $0x440] sm:$0xf0]  ;;  %v8206_v20 = vld [vmem:[%s16094_s3 + $0x420] sm:$0xf]  ;;  %v9052_v4 = vld [vmem:[%s16094_s3 + $0x428] sm:$0xf0] }
 0x2e3   : > { %3336 = vmatpush.bf16.msra.mxu2 %v8459_v62  ;;  %v12611_v0 = vpack.c.bf16 %v1844_v43, %v1232_v1  ;;  %v8231_v62 = vor.u32 %v9058_v49, %v8230_v14  ;;  %v7839_v60 = vor.u32 %v8958_v22, %v7836_v27  ;;  %v8955_v16 = vld [vmem:[%s16094_s3 + $0x124] sm:$0xf]  ;;  %v8219_v1 = vor.u32 %v9055_v12, %v8218_v28  ;;  %v8398_v14 = vld [vmem:[%s16094_s3 + $0x5a0] sm:$0xf]  ;;  %v8290_v41 = vld [vmem:[%s16094_s3 + $0x4c8] sm:$0xf] }
 0x2e4   : > { %9759 = vrot.lane.b32.xlu0 %v9758_v2, %s16059_s30  ;;  %v7824_v2 = vld [vmem:[%s16094_s3 + $0x12c] sm:$0xf0]  ;;  %v9103_v43 = vld [vmem:[%s16094_s3 + $0x5c0] sm:$0xf0]  ;;  %3303 = vmatpush.bf16.msra.mxu0 %v8327_v57  ;;  %v8315_v38 = vor.u32 %v9079_v23, %v8314_v46  ;;  %v7815_v49 = vor.u32 %v8952_v59, %v7812_v44  ;;  %v7800_v5 = vld [vmem:[%s16094_s3 + $0xfc] sm:$0xf0] }
 0x2e5   : > { %3289 = vmatpush.bf16.msrb.mxu3 %v8231_v62  ;;  %3317 = vmatpush.bf16.msra.mxu1 %v8423_v45  ;;  %v7827_v27 = vor.u32 %v8955_v16, %v7824_v2  ;;  %v9073_v25 = vld [vmem:[%s16094_s3 + $0x4d0] sm:$0xf0]  ;;  %v8386_v57 = vld [vmem:[%s16094_s3 + $0x588] sm:$0xf]  ;;  %v8943_v2 = vld [vmem:[%s16094_s3 + $0xc4] sm:$0xf] }
 0x2e6   : > { %v9097_v45 = vld [vmem:[%s16094_s3 + $0x590] sm:$0xf0]  ;;  %v8291_v12 = vor.u32 %v9073_v25, %v8290_v41  ;;  %v7788_v16 = vld [vmem:[%s16094_s3 + $0xe4] sm:$0xf0]  ;;  %v9043_v44 = vld [vmem:[%s16094_s3 + $0x3e0] sm:$0xf0] }
 0x2e7   : > { %3337 = vmatpush.bf16.msra.mxu2 %v8447_v40  ;;  %v8410_v40 = vld [vmem:[%s16094_s3 + $0x5b8] sm:$0xf]  ;;  %v8387_v46 = vor.u32 %v9097_v45, %v8386_v57  ;;  %v8988_v25 = vld [vmem:[%s16094_s3 + $0x22c] sm:$0xf]  ;;  %s10871_s30 = smov 90  }
 0x2e8   : > { %v8411_v15 = vor.u32 %v9103_v43, %v8410_v40  ;;  %3304 = vmatpush.bf16.msra.mxu0 %v8315_v38  ;;  %v7776_v40 = vld [vmem:[%s16094_s3 + $0xcc] sm:$0xf0]  ;;  %v9070_v38 = vld [vmem:[%s16094_s3 + $0x4b8] sm:$0xf0]  ;;  %v7764_v41 = vld [vmem:[%s16094_s3 + $0xb4] sm:$0xf0] }
 0x2e9   : > { %3290 = vmatpush.bf16.msrb.mxu3 %v8219_v1  ;;  %v7779_v43 = vor.u32 %v8943_v2, %v7776_v40  ;;  %v8182_v1 = vld [vmem:[%s16094_s3 + $0x3f0] sm:$0xf]  ;;  %v7752_v2 = vld [vmem:[%s16094_s3 + $0x9c] sm:$0xf0]  ;;  %v9084_v24 = vld [vmem:[%s16094_s3 + $0x52c] sm:$0xf] }
 0x2ea   : > { %8492 = vmatmul.msk.bf16.vlgmr.msra.gmra.mxu2 %vm3214_vm10, %v12611_v0  ;;  %3318 = vmatpush.bf16.msra.mxu1 %v8411_v15  ;;  %v8170_v15 = vld [vmem:[%s16094_s3 + $0x3d8] sm:$0xf] }
 0x2eb   : > { %3358 = vmatpush.bf16.msra.mxu2 %v7863_v13 }
 0x2ef   : > { %3359 = vmatpush.bf16.msra.mxu2 %v7851_v19  ;;  %v8207_v19 = vor.u32 %v9052_v4, %v8206_v20  ;;  %v9046_v20 = vld [vmem:[%s16094_s3 + $0x3f8] sm:$0xf0]  ;;  %v8278_v4 = vld [vmem:[%s16094_s3 + $0x4b0] sm:$0xf] }
 0x2f1   : > { %3291 = vmatpush.bf16.msrb.mxu3 %v8207_v19  ;;  %v8266_v19 = vld [vmem:[%s16094_s3 + $0x498] sm:$0xf] }
 0x2f2   : > { %v9750_v13 = vpop.permute.xlu1 %9749 }
 0x2f3   : > { %v9752_v8 = vunpack.i.h.bf16 %v9750_v13  ;;  %v9751_v22 = vunpack.i.l.bf16 %v9750_v13  ;;  %3360 = vmatpush.bf16.msra.mxu2 %v7839_v60  ;;  %v8946_v60 = vld [vmem:[%s16094_s3 + $0xdc] sm:$0xf]  ;;  %v8183_v13 = vor.u32 %v9046_v20, %v8182_v1  ;;  %v8985_v1 = vld [vmem:[%s16094_s3 + $0x214] sm:$0xf]  ;;  %v7944_v20 = vld [vmem:[%s16094_s3 + $0x21c] sm:$0xf0] }
 0x2f4   : > { %v7791_v23 = vor.u32 %v8946_v60, %v7788_v16  ;;  %v9057_v60 = vld [vmem:[%s16094_s3 + $0x454] sm:$0xf] }
 0x2f5   : > { %v1821_v29 = vsel %vm703_vm6, %v9752_v8, %v9757_v10  ;;  %v1208_v35 = vsel %vm703_vm6, %v9712_v61, %v9751_v22  ;;  %v1209_v31 = vsel %vm703_vm6, %v9751_v22, %v9756_v63  ;;  %v1820_v58 = vsel %vm703_vm6, %v9717_v53, %v9752_v8  ;;  %v9100_v10 = vld [vmem:[%s16094_s3 + $0x5a8] sm:$0xf0]  ;;  %v9049_v53 = vld [vmem:[%s16094_s3 + $0x410] sm:$0xf0]  ;;  %v8374_v8 = vld [vmem:[%s16094_s3 + $0x570] sm:$0xf] }
 0x2f6   : > { %v1838_v32 = vmax.f32 %v12272_v37, %v1821_v29  ;;  %v1225_v61 = vmax.f32 %v12120_v39, %v1208_v35  ;;  %v1226_v54 = vmax.f32 %v12268_v18, %v1209_v31  ;;  %v1837_v63 = vmax.f32 %v12140_v21, %v1820_v58  ;;  %v8949_v37 = vld [vmem:[%s16094_s3 + $0xf4] sm:$0xf]  ;;  %v9094_v22 = vld [vmem:[%s16094_s3 + $0x578] sm:$0xf0]  ;;  %v8362_v29 = vld [vmem:[%s16094_s3 + $0x558] sm:$0xf] }
 0x2f7   : > { %3361 = vmatpush.bf16.msra.mxu2 %v7827_v27  ;;  %v8303_v39 = vor.u32 %v9076_v51, %v8302_v50  ;;  %v8399_v62 = vor.u32 %v9100_v10, %v8398_v14  ;;  %v8195_v9 = vor.u32 %v9049_v53, %v8194_v3  ;;  %v7803_v28 = vor.u32 %v8949_v37, %v7800_v5  ;;  %v9067_v51 = vld [vmem:[%s16094_s3 + $0x4a0] sm:$0xf0]  ;;  %v9060_v14 = vld [vmem:[%s16094_s3 + $0x46c] sm:$0xf]  ;;  %v8244_v10 = vld [vmem:[%s16094_s3 + $0x474] sm:$0xf0] }
 0x2f8   : > { %v12736_v18 = vpack.c.bf16 %v1837_v63, %v1225_v61  ;;  %v12738_v21 = vpack.c.bf16 %v1838_v32, %v1226_v54  ;;  %v8279_v27 = vor.u32 %v9070_v38, %v8278_v4  ;;  %v8375_v59 = vor.u32 %v9094_v22, %v8374_v8  ;;  %v9091_v35 = vld [vmem:[%s16094_s3 + $0x560] sm:$0xf0]  ;;  %v8158_v32 = vld [vmem:[%s16094_s3 + $0x3c0] sm:$0xf]  ;;  %v9040_v54 = vld [vmem:[%s16094_s3 + $0x3c8] sm:$0xf0] }
 0x2f9   : > { %3305 = vmatpush.bf16.msra.mxu0 %v8303_v39  ;;  %3319 = vmatpush.bf16.msra.mxu1 %v8399_v62  ;;  %v8171_v50 = vor.u32 %v9043_v44, %v8170_v15  ;;  %v8267_v31 = vor.u32 %v9067_v51, %v8266_v19  ;;  %v8363_v58 = vor.u32 %v9091_v35, %v8362_v29  ;;  %v8254_v63 = vld [vmem:[%s16094_s3 + $0x480] sm:$0xf]  ;;  %v9064_v3 = vld [vmem:[%s16094_s3 + $0x488] sm:$0xf0]  ;;  %v9009_v4 = vld [vmem:[%s16094_s3 + $0x2d4] sm:$0xf] }
 0x2fa   : > { %3240 = vmatmul.bf16.vlgmr.msra.gmra.mxu3 %v12736_v18  ;;  %3254 = vmatmul.bf16.vlgmr.msrb.gmra.mxu0 %v12738_v21  ;;  %v8247_v61 = vor.u32 %v9060_v14, %v8244_v10  ;;  %v8159_v53 = vor.u32 %v9040_v54, %v8158_v32  ;;  %v8350_v37 = vld [vmem:[%s16094_s3 + $0x540] sm:$0xf]  ;;  %v9088_v39 = vld [vmem:[%s16094_s3 + $0x548] sm:$0xf0]  ;;  %v9054_v8 = vld [vmem:[%s16094_s3 + $0x43c] sm:$0xf] }
 0x2fb   : > { %3362 = vmatpush.bf16.msra.mxu2 %v7815_v49  ;;  %3292 = vmatpush.bf16.msrb.mxu3 %v8195_v9  ;;  %v8255_v49 = vor.u32 %v9064_v3, %v8254_v63  ;;  %v8940_v5 = vld [vmem:[%s16094_s3 + $0xac] sm:$0xf]  ;;  %v8351_v62 = vor.u32 %v9088_v39, %v8350_v37  ;;  %v7956_v9 = vld [vmem:[%s16094_s3 + $0x234] sm:$0xf0]  ;;  %v8040_v38 = vld [vmem:[%s16094_s3 + $0x2dc] sm:$0xf0] }
 0x2fc   : > { %v7767_v57 = vor.u32 %v8940_v5, %v7764_v41  ;;  %v7959_v45 = vor.u32 %v8988_v25, %v7956_v9  ;;  %v8220_v22 = vld [vmem:[%s16094_s3 + $0x444] sm:$0xf0]  ;;  %v8934_v15 = vld [vmem:[%s16094_s3 + $0x7c] sm:$0xf]  ;;  %v8208_v14 = vld [vmem:[%s16094_s3 + $0x42c] sm:$0xf0] }
 0x2fd   : > { %3306 = vmatpush.bf16.msra.mxu0 %v8291_v12  ;;  %3320 = vmatpush.bf16.msra.mxu1 %v8387_v46  ;;  %v8052_v12 = vld [vmem:[%s16094_s3 + $0x2f4] sm:$0xf0]  ;;  %v8232_v46 = vld [vmem:[%s16094_s3 + $0x45c] sm:$0xf0]  ;;  %v7740_v44 = vld [vmem:[%s16094_s3 + $0x84] sm:$0xf0] }
 0x2fe   : > { %v8235_v40 = vor.u32 %v9057_v60, %v8232_v46  ;;  %v8982_v19 = vld [vmem:[%s16094_s3 + $0x1fc] sm:$0xf]  ;;  %v8028_v29 = vld [vmem:[%s16094_s3 + $0x2c4] sm:$0xf0]  ;;  %v7743_v35 = vor.u32 %v8934_v15, %v7740_v44  ;;  %v8931_v10 = vld [vmem:[%s16094_s3 + $0x64] sm:$0xf] }
 0x2ff   : > { %3363 = vmatpush.bf16.msra.mxu2 %v7803_v28  ;;  %3293 = vmatpush.bf16.msrb.mxu3 %v8183_v13  ;;  %v9012_v28 = vld [vmem:[%s16094_s3 + $0x2ec] sm:$0xf]  ;;  %v7947_v13 = vor.u32 %v8985_v1, %v7944_v20  ;;  %v9006_v51 = vld [vmem:[%s16094_s3 + $0x2bc] sm:$0xf]  ;;  %v8979_v54 = vld [vmem:[%s16094_s3 + $0x1e4] sm:$0xf] }
 0x300   : > { %v8055_v16 = vor.u32 %v9012_v28, %v8052_v12  ;;  %v8031_v32 = vor.u32 %v9006_v51, %v8028_v29  ;;  %v7920_v63 = vld [vmem:[%s16094_s3 + $0x1ec] sm:$0xf0]  ;;  %v9048_v37 = vld [vmem:[%s16094_s3 + $0x40c] sm:$0xf]  ;;  %v8196_v39 = vld [vmem:[%s16094_s3 + $0x414] sm:$0xf0] }
 0x301   : > { %3307 = vmatpush.bf16.msra.mxu0 %v8279_v27  ;;  %3321 = vmatpush.bf16.msra.mxu1 %v8375_v59  ;;  %v8043_v27 = vor.u32 %v9009_v4, %v8040_v38  ;;  %v8223_v59 = vor.u32 %v9054_v8, %v8220_v22  ;;  %v8928_v41 = vld [vmem:[%s16094_s3 + $0x4c] sm:$0xf]  ;;  %v7716_v9 = vld [vmem:[%s16094_s3 + $0x54] sm:$0xf0]  ;;  %v8199_v28 = vor.u32 %v9048_v37, %v8196_v39  ;;  %v8184_v46 = vld [vmem:[%s16094_s3 + $0x3fc] sm:$0xf0] }
 0x302   : > { %v9000_v12 = vld [vmem:[%s16094_s3 + $0x28c] sm:$0xf]  ;;  %v8004_v60 = vld [vmem:[%s16094_s3 + $0x294] sm:$0xf0]  ;;  %v7704_v1 = vld [vmem:[%s16094_s3 + $0x3c] sm:$0xf0] }
 0x303   : > { %3364 = vmatpush.bf16.msra.mxu2 %v7791_v23  ;;  %3294 = vmatpush.bf16.msrb.mxu3 %v8171_v50  ;;  %v8937_v23 = vld [vmem:[%s16094_s3 + $0x94] sm:$0xf]  ;;  %v7932_v50 = vld [vmem:[%s16094_s3 + $0x204] sm:$0xf0]  ;;  %v7896_v4 = vld [vmem:[%s16094_s3 + $0x1bc] sm:$0xf0] }
 0x304   : > { %v8973_v20 = vld [vmem:[%s16094_s3 + $0x1b4] sm:$0xf]  ;;  %v7992_v8 = vld [vmem:[%s16094_s3 + $0x27c] sm:$0xf0]  ;;  %v9042_v15 = vld [vmem:[%s16094_s3 + $0x3dc] sm:$0xf] }
 0x305   : > { %3308 = vmatpush.bf16.msra.mxu0 %v8267_v31  ;;  %3322 = vmatpush.bf16.msra.mxu1 %v8363_v58  ;;  %v7935_v31 = vor.u32 %v8982_v19, %v7932_v50  ;;  %v9051_v58 = vld [vmem:[%s16094_s3 + $0x424] sm:$0xf]  ;;  %v8997_v38 = vld [vmem:[%s16094_s3 + $0x274] sm:$0xf]  ;;  %v8172_v44 = vld [vmem:[%s16094_s3 + $0x3e4] sm:$0xf0] }
 0x306   : > { %v8211_v3 = vor.u32 %v9051_v58, %v8208_v14  ;;  %v8175_v19 = vor.u32 %v9042_v15, %v8172_v44  ;;  %v8922_v50 = vld [vmem:[%s16094_s3 + $0x1c] sm:$0xf]  ;;  %v7692_v51 = vld [vmem:[%s16094_s3 + $0x24] sm:$0xf0]  ;;  %v7872_v39 = vld [vmem:[%s16094_s3 + $0x18c] sm:$0xf0] }
 0x307   : > { %3365 = vmatpush.bf16.msra.mxu2 %v7779_v43  ;;  %3295 = vmatpush.bf16.msrb.mxu3 %v8159_v53  ;;  %v7755_v43 = vor.u32 %v8937_v23, %v7752_v2  ;;  %v9003_v53 = vld [vmem:[%s16094_s3 + $0x2a4] sm:$0xf]  ;;  %v7719_v23 = vor.u32 %v8928_v41, %v7716_v9  ;;  %v8970_v29 = vld [vmem:[%s16094_s3 + $0x19c] sm:$0xf]  ;;  %v7980_v14 = vld [vmem:[%s16094_s3 + $0x264] sm:$0xf0] }
 0x308   : > { %v8994_v58 = vld [vmem:[%s16094_s3 + $0x25c] sm:$0xf]  ;;  %v9081_v15 = vld [vmem:[%s16094_s3 + $0x514] sm:$0xf] }
 0x309   : > { %3309 = vmatpush.bf16.msra.mxu0 %v8255_v49  ;;  %3323 = vmatpush.bf16.msra.mxu1 %v8351_v62  ;;  %v8016_v49 = vld [vmem:[%s16094_s3 + $0x2ac] sm:$0xf0]  ;;  %v7923_v62 = vor.u32 %v8979_v54, %v7920_v63 }
 0x30a   : > { %3366 = vmatmul.bf16.vlgmr.msra.gmra.mxu2 %v12736_v18  ;;  %v8019_v25 = vor.u32 %v9003_v53, %v8016_v49  ;;  %v8160_v54 = vld [vmem:[%s16094_s3 + $0x3cc] sm:$0xf0]  ;;  %v8967_v49 = vld [vmem:[%s16094_s3 + $0x184] sm:$0xf] }
 0x30b   : > { %3414 = vmatpush.bf16.msra.mxu2 %v8247_v61  ;;  %3344 = vmatpush.bf16.msra.mxu3 %v7767_v57  ;;  %v7728_v61 = vld [vmem:[%s16094_s3 + $0x6c] sm:$0xf0]  ;;  %v8976_v57 = vld [vmem:[%s16094_s3 + $0x1cc] sm:$0xf]  ;;  %v7875_v41 = vor.u32 %v8967_v49, %v7872_v39  ;;  %v7746_v49 = vld [vmem:[%s16094_s3 + $0x80] sm:$0xf] }
 0x30c   : > { %v7731_v5 = vor.u32 %v8931_v10, %v7728_v61  ;;  %v9039_v61 = vld [vmem:[%s16094_s3 + $0x3c4] sm:$0xf]  ;;  %v7680_v53 = vld [vmem:[%s16094_s3 + $0xc] sm:$0xf0] }
 0x30d   : > { %3372 = vmatpush.bf16.msrb.mxu0 %v7959_v45  ;;  %3386 = vmatpush.bf16.msrb.mxu1 %v8055_v16  ;;  %v7908_v45 = vld [vmem:[%s16094_s3 + $0x1d4] sm:$0xf0]  ;;  %v9045_v16 = vld [vmem:[%s16094_s3 + $0x3f4] sm:$0xf]  ;;  %v8163_v63 = vor.u32 %v9039_v61, %v8160_v54  ;;  %v9078_v61 = vld [vmem:[%s16094_s3 + $0x4fc] sm:$0xf] }
 0x30e   : > { %v7911_v2 = vor.u32 %v8976_v57, %v7908_v45 }
 0x30f   : > { %3415 = vmatpush.bf16.msra.mxu2 %v8235_v40  ;;  %3345 = vmatpush.bf16.msra.mxu3 %v7755_v43  ;;  %v8925_v40 = vld [vmem:[%s16094_s3 + $0x34] sm:$0xf]  ;;  %v8007_v43 = vor.u32 %v9000_v12, %v8004_v60 }
 0x310   : > { %v7707_v22 = vor.u32 %v8925_v40, %v7704_v1  ;;  %v9036_v40 = vld [vmem:[%s16094_s3 + $0x3ac] sm:$0xf]  ;;  %v8340_v1 = vld [vmem:[%s16094_s3 + $0x534] sm:$0xf0] }
 0x311   : > { %3373 = vmatpush.bf16.msrb.mxu0 %v7947_v13  ;;  %3387 = vmatpush.bf16.msrb.mxu1 %v8043_v27  ;;  %v8187_v13 = vor.u32 %v9045_v16, %v8184_v46  ;;  %v7899_v27 = vor.u32 %v8973_v20, %v7896_v4  ;;  %v9108_v20 = vld [vmem:[%s16094_s3 + $0x5ec] sm:$0xf] }
 0x313   : > { %3416 = vmatpush.bf16.msra.mxu2 %v8223_v59  ;;  %3346 = vmatpush.bf16.msra.mxu3 %v7743_v35  ;;  %v7995_v59 = vor.u32 %v8997_v38, %v7992_v8  ;;  %v7695_v35 = vor.u32 %v8922_v50, %v7692_v51  ;;  %v8942_v38 = vld [vmem:[%s16094_s3 + $0xb8] sm:$0xf0]  ;;  %v9105_v50 = vld [vmem:[%s16094_s3 + $0x5d4] sm:$0xf]  ;;  %v8424_v51 = vld [vmem:[%s16094_s3 + $0x5dc] sm:$0xf0] }
 0x315   : > { %3374 = vmatpush.bf16.msrb.mxu0 %v7935_v31  ;;  %3388 = vmatpush.bf16.msrb.mxu1 %v8031_v32  ;;  %v7884_v31 = vld [vmem:[%s16094_s3 + $0x1a4] sm:$0xf0]  ;;  %v7983_v32 = vor.u32 %v8994_v58, %v7980_v14  ;;  %v8427_v14 = vor.u32 %v9105_v50, %v8424_v51  ;;  %v9018_v50 = vld [vmem:[%s16094_s3 + $0x31c] sm:$0xf] }
 0x316   : > { %v7887_v10 = vor.u32 %v8970_v29, %v7884_v31  ;;  %v7758_v29 = vld [vmem:[%s16094_s3 + $0x98] sm:$0xf]  ;;  %v8076_v51 = vld [vmem:[%s16094_s3 + $0x324] sm:$0xf0] }
 0x317   : > { %3417 = vmatpush.bf16.msra.mxu2 %v8211_v3  ;;  %3347 = vmatpush.bf16.msra.mxu3 %v7731_v5  ;;  %v8919_v3 = vld [vmem:[%s16094_s3 + $0x4] sm:$0xf] }
 0x318   : > { %v7683_v37 = vor.u32 %v8919_v3, %v7680_v53  ;;  %v8991_v5 = vld [vmem:[%s16094_s3 + $0x244] sm:$0xf]  ;;  %v9102_v3 = vld [vmem:[%s16094_s3 + $0x5bc] sm:$0xf]  ;;  %v8412_v53 = vld [vmem:[%s16094_s3 + $0x5c4] sm:$0xf0] }
 0x319   : > { %3375 = vmatpush.bf16.msrb.mxu0 %v7923_v62  ;;  %3389 = vmatpush.bf16.msrb.mxu1 %v8019_v25  ;;  %v7968_v62 = vld [vmem:[%s16094_s3 + $0x24c] sm:$0xf0] }
 0x31a   : > { %v7971_v25 = vor.u32 %v8991_v5, %v7968_v62  ;;  %v8415_v62 = vor.u32 %v9102_v3, %v8412_v53 }
 0x31b   : > { %3418 = vmatpush.bf16.msra.mxu2 %v8199_v28  ;;  %3348 = vmatpush.bf16.msra.mxu3 %v7719_v23 }
 0x31d   : > { %3376 = vmatpush.bf16.msrb.mxu0 %v7911_v2  ;;  %3390 = vmatpush.bf16.msrb.mxu1 %v8007_v43  ;;  %v8148_v43 = vld [vmem:[%s16094_s3 + $0x3b4] sm:$0xf0] }
 0x31f   : > { %3419 = vmatpush.bf16.msra.mxu2 %v8187_v13  ;;  %3349 = vmatpush.bf16.msra.mxu3 %v7707_v22  ;;  %v7770_v13 = vld [vmem:[%s16094_s3 + $0xb0] sm:$0xf]  ;;  %v8151_v22 = vor.u32 %v9036_v40, %v8148_v43  ;;  %v9024_v40 = vld [vmem:[%s16094_s3 + $0x34c] sm:$0xf]  ;;  %v8100_v43 = vld [vmem:[%s16094_s3 + $0x354] sm:$0xf0] }
 0x320   : > { %v7771_v44 = vor.u32 %v8942_v38, %v7770_v13  ;;  %v9069_v13 = vld [vmem:[%s16094_s3 + $0x4b4] sm:$0xf] }
 0x321   : > { %3377 = vmatpush.bf16.msrb.mxu0 %v7899_v27  ;;  %3391 = vmatpush.bf16.msrb.mxu1 %v7995_v59  ;;  %v8439_v59 = vor.u32 %v9108_v20, %v8436_v7  ;;  %v8930_v20 = vld [vmem:[%s16094_s3 + $0x58] sm:$0xf0]  ;;  %v8103_v7 = vor.u32 %v9024_v40, %v8100_v43  ;;  %v8154_v43 = vld [vmem:[%s16094_s3 + $0x3b0] sm:$0xf] }
 0x323   : > { %3420 = vmatpush.bf16.msra.mxu2 %v8175_v19  ;;  %3350 = vmatpush.bf16.msra.mxu3 %v7695_v35  ;;  %v8328_v19 = vld [vmem:[%s16094_s3 + $0x51c] sm:$0xf0]  ;;  %v8939_v35 = vld [vmem:[%s16094_s3 + $0xa0] sm:$0xf0] }
 0x324   : > { %v8331_v58 = vor.u32 %v9081_v15, %v8328_v19  ;;  %v7759_v54 = vor.u32 %v8939_v35, %v7758_v29  ;;  %v9066_v29 = vld [vmem:[%s16094_s3 + $0x49c] sm:$0xf] }
 0x325   : > { %3378 = vmatpush.bf16.msrb.mxu0 %v7887_v10  ;;  %3392 = vmatpush.bf16.msrb.mxu1 %v7983_v32  ;;  %v9030_v10 = vld [vmem:[%s16094_s3 + $0x37c] sm:$0xf]  ;;  %v8124_v32 = vld [vmem:[%s16094_s3 + $0x384] sm:$0xf0] }
 0x326   : > { %v8127_v39 = vor.u32 %v9030_v10, %v8124_v32  ;;  %v7698_v10 = vld [vmem:[%s16094_s3 + $0x20] sm:$0xf]  ;;  %v8924_v32 = vld [vmem:[%s16094_s3 + $0x28] sm:$0xf0] }
 0x327   : > { %3421 = vmatpush.bf16.msra.mxu2 %v8163_v63  ;;  %3351 = vmatpush.bf16.msra.mxu3 %v7683_v37  ;;  %v8316_v63 = vld [vmem:[%s16094_s3 + $0x504] sm:$0xf0]  ;;  %v8936_v37 = vld [vmem:[%s16094_s3 + $0x88] sm:$0xf0] }
 0x328   : > { %v8319_v5 = vor.u32 %v9078_v61, %v8316_v63  ;;  %v8079_v61 = vor.u32 %v9018_v50, %v8076_v51  ;;  %v8064_v63 = vld [vmem:[%s16094_s3 + $0x30c] sm:$0xf0]  ;;  %v8130_v51 = vld [vmem:[%s16094_s3 + $0x380] sm:$0xf] }
 0x329   : > { %3379 = vmatpush.bf16.msrb.mxu0 %v7875_v41  ;;  %3393 = vmatpush.bf16.msrb.mxu1 %v7971_v25  ;;  %v9027_v41 = vld [vmem:[%s16094_s3 + $0x364] sm:$0xf]  ;;  %v8112_v25 = vld [vmem:[%s16094_s3 + $0x36c] sm:$0xf0] }
 0x354   : > { %v9765_v9 = vpop.permute.xlu1 %9764 }
 0x355   : > { %v9767_v57 = vunpack.i.h.bf16 %v9765_v9  ;;  %v9766_v45 = vunpack.i.l.bf16 %v9765_v9  ;;  %v9075_v9 = vld [vmem:[%s16094_s3 + $0x4e4] sm:$0xf] }
 0x356   : > { %v9760_v28 = vpop.permute.xlu0 %9759 }
 0x357   : > { %v1826_v12 = vsel %vm703_vm6, %v9767_v57, %v9742_v36  ;;  %v1214_v60 = vsel %vm703_vm6, %v9766_v45, %v9741_v17  ;;  %v9762_v16 = vunpack.i.h.bf16 %v9760_v28  ;;  %v9761_v46 = vunpack.i.l.bf16 %v9760_v28  ;;  %v9099_v28 = vld [vmem:[%s16094_s3 + $0x5a4] sm:$0xf] }
 0x358   : > { %v1843_v23 = vmax.f32 %v12566_v48, %v1826_v12  ;;  %v1231_v2 = vmax.f32 %v12562_v55, %v1214_v60  ;;  %v8400_v12 = vld [vmem:[%s16094_s3 + $0x5ac] sm:$0xf0]  ;;  %v7734_v60 = vld [vmem:[%s16094_s3 + $0x68] sm:$0xf] }
 0x359   : > { %v1825_v36 = vsel %vm703_vm6, %v9762_v16, %v9767_v57  ;;  %v1212_v48 = vsel %vm703_vm6, %v9727_v6, %v9761_v46  ;;  %v1213_v55 = vsel %vm703_vm6, %v9761_v46, %v9766_v45  ;;  %v1824_v17 = vsel %vm703_vm6, %v9732_v47, %v9762_v16  ;;  %v8304_v45 = vld [vmem:[%s16094_s3 + $0x4ec] sm:$0xf0]  ;;  %v8933_v16 = vld [vmem:[%s16094_s3 + $0x70] sm:$0xf0] }
 0x35a   : > { %v1842_v6 = vmax.f32 %v12584_v42, %v1825_v36  ;;  %v1229_v4 = vmax.f32 %v12167_v56, %v1212_v48  ;;  %v1230_v33 = vmax.f32 %v12580_v26, %v1213_v55  ;;  %v1841_v47 = vmax.f32 %v12173_v30, %v1824_v17  ;;  %v9033_v30 = vld [vmem:[%s16094_s3 + $0x394] sm:$0xf]  ;;  %v8136_v26 = vld [vmem:[%s16094_s3 + $0x39c] sm:$0xf0]  ;;  %v8292_v48 = vld [vmem:[%s16094_s3 + $0x4d4] sm:$0xf0] }
 0x35b   : > { %v13060_v8 = vpack.c.bf16 %v1843_v23, %v1231_v2  ;;  %v8343_v56 = vor.u32 %v9084_v24, %v8340_v1  ;;  %v8139_v31 = vor.u32 %v9033_v30, %v8136_v26  ;;  %v7747_v57 = vor.u32 %v8936_v37, %v7746_v49  ;;  %v9072_v24 = vld [vmem:[%s16094_s3 + $0x4cc] sm:$0xf]  ;;  %v8388_v17 = vld [vmem:[%s16094_s3 + $0x594] sm:$0xf0]  ;;  %v7722_v1 = vld [vmem:[%s16094_s3 + $0x50] sm:$0xf] }
 0x35c   : > { %v13062_v27 = vpack.c.bf16 %v1841_v47, %v1229_v4  ;;  %v13064_v42 = vpack.c.bf16 %v1842_v6, %v1230_v33  ;;  %v8115_v46 = vor.u32 %v9027_v41, %v8112_v25  ;;  %v8307_v23 = vor.u32 %v9075_v9, %v8304_v45  ;;  %v9096_v55 = vld [vmem:[%s16094_s3 + $0x58c] sm:$0xf]  ;;  %v9021_v33 = vld [vmem:[%s16094_s3 + $0x334] sm:$0xf]  ;;  %v8088_v47 = vld [vmem:[%s16094_s3 + $0x33c] sm:$0xf0] }
 0x35d   : > { %3324 = vmatmul.bf16.vlgmr.msra.gmra.mxu1 %v13060_v8  ;;  %v8403_v2 = vor.u32 %v9099_v28, %v8400_v12  ;;  %v7735_v36 = vor.u32 %v8933_v16, %v7734_v60  ;;  %v8295_v6 = vor.u32 %v9072_v24, %v8292_v48  ;;  %v8391_v4 = vor.u32 %v9096_v55, %v8388_v17  ;;  %v7710_v30 = vld [vmem:[%s16094_s3 + $0x38] sm:$0xf]  ;;  %v8927_v26 = vld [vmem:[%s16094_s3 + $0x40] sm:$0xf0]  ;;  %v8256_v37 = vld [vmem:[%s16094_s3 + $0x48c] sm:$0xf0] }
 0x35e   : > { %3296 = vmatmul.bf16.vlgmr.msrb.gmra.mxu3 %v13062_v27  ;;  %3310 = vmatmul.bf16.vlgmr.msra.gmra.mxu0 %v13064_v42  ;;  %v7723_v38 = vor.u32 %v8930_v20, %v7722_v1  ;;  %v8091_v15 = vor.u32 %v9021_v33, %v8088_v47  ;;  %v7711_v35 = vor.u32 %v8927_v26, %v7710_v30  ;;  %v9063_v49 = vld [vmem:[%s16094_s3 + $0x484] sm:$0xf]  ;;  %v7686_v41 = vld [vmem:[%s16094_s3 + $0x8] sm:$0xf]  ;;  %v8921_v25 = vld [vmem:[%s16094_s3 + $0x10] sm:$0xf0] }
 0x35f   : > { %3400 = vmatpush.bf16.msrb.mxu3 %v8151_v22  ;;  %3422 = vmatmul.bf16.vlgmr.msra.gmra.mxu2 %v13062_v27  ;;  %v8280_v22 = vld [vmem:[%s16094_s3 + $0x4bc] sm:$0xf0]  ;;  %v9120_v9 = vld [vmem:[%s16094_s3 + $0x64c] sm:$0xf]  ;;  %v7866_v45 = vld [vmem:[%s16094_s3 + $0x170] sm:$0xf] }
 0x360   : > { %3428 = vmatpush.bf16.msra.mxu0 %v8343_v56  ;;  %3442 = vmatpush.bf16.msra.mxu1 %v8439_v59  ;;  %v9093_v56 = vld [vmem:[%s16094_s3 + $0x574] sm:$0xf]  ;;  %v8376_v59 = vld [vmem:[%s16094_s3 + $0x57c] sm:$0xf0]  ;;  %v8966_v12 = vld [vmem:[%s16094_s3 + $0x178] sm:$0xf0] }
 0x361   : > { %3470 = vmatpush.bf16.msra.mxu2 %v7771_v44  ;;  %v8283_v44 = vor.u32 %v9069_v13, %v8280_v22  ;;  %v8379_v19 = vor.u32 %v9093_v56, %v8376_v59  ;;  %v7962_v60 = vld [vmem:[%s16094_s3 + $0x230] sm:$0xf]  ;;  %v8990_v16 = vld [vmem:[%s16094_s3 + $0x238] sm:$0xf0]  ;;  %v9117_v55 = vld [vmem:[%s16094_s3 + $0x634] sm:$0xf] }
 0x362   : > { %v9038_v24 = vld [vmem:[%s16094_s3 + $0x3b8] sm:$0xf0]  ;;  %v7963_v48 = vor.u32 %v8990_v16, %v7962_v60  ;;  %v8472_v17 = vld [vmem:[%s16094_s3 + $0x63c] sm:$0xf0]  ;;  %v7854_v1 = vld [vmem:[%s16094_s3 + $0x158] sm:$0xf] }
 0x363   : > { %3401 = vmatpush.bf16.msrb.mxu3 %v8139_v31  ;;  %v8268_v31 = vld [vmem:[%s16094_s3 + $0x4a4] sm:$0xf0]  ;;  %v8963_v20 = vld [vmem:[%s16094_s3 + $0x160] sm:$0xf0]  ;;  %v8475_v33 = vor.u32 %v9117_v55, %v8472_v17  ;;  %v8142_v47 = vld [vmem:[%s16094_s3 + $0x398] sm:$0xf] }
 0x364   : > { %3429 = vmatpush.bf16.msra.mxu0 %v8331_v58  ;;  %3443 = vmatpush.bf16.msra.mxu1 %v8427_v14  ;;  %v9090_v58 = vld [vmem:[%s16094_s3 + $0x55c] sm:$0xf]  ;;  %v8364_v14 = vld [vmem:[%s16094_s3 + $0x564] sm:$0xf0]  ;;  %v8271_v3 = vor.u32 %v9066_v29, %v8268_v31  ;;  %v9035_v13 = vld [vmem:[%s16094_s3 + $0x3a0] sm:$0xf0] }
 0x365   : > { %3471 = vmatpush.bf16.msra.mxu2 %v7759_v54  ;;  %v9015_v54 = vld [vmem:[%s16094_s3 + $0x304] sm:$0xf]  ;;  %v8367_v53 = vor.u32 %v9090_v58, %v8364_v14  ;;  %v9114_v56 = vld [vmem:[%s16094_s3 + $0x61c] sm:$0xf]  ;;  %v8460_v59 = vld [vmem:[%s16094_s3 + $0x624] sm:$0xf0] }
 0x366   : > { %v8067_v28 = vor.u32 %v9015_v54, %v8064_v63  ;;  %v7842_v30 = vld [vmem:[%s16094_s3 + $0x140] sm:$0xf]  ;;  %v8960_v26 = vld [vmem:[%s16094_s3 + $0x148] sm:$0xf0]  ;;  %v8463_v50 = vor.u32 %v9114_v56, %v8460_v59  ;;  %v8448_v58 = vld [vmem:[%s16094_s3 + $0x60c] sm:$0xf0] }
 0x367   : > { %3402 = vmatpush.bf16.msrb.mxu3 %v8127_v39  ;;  %v9087_v39 = vld [vmem:[%s16094_s3 + $0x544] sm:$0xf]  ;;  %v9032_v29 = vld [vmem:[%s16094_s3 + $0x388] sm:$0xf0]  ;;  %v7830_v14 = vld [vmem:[%s16094_s3 + $0x128] sm:$0xf] }
 0x368   : > { %3430 = vmatpush.bf16.msra.mxu0 %v8319_v5  ;;  %3444 = vmatpush.bf16.msra.mxu1 %v8415_v62  ;;  %v7699_v5 = vor.u32 %v8924_v32, %v7698_v10  ;;  %v8352_v62 = vld [vmem:[%s16094_s3 + $0x54c] sm:$0xf0]  ;;  %v8957_v10 = vld [vmem:[%s16094_s3 + $0x130] sm:$0xf0]  ;;  %v7926_v32 = vld [vmem:[%s16094_s3 + $0x1e8] sm:$0xf] }
 0x369   : > { %3472 = vmatpush.bf16.msra.mxu2 %v7747_v57  ;;  %v8484_v57 = vld [vmem:[%s16094_s3 + $0x654] sm:$0xf0]  ;;  %v8058_v54 = vld [vmem:[%s16094_s3 + $0x2f0] sm:$0xf]  ;;  %v9014_v63 = vld [vmem:[%s16094_s3 + $0x2f8] sm:$0xf0] }
 0x36a   : > { %v8487_v40 = vor.u32 %v9120_v9, %v8484_v57  ;;  %v7914_v9 = vld [vmem:[%s16094_s3 + $0x1d0] sm:$0xf]  ;;  %v8978_v57 = vld [vmem:[%s16094_s3 + $0x1d8] sm:$0xf0]  ;;  %v9008_v55 = vld [vmem:[%s16094_s3 + $0x2c8] sm:$0xf0] }
 0x36b   : > { %3403 = vmatpush.bf16.msrb.mxu3 %v8115_v46  ;;  %v8259_v46 = vor.u32 %v9063_v49, %v8256_v37  ;;  %v7831_v49 = vor.u32 %v8957_v10, %v7830_v14  ;;  %v7915_v16 = vor.u32 %v8978_v57, %v7914_v9  ;;  %v9005_v56 = vld [vmem:[%s16094_s3 + $0x2b0] sm:$0xf0]  ;;  %v9062_v14 = vld [vmem:[%s16094_s3 + $0x478] sm:$0xf0]  ;;  %v8334_v9 = vld [vmem:[%s16094_s3 + $0x518] sm:$0xf] }
 0x36c   : > { %3431 = vmatpush.bf16.msra.mxu0 %v8307_v23  ;;  %3445 = vmatpush.bf16.msra.mxu1 %v8403_v2  ;;  %v8355_v23 = vor.u32 %v9087_v39, %v8352_v62  ;;  %v7687_v2 = vor.u32 %v8921_v25, %v7686_v41  ;;  %v8118_v39 = vld [vmem:[%s16094_s3 + $0x368] sm:$0xf]  ;;  %v7818_v62 = vld [vmem:[%s16094_s3 + $0x110] sm:$0xf]  ;;  %v8059_v41 = vor.u32 %v9014_v63, %v8058_v54  ;;  %v8954_v25 = vld [vmem:[%s16094_s3 + $0x118] sm:$0xf0] }
 0x36d   : > { %3473 = vmatpush.bf16.msra.mxu2 %v7735_v36  ;;  %3394 = vmatmul.bf16.vlgmr.msrb.gmra.mxu1 %v12586_v11  ;;  %v7867_v36 = vor.u32 %v8966_v12, %v7866_v45  ;;  %v8046_v45 = vld [vmem:[%s16094_s3 + $0x2d8] sm:$0xf]  ;;  %v7819_v60 = vor.u32 %v8954_v25, %v7818_v62  ;;  %v8999_v62 = vld [vmem:[%s16094_s3 + $0x280] sm:$0xf0] }
 0x36e   : > { %3352 = vmatmul.bf16.vlgmr.msra.gmra.mxu3 %v12338_v34  ;;  %3380 = vmatmul.bf16.vlgmr.msrb.gmra.mxu0 %v12738_v21  ;;  %v9059_v25 = vld [vmem:[%s16094_s3 + $0x460] sm:$0xf0] }
 0x36f   : > { %3404 = vmatpush.bf16.msrb.mxu3 %v8103_v7  ;;  %v7950_v7 = vld [vmem:[%s16094_s3 + $0x218] sm:$0xf]  ;;  %v9083_v57 = vld [vmem:[%s16094_s3 + $0x520] sm:$0xf0] }
 0x370   : > { %3432 = vmatpush.bf16.msra.mxu0 %v8295_v6  ;;  %3446 = vmatpush.bf16.msra.mxu1 %v8391_v4  ;;  %v8987_v6 = vld [vmem:[%s16094_s3 + $0x220] sm:$0xf0]  ;;  %v8155_v4 = vor.u32 %v9038_v24, %v8154_v43  ;;  %v7902_v24 = vld [vmem:[%s16094_s3 + $0x1b8] sm:$0xf] }
 0x371   : > { %3474 = vmatpush.bf16.msra.mxu2 %v7723_v38  ;;  %v7855_v38 = vor.u32 %v8963_v20, %v7854_v1  ;;  %v7951_v22 = vor.u32 %v8987_v6, %v7950_v7  ;;  %v8951_v43 = vld [vmem:[%s16094_s3 + $0x100] sm:$0xf0]  ;;  %v8094_v7 = vld [vmem:[%s16094_s3 + $0x338] sm:$0xf] }
 0x372   : > { %v9023_v6 = vld [vmem:[%s16094_s3 + $0x340] sm:$0xf0] }
 0x373   : > { %3405 = vmatpush.bf16.msrb.mxu3 %v8091_v15  ;;  %v7938_v15 = vld [vmem:[%s16094_s3 + $0x200] sm:$0xf]  ;;  %v8095_v59 = vor.u32 %v9023_v6, %v8094_v7  ;;  %v8214_v6 = vld [vmem:[%s16094_s3 + $0x428] sm:$0xf] }
 0x374   : > { %3433 = vmatpush.bf16.msra.mxu0 %v8283_v44  ;;  %3447 = vmatpush.bf16.msra.mxu1 %v8379_v19  ;;  %v8984_v44 = vld [vmem:[%s16094_s3 + $0x208] sm:$0xf0]  ;;  %v8143_v19 = vor.u32 %v9035_v13, %v8142_v47  ;;  %v7890_v13 = vld [vmem:[%s16094_s3 + $0x1a0] sm:$0xf] }
 0x375   : > { %3475 = vmatpush.bf16.msra.mxu2 %v7711_v35  ;;  %v7843_v35 = vor.u32 %v8960_v26, %v7842_v30  ;;  %v7939_v31 = vor.u32 %v8984_v44, %v7938_v15  ;;  %v8948_v47 = vld [vmem:[%s16094_s3 + $0xe8] sm:$0xf0]  ;;  %v8082_v30 = vld [vmem:[%s16094_s3 + $0x320] sm:$0xf] }
 0x376   : > { %v9020_v44 = vld [vmem:[%s16094_s3 + $0x328] sm:$0xf0] }
 0x377   : > { %3406 = vmatpush.bf16.msrb.mxu3 %v8079_v61  ;;  %v8981_v61 = vld [vmem:[%s16094_s3 + $0x1f0] sm:$0xf0]  ;;  %v8083_v10 = vor.u32 %v9020_v44, %v8082_v30  ;;  %v9116_v30 = vld [vmem:[%s16094_s3 + $0x628] sm:$0xf0]  ;;  %v8202_v44 = vld [vmem:[%s16094_s3 + $0x410] sm:$0xf] }
 0x378   : > { %3434 = vmatpush.bf16.msra.mxu0 %v8271_v3  ;;  %3448 = vmatpush.bf16.msra.mxu1 %v8367_v53  ;;  %v8131_v3 = vor.u32 %v9032_v29, %v8130_v51  ;;  %v7927_v37 = vor.u32 %v8981_v61, %v7926_v32  ;;  %v7878_v29 = vld [vmem:[%s16094_s3 + $0x188] sm:$0xf]  ;;  %v8346_v32 = vld [vmem:[%s16094_s3 + $0x530] sm:$0xf]  ;;  %v9086_v61 = vld [vmem:[%s16094_s3 + $0x538] sm:$0xf0] }
 0x379   : > { %3476 = vmatpush.bf16.msra.mxu2 %v7699_v5  ;;  %v9029_v5 = vld [vmem:[%s16094_s3 + $0x370] sm:$0xf0] }
 0x37a   : > { %v8119_v12 = vor.u32 %v9029_v5, %v8118_v39  ;;  %v7998_v39 = vld [vmem:[%s16094_s3 + $0x278] sm:$0xf]  ;;  %v8347_v5 = vor.u32 %v9086_v61, %v8346_v32 }
 0x37b   : > { %3407 = vmatpush.bf16.msrb.mxu3 %v8067_v28  ;;  %v9011_v28 = vld [vmem:[%s16094_s3 + $0x2e0] sm:$0xf0]  ;;  %v8190_v61 = vld [vmem:[%s16094_s3 + $0x3f8] sm:$0xf] }
 0x37c   : > { %3435 = vmatpush.bf16.msra.mxu0 %v8259_v46  ;;  %3449 = vmatpush.bf16.msra.mxu1 %v8355_v23  ;;  %v8106_v46 = vld [vmem:[%s16094_s3 + $0x350] sm:$0xf]  ;;  %v9026_v23 = vld [vmem:[%s16094_s3 + $0x358] sm:$0xf0] }
 0x37d   : > { %3477 = vmatpush.bf16.msra.mxu2 %v7687_v2  ;;  %v7806_v2 = vld [vmem:[%s16094_s3 + $0xf8] sm:$0xf]  ;;  %v8107_v17 = vor.u32 %v9026_v23, %v8106_v46  ;;  %v7986_v46 = vld [vmem:[%s16094_s3 + $0x260] sm:$0xf]  ;;  %v8335_v23 = vor.u32 %v9083_v57, %v8334_v9  ;;  %v8406_v57 = vld [vmem:[%s16094_s3 + $0x5a8] sm:$0xf] }
 0x37e   : > { %3408 = vmatmul.bf16.vlgmr.msrb.gmra.mxu3 %v12533_v52  ;;  %v7807_v1 = vor.u32 %v8951_v43, %v7806_v2  ;;  %v8996_v2 = vld [vmem:[%s16094_s3 + $0x268] sm:$0xf0]  ;;  %v8274_v9 = vld [vmem:[%s16094_s3 + $0x4a0] sm:$0xf] }
 0x37f   : > { %3484 = vmatpush.bf16.msra.mxu3 %v7867_v36  ;;  %3436 = vmatmul.bf16.vlgmr.msra.gmra.mxu0 %v13064_v42  ;;  %v8975_v36 = vld [vmem:[%s16094_s3 + $0x1c0] sm:$0xf0]  ;;  %v9056_v43 = vld [vmem:[%s16094_s3 + $0x448] sm:$0xf0] }
 0x380   : > { %3460 = vmatpush.bf16.msrb.mxu1 %v8487_v40  ;;  %3498 = vmatpush.bf16.msrb.mxu0 %v7963_v48  ;;  %v8047_v40 = vor.u32 %v9011_v28, %v8046_v45  ;;  %v8034_v48 = vld [vmem:[%s16094_s3 + $0x2c0] sm:$0xf]  ;;  %v7903_v20 = vor.u32 %v8975_v36, %v7902_v24  ;;  %v7999_v28 = vor.u32 %v8999_v62, %v7998_v39  ;;  %v9080_v36 = vld [vmem:[%s16094_s3 + $0x508] sm:$0xf0] }
 0x381   : > { %3478 = vmatmul.bf16.vlgmr.msra.gmra.mxu2 %v12338_v34  ;;  %3450 = vmatmul.bf16.vlgmr.msra.gmra.mxu1 %v13060_v8  ;;  %v9111_v34 = vld [vmem:[%s16094_s3 + $0x604] sm:$0xf]  ;;  %v8322_v24 = vld [vmem:[%s16094_s3 + $0x500] sm:$0xf] }
 0x382   : > { %3526 = vmatpush.bf16.msra.mxu2 %v8155_v4  ;;  %v8451_v53 = vor.u32 %v9111_v34, %v8448_v58  ;;  %v7794_v4 = vld [vmem:[%s16094_s3 + $0xe0] sm:$0xf]  ;;  %v9002_v34 = vld [vmem:[%s16094_s3 + $0x298] sm:$0xf0]  ;;  %v8250_v58 = vld [vmem:[%s16094_s3 + $0x470] sm:$0xf]  ;;  %v8323_v7 = vor.u32 %v9080_v36, %v8322_v24 }
 0x383   : > { %3485 = vmatpush.bf16.msra.mxu3 %v7855_v38  ;;  %v8972_v38 = vld [vmem:[%s16094_s3 + $0x1a8] sm:$0xf0]  ;;  %v7795_v26 = vor.u32 %v8948_v47, %v7794_v4  ;;  %v9053_v4 = vld [vmem:[%s16094_s3 + $0x430] sm:$0xf0] }
 0x384   : > { %3461 = vmatpush.bf16.msrb.mxu1 %v8475_v33  ;;  %3499 = vmatpush.bf16.msrb.mxu0 %v7951_v22  ;;  %v8035_v33 = vor.u32 %v9008_v55, %v8034_v48  ;;  %v8022_v22 = vld [vmem:[%s16094_s3 + $0x2a8] sm:$0xf]  ;;  %v7891_v15 = vor.u32 %v8972_v38, %v7890_v13  ;;  %v8478_v55 = vld [vmem:[%s16094_s3 + $0x638] sm:$0xf]  ;;  %v9077_v47 = vld [vmem:[%s16094_s3 + $0x4f0] sm:$0xf0] }
 0x385   : > { %v8023_v51 = vor.u32 %v9005_v56, %v8022_v22  ;;  %v8442_v13 = vld [vmem:[%s16094_s3 + $0x5f0] sm:$0xf]  ;;  %v9110_v38 = vld [vmem:[%s16094_s3 + $0x5f8] sm:$0xf0] }
 0x386   : > { %3527 = vmatpush.bf16.msra.mxu2 %v8143_v19  ;;  %v7782_v19 = vld [vmem:[%s16094_s3 + $0xc8] sm:$0xf] }
 0x387   : > { %3486 = vmatpush.bf16.msra.mxu3 %v7843_v35  ;;  %v8969_v35 = vld [vmem:[%s16094_s3 + $0x190] sm:$0xf0] }
 0x388   : > { %3462 = vmatpush.bf16.msrb.mxu1 %v8463_v50  ;;  %3500 = vmatpush.bf16.msrb.mxu0 %v7939_v31  ;;  %v8945_v50 = vld [vmem:[%s16094_s3 + $0xd0] sm:$0xf0]  ;;  %v8010_v31 = vld [vmem:[%s16094_s3 + $0x290] sm:$0xf]  ;;  %v7879_v63 = vor.u32 %v8969_v35, %v7878_v29  ;;  %v8430_v29 = vld [vmem:[%s16094_s3 + $0x5d8] sm:$0xf] }
 0x389   : > { %v7783_v54 = vor.u32 %v8945_v50, %v7782_v19  ;;  %v9050_v19 = vld [vmem:[%s16094_s3 + $0x418] sm:$0xf0]  ;;  %v8298_v50 = vld [vmem:[%s16094_s3 + $0x4d0] sm:$0xf]  ;;  %v9107_v35 = vld [vmem:[%s16094_s3 + $0x5e0] sm:$0xf0] }
 0x38a   : > { %3528 = vmatpush.bf16.msra.mxu2 %v8131_v3  ;;  %v8011_v3 = vor.u32 %v9002_v34, %v8010_v31  ;;  %v8203_v34 = vor.u32 %v9050_v19, %v8202_v44  ;;  %v8431_v32 = vor.u32 %v9107_v35, %v8430_v29 }
 0x38b   : > { %3487 = vmatpush.bf16.msra.mxu3 %v7831_v49  ;;  %v8070_v49 = vld [vmem:[%s16094_s3 + $0x308] sm:$0xf] }
 0x38c   : > { %3463 = vmatpush.bf16.msrb.mxu1 %v8451_v53  ;;  %3501 = vmatpush.bf16.msrb.mxu0 %v7927_v37  ;;  %v8251_v53 = vor.u32 %v9062_v14, %v8250_v58  ;;  %v9017_v37 = vld [vmem:[%s16094_s3 + $0x310] sm:$0xf0]  ;;  %v8454_v58 = vld [vmem:[%s16094_s3 + $0x608] sm:$0xf] }
 0x38d   : > { %v8071_v45 = vor.u32 %v9017_v37, %v8070_v49  ;;  %v9113_v14 = vld [vmem:[%s16094_s3 + $0x610] sm:$0xf0]  ;;  %v9104_v49 = vld [vmem:[%s16094_s3 + $0x5c8] sm:$0xf0] }
 0x38e   : > { %3529 = vmatpush.bf16.msra.mxu2 %v8119_v12  ;;  %v8455_v37 = vor.u32 %v9113_v14, %v8454_v58 }
 0x38f   : > { %3488 = vmatpush.bf16.msra.mxu3 %v7819_v60  ;;  %v8490_v60 = vld [vmem:[%s16094_s3 + $0x650] sm:$0xf] }
 0x390   : > { %3512 = vmatpush.bf16.msra.mxu1 %v8059_v41  ;;  %3502 = vmatpush.bf16.msrb.mxu0 %v7915_v16  ;;  %v8238_v41 = vld [vmem:[%s16094_s3 + $0x458] sm:$0xf]  ;;  %v9122_v16 = vld [vmem:[%s16094_s3 + $0x658] sm:$0xf0] }
 0x391   : > { %8493 = vmatmul.msk.bf16.vlgmr.msrb.gmra.mxu1 %vm3214_vm10, %v12611_v0  ;;  %v8239_v12 = vor.u32 %v9059_v25, %v8238_v41  ;;  %v8491_v48 = vor.u32 %v9122_v16, %v8490_v60  ;;  %v8178_v41 = vld [vmem:[%s16094_s3 + $0x3e0] sm:$0xf]  ;;  %v9044_v25 = vld [vmem:[%s16094_s3 + $0x3e8] sm:$0xf0]  ;;  %v8166_v16 = vld [vmem:[%s16094_s3 + $0x3c8] sm:$0xf] }
 0x392   : > { %3530 = vmatpush.bf16.msra.mxu2 %v8107_v17  ;;  %v7987_v17 = vor.u32 %v8996_v2, %v7986_v46  ;;  %v9041_v46 = vld [vmem:[%s16094_s3 + $0x3d0] sm:$0xf0] }
 0x393   : > { %3489 = vmatpush.bf16.msra.mxu3 %v7807_v1  ;;  %v7974_v1 = vld [vmem:[%s16094_s3 + $0x248] sm:$0xf]  ;;  %v9065_v2 = vld [vmem:[%s16094_s3 + $0x490] sm:$0xf0]  ;;  %v8167_v24 = vor.u32 %v9041_v46, %v8166_v16 }
 0x394   : > { %3513 = vmatpush.bf16.msra.mxu1 %v8047_v40  ;;  %3503 = vmatpush.bf16.msrb.mxu0 %v7903_v20  ;;  %v8226_v40 = vld [vmem:[%s16094_s3 + $0x440] sm:$0xf]  ;;  %v8993_v20 = vld [vmem:[%s16094_s3 + $0x250] sm:$0xf0] }
 0x395   : > { %v7975_v56 = vor.u32 %v8993_v20, %v7974_v1  ;;  %v3227_v1 = vpop.f32.mrf.mxu2 }
 0x396   : > { %3531 = vmatpush.bf16.msra.mxu2 %v8095_v59  ;;  %v8215_v59 = vor.u32 %v9053_v4, %v8214_v6  ;;  %v9089_v6 = vld [vmem:[%s16094_s3 + $0x550] sm:$0xf0] }
 0x397   : > { %3490 = vmatpush.bf16.msra.mxu3 %v7795_v26 }
 0x398   : > { %3514 = vmatpush.bf16.msra.mxu1 %v8035_v33  ;;  %3504 = vmatpush.bf16.msrb.mxu0 %v7891_v15  ;;  %v8310_v33 = vld [vmem:[%s16094_s3 + $0x4e8] sm:$0xf]  ;;  %v8443_v15 = vor.u32 %v9110_v38, %v8442_v13  ;;  %v3241_v13 = vpop.f32.mrf.mxu3 }
 0x399   : > { %v8311_v26 = vor.u32 %v9077_v47, %v8310_v33  ;;  %v3242_v58 = vadd.f32 %v3241_v13, %v3227_v1 }
 0x39a   : > { %3532 = vmatpush.bf16.msra.mxu2 %v8083_v10 }
 0x39b   : > { %3491 = vmatpush.bf16.msra.mxu3 %v7783_v54  ;;  %v9047_v54 = vld [vmem:[%s16094_s3 + $0x400] sm:$0xf0] }
 0x39c   : > { %3515 = vmatpush.bf16.msra.mxu1 %v8023_v51  ;;  %3505 = vmatpush.bf16.msrb.mxu0 %v7879_v63  ;;  %v9074_v51 = vld [vmem:[%s16094_s3 + $0x4d8] sm:$0xf0]  ;;  %v8286_v63 = vld [vmem:[%s16094_s3 + $0x4b8] sm:$0xf]  ;;  %v8191_v39 = vor.u32 %v9047_v54, %v8190_v61 }
 0x39d   : > { %v8299_v10 = vor.u32 %v9074_v51, %v8298_v50  ;;  %v13639_v33 = vpop.f32.mrf.mxu2 }
 0x39e   : > { %3492 = vmatmul.bf16.vlgmr.msra.gmra.mxu3 %v12736_v18  ;;  %3533 = vmatpush.bf16.msra.mxu2 %v8071_v45  ;;  %v8227_v18 = vor.u32 %v9056_v43, %v8226_v40  ;;  %v9101_v45 = vld [vmem:[%s16094_s3 + $0x5b0] sm:$0xf0]  ;;  %v8394_v40 = vld [vmem:[%s16094_s3 + $0x590] sm:$0xf]  ;;  %v9098_v43 = vld [vmem:[%s16094_s3 + $0x598] sm:$0xf0] }
 0x39f   : > { %3540 = vmatpush.bf16.msrb.mxu3 %v8251_v53  ;;  %3506 = vmatmul.bf16.vlgmr.msrb.gmra.mxu0 %v12738_v21  ;;  %v9119_v21 = vld [vmem:[%s16094_s3 + $0x640] sm:$0xf0]  ;;  %v8418_v53 = vld [vmem:[%s16094_s3 + $0x5c0] sm:$0xf]  ;;  %v8407_v60 = vor.u32 %v9101_v45, %v8406_v57 }
 0x3a0   : > { %3516 = vmatpush.bf16.msra.mxu1 %v8011_v3  ;;  %3554 = vmatpush.bf16.msra.mxu0 %v8347_v5  ;;  %v8479_v22 = vor.u32 %v9119_v21, %v8478_v55  ;;  %v9071_v3 = vld [vmem:[%s16094_s3 + $0x4c0] sm:$0xf0]  ;;  %v8419_v62 = vor.u32 %v9104_v49, %v8418_v53  ;;  %v9092_v21 = vld [vmem:[%s16094_s3 + $0x568] sm:$0xf0] }
 0x3a1   : > { %3534 = vmatmul.bf16.vlgmr.msra.gmra.mxu2 %v12533_v52  ;;  %v8466_v52 = vld [vmem:[%s16094_s3 + $0x620] sm:$0xf]  ;;  %v8287_v5 = vor.u32 %v9071_v3, %v8286_v63  ;;  %v9095_v55 = vld [vmem:[%s16094_s3 + $0x580] sm:$0xf0] }
 0x3a2   : > { %3586 = vmatpush.bf16.msra.mxu2 %v8491_v48  ;;  %v8467_v31 = vor.u32 %v9116_v30, %v8466_v52  ;;  %v8395_v48 = vor.u32 %v9098_v43, %v8394_v40 }
 0x3a3   : > { %3541 = vmatpush.bf16.msrb.mxu3 %v8239_v12 }
 0x3a4   : > { %3517 = vmatpush.bf16.msra.mxu1 %v7999_v28  ;;  %3555 = vmatpush.bf16.msra.mxu0 %v8335_v23  ;;  %v8179_v28 = vor.u32 %v9044_v25, %v8178_v41  ;;  %v8262_v23 = vld [vmem:[%s16094_s3 + $0x488] sm:$0xf] }
 0x3a5   : > { %v8263_v36 = vor.u32 %v9065_v2, %v8262_v23  ;;  %v3283_v47 = vpop.f32.mrf.mxu2 }
 0x3a6   : > { %3587 = vmatpush.bf16.msra.mxu2 %v8479_v22 }
 0x3a7   : > { %3542 = vmatpush.bf16.msrb.mxu3 %v8227_v18  ;;  %v8370_v18 = vld [vmem:[%s16094_s3 + $0x560] sm:$0xf] }
 0x3a8   : > { %3518 = vmatpush.bf16.msra.mxu1 %v7987_v17  ;;  %3556 = vmatpush.bf16.msra.mxu0 %v8323_v7  ;;  %v8371_v20 = vor.u32 %v9092_v21, %v8370_v18  ;;  %v8358_v7 = vld [vmem:[%s16094_s3 + $0x548] sm:$0xf] }
 0x3a9   : > { %v8359_v4 = vor.u32 %v9089_v6, %v8358_v7 }
 0x3aa   : > { %3588 = vmatpush.bf16.msra.mxu2 %v8467_v31 }
 0x3ab   : > { %3543 = vmatpush.bf16.msrb.mxu3 %v8215_v59  ;;  %v13648_v59 = vpop.f32.mrf.mxu3 }
 0x3ac   : > { %3519 = vmatpush.bf16.msra.mxu1 %v7975_v56  ;;  %3557 = vmatpush.bf16.msra.mxu0 %v8311_v26 }
 0x3ad   : > { %v13644_v22 = vpop.f32.mrf.mxu2 }
 0x3ae   : > { %3589 = vmatpush.bf16.msra.mxu2 %v8455_v37 }
 0x3af   : > { %3520 = vmatmul.bf16.vlgmr.msra.gmra.mxu1 %v12586_v11  ;;  %3544 = vmatpush.bf16.msrb.mxu3 %v8203_v34  ;;  %v9068_v11 = vld [vmem:[%s16094_s3 + $0x4a8] sm:$0xf0] }
 0x3b0   : > { %3568 = vmatpush.bf16.msrb.mxu1 %v8443_v15  ;;  %3558 = vmatpush.bf16.msra.mxu0 %v8299_v10  ;;  %v8275_v12 = vor.u32 %v9068_v11, %v8274_v9 }
 0x3b1   : > { %8494 = vmatmul.msk.bf16.vlgmr.msra.gmra.mxu2 %vm3214_vm10, %v12611_v0  ;;  %v8382_v0 = vld [vmem:[%s16094_s3 + $0x578] sm:$0xf] }
 0x3b2   : > { %v8383_v17 = vor.u32 %v9095_v55, %v8382_v0 }
 0x3b3   : > { %3545 = vmatpush.bf16.msrb.mxu3 %v8191_v39 }
 0x3b4   : > { %3569 = vmatpush.bf16.msrb.mxu1 %v8431_v32  ;;  %3559 = vmatpush.bf16.msra.mxu0 %v8287_v5 }
 0x3b5   : > { %v3339_v26 = vpop.f32.mrf.mxu2 }
 0x3b7   : > { %3546 = vmatpush.bf16.msrb.mxu3 %v8179_v28 }
 0x3b8   : > { %3570 = vmatpush.bf16.msrb.mxu1 %v8419_v62  ;;  %3560 = vmatpush.bf16.msra.mxu0 %v8275_v12 }
 0x3bb   : > { %3547 = vmatpush.bf16.msrb.mxu3 %v8167_v24 }
 0x3bc   : > { %3571 = vmatpush.bf16.msrb.mxu1 %v8407_v60  ;;  %3561 = vmatpush.bf16.msra.mxu0 %v8263_v36 }
 0x3bd   : > { %v13656_v50 = vpop.f32.mrf.mxu2 }
 0x3be   : > { %3548 = vmatmul.bf16.vlgmr.msrb.gmra.mxu3 %v13062_v27  ;;  %v3269_v27 = vpop.f32.mrf.mxu1 }
 0x3bf   : > { %3562 = vmatmul.bf16.vlgmr.msra.gmra.mxu0 %v13064_v42  ;;  %v3255_v42 = vpop.f32.mrf.mxu0 }
 0x3c0   : > { %3572 = vmatpush.bf16.msrb.mxu1 %v8395_v48  ;;  %v3256_v14 = vadd.f32 %v3255_v42, %v3242_v58 }
 0x3c2   : > { %v3270_v54 = vadd.f32 %v3269_v27, %v3256_v14 }
 0x3c4   : > { %3573 = vmatpush.bf16.msrb.mxu1 %v8383_v17  ;;  %v3284_v49 = vadd.f32 %v3283_v47, %v3270_v54 }
 0x3c5   : > { %v3367_v35 = vpop.f32.mrf.mxu2 }
 0x3c6   : > { %v13642_v38 = vpop.f32.mrf.mxu1 }
 0x3c7   : > { %v13646_v56 = vpop.f32.mrf.mxu0 }
 0x3c8   : > { %3574 = vmatpush.bf16.msrb.mxu1 %v8371_v20 }
 0x3cc   : > { %3575 = vmatpush.bf16.msrb.mxu1 %v8359_v4  ;;  %v3244_v4 = vadd.f32 %v13648_v59, %v13639_v33 }
 0x3cd   : > { %v3369_v61 = vpop.f32.mrf.mxu2 }
 0x3cf   : > { %3576 = vmatmul.bf16.vlgmr.msrb.gmra.mxu1 %v13060_v8 }
 0x3da   : > { %v3325_v52 = vpop.f32.mrf.mxu1 }
 0x3db   : > { %v3311_v30 = vpop.f32.mrf.mxu0 }
 0x3e1   : > { %v3297_v15 = vpop.f32.mrf.mxu3 }
 0x3e2   : > { %v13650_v44 = vpop.f32.mrf.mxu1  ;;  %v3298_v39 = vadd.f32 %v3297_v15, %v3284_v49  ;;  %v3423_v41 = vpop.f32.mrf.mxu2 }
 0x3e3   : > { %v13652_v19 = vpop.f32.mrf.mxu0 }
 0x3e4   : > { %v3312_v11 = vadd.f32 %v3311_v30, %v3298_v39  ;;  %v3258_v30 = vadd.f32 %v13646_v56, %v3244_v4 }
 0x3e6   : > { %v3326_v28 = vadd.f32 %v3325_v52, %v3312_v11 }
 0x3e8   : > { %v13662_v16 = vadd.f32 %v3339_v26, %v3326_v28 }
 0x3e9   : > { %v13654_v8 = vpop.f32.mrf.mxu3 }
 0x3ea   : > { %v3395_v51 = vpop.f32.mrf.mxu1  ;;  %v3425_v2 = vpop.f32.mrf.mxu2 }
 0x3eb   : > { %v3381_v31 = vpop.f32.mrf.mxu0 }
 0x3f1   : > { %v3353_v29 = vpop.f32.mrf.mxu3 }
 0x3f2   : > { %v13658_v34 = vpop.f32.mrf.mxu1  ;;  %v3368_v10 = vadd.f32 %v3367_v35, %v3353_v29  ;;  %v3272_v29 = vadd.f32 %v13642_v38, %v3258_v30 }
 0x3f3   : > { %v3383_v3 = vpop.f32.mrf.mxu0 }
 0x3f4   : > { %v3382_v63 = vadd.f32 %v3381_v31, %v3368_v10  ;;  %v3286_v33 = vadd.f32 %v13644_v22, %v3272_v29 }
 0x3f6   : > { %v3396_v37 = vadd.f32 %v3395_v51, %v3382_v63 }
 0x3f9   : > { %v3355_v32 = vpop.f32.mrf.mxu3 }
 0x3fa   : > { %v3370_v27 = vadd.f32 %v3369_v61, %v3355_v32  ;;  %v3300_v32 = vadd.f32 %v13654_v8, %v3286_v33 }
 0x3fc   : > { %v3437_v57 = vpop.f32.mrf.mxu0  ;;  %v3384_v26 = vadd.f32 %v3383_v3, %v3370_v27  ;;  %v3314_v38 = vadd.f32 %v13652_v19, %v3300_v32 }
 0x3fe   : > { %v3451_v53 = vpop.f32.mrf.mxu1  ;;  %v3398_v35 = vadd.f32 %v13658_v34, %v3384_v26  ;;  %v3328_v34 = vadd.f32 %v13650_v44, %v3314_v38 }
 0x400   : > { %v13711_v3 = vadd.f32 %v13656_v50, %v3328_v34 }
 0x401   : > { %v3409_v5 = vpop.f32.mrf.mxu3 }
 0x402   : > { %v3410_v62 = vadd.f32 %v3409_v5, %v3396_v37 }
 0x404   : > { %v3424_v25 = vadd.f32 %v3423_v41, %v3410_v62  ;;  %v3479_v40 = vpop.f32.mrf.mxu2  ;;  %v3439_v24 = vpop.f32.mrf.mxu0 }
 0x406   : > { %v13660_v9 = vpop.f32.mrf.mxu1  ;;  %v3438_v45 = vadd.f32 %v3437_v57, %v3424_v25 }
 0x408   : > { %v3452_v12 = vadd.f32 %v3451_v53, %v3438_v45 }
 0x409   : > { %v3411_v43 = vpop.f32.mrf.mxu3 }
 0x40a   : > { %v3412_v14 = vadd.f32 %v3411_v43, %v3398_v35 }
 0x40c   : > { %v3481_v36 = vpop.f32.mrf.mxu2  ;;  %v3426_v61 = vadd.f32 %v3425_v2, %v3412_v14 }
 0x40e   : > { %v3465_v60 = vpop.f32.mrf.mxu1  ;;  %v3440_v56 = vadd.f32 %v3439_v24, %v3426_v61 }
 0x40f   : > { %v13664_v46 = vadd.f32 %v3465_v60, %v3452_v12 }
 0x410   : > { %v3454_v22 = vadd.f32 %v13660_v9, %v3440_v56 }
 0x411   : > { %v13668_v23 = vpack.i.bf16 %v13664_v46, %v13662_v16 }
 0x413   : > { %9779 = vrot.lane.b32.xlu1 %v13668_v23, %s10870_s27  ;;  %9774 = vrot.lane.b32.xlu0 %v13668_v23, %s16051_s20 }
 0x414   : > { %9769 = vrot.lane.b32.xlu2 %v13668_v23, %s10871_s30 }
 0x416   : > { %v3467_v48 = vpop.f32.mrf.mxu1 }
 0x417   : > { %v13708_v8 = vadd.f32 %v3467_v48, %v3454_v22  ;;  %v13763_v22 = vld [vmem:[%s15939_s4] sm:$0xff] }
 0x419   : > { %v9818_v44 = vpack.i.bf16 %v13708_v8, %v13711_v3 }
 0x41b   : > { %9789 = vrot.lane.b32.xlu1 %v13668_v23, %s10872_s29  ;;  %9784 = vrot.lane.b32.xlu0 %v13668_v23, %s10873_s1 }
 0x41c   : > { %9799 = vrot.lane.b32.xlu2 %v13668_v23, %s10874_s18  ;;  %v3507_v55 = vpop.f32.mrf.mxu0 }
 0x421   : > { %v3493_v0 = vpop.f32.mrf.mxu3 }
 0x422   : > { %v3494_v21 = vadd.f32 %v3493_v0, %v3479_v40 }
 0x423   : > { %9794 = vrot.lane.b32.xlu1 %v13668_v23, %s16053_s19 }
 0x424   : > { %v3535_v17 = vpop.f32.mrf.mxu2  ;;  %v3508_v20 = vadd.f32 %v3507_v55, %v3494_v21  ;;  %v3509_v6 = vpop.f32.mrf.mxu0 }
 0x429   : > { %v3495_v1 = vpop.f32.mrf.mxu3 }
 0x42a   : > { %v3496_v63 = vadd.f32 %v3495_v1, %v3481_v36 }
 0x42c   : > { %v3521_v18 = vpop.f32.mrf.mxu1  ;;  %v3537_v47 = vpop.f32.mrf.mxu2  ;;  %v3510_v19 = vadd.f32 %v3509_v6, %v3496_v63 }
 0x42d   : > { %v3522_v7 = vadd.f32 %v3521_v18, %v3508_v20 }
 0x42f   : > { %v3536_v13 = vadd.f32 %v3535_v17, %v3522_v7 }
 0x434   : > { %v3523_v42 = vpop.f32.mrf.mxu1  ;;  %v3591_v54 = vpop.f32.mrf.mxu2 }
 0x435   : > { %v3524_v53 = vadd.f32 %v3523_v42, %v3510_v19 }
 0x437   : > { %v3538_v37 = vadd.f32 %v3537_v47, %v3524_v53 }
 0x43c   : > { %v3563_v51 = vpop.f32.mrf.mxu0  ;;  %v3593_v25 = vpop.f32.mrf.mxu2 }
 0x441   : > { %v3549_v52 = vpop.f32.mrf.mxu3 }
 0x442   : > { %v3550_v15 = vadd.f32 %v3549_v52, %v3536_v13 }
 0x444   : > { %v3564_v31 = vadd.f32 %v3563_v51, %v3550_v15  ;;  %v3565_v5 = vpop.f32.mrf.mxu0 }
 0x449   : > { %v3551_v49 = vpop.f32.mrf.mxu3 }
 0x44a   : > { %v3552_v39 = vadd.f32 %v3551_v49, %v3538_v37 }
 0x44c   : > { %v3577_v58 = vpop.f32.mrf.mxu1  ;;  %v3566_v50 = vadd.f32 %v3565_v5, %v3552_v39 }
 0x44d   : > { %v3578_v10 = vadd.f32 %v3577_v58, %v3564_v31 }
 0x44f   : > { %v13690_v59 = vadd.f32 %v3591_v54, %v3578_v10 }
 0x451   : > { %3649 = vrot.lane.b32.xlu1 %v13690_v59, %s10872_s29  ;;  %3672 = vrot.lane.b32.xlu0 %v13690_v59, %s10870_s27 }
 0x452   : > { %3684 = vrot.lane.b32.xlu2 %v13690_v59, %s10871_s30 }
 0x454   : > { %v3579_v62 = vpop.f32.mrf.mxu1 }
 0x455   : > { %v3580_v41 = vadd.f32 %v3579_v62, %v3566_v50 }
 0x457   : > { %v13724_v9 = vadd.f32 %v3593_v25, %v3580_v41 }
 0x459   : > { %3625 = vrot.lane.b32.xlu1 %v13690_v59, %s10874_s18  ;;  %3637 = vrot.lane.b32.xlu0 %v13690_v59, %s10873_s1 }
 0x45a   : > { %3661 = vrot.lane.b32.xlu2 %v13690_v59, %s16051_s20 }
 0x461   : > { %3614 = vrot.lane.b32.xlu0 %v13690_v59, %s16053_s19  ;;  %9819 = vrot.lane.b32.xlu1 %v9818_v44, %s10870_s27 }
 0x462   : > { %9804 = vrot.lane.b32.xlu2 %v13668_v23, %s16056_s21 }
 0x469   : > { %9834 = vrot.lane.b32.xlu1 %v9818_v44, %s16053_s19  ;;  %9809 = vrot.lane.b32.xlu0 %v9818_v44, %s10871_s30 }
 0x46a   : > { %3603 = vrot.lane.b32.xlu2 %v13690_v59, %s16056_s21 }
 0x46e   : > { %v9770_v11 = vpop.permute.xlu2 %9769 }
 0x46f   : > { %v9772_v57 = vunpack.i.h.bf16 %v9770_v11  ;;  %v9771_v45 = vunpack.i.l.bf16 %v9770_v11 }
 0x471   : > { %3938 = vrot.lane.b32.xlu1 %v13724_v9, %s10871_s30  ;;  %9824 = vrot.lane.b32.xlu0 %v9818_v44, %s10873_s1  ;;  %v3687_v28 = vsel %vm3686_vm11, %v9771_v45, %v9772_v57  ;;  %s10876_s30 = smov 116  }
 0x472   : > { %9814 = vrot.lane.b32.xlu2 %v9818_v44, %s16051_s20  ;;  %v3704_v12 = vpack.c.bf16 %v3687_v28, %v3687_v28 }
 0x474   : > { %v3730_v60 = vsel %vm973_vm1, %v3704_v12, 0 }
 0x475   : > { %3741 = vmatpush.bf16.msra.mxu3 %v3730_v60 }
 0x476   : > { %v9800_v27 = vpop.permute.xlu2 %9799 }
 0x477   : > { %v9802_v42 = vunpack.i.h.bf16 %v9800_v27  ;;  %v9801_v13 = vunpack.i.l.bf16 %v9800_v27 }
 0x479   : > { %3894 = vrot.lane.b32.xlu1 %v13724_v9, %s10873_s1  ;;  %9839 = vrot.lane.b32.xlu0 %v9818_v44, %s10874_s18  ;;  %v3628_v51 = vsel %vm3627_vm15, %v9801_v13, %v9802_v42  ;;  %s10877_s1 = smov 117  }
 0x47a   : > { %9829 = vrot.lane.b32.xlu2 %v9818_v44, %s10872_s29 }
 0x481   : > { %3883 = vrot.lane.b32.xlu1 %v13724_v9, %s10874_s18  ;;  %3916 = vrot.lane.b32.xlu0 %v13724_v9, %s16051_s20  ;;  %s16011_s20 = smov 118  }
 0x482   : > { %3927 = vrot.lane.b32.xlu2 %v13724_v9, %s10870_s27  ;;  %s16096_s27 = smov 120  }
 0x485   : > { %v9780_v23 = vpop.permute.xlu1 %9779  ;;  %v9775_v2 = vpop.permute.xlu0 %9774 }
 0x486   : > { %v9782_v40 = vunpack.i.h.bf16 %v9780_v23  ;;  %v9781_v43 = vunpack.i.l.bf16 %v9780_v23  ;;  %v9777_v24 = vunpack.i.h.bf16 %v9775_v2  ;;  %v9776_v36 = vunpack.i.l.bf16 %v9775_v2 }
 0x488   : > { %v3663_v48 = vsel %vm781_vm5, %v9776_v36, %v9777_v24  ;;  %v3675_v0 = vsel %vm3674_vm12, %v9781_v43, %v9782_v40 }
 0x489   : > { %3905 = vrot.lane.b32.xlu0 %v13724_v9, %s10872_s29  ;;  %v3701_v55 = vpack.c.bf16 %v3675_v0, %v3663_v48 }
 0x48a   : > { %3872 = vrot.lane.b32.xlu2 %v13724_v9, %s16053_s19 }
 0x48b   : > { %3742 = vmatpush.bf16.msra.mxu3 %v3701_v55 }
 0x48d   : > { %v9790_v17 = vpop.permute.xlu1 %9789  ;;  %v9785_v18 = vpop.permute.xlu0 %9784 }
 0x48e   : > { %v9792_v21 = vunpack.i.h.bf16 %v9790_v17  ;;  %v9791_v1 = vunpack.i.l.bf16 %v9790_v17  ;;  %v9787_v20 = vunpack.i.h.bf16 %v9785_v18  ;;  %v9786_v7 = vunpack.i.l.bf16 %v9785_v18 }
 0x490   : > { %v3640_v6 = vsel %vm3639_vm13, %v9786_v7, %v9787_v20  ;;  %v3652_v4 = vsel %vm3651_vm14, %v9791_v1, %v9792_v21 }
 0x491   : > { %3861 = vrot.lane.b32.xlu0 %v13724_v9, %s16056_s21  ;;  %v3698_v47 = vpack.c.bf16 %v3652_v4, %v3640_v6 }
 0x492   : > { %9844 = vrot.lane.b32.xlu2 %v9818_v44, %s16056_s21 }
 0x493   : > { %3743 = vmatpush.bf16.msra.mxu3 %v3698_v47 }
 0x495   : > { %v9795_v52 = vpop.permute.xlu1 %9794 }
 0x496   : > { %v9797_v30 = vunpack.i.h.bf16 %v9795_v52  ;;  %v9796_v26 = vunpack.i.l.bf16 %v9795_v52 }
 0x498   : > { %v3616_v15 = vsel %vm664_vm7, %v9796_v26, %v9797_v30 }
 0x499   : > { %v3695_v29 = vpack.c.bf16 %v3628_v51, %v3616_v15 }
 0x49b   : > { %3744 = vmatpush.bf16.msra.mxu3 %v3695_v29 }
 0x4ac   : > { %v3685_v35 = vpop.permute.xlu2 %3684 }
 0x4ad   : > { %v3688_v31 = vsel %vm3686_vm11, %v9772_v57, %v3685_v35  ;;  %v3706_v58 = vpack.c.bf16 %v3685_v35, %v3685_v35 }
 0x4ae   : > { %v3705_v14 = vpack.c.bf16 %v3688_v31, %v3688_v31 }
 0x4af   : > { %v3736_v10 = vsel %vm973_vm1, %v3706_v58, 0 }
 0x4b0   : > { %3769 = vmatpush.bf16.msra.mxu1 %v3736_v10  ;;  %v3733_v54 = vsel %vm973_vm1, %v3705_v14, 0 }
 0x4b1   : > { %3755 = vmatpush.bf16.msrb.mxu0 %v3733_v54 }
 0x4b4   : > { %v3662_v33 = vpop.permute.xlu2 %3661 }
 0x4b5   : > { %v3664_v53 = vsel %vm781_vm5, %v9777_v24, %v3662_v33 }
 0x4bc   : > { %v9805_v32 = vpop.permute.xlu2 %9804 }
 0x4bd   : > { %v9807_v61 = vunpack.i.h.bf16 %v9805_v32  ;;  %v9806_v38 = vunpack.i.l.bf16 %v9805_v32  ;;  %v3710_v32 = vld [vmem:[%s15940_s5 + $0x8] sm:$0xff] }
 0x4be   : > { %3718 = vperm.xlu2 %9849, %v3710_v32  }
 0x4bf   : > { %v3605_v56 = vsel %vm628_vm8, %v9806_v38, %v9807_v61 }
 0x4c0   : > { %v3692_v34 = vpack.c.bf16 %v3605_v56, %v13662_v16  ;;  %v3709_v16 = vld [vmem:[%s15940_s5] sm:$0xff] }
 0x4c1   : > { %3713 = vperm.xlu1 %9848, %v3709_v16  }
 0x4c2   : > { %3745 = vmatpush.bf16.msra.mxu3 %v3692_v34 }
 0x4c3   : > { %v3650_v63 = vpop.permute.xlu1 %3649  ;;  %v3673_v19 = vpop.permute.xlu0 %3672 }
 0x4c4   : > { %v3676_v44 = vsel %vm3674_vm12, %v9782_v40, %v3673_v19  ;;  %v3703_v49 = vpack.c.bf16 %v3673_v19, %v3662_v33  ;;  %v3604_v37 = vpop.permute.xlu2 %3603  ;;  %v3653_v50 = vsel %vm3651_vm14, %v9792_v21, %v3650_v63 }
 0x4c5   : > { %v3702_v39 = vpack.c.bf16 %v3676_v44, %v3664_v53  ;;  %8499 = vmatmul.msk.bf16.vlgmr.msra.gmra.mxu3 %vm969_vm9, %v13763_v22  ;;  %v3606_v43 = vsel %vm628_vm8, %v9807_v61, %v3604_v37  ;;  %v3694_v24 = vpack.c.bf16 %v3604_v37, %v13690_v59 }
 0x4c6   : > { %3770 = vmatpush.bf16.msra.mxu1 %v3703_v49  ;;  %v3693_v36 = vpack.c.bf16 %v3606_v43, %v13664_v46 }
 0x4c7   : > { %3756 = vmatpush.bf16.msrb.mxu0 %v3702_v39 }
 0x4cb   : > { %v3626_v5 = vpop.permute.xlu1 %3625  ;;  %v3638_v62 = vpop.permute.xlu0 %3637 }
 0x4cc   : > { %v3641_v41 = vsel %vm3639_vm13, %v9787_v20, %v3638_v62  ;;  %v3700_v25 = vpack.c.bf16 %v3650_v63, %v3638_v62  ;;  %v13774_v11 = vpop.permute.xlu2 %9814  ;;  %v3629_v12 = vsel %vm3627_vm15, %v9802_v42, %v3626_v5 }
 0x4cd   : > { %v3699_v57 = vpack.c.bf16 %v3653_v50, %v3641_v41  ;;  %v9817_v20 = vunpack.i.h.bf16 %v13774_v11  ;;  %v9816_v59 = vunpack.i.l.bf16 %v13774_v11 }
 0x4ce   : > { %3771 = vmatpush.bf16.msra.mxu1 %v3700_v25 }
 0x4cf   : > { %3757 = vmatpush.bf16.msrb.mxu0 %v3699_v57  ;;  %v3918_v42 = vsel %vm781_vm5, %v9816_v59, %v9817_v20 }
 0x4d3   : > { %v3615_v45 = vpop.permute.xlu0 %3614  ;;  %v13776_v28 = vpop.permute.xlu1 %9819 }
 0x4d4   : > { %v3617_v60 = vsel %vm664_vm7, %v9797_v30, %v3615_v45  ;;  %v3697_v23 = vpack.c.bf16 %v3626_v5, %v3615_v45  ;;  %v13780_v2 = vpop.permute.xlu2 %9829  ;;  %v9822_v55 = vunpack.i.h.bf16 %v13776_v28  ;;  %v9821_v17 = vunpack.i.l.bf16 %v13776_v28 }
 0x4d5   : > { %v3696_v40 = vpack.c.bf16 %v3629_v12, %v3617_v60  ;;  %v9832_v27 = vunpack.i.h.bf16 %v13780_v2  ;;  %v9831_v47 = vunpack.i.l.bf16 %v13780_v2 }
 0x4d6   : > { %3772 = vmatpush.bf16.msra.mxu1 %v3697_v23  ;;  %v3929_v6 = vsel %vm3674_vm12, %v9821_v17, %v9822_v55 }
 0x4d7   : > { %3758 = vmatpush.bf16.msrb.mxu0 %v3696_v40  ;;  %v3954_v30 = vpack.c.bf16 %v3929_v6, %v3918_v42  ;;  %v3907_v10 = vsel %vm3651_vm14, %v9831_v47, %v9832_v27 }
 0x4da   : > { %3773 = vmatpush.bf16.msra.mxu1 %v3694_v24 }
 0x4db   : > { %3759 = vmatpush.bf16.msrb.mxu0 %v3693_v36  ;;  %v13785_v48 = vpop.permute.xlu1 %9834  ;;  %v9810_v0 = vpop.permute.xlu0 %9809 }
 0x4dc   : > { %v3928_v18 = vpop.permute.xlu2 %3927  ;;  %v9812_v21 = vunpack.i.h.bf16 %v9810_v0  ;;  %v9811_v1 = vunpack.i.l.bf16 %v9810_v0  ;;  %v9837_v61 = vunpack.i.h.bf16 %v13785_v48  ;;  %v9836_v38 = vunpack.i.l.bf16 %v13785_v48 }
 0x4dd   : > { %8501 = vmatmul.msk.bf16.vlgmr.msra.gmra.mxu1 %vm969_vm9, %v13763_v22  ;;  %v3930_v41 = vsel %vm3674_vm12, %v9822_v55, %v3928_v18 }
 0x4de   : > { %8500 = vmatmul.msk.bf16.vlgmr.msrb.gmra.mxu0 %vm969_vm9, %v13763_v22  ;;  %v3940_v46 = vsel %vm3686_vm11, %v9811_v1, %v9812_v21  ;;  %v3874_v49 = vsel %vm664_vm7, %v9836_v38, %v9837_v61 }
 0x4df   : > { %v3957_v7 = vpack.c.bf16 %v3940_v46, %v3940_v46 }
 0x4e1   : > { %v3961_v4 = vsel %vm973_vm1, %v3957_v7, 0 }
 0x4e2   : > { %3972 = vmatpush.bf16.msra.mxu2 %v3961_v4 }
 0x4e3   : > { %v3939_v13 = vpop.permute.xlu1 %3938  ;;  %v9825_v52 = vpop.permute.xlu0 %9824 }
 0x4e4   : > { %v3941_v26 = vsel %vm3686_vm11, %v9812_v21, %v3939_v13  ;;  %v3959_v15 = vpack.c.bf16 %v3939_v13, %v3939_v13  ;;  %v3873_v51 = vpop.permute.xlu2 %3872  ;;  %v9827_v29 = vunpack.i.h.bf16 %v9825_v52  ;;  %v9826_v35 = vunpack.i.l.bf16 %v9825_v52 }
 0x4e5   : > { %v3958_v31 = vpack.c.bf16 %v3941_v26, %v3941_v26  ;;  %v3875_v40 = vsel %vm664_vm7, %v9837_v61, %v3873_v51 }
 0x4e6   : > { %3973 = vmatpush.bf16.msra.mxu2 %v3954_v30  ;;  %v3967_v58 = vsel %vm973_vm1, %v3959_v15, 0  ;;  %v3896_v14 = vsel %vm3639_vm13, %v9826_v35, %v9827_v29 }
 0x4e7   : > { %4000 = vmatpush.bf16.msra.mxu0 %v3967_v58  ;;  %v3964_v54 = vsel %vm973_vm1, %v3958_v31, 0  ;;  %v3951_v33 = vpack.c.bf16 %v3907_v10, %v3896_v14 }
 0x4e8   : > { %3986 = vmatpush.bf16.msrb.mxu3 %v3964_v54 }
 0x4ea   : > { %3974 = vmatpush.bf16.msra.mxu2 %v3951_v33 }
 0x4eb   : > { %v9840_v56 = vpop.permute.xlu0 %9839  ;;  %v3895_v5 = vpop.permute.xlu1 %3894 }
 0x4ec   : > { %v9845_v34 = vpop.permute.xlu2 %9844  ;;  %v9842_v63 = vunpack.i.h.bf16 %v9840_v56  ;;  %v9841_v19 = vunpack.i.l.bf16 %v9840_v56  ;;  %v3897_v12 = vsel %vm3639_vm13, %v9827_v29, %v3895_v5 }
 0x4ed   : > { %v9847_v53 = vunpack.i.h.bf16 %v9845_v34  ;;  %v9846_v44 = vunpack.i.l.bf16 %v9845_v34 }
 0x4ee   : > { %v3885_v37 = vsel %vm3627_vm15, %v9841_v19, %v9842_v63 }
 0x4ef   : > { %v3948_v39 = vpack.c.bf16 %v3885_v37, %v3874_v49  ;;  %v3863_v16 = vsel %vm628_vm8, %v9846_v44, %v9847_v53 }
 0x4f0   : > { %v3945_v50 = vpack.c.bf16 %v3863_v16, %v13711_v3 }
 0x4f1   : > { %3975 = vmatpush.bf16.msra.mxu2 %v3948_v39 }
 0x4f3   : > { %v3917_v62 = vpop.permute.xlu0 %3916  ;;  %v3884_v45 = vpop.permute.xlu1 %3883 }
 0x4f4   : > { %v3919_v25 = vsel %vm781_vm5, %v9817_v20, %v3917_v62  ;;  %v3956_v11 = vpack.c.bf16 %v3928_v18, %v3917_v62  ;;  %v3886_v2 = vsel %vm3627_vm15, %v9842_v63, %v3884_v45  ;;  %v3950_v43 = vpack.c.bf16 %v3884_v45, %v3873_v51 }
 0x4f5   : > { %3976 = vmatpush.bf16.msra.mxu2 %v3945_v50  ;;  %v3955_v57 = vpack.c.bf16 %v3930_v41, %v3919_v25  ;;  %v3949_v24 = vpack.c.bf16 %v3886_v2, %v3875_v40  ;;  %vm7443_vm5 = vcmask 7168  }
 0x4f6   : > { %4001 = vmatpush.bf16.msra.mxu0 %v3956_v11 }
 0x4f7   : > { %3987 = vmatpush.bf16.msrb.mxu3 %v3955_v57 }
 0x4f8   : > { %8502 = vmatmul.msk.bf16.vlgmr.msra.gmra.mxu2 %vm969_vm9, %v13763_v22 }
 0x4fb   : > { %v3906_v28 = vpop.permute.xlu0 %3905 }
 0x4fc   : > { %v3908_v60 = vsel %vm3651_vm14, %v9832_v27, %v3906_v28  ;;  %v3953_v23 = vpack.c.bf16 %v3906_v28, %v3895_v5 }
 0x4fd   : > { %v3952_v3 = vpack.c.bf16 %v3908_v60, %v3897_v12 }
 0x4fe   : > { %4002 = vmatpush.bf16.msra.mxu0 %v3953_v23 }
 0x4ff   : > { %3988 = vmatpush.bf16.msrb.mxu3 %v3952_v3 }
 0x502   : > { %4003 = vmatpush.bf16.msra.mxu0 %v3950_v43 }
 0x503   : > { %v3862_v36 = vpop.permute.xlu0 %3861  ;;  %3989 = vmatpush.bf16.msrb.mxu3 %v3949_v24 }
 0x504   : > { %v3864_v48 = vsel %vm628_vm8, %v9847_v53, %v3862_v36  ;;  %v3947_v0 = vpack.c.bf16 %v3862_v36, %v13724_v9 }
 0x505   : > { %v3946_v55 = vpack.c.bf16 %v3864_v48, %v13708_v8 }
 0x506   : > { %4004 = vmatpush.bf16.msra.mxu0 %v3947_v0 }
 0x507   : > { %3990 = vmatpush.bf16.msrb.mxu3 %v3946_v55 }
 0x509   : > { %8504 = vmatmul.msk.bf16.vlgmr.msra.gmra.mxu0 %vm969_vm9, %v13763_v22 }
 0x50a   : > { %8503 = vmatmul.msk.bf16.vlgmr.msrb.gmra.mxu3 %vm969_vm9, %v13763_v22 }
 0x518   : > { %v3719_v6 = vpop.permute.xlu2 %3718 }
 0x533   : > { %v3714_v18 = vpop.permute.xlu1 %3713 }
 0x548   : > { %v3747_v17 = vpop.f32.mrf.mxu3 }
 0x549   : > { %v3748_v21 = vadd.f32 %v3747_v17, %v3714_v18 }
 0x54b   : > { %v3780_v46 = vmax.f32 %v3748_v21, 0.0  ;;  %v9131_v21 = vld [vmem:[%s15941_s6 + $0x38] sm:$0xff] }
 0x54c   : > { %4242 = vmatpush.bf16.msrb.mxu1 %v9131_v21 }
 0x550   : > { %v3749_v7 = vpop.f32.mrf.mxu3 }
 0x551   : > { %v3750_v8 = vadd.f32 %v3749_v7, %v3719_v6  ;;  %v9137_v7 = vld [vmem:[%s15941_s6 + $0x68] sm:$0xff] }
 0x553   : > { %v3783_v22 = vmax.f32 %v3750_v8, 0.0  ;;  %v9135_v8 = vld [vmem:[%s15941_s6 + $0x58] sm:$0xff] }
 0x55a   : > { %v3775_v1 = vpop.f32.mrf.mxu1 }
 0x55b   : > { %v3761_v20 = vpop.f32.mrf.mxu0  ;;  %v3776_v27 = vadd.f32 %v3775_v1, %v3714_v18  ;;  %v9139_v1 = vld [vmem:[%s15941_s6 + $0x78] sm:$0xff] }
 0x55c   : > { %v3762_v59 = vadd.f32 %v3761_v20, %v3714_v18  ;;  %4261 = vmatpush.bf16.msrb.mxu0 %v9139_v1  ;;  %v9130_v20 = vld [vmem:[%s15941_s6 + $0x30] sm:$0xff] }
 0x55d   : > { %v3782_v30 = vmax.f32 %v3776_v27, 0.0  ;;  %4243 = vmatpush.bf16.msrb.mxu1 %v9130_v20  ;;  %v9126_v27 = vld [vmem:[%s15941_s6 + $0x10] sm:$0xff] }
 0x55e   : > { %v3781_v9 = vmax.f32 %v3762_v59, 0.0  ;;  %v9138_v59 = vld [vmem:[%s15941_s6 + $0x70] sm:$0xff] }
 0x560   : > { %v9855_v4 = vpack.i.bf16 %v3781_v9, %v3780_v46  ;;  %4262 = vmatpush.bf16.msrb.mxu0 %v9138_v59 }
 0x562   : > { %v3777_v47 = vpop.f32.mrf.mxu1  ;;  %9856 = vrot.lane.b32.xlu1 %v9855_v4, %s16056_s21  ;;  %v9127_v4 = vld [vmem:[%s15941_s6 + $0x18] sm:$0xff] }
 0x563   : > { %v3763_v42 = vpop.f32.mrf.mxu0  ;;  %v3778_v13 = vadd.f32 %v3777_v47, %v3719_v6  ;;  %v9134_v47 = vld [vmem:[%s15941_s6 + $0x50] sm:$0xff] }
 0x564   : > { %v3764_v52 = vadd.f32 %v3763_v42, %v3719_v6  ;;  %4263 = vmatpush.bf16.msrb.mxu0 %v9137_v7  ;;  %v9141_v42 = vld [vmem:[%s15941_s6 + $0x88] sm:$0xff] }
 0x565   : > { %v3785_v26 = vmax.f32 %v3778_v13, 0.0  ;;  %4286 = vmatpush.bf16.msra.mxu3 %v9141_v42  ;;  %v9125_v13 = vld [vmem:[%s15941_s6 + $0x8] sm:$0xff] }
 0x566   : > { %v3784_v15 = vmax.f32 %v3764_v52, 0.0  ;;  %v9133_v52 = vld [vmem:[%s15941_s6 + $0x48] sm:$0xff] }
 0x567   : > { %v9850_v51 = vpack.i.bf16 %v3785_v26, %v3782_v30 }
 0x568   : > { %v9860_v29 = vpack.i.bf16 %v3784_v15, %v3783_v22 }
 0x569   : > { %9851 = vrot.lane.b32.xlu0 %v9850_v51, %s16056_s21 }
 0x56a   : > { %9861 = vrot.lane.b32.xlu2 %v9860_v29, %s16056_s21 }
 0x57b   : > { %v3978_v10 = vpop.f32.mrf.mxu2 }
 0x57c   : > { %v13864_v3 = vadd.f32 %v3978_v10, %v3714_v18 }
 0x57e   : > { %v4011_v48 = vmax.f32 %v13864_v3, 0.0 }
 0x583   : > { %v3980_v25 = vpop.f32.mrf.mxu2 }
 0x584   : > { %v13866_v2 = vadd.f32 %v3980_v25, %v3719_v6 }
 0x586   : > { %v4006_v35 = vpop.f32.mrf.mxu0  ;;  %v4014_v0 = vmax.f32 %v13866_v2, 0.0 }
 0x587   : > { %v13861_v23 = vadd.f32 %v4006_v35, %v3714_v18 }
 0x589   : > { %v4013_v36 = vmax.f32 %v13861_v23, 0.0 }
 0x58d   : > { %v3992_v31 = vpop.f32.mrf.mxu3 }
 0x58e   : > { %v4008_v53 = vpop.f32.mrf.mxu0  ;;  %v13853_v45 = vadd.f32 %v3992_v31, %v3714_v18 }
 0x58f   : > { %v13849_v11 = vadd.f32 %v4008_v53, %v3719_v6 }
 0x590   : > { %v4012_v43 = vmax.f32 %v13853_v45, 0.0 }
 0x591   : > { %v4016_v40 = vmax.f32 %v13849_v11, 0.0 }
 0x592   : > { %v9885_v17 = vpack.i.bf16 %v4012_v43, %v4011_v48 }
 0x593   : > { %v9880_v55 = vpack.i.bf16 %v4016_v40, %v4013_v36 }
 0x595   : > { %v3994_v44 = vpop.f32.mrf.mxu3 }
 0x596   : > { %v13855_v28 = vadd.f32 %v3994_v44, %v3719_v6  ;;  %v9128_v6 = vld [vmem:[%s15941_s6 + $0x20] sm:$0xff] }
 0x598   : > { %v4015_v24 = vmax.f32 %v13855_v28, 0.0 }
 0x59a   : > { %v9890_v18 = vpack.i.bf16 %v4015_v24, %v4014_v0 }
 0x5c4   : > { %v9862_v58 = vpop.permute.xlu2 %9861 }
 0x5c5   : > { %v9864_v54 = vunpack.i.h.bf16 %v9862_v58  ;;  %v9863_v33 = vunpack.i.l.bf16 %v9862_v58 }
 0x5c7   : > { %v3806_v63 = vsel %vm628_vm8, %v9863_v33, %v9864_v54 }
 0x5c8   : > { %v13841_v5 = vmax.f32 %v3783_v22, %v3806_v63  ;;  %v9140_v22 = vld [vmem:[%s15941_s6 + $0x80] sm:$0xff] }
 0x5c9   : > { %4287 = vmatpush.bf16.msra.mxu3 %v9140_v22 }
 0x5d4   : > { %v9857_v14 = vpop.permute.xlu1 %9856 }
 0x5d5   : > { %v9859_v32 = vunpack.i.h.bf16 %v9857_v14  ;;  %v9858_v61 = vunpack.i.l.bf16 %v9857_v14 }
 0x5d7   : > { %v3804_v19 = vsel %vm628_vm8, %v9858_v61, %v9859_v32 }
 0x5d8   : > { %v13845_v50 = vmax.f32 %v3780_v46, %v3804_v19  ;;  %v9129_v46 = vld [vmem:[%s15941_s6 + $0x28] sm:$0xff] }
 0x5d9   : > { %4244 = vmatpush.bf16.msrb.mxu1 %v9129_v46 }
 0x5db   : > { %v9852_v38 = vpop.permute.xlu0 %9851 }
 0x5dc   : > { %v9854_v56 = vunpack.i.h.bf16 %v9852_v38  ;;  %v9853_v34 = vunpack.i.l.bf16 %v9852_v38 }
 0x5dd   : > { %4245 = vmatpush.bf16.msrb.mxu1 %v9128_v6 }
 0x5de   : > { %v13835_v49 = vmax.f32 %v3785_v26, %v9854_v56  ;;  %v13837_v37 = vmax.f32 %v3782_v30, %v9853_v34  ;;  %v3807_v39 = vsel %vm628_vm8, %v9864_v54, %v9854_v56  ;;  %v3805_v16 = vsel %vm628_vm8, %v9859_v32, %v9853_v34  ;;  %v9124_v30 = vld [vmem:[%s15941_s6] sm:$0xff] }
 0x5df   : > { %v13843_v62 = vmax.f32 %v3784_v15, %v3807_v39  ;;  %v13847_v41 = vmax.f32 %v3781_v9, %v3805_v16  ;;  %v9136_v9 = vld [vmem:[%s15941_s6 + $0x60] sm:$0xff] }
 0x5e0   : > { %v9865_v57 = vpack.i.bf16 %v13835_v49, %v13837_v37  ;;  %4264 = vmatpush.bf16.msrb.mxu0 %v9136_v9  ;;  %v9132_v26 = vld [vmem:[%s15941_s6 + $0x40] sm:$0xff] }
 0x5e1   : > { %v9875_v12 = vpack.i.bf16 %v13843_v62, %v13841_v5  ;;  %v9870_v60 = vpack.i.bf16 %v13847_v41, %v13845_v50  ;;  %4246 = vmatpush.bf16.msrb.mxu1 %v9127_v4 }
 0x5e2   : > { %9866 = vrot.lane.b32.xlu0 %v9865_v57, %s10874_s18 }
 0x5e3   : > { %9876 = vrot.lane.b32.xlu2 %v9875_v12, %s10874_s18  ;;  %9871 = vrot.lane.b32.xlu1 %v9870_v60, %s10874_s18 }
 0x5e4   : > { %4265 = vmatpush.bf16.msrb.mxu0 %v9135_v8 }
 0x5e5   : > { %4247 = vmatpush.bf16.msrb.mxu1 %v9126_v27 }
 0x5e8   : > { %4266 = vmatpush.bf16.msrb.mxu0 %v9134_v47 }
 0x5e9   : > { %4248 = vmatpush.bf16.msrb.mxu1 %v9125_v13 }
 0x5ea   : > { %9881 = vrot.lane.b32.xlu0 %v9880_v55, %s16056_s21 }
 0x5eb   : > { %9891 = vrot.lane.b32.xlu2 %v9890_v18, %s16056_s21  ;;  %9886 = vrot.lane.b32.xlu1 %v9885_v17, %s16056_s21 }
 0x5ec   : > { %4267 = vmatpush.bf16.msrb.mxu0 %v9133_v52 }
 0x5ed   : > { %4249 = vmatpush.bf16.msrb.mxu1 %v9124_v30 }
 0x5f0   : > { %4268 = vmatpush.bf16.msrb.mxu0 %v9132_v26 }
 0x63d   : > { %v9877_v15 = vpop.permute.xlu2 %9876 }
 0x63e   : > { %v9879_v51 = vunpack.i.h.bf16 %v9877_v15  ;;  %v9878_v29 = vunpack.i.l.bf16 %v9877_v15 }
 0x640   : > { %v3840_v35 = vsel %vm3627_vm15, %v9878_v29, %v9879_v51 }
 0x641   : > { %v3851_v61 = vmax.f32 %v13841_v5, %v3840_v35 }
 0x645   : > { %v9892_v58 = vpop.permute.xlu2 %9891 }
 0x646   : > { %v9894_v63 = vunpack.i.h.bf16 %v9892_v58  ;;  %v9893_v39 = vunpack.i.l.bf16 %v9892_v58 }
 0x648   : > { %v4037_v55 = vsel %vm628_vm8, %v9893_v39, %v9894_v63 }
 0x649   : > { %v4048_v1 = vmax.f32 %v4014_v0, %v4037_v55 }
 0x654   : > { %v9867_v31 = vpop.permute.xlu0 %9866 }
 0x655   : > { %v9869_v14 = vunpack.i.h.bf16 %v9867_v31  ;;  %v9868_v10 = vunpack.i.l.bf16 %v9867_v31  ;;  %v9872_v54 = vpop.permute.xlu1 %9871 }
 0x656   : > { %v9874_v33 = vunpack.i.h.bf16 %v9872_v54  ;;  %v9873_v32 = vunpack.i.l.bf16 %v9872_v54 }
 0x657   : > { %v3841_v38 = vsel %vm3627_vm15, %v9879_v51, %v9869_v14  ;;  %v3853_v56 = vmax.f32 %v13835_v49, %v9869_v14  ;;  %v3850_v34 = vmax.f32 %v13837_v37, %v9868_v10 }
 0x658   : > { %v3852_v19 = vmax.f32 %v13843_v62, %v3841_v38  ;;  %v3839_v53 = vsel %vm3627_vm15, %v9874_v33, %v9868_v10  ;;  %v3838_v44 = vsel %vm3627_vm15, %v9873_v32, %v9874_v33 }
 0x659   : > { %v4087_v16 = vpack.c.bf16 %v3853_v56, %v3850_v34  ;;  %v3849_v25 = vmax.f32 %v13847_v41, %v3839_v53  ;;  %v3848_v57 = vmax.f32 %v13845_v50, %v3838_v44 }
 0x65b   : > { %v4086_v5 = vpack.c.bf16 %v3852_v19, %v3849_v25  ;;  %v4085_v12 = vpack.c.bf16 %v3851_v61, %v3848_v57  ;;  %8577 = vmatmul.msk.bf16.vlgmr.msra.gmra.mxu3 %vm4235_vm0, %v4087_v16 }
 0x65c   : > { %v9882_v49 = vpop.permute.xlu0 %9881 }
 0x65d   : > { %v9884_v60 = vunpack.i.h.bf16 %v9882_v49  ;;  %v9883_v37 = vunpack.i.l.bf16 %v9882_v49  ;;  %4250 = vmatmul.bf16.vlgmr.msrb.gmra.mxu1 %v4085_v12  ;;  %4269 = vmatmul.bf16.vlgmr.msrb.gmra.mxu0 %v4086_v5  ;;  %v9887_v62 = vpop.permute.xlu1 %9886 }
 0x65e   : > { %v9889_v17 = vunpack.i.h.bf16 %v9887_v62  ;;  %v9888_v18 = vunpack.i.l.bf16 %v9887_v62 }
 0x65f   : > { %v4050_v21 = vmax.f32 %v4016_v40, %v9884_v60  ;;  %v4047_v50 = vmax.f32 %v4013_v36, %v9883_v37  ;;  %v4038_v41 = vsel %vm628_vm8, %v9894_v63, %v9884_v60 }
 0x660   : > { %v4049_v20 = vmax.f32 %v4015_v24, %v4038_v41  ;;  %v4035_v59 = vsel %vm628_vm8, %v9888_v18, %v9889_v17  ;;  %v4036_v46 = vsel %vm628_vm8, %v9889_v17, %v9883_v37 }
 0x661   : > { %v9895_v7 = vpack.i.bf16 %v4050_v21, %v4047_v50  ;;  %v4045_v11 = vmax.f32 %v4011_v48, %v4035_v59  ;;  %v4046_v23 = vmax.f32 %v4012_v43, %v4036_v46 }
 0x662   : > { %v9905_v40 = vpack.i.bf16 %v4049_v20, %v4048_v1 }
 0x663   : > { %9896 = vrot.lane.b32.xlu0 %v9895_v7, %s10874_s18  ;;  %v9900_v36 = vpack.i.bf16 %v4046_v23, %v4045_v11 }
 0x664   : > { %9906 = vrot.lane.b32.xlu2 %v9905_v40, %s10874_s18 }
 0x665   : > { %9901 = vrot.lane.b32.xlu1 %v9900_v36, %s10874_s18  ;;  %s10875_s18 = smov 107  }
 0x6be   : > { %v9907_v28 = vpop.permute.xlu2 %9906 }
 0x6bf   : > { %v9909_v2 = vunpack.i.h.bf16 %v9907_v28  ;;  %v9908_v24 = vunpack.i.l.bf16 %v9907_v28 }
 0x6c1   : > { %v4071_v3 = vsel %vm3627_vm15, %v9908_v24, %v9909_v2 }
 0x6c2   : > { %v4082_v26 = vmax.f32 %v4048_v1, %v4071_v3 }
 0x6d5   : > { %v9897_v0 = vpop.permute.xlu0 %9896 }
 0x6d6   : > { %v9899_v6 = vunpack.i.h.bf16 %v9897_v0  ;;  %v9898_v9 = vunpack.i.l.bf16 %v9897_v0 }
 0x6d7   : > { %v9902_v4 = vpop.permute.xlu1 %9901 }
 0x6d8   : > { %v4084_v48 = vmax.f32 %v4050_v21, %v9899_v6  ;;  %v4081_v45 = vmax.f32 %v4047_v50, %v9898_v9  ;;  %v9904_v43 = vunpack.i.h.bf16 %v9902_v4  ;;  %v9903_v8 = vunpack.i.l.bf16 %v9902_v4  ;;  %v8583_v4 = vld [vmem:[%s15942_s7 + $0x8] sm:$0xf0] }
 0x6d9   : > { %v4072_v27 = vsel %vm3627_vm15, %v9909_v2, %v9899_v6 }
 0x6da   : > { %v4251_v47 = vpop.f32.mrf.mxu1  ;;  %v4270_v42 = vpop.f32.mrf.mxu0  ;;  %v4090_v13 = vpack.c.bf16 %v4084_v48, %v4081_v45  ;;  %v4069_v52 = vsel %vm3627_vm15, %v9903_v8, %v9904_v43  ;;  %v4070_v22 = vsel %vm3627_vm15, %v9904_v43, %v9898_v9  ;;  %v4083_v51 = vmax.f32 %v4049_v20, %v4072_v27  ;;  %v9142_v9 = vld [vmem:[%s15942_s7 + $0x4] sm:$0xf] }
 0x6db   : > { %v4079_v30 = vmax.f32 %v4045_v11, %v4069_v52  ;;  %v4080_v15 = vmax.f32 %v4046_v23, %v4070_v22  ;;  %v4271_v10 = vadd.f32 %v4270_v42, %v4251_v47  ;;  %v14013_v27 = vor.u32 %v9142_v9, %v8583_v4  ;;  %v4362_v22 = vld [vmem:[%s15943_s8] sm:$0xff] }
 0x6dc   : > { %8578 = vmatmul.msk.bf16.gmra.mxu3 %vm4235_vm0, %v4090_v13 }
 0x6dd   : > { %v4088_v29 = vpack.c.bf16 %v4082_v26, %v4079_v30  ;;  %v4089_v35 = vpack.c.bf16 %v4083_v51, %v4080_v15  ;;  %v8581_v30 = vld [vmem:[%s15942_s7] sm:$0xf]  ;;  %v9143_v26 = vld [vmem:[%s15942_s7 + $0x4] sm:$0xf0]  ;;  %v9144_v51 = vld [vmem:[%s15942_s7 + $0x14] sm:$0xf] }
 0x6de   : > { %v4289_v31 = vpop.f32.mrf.mxu3  ;;  %v8582_v15 = vor.u32 %v9143_v26, %v8581_v30 }
 0x6df   : > { %4255 = vmatmul.bf16.gmra.mxu1 %v4088_v29  ;;  %4274 = vmatmul.bf16.gmra.mxu0 %v4089_v35  ;;  %v13980_v32 = vadd.f32 %v4289_v31, %v4271_v10  ;;  %v8591_v29 = vld [vmem:[%s15942_s7 + $0x18] sm:$0xf0]  ;;  %v4364_v31 = vld [vmem:[%s15943_s8 + $0x10] sm:$0xff] }
 0x6e0   : > { %v4365_v35 = vld [vmem:[%s15943_s8 + $0x18] sm:$0xff]  ;;  %v8589_v10 = vld [vmem:[%s15942_s7 + $0x10] sm:$0xf] }
 0x6e2   : > { %v4253_v58 = vpop.f32.mrf.mxu1  ;;  %v4272_v14 = vpop.f32.mrf.mxu0 }
 0x6e3   : > { %v4273_v54 = vadd.f32 %v4272_v14, %v4253_v58  ;;  %v4363_v58 = vld [vmem:[%s15943_s8 + $0x8] sm:$0xff]  ;;  %v8594_v14 = vor.u32 %v9144_v51, %v8591_v29 }
 0x6e6   : > { %v4291_v33 = vpop.f32.mrf.mxu3 }
 0x6e7   : > { %v13982_v61 = vadd.f32 %v4291_v33, %v4273_v54  ;;  %v9145_v54 = vld [vmem:[%s15942_s7 + $0x14] sm:$0xf0] }
 0x6e8   : > { %v8590_v33 = vor.u32 %v9145_v54, %v8589_v10 }
 0x6e9   : > { %v9910_v38 = vpack.i.bf16 %v13982_v61, %v13980_v32  ;;  %v4349_v56 = vpack.c.bf16 %v13982_v61, %v13980_v32 }
 0x6eb   : > { %9911 = vrot.lane.b32.xlu0 %v9910_v38, %s10875_s18  ;;  %9921 = vrot.lane.b32.xlu2 %v9910_v38, %s10876_s30 }
 0x6ec   : > { %9916 = vrot.lane.b32.xlu1 %v9910_v38, %s10872_s29 }
 0x6f3   : > { %9926 = vrot.lane.b32.xlu0 %v9910_v38, %s10877_s1  ;;  %9936 = vrot.lane.b32.xlu2 %v9910_v38, %s16053_s19 }
 0x6f4   : > { %9931 = vrot.lane.b32.xlu1 %v9910_v38, %s16011_s20 }
 0x6fb   : > { %9941 = vrot.lane.b32.xlu0 %v9910_v38, %s16056_s21 }
 0x6fc   : > { %9946 = vrot.lane.b32.xlu1 %v9910_v38, %s10879_s17 }
 0x745   : > { %v9922_v25 = vpop.permute.xlu2 %9921 }
 0x746   : > { %v9924_v49 = vunpack.i.h.bf16 %v9922_v25  ;;  %v9923_v60 = vunpack.i.l.bf16 %v9922_v25 }
 0x748   : > { %v4354_v1 = vpack.c.bf16 %v9924_v49, %v9923_v60 }
 0x74d   : > { %v9937_v2 = vpop.permute.xlu2 %9936 }
 0x74e   : > { %v9939_v3 = vunpack.i.h.bf16 %v9937_v2  ;;  %v9938_v48 = vunpack.i.l.bf16 %v9937_v2 }
 0x750   : > { %v4351_v13 = vpack.c.bf16 %v9939_v3, %v9938_v48 }
 0x75c   : > { %v4256_v34 = vpop.f32.mrf.mxu1  ;;  %v4275_v63 = vpop.f32.mrf.mxu0 }
 0x75d   : > { %v9912_v19 = vpop.permute.xlu0 %9911  ;;  %v4276_v37 = vadd.f32 %v4275_v63, %v4256_v34 }
 0x75e   : > { %v9914_v53 = vunpack.i.h.bf16 %v9912_v19  ;;  %v9913_v44 = vunpack.i.l.bf16 %v9912_v19  ;;  %v9917_v39 = vpop.permute.xlu1 %9916 }
 0x75f   : > { %v4294_v16 = vpop.f32.mrf.mxu3  ;;  %v9919_v5 = vunpack.i.h.bf16 %v9917_v39  ;;  %v9918_v12 = vunpack.i.l.bf16 %v9917_v39 }
 0x760   : > { %v4356_v57 = vpack.c.bf16 %v9914_v53, %v9913_v44  ;;  %v13996_v20 = vadd.f32 %v4294_v16, %v4276_v37 }
 0x761   : > { %v4355_v17 = vpack.c.bf16 %v9919_v5, %v9918_v12 }
 0x762   : > { %4411 = vmatpush.bf16.msra.mxu0 %v4356_v57 }
 0x764   : > { %v4258_v62 = vpop.f32.mrf.mxu1  ;;  %v4277_v55 = vpop.f32.mrf.mxu0 }
 0x765   : > { %v4278_v18 = vadd.f32 %v4277_v55, %v4258_v62  ;;  %v9927_v21 = vpop.permute.xlu0 %9926 }
 0x766   : > { %v9932_v50 = vpop.permute.xlu1 %9931  ;;  %4412 = vmatpush.bf16.msra.mxu0 %v4355_v17  ;;  %v9929_v59 = vunpack.i.h.bf16 %v9927_v21  ;;  %v9928_v46 = vunpack.i.l.bf16 %v9927_v21 }
 0x767   : > { %v4296_v41 = vpop.f32.mrf.mxu3  ;;  %v9934_v23 = vunpack.i.h.bf16 %v9932_v50  ;;  %v9933_v40 = vunpack.i.l.bf16 %v9932_v50 }
 0x768   : > { %v13998_v7 = vadd.f32 %v4296_v41, %v4278_v18  ;;  %v4353_v36 = vpack.c.bf16 %v9929_v59, %v9928_v46 }
 0x769   : > { %v4352_v45 = vpack.c.bf16 %v9934_v23, %v9933_v40 }
 0x76a   : > { %4413 = vmatpush.bf16.msra.mxu0 %v4354_v1  ;;  %v9960_v11 = vpack.i.bf16 %v13998_v7, %v13996_v20  ;;  %v4543_v28 = vpack.c.bf16 %v13998_v7, %v13996_v20 }
 0x76c   : > { %9961 = vrot.lane.b32.xlu1 %v9960_v11, %s10876_s30  ;;  %9956 = vrot.lane.b32.xlu0 %v9960_v11, %s10872_s29  ;;  %s16015_s29 = smov 120  }
 0x76d   : > { %9951 = vrot.lane.b32.xlu2 %v9960_v11, %s10875_s18  ;;  %v9942_v43 = vpop.permute.xlu0 %9941  ;;  %s16098_s18 = smov 123  }
 0x76e   : > { %v9947_v24 = vpop.permute.xlu1 %9946  ;;  %4414 = vmatpush.bf16.msra.mxu0 %v4353_v36  ;;  %v9944_v47 = vunpack.i.h.bf16 %v9942_v43  ;;  %v9943_v42 = vunpack.i.l.bf16 %v9942_v43 }
 0x76f   : > { %v9949_v0 = vunpack.i.h.bf16 %v9947_v24  ;;  %v9948_v6 = vunpack.i.l.bf16 %v9947_v24 }
 0x770   : > { %v4350_v52 = vpack.c.bf16 %v9944_v47, %v9943_v42 }
 0x771   : > { %v4357_v8 = vpack.c.bf16 %v9949_v0, %v9948_v6 }
 0x772   : > { %4415 = vmatpush.bf16.msra.mxu0 %v4352_v45 }
 0x773   : > { %4437 = vmatpush.bf16.msra.mxu1 %v4357_v8 }
 0x774   : > { %9976 = vrot.lane.b32.xlu1 %v9960_v11, %s16053_s19  ;;  %9971 = vrot.lane.b32.xlu0 %v9960_v11, %s16011_s20 }
 0x775   : > { %9966 = vrot.lane.b32.xlu2 %v9960_v11, %s10877_s1 }
 0x776   : > { %4416 = vmatpush.bf16.msra.mxu0 %v4351_v13  ;;  %8595 = vmatmul.msk.bf16.vlgmr.msra.gmra.mxu1 %vm4404_vm2, %v14013_v27 }
 0x77a   : > { %4417 = vmatpush.bf16.msra.mxu0 %v4350_v52 }
 0x77c   : > { %4368 = vperm.xlu1 %9848, %v4362_v22   ;;  %9986 = vrot.lane.b32.xlu0 %v9960_v11, %s10879_s17  ;;  %s10884_s17 = smov 114  }
 0x77d   : > { %9981 = vrot.lane.b32.xlu2 %v9960_v11, %s16056_s21 }
 0x77e   : > { %4418 = vmatpush.bf16.msra.mxu0 %v4349_v56 }
 0x781   : > { %4419 = vmatmul.bf16.vlgmr.msra.gmra.mxu0 %v8582_v15 }
 0x784   : > { %4383 = vperm.xlu1 %9848, %v4365_v35   ;;  %4378 = vperm.xlu0 %9677, %v4364_v31  }
 0x785   : > { %4373 = vperm.xlu2 %9849, %v4363_v58  }
 0x786   : > { %8596 = vmatmul.msk.bf16.gmra.mxu1 %vm4404_vm2, %v8594_v14 }
 0x791   : > { %4424 = vmatmul.bf16.gmra.mxu0 %v8590_v33 }
 0x7c7   : > { %v9952_v32 = vpop.permute.xlu2 %9951 }
 0x7c8   : > { %v9954_v61 = vunpack.i.h.bf16 %v9952_v32  ;;  %v9953_v38 = vunpack.i.l.bf16 %v9952_v32 }
 0x7ca   : > { %v4550_v56 = vpack.c.bf16 %v9954_v61, %v9953_v38  ;;  %v9150_v38 = vld [vmem:[%s15944_s9 + $0x20] sm:$0xff] }
 0x7cb   : > { %4694 = vmatpush.bf16.msrb.mxu0 %v9150_v38 }
 0x7cc   : > { %4552 = vmatpush.bf16.msrb.mxu3 %v4550_v56  ;;  %v9149_v56 = vld [vmem:[%s15944_s9 + $0x18] sm:$0xff] }
 0x7cf   : > { %v9967_v25 = vpop.permute.xlu2 %9966  ;;  %4695 = vmatpush.bf16.msrb.mxu0 %v9149_v56 }
 0x7d0   : > { %v9969_v57 = vunpack.i.h.bf16 %v9967_v25  ;;  %v9968_v5 = vunpack.i.l.bf16 %v9967_v25  ;;  %v9147_v25 = vld [vmem:[%s15944_s9 + $0x8] sm:$0xff] }
 0x7d2   : > { %v4547_v62 = vpack.c.bf16 %v9969_v57, %v9968_v5 }
 0x7d7   : > { %v9982_v50 = vpop.permute.xlu2 %9981 }
 0x7d8   : > { %v9984_v46 = vunpack.i.h.bf16 %v9982_v50  ;;  %v9983_v11 = vunpack.i.l.bf16 %v9982_v50 }
 0x7da   : > { %v4544_v36 = vpack.c.bf16 %v9984_v46, %v9983_v11 }
 0x7de   : > { %v9962_v34 = vpop.permute.xlu1 %9961  ;;  %v9957_v63 = vpop.permute.xlu0 %9956 }
 0x7df   : > { %v9959_v19 = vunpack.i.h.bf16 %v9957_v63  ;;  %v9958_v53 = vunpack.i.l.bf16 %v9957_v63  ;;  %v9964_v44 = vunpack.i.h.bf16 %v9962_v34  ;;  %v9963_v39 = vunpack.i.l.bf16 %v9962_v34  ;;  %v4374_v4 = vpop.permute.xlu2 %4373 }
 0x7e1   : > { %v4549_v16 = vpack.c.bf16 %v9959_v19, %v9958_v53  ;;  %v4548_v12 = vpack.c.bf16 %v9964_v44, %v9963_v39  ;;  %v9148_v19 = vld [vmem:[%s15944_s9 + $0x10] sm:$0xff] }
 0x7e2   : > { %4696 = vmatpush.bf16.msrb.mxu0 %v9148_v19 }
 0x7e3   : > { %4553 = vmatpush.bf16.msrb.mxu3 %v4549_v16 }
 0x7e6   : > { %v9972_v49 = vpop.permute.xlu0 %9971  ;;  %v9977_v55 = vpop.permute.xlu1 %9976  ;;  %4697 = vmatpush.bf16.msrb.mxu0 %v9147_v25 }
 0x7e7   : > { %4554 = vmatpush.bf16.msrb.mxu3 %v4548_v12  ;;  %v9974_v60 = vunpack.i.h.bf16 %v9972_v49  ;;  %v9973_v37 = vunpack.i.l.bf16 %v9972_v49  ;;  %v9979_v17 = vunpack.i.h.bf16 %v9977_v55  ;;  %v9978_v18 = vunpack.i.l.bf16 %v9977_v55 }
 0x7e9   : > { %v4546_v21 = vpack.c.bf16 %v9974_v60, %v9973_v37  ;;  %v4545_v23 = vpack.c.bf16 %v9979_v17, %v9978_v18 }
 0x7eb   : > { %4555 = vmatpush.bf16.msrb.mxu3 %v4547_v62 }
 0x7ee   : > { %v9987_v41 = vpop.permute.xlu0 %9986  ;;  %v4369_v0 = vpop.permute.xlu1 %4368 }
 0x7ef   : > { %v9989_v1 = vunpack.i.h.bf16 %v9987_v41  ;;  %v9988_v59 = vunpack.i.l.bf16 %v9987_v41  ;;  %4556 = vmatpush.bf16.msrb.mxu3 %v4546_v21 }
 0x7f1   : > { %v4551_v40 = vpack.c.bf16 %v9989_v1, %v9988_v59 }
 0x7f3   : > { %4557 = vmatpush.bf16.msrb.mxu3 %v4545_v23  ;;  %4578 = vmatpush.bf16.msra.mxu2 %v4551_v40  ;;  %v4439_v2 = vpop.f32.mrf.mxu1 }
 0x7f6   : > { %8597 = vmatmul.msk.bf16.vlgmr.msra.gmra.mxu2 %vm4404_vm2, %v14013_v27  ;;  %v4379_v20 = vpop.permute.xlu0 %4378 }
 0x7f7   : > { %4558 = vmatpush.bf16.msrb.mxu3 %v4544_v36 }
 0x7fb   : > { %4559 = vmatpush.bf16.msrb.mxu3 %v4543_v28  ;;  %v4441_v6 = vpop.f32.mrf.mxu1  ;;  %v4384_v28 = vpop.permute.xlu1 %4383 }
 0x7fe   : > { %v4420_v24 = vpop.f32.mrf.mxu0  ;;  %4560 = vmatmul.bf16.vlgmr.msrb.gmra.mxu3 %v8582_v15 }
 0x7ff   : > { %v4421_v9 = vadd.f32 %v4420_v24, %v4369_v0 }
 0x801   : > { %v4440_v48 = vadd.f32 %v4439_v2, %v4421_v9  ;;  %v9146_v2 = vld [vmem:[%s15944_s9] sm:$0xff] }
 0x802   : > { %4698 = vmatpush.bf16.msrb.mxu0 %v9146_v2 }
 0x803   : > { %v4449_v8 = vmax.f32 %v4440_v48, 0.0  ;;  %v4444_v47 = vpop.f32.mrf.mxu1 }
 0x806   : > { %v4422_v3 = vpop.f32.mrf.mxu0  ;;  %8598 = vmatmul.msk.bf16.gmra.mxu2 %vm4404_vm2, %v8594_v14 }
 0x807   : > { %v4423_v45 = vadd.f32 %v4422_v3, %v4374_v4 }
 0x809   : > { %v4442_v43 = vadd.f32 %v4441_v6, %v4423_v45 }
 0x80b   : > { %v4450_v27 = vmax.f32 %v4442_v43, 0.0  ;;  %v4446_v22 = vpop.f32.mrf.mxu1 }
 0x80d   : > { %v9990_v42 = vpack.i.bf16 %v4450_v27, %v4449_v8 }
 0x80e   : > { %v4425_v13 = vpop.f32.mrf.mxu0  ;;  %4565 = vmatmul.bf16.gmra.mxu3 %v8590_v33 }
 0x80f   : > { %9991 = vrot.lane.b32.xlu2 %v9990_v42, %s16056_s21  ;;  %v4426_v7 = vadd.f32 %v4425_v13, %v4379_v20 }
 0x811   : > { %v4445_v30 = vadd.f32 %v4444_v47, %v4426_v7 }
 0x813   : > { %v4451_v51 = vmax.f32 %v4445_v30, 0.0 }
 0x816   : > { %v4427_v52 = vpop.f32.mrf.mxu0 }
 0x817   : > { %v4428_v26 = vadd.f32 %v4427_v52, %v4384_v28 }
 0x819   : > { %v4447_v15 = vadd.f32 %v4446_v22, %v4428_v26 }
 0x81b   : > { %v4452_v29 = vmax.f32 %v4447_v15, 0.0 }
 0x81d   : > { %v9995_v35 = vpack.i.bf16 %v4452_v29, %v4451_v51 }
 0x81f   : > { %9996 = vrot.lane.b32.xlu0 %v9995_v35, %s16056_s21 }
 0x869   : > { %v9992_v31 = vpop.permute.xlu2 %9991 }
 0x86a   : > { %v9994_v58 = vunpack.i.h.bf16 %v9992_v31  ;;  %v9993_v14 = vunpack.i.l.bf16 %v9992_v31 }
 0x86c   : > { %v4470_v10 = vmax.f32 %v4450_v27, %v9994_v58  ;;  %v4469_v54 = vmax.f32 %v4449_v8, %v9993_v14 }
 0x86e   : > { %v10000_v33 = vpack.i.bf16 %v4470_v10, %v4469_v54 }
 0x870   : > { %10001 = vrot.lane.b32.xlu1 %v10000_v33, %s16011_s20 }
 0x879   : > { %v4580_v32 = vpop.f32.mrf.mxu2 }
 0x881   : > { %v4561_v61 = vpop.f32.mrf.mxu3  ;;  %v4582_v63 = vpop.f32.mrf.mxu2 }
 0x882   : > { %v4562_v34 = vadd.f32 %v4561_v61, %v4369_v0 }
 0x884   : > { %v4581_v44 = vadd.f32 %v4580_v32, %v4562_v34 }
 0x886   : > { %v4590_v57 = vmax.f32 %v4581_v44, 0.0 }
 0x889   : > { %v4563_v53 = vpop.f32.mrf.mxu3  ;;  %v4585_v49 = vpop.f32.mrf.mxu2 }
 0x88a   : > { %v4564_v39 = vadd.f32 %v4563_v53, %v4374_v4 }
 0x88c   : > { %v4583_v16 = vadd.f32 %v4582_v63, %v4564_v39 }
 0x88e   : > { %v4591_v5 = vmax.f32 %v4583_v16, 0.0 }
 0x890   : > { %v10010_v12 = vpack.i.bf16 %v4591_v5, %v4590_v57 }
 0x891   : > { %v9997_v60 = vpop.permute.xlu0 %9996  ;;  %v4566_v37 = vpop.f32.mrf.mxu3 }
 0x892   : > { %v9999_v62 = vunpack.i.h.bf16 %v9997_v60  ;;  %v9998_v55 = vunpack.i.l.bf16 %v9997_v60  ;;  %10011 = vrot.lane.b32.xlu0 %v10010_v12, %s16056_s21  ;;  %v4567_v21 = vadd.f32 %v4566_v37, %v4379_v20  ;;  %v4587_v46 = vpop.f32.mrf.mxu2 }
 0x894   : > { %v4472_v17 = vmax.f32 %v4452_v29, %v9999_v62  ;;  %v4471_v18 = vmax.f32 %v4451_v51, %v9998_v55  ;;  %v4586_v1 = vadd.f32 %v4585_v49, %v4567_v21 }
 0x896   : > { %v10005_v50 = vpack.i.bf16 %v4472_v17, %v4471_v18  ;;  %v4592_v23 = vmax.f32 %v4586_v1, 0.0 }
 0x898   : > { %10006 = vrot.lane.b32.xlu2 %v10005_v50, %s16011_s20 }
 0x899   : > { %v4568_v41 = vpop.f32.mrf.mxu3 }
 0x89a   : > { %v4569_v59 = vadd.f32 %v4568_v41, %v4384_v28 }
 0x89c   : > { %v4588_v11 = vadd.f32 %v4587_v46, %v4569_v59 }
 0x89e   : > { %v4593_v40 = vmax.f32 %v4588_v11, 0.0 }
 0x8a0   : > { %v10015_v36 = vpack.i.bf16 %v4593_v40, %v4592_v23 }
 0x8a2   : > { %10016 = vrot.lane.b32.xlu1 %v10015_v36, %s16056_s21 }
 0x8e2   : > { %v10002_v24 = vpop.permute.xlu1 %10001 }
 0x8e3   : > { %v10004_v0 = vunpack.i.h.bf16 %v10002_v24  ;;  %v10003_v6 = vunpack.i.l.bf16 %v10002_v24 }
 0x8e5   : > { %v4490_v9 = vmax.f32 %v4470_v10, %v10004_v0  ;;  %v4489_v4 = vmax.f32 %v4469_v54, %v10003_v6 }
 0x8e7   : > { %v4634_v3 = vpack.c.bf16 %v4490_v9, %v4489_v4 }
 0x8e9   : > { %8619 = vmatmul.msk.bf16.vlgmr.msrb.gmra.mxu0 %vm4678_vm3, %v4634_v3 }
 0x8f2   : > { %v10007_v48 = vpop.permute.xlu2 %10006 }
 0x8f3   : > { %v10009_v45 = vunpack.i.h.bf16 %v10007_v48  ;;  %v10008_v43 = vunpack.i.l.bf16 %v10007_v48 }
 0x8f5   : > { %v4492_v8 = vmax.f32 %v4472_v17, %v10009_v45  ;;  %v4491_v27 = vmax.f32 %v4471_v18, %v10008_v43 }
 0x8f7   : > { %v4635_v47 = vpack.c.bf16 %v4492_v8, %v4491_v27 }
 0x8f9   : > { %8620 = vmatmul.msk.bf16.gmra.mxu0 %vm4678_vm3, %v4635_v47 }
 0x904   : > { %v10012_v42 = vpop.permute.xlu0 %10011 }
 0x905   : > { %v10014_v13 = vunpack.i.h.bf16 %v10012_v42  ;;  %v10013_v20 = vunpack.i.l.bf16 %v10012_v42 }
 0x907   : > { %v4611_v7 = vmax.f32 %v4591_v5, %v10014_v13  ;;  %v4610_v28 = vmax.f32 %v4590_v57, %v10013_v20 }
 0x909   : > { %v10020_v52 = vpack.i.bf16 %v4611_v7, %v4610_v28 }
 0x90b   : > { %10021 = vrot.lane.b32.xlu2 %v10020_v52, %s16011_s20 }
 0x914   : > { %v10017_v22 = vpop.permute.xlu1 %10016 }
 0x915   : > { %v10019_v30 = vunpack.i.h.bf16 %v10017_v22  ;;  %v10018_v26 = vunpack.i.l.bf16 %v10017_v22 }
 0x917   : > { %v4613_v15 = vmax.f32 %v4593_v40, %v10019_v30  ;;  %v4612_v51 = vmax.f32 %v4592_v23, %v10018_v26 }
 0x919   : > { %v10025_v29 = vpack.i.bf16 %v4613_v15, %v4612_v51 }
 0x91b   : > { %10026 = vrot.lane.b32.xlu0 %v10025_v29, %s16011_s20  ;;  %s16097_s20 = smov 118  }
 0x965   : > { %v10022_v35 = vpop.permute.xlu2 %10021 }
 0x966   : > { %v10024_v31 = vunpack.i.h.bf16 %v10022_v35  ;;  %v10023_v58 = vunpack.i.l.bf16 %v10022_v35  ;;  %v14087_v14 = vpop.f32.mrf.mxu0 }
 0x968   : > { %v4631_v10 = vmax.f32 %v4611_v7, %v10024_v31  ;;  %v4630_v54 = vmax.f32 %v4610_v28, %v10023_v58 }
 0x96a   : > { %v4636_v33 = vpack.c.bf16 %v4631_v10, %v4630_v54 }
 0x96c   : > { %8621 = vmatmul.msk.bf16.gmra.mxu0 %vm4678_vm3, %v4636_v33 }
 0x96e   : > { %v14090_v32 = vpop.f32.mrf.mxu0 }
 0x96f   : > { %v10035_v61 = vpack.i.bf16 %v14090_v32, %v14087_v14 }
 0x971   : > { %10036 = vrot.lane.b32.xlu1 %v10035_v61, %s10880_s0  ;;  %10031 = vrot.lane.b32.xlu0 %v10035_v61, %s10881_s22 }
 0x976   : > { %v14096_v38 = vpop.f32.mrf.mxu0 }
 0x97e   : > { %v14098_v56 = vpop.f32.mrf.mxu0 }
 0x97f   : > { %v10040_v34 = vpack.i.bf16 %v14098_v56, %v14096_v38 }
 0x981   : > { %10041 = vrot.lane.b32.xlu1 %v10040_v34, %s10881_s22  ;;  %10071 = vrot.lane.b32.xlu0 %v10040_v34, %s16053_s19 }
 0x982   : > { %10051 = vrot.lane.b32.xlu2 %v10040_v34, %s10880_s0 }
 0x989   : > { %10046 = vrot.lane.b32.xlu1 %v10035_v61, %s10876_s30  ;;  %10076 = vrot.lane.b32.xlu0 %v10040_v34, %s16015_s29 }
 0x98a   : > { %10056 = vrot.lane.b32.xlu2 %v10040_v34, %s10876_s30 }
 0x98d   : > { %v10027_v63 = vpop.permute.xlu0 %10026 }
 0x98e   : > { %v10029_v19 = vunpack.i.h.bf16 %v10027_v63  ;;  %v10028_v53 = vunpack.i.l.bf16 %v10027_v63 }
 0x990   : > { %v4633_v44 = vmax.f32 %v4613_v15, %v10029_v19  ;;  %v4632_v39 = vmax.f32 %v4612_v51, %v10028_v53 }
 0x991   : > { %10086 = vrot.lane.b32.xlu1 %v10040_v34, %s16056_s21  ;;  %10081 = vrot.lane.b32.xlu0 %v10035_v61, %s16056_s21 }
 0x992   : > { %10061 = vrot.lane.b32.xlu2 %v10035_v61, %s16053_s19  ;;  %v4637_v16 = vpack.c.bf16 %v4633_v44, %v4632_v39 }
 0x994   : > { %8622 = vmatmul.msk.bf16.gmra.mxu0 %vm4678_vm3, %v4637_v16 }
 0x999   : > { %10091 = vrot.lane.b32.xlu1 %v10040_v34, %s16013_s25  ;;  %10101 = vrot.lane.b32.xlu0 %v10035_v61, %s16013_s25  ;;  %s16095_s25 = smov 121  }
 0x99a   : > { %10066 = vrot.lane.b32.xlu2 %v10035_v61, %s16015_s29 }
 0x9a1   : > { %10106 = vrot.lane.b32.xlu1 %v10035_v61, %s10884_s17 }
 0x9a2   : > { %10096 = vrot.lane.b32.xlu2 %v10040_v34, %s10884_s17 }
 0x9dc   : > { %v10052_v25 = vpop.permute.xlu2 %10051 }
 0x9dd   : > { %v10054_v57 = vunpack.i.h.bf16 %v10052_v25  ;;  %v10053_v5 = vunpack.i.l.bf16 %v10052_v25 }
 0x9df   : > { %v4827_v12 = vpack.c.bf16 %v10054_v57, %v10053_v5  ;;  %v4821_v57 = vpack.c.bf16 %v14098_v56, %v14096_v38  ;;  %v4820_v56 = vpack.c.bf16 %v14090_v32, %v14087_v14 }
 0x9e1   : > { %4974 = vmatpush.bf16.msrb.mxu1 %v4827_v12  ;;  %v8625_v12 = vld [vmem:[%s15945_s10] sm:$0xf] }
 0x9e3   : > { %v10037_v49 = vpop.permute.xlu1 %10036  ;;  %v10032_v18 = vpop.permute.xlu0 %10031 }
 0x9e4   : > { %v10039_v60 = vunpack.i.h.bf16 %v10037_v49  ;;  %v10038_v37 = vunpack.i.l.bf16 %v10037_v49  ;;  %v10057_v62 = vpop.permute.xlu2 %10056  ;;  %v10034_v2 = vunpack.i.h.bf16 %v10032_v18  ;;  %v10033_v24 = vunpack.i.l.bf16 %v10032_v18  ;;  %v9152_v49 = vld [vmem:[%s15945_s10 + $0x8] sm:$0xf0] }
 0x9e5   : > { %v10059_v3 = vunpack.i.h.bf16 %v10057_v62  ;;  %v10058_v48 = vunpack.i.l.bf16 %v10057_v62  ;;  %v14147_v18 = vor.u32 %v9152_v49, %v8625_v12 }
 0x9e6   : > { %v4826_v55 = vpack.c.bf16 %v10039_v60, %v10038_v37  ;;  %v4834_v43 = vpack.c.bf16 %v10034_v2, %v10033_v24  ;;  %v9151_v60 = vld [vmem:[%s15945_s10 + $0x4] sm:$0xf]  ;;  %v8627_v37 = vld [vmem:[%s15945_s10 + $0xc] sm:$0xf0]  ;;  %v9154_v24 = vld [vmem:[%s15945_s10 + $0x1c] sm:$0xf] }
 0x9e7   : > { %v4833_v28 = vpack.c.bf16 %v10059_v3, %v10058_v48  ;;  %v9155_v2 = vld [vmem:[%s15945_s10 + $0x20] sm:$0xf0]  ;;  %v9156_v3 = vld [vmem:[%s15945_s10 + $0x28] sm:$0xf0] }
 0x9e8   : > { %4975 = vmatpush.bf16.msrb.mxu1 %v4826_v55 }
 0x9e9   : > { %v14117_v17 = vpop.f32.mrf.mxu0 }
 0x9ec   : > { %v10062_v21 = vpop.permute.xlu2 %10061 }
 0x9ed   : > { %v10064_v0 = vunpack.i.h.bf16 %v10062_v21  ;;  %v10063_v6 = vunpack.i.l.bf16 %v10062_v21  ;;  %v14149_v21 = vor.u32 %v9151_v60, %v8627_v37 }
 0x9ef   : > { %v4824_v45 = vpack.c.bf16 %v10064_v0, %v10063_v6  ;;  %v8639_v0 = vld [vmem:[%s15945_s10 + $0x24] sm:$0xf0] }
 0x9f1   : > { %v14119_v50 = vpop.f32.mrf.mxu0 }
 0x9f2   : > { %v14123_v41 = vpack.i.bf16 %v14119_v50, %v14117_v17 }
 0x9f3   : > { %v10042_v1 = vpop.permute.xlu1 %10041  ;;  %v10072_v59 = vpop.permute.xlu0 %10071 }
 0x9f4   : > { %v10044_v46 = vunpack.i.h.bf16 %v10042_v1  ;;  %v10043_v11 = vunpack.i.l.bf16 %v10042_v1  ;;  %v10074_v23 = vunpack.i.h.bf16 %v10072_v59  ;;  %v10073_v40 = vunpack.i.l.bf16 %v10072_v59  ;;  %v10067_v36 = vpop.permute.xlu2 %10066  ;;  %10116 = vrot.lane.b32.xlu2 %v14123_v41, %s10881_s22  ;;  %10111 = vrot.lane.b32.xlu1 %v14123_v41, %s10880_s0 }
 0x9f5   : > { %v10069_v31 = vunpack.i.h.bf16 %v10067_v36  ;;  %v10068_v58 = vunpack.i.l.bf16 %v10067_v36  ;;  %v8637_v36 = vld [vmem:[%s15945_s10 + $0x18] sm:$0xf] }
 0x9f6   : > { %v4835_v9 = vpack.c.bf16 %v10044_v46, %v10043_v11  ;;  %v4825_v4 = vpack.c.bf16 %v10074_v23, %v10073_v40  ;;  %v8633_v46 = vld [vmem:[%s15945_s10 + $0x8] sm:$0xf]  ;;  %v9153_v11 = vld [vmem:[%s15945_s10 + $0x10] sm:$0xf0]  ;;  %v14182_v6 = vor.u32 %v9155_v2, %v8637_v36 }
 0x9f7   : > { %v4830_v63 = vpack.c.bf16 %v10069_v31, %v10068_v58  ;;  %v14159_v14 = vor.u32 %v9153_v11, %v8633_v46  ;;  %v8669_v31 = vld [vmem:[%s15945_s10 + $0x50] sm:$0xf]  ;;  %v9162_v58 = vld [vmem:[%s15945_s10 + $0x58] sm:$0xf0] }
 0x9f8   : > { %4976 = vmatpush.bf16.msrb.mxu1 %v4825_v4  ;;  %5003 = vmatpush.bf16.msra.mxu3 %v4835_v9  ;;  %v14184_v9 = vor.u32 %v9154_v24, %v8639_v0  ;;  %v8645_v4 = vld [vmem:[%s15945_s10 + $0x20] sm:$0xf] }
 0x9f9   : > { %v14198_v48 = vor.u32 %v9156_v3, %v8645_v4 }
 0x9fb   : > { %v10047_v8 = vpop.permute.xlu1 %10046  ;;  %v10077_v27 = vpop.permute.xlu0 %10076 }
 0x9fc   : > { %v10097_v47 = vpop.permute.xlu2 %10096  ;;  %4977 = vmatpush.bf16.msrb.mxu1 %v4824_v45  ;;  %5004 = vmatpush.bf16.msra.mxu3 %v4834_v43  ;;  %v10049_v20 = vunpack.i.h.bf16 %v10047_v8  ;;  %v10048_v7 = vunpack.i.l.bf16 %v10047_v8  ;;  %v10079_v22 = vunpack.i.h.bf16 %v10077_v27  ;;  %v10078_v30 = vunpack.i.l.bf16 %v10077_v27  ;;  %v8649_v45 = vld [vmem:[%s15945_s10 + $0x30] sm:$0xf]  ;;  %v9158_v43 = vld [vmem:[%s15945_s10 + $0x38] sm:$0xf0]  ;;  %v9157_v8 = vld [vmem:[%s15945_s10 + $0x34] sm:$0xf] }
 0x9fd   : > { %v10099_v42 = vunpack.i.h.bf16 %v10097_v47  ;;  %v10098_v13 = vunpack.i.l.bf16 %v10097_v47  ;;  %v8651_v27 = vld [vmem:[%s15945_s10 + $0x3c] sm:$0xf0]  ;;  %v14219_v47 = vor.u32 %v9158_v43, %v8649_v45 }
 0x9fe   : > { %v4832_v26 = vpack.c.bf16 %v10049_v20, %v10048_v7  ;;  %v4831_v61 = vpack.c.bf16 %v10079_v22, %v10078_v30  ;;  %v9159_v20 = vld [vmem:[%s15945_s10 + $0x40] sm:$0xf0]  ;;  %v9161_v22 = vld [vmem:[%s15945_s10 + $0x50] sm:$0xf0]  ;;  %v9160_v30 = vld [vmem:[%s15945_s10 + $0x4c] sm:$0xf] }
 0x9ff   : > { %v4837_v52 = vpack.c.bf16 %v10099_v42, %v10098_v13  ;;  %v14221_v42 = vor.u32 %v9157_v8, %v8651_v27  ;;  %v8657_v13 = vld [vmem:[%s15945_s10 + $0x38] sm:$0xf] }
 0xa00   : > { %5005 = vmatpush.bf16.msra.mxu3 %v4833_v28  ;;  %v14236_v7 = vor.u32 %v9159_v20, %v8657_v13  ;;  %v4855_v28 = vld [vmem:[%s15946_s11 + $0x8] sm:$0xff] }
 0xa01   : > { %5038 = vmatpush.bf16.msra.mxu2 %v4837_v52  ;;  %v8661_v52 = vld [vmem:[%s15945_s10 + $0x48] sm:$0xf] }
 0xa03   : > { %v10087_v15 = vpop.permute.xlu1 %10086  ;;  %v10082_v51 = vpop.permute.xlu0 %10081 }
 0xa04   : > { %v10089_v29 = vunpack.i.h.bf16 %v10087_v15  ;;  %v10088_v35 = vunpack.i.l.bf16 %v10087_v15  ;;  %5006 = vmatpush.bf16.msra.mxu3 %v4832_v26  ;;  %v10084_v10 = vunpack.i.h.bf16 %v10082_v51  ;;  %v10083_v54 = vunpack.i.l.bf16 %v10082_v51  ;;  %v8663_v26 = vld [vmem:[%s15945_s10 + $0x54] sm:$0xf0]  ;;  %v4854_v15 = vld [vmem:[%s15946_s11] sm:$0xff]  ;;  %v4856_v51 = vld [vmem:[%s15946_s11 + $0x10] sm:$0xff] }
 0xa06   : > { %v4823_v33 = vpack.c.bf16 %v10089_v29, %v10088_v35  ;;  %v4822_v34 = vpack.c.bf16 %v10084_v10, %v10083_v54  ;;  %v14267_v29 = vor.u32 %v9161_v22, %v8661_v52  ;;  %v14269_v35 = vor.u32 %v9160_v30, %v8663_v26  ;;  %v4860_v54 = vld [vmem:[%s15946_s11 + $0x30] sm:$0xff] }
 0xa07   : > { %v14279_v10 = vor.u32 %v9162_v58, %v8669_v31 }
 0xa08   : > { %4978 = vmatpush.bf16.msrb.mxu1 %v4823_v33  ;;  %5007 = vmatpush.bf16.msra.mxu3 %v4831_v61  ;;  %v4857_v33 = vld [vmem:[%s15946_s11 + $0x18] sm:$0xff]  ;;  %v4859_v61 = vld [vmem:[%s15946_s11 + $0x28] sm:$0xff] }
 0xa0b   : > { %v10092_v19 = vpop.permute.xlu1 %10091  ;;  %v10102_v53 = vpop.permute.xlu0 %10101 }
 0xa0c   : > { %v10094_v44 = vunpack.i.h.bf16 %v10092_v19  ;;  %v10093_v39 = vunpack.i.l.bf16 %v10092_v19  ;;  %4979 = vmatpush.bf16.msrb.mxu1 %v4822_v34  ;;  %5008 = vmatpush.bf16.msra.mxu3 %v4830_v63  ;;  %v10104_v16 = vunpack.i.h.bf16 %v10102_v53  ;;  %v10103_v25 = vunpack.i.l.bf16 %v10102_v53  ;;  %v4861_v34 = vld [vmem:[%s15946_s11 + $0x38] sm:$0xff] }
 0xa0e   : > { %v4829_v5 = vpack.c.bf16 %v10094_v44, %v10093_v39  ;;  %v4828_v62 = vpack.c.bf16 %v10104_v16, %v10103_v25 }
 0xa10   : > { %4980 = vmatpush.bf16.msrb.mxu1 %v4821_v57  ;;  %5009 = vmatpush.bf16.msra.mxu3 %v4829_v5 }
 0xa11   : > { %v14143_v38 = vpop.f32.mrf.mxu0 }
 0xa13   : > { %v10107_v55 = vpop.permute.xlu1 %10106 }
 0xa14   : > { %v10109_v1 = vunpack.i.h.bf16 %v10107_v55  ;;  %v10108_v59 = vunpack.i.l.bf16 %v10107_v55  ;;  %4981 = vmatpush.bf16.msrb.mxu1 %v4820_v56  ;;  %5010 = vmatpush.bf16.msra.mxu3 %v4828_v62 }
 0xa16   : > { %v4836_v23 = vpack.c.bf16 %v10109_v1, %v10108_v59 }
 0xa17   : > { %4982 = vmatmul.bf16.vlgmr.msrb.gmra.mxu1 %v14147_v18  ;;  %5011 = vmatmul.bf16.vlgmr.msra.gmra.mxu3 %v14149_v21 }
 0xa18   : > { %5039 = vmatpush.bf16.msra.mxu2 %v4836_v23 }
 0xa19   : > { %v14161_v32 = vpop.f32.mrf.mxu0 }
 0xa1a   : > { %v10150_v40 = vpack.i.bf16 %v14161_v32, %v14143_v38 }
 0xa1b   : > { %8671 = vmatmul.msk.bf16.vlgmr.msra.gmra.mxu2 %vm4235_vm0, %v14159_v14 }
 0xa1c   : > { %10151 = vrot.lane.b32.xlu1 %v10150_v40, %s10876_s30  ;;  %10131 = vrot.lane.b32.xlu0 %v10150_v40, %s10881_s22 }
 0xa1d   : > { %10121 = vrot.lane.b32.xlu2 %v10150_v40, %s10880_s0 }
 0xa24   : > { %10156 = vrot.lane.b32.xlu1 %v10150_v40, %s16056_s21  ;;  %10136 = vrot.lane.b32.xlu0 %v10150_v40, %s16053_s19 }
 0xa25   : > { %10126 = vrot.lane.b32.xlu2 %v14123_v41, %s16053_s19 }
 0xa27   : > { %4987 = vmatmul.bf16.gmra.mxu1 %v14182_v6  ;;  %5016 = vmatmul.bf16.gmra.mxu3 %v14184_v9 }
 0xa2b   : > { %8672 = vmatmul.msk.bf16.gmra.mxu2 %vm4235_vm0, %v14198_v48 }
 0xa2c   : > { %10161 = vrot.lane.b32.xlu1 %v14123_v41, %s16015_s29  ;;  %10141 = vrot.lane.b32.xlu0 %v14123_v41, %s10876_s30 }
 0xa2d   : > { %10166 = vrot.lane.b32.xlu2 %v10150_v40, %s16015_s29  ;;  %s16019_s29 = smov 124  }
 0xa34   : > { %10181 = vrot.lane.b32.xlu1 %v14123_v41, %s10884_s17  ;;  %10146 = vrot.lane.b32.xlu0 %v14123_v41, %s16056_s21 }
 0xa35   : > { %10171 = vrot.lane.b32.xlu2 %v10150_v40, %s10884_s17  ;;  %s16132_s17 = sld [smem:[#allocation27_spill]] }
 0xa37   : > { %4992 = vmatmul.bf16.gmra.mxu1 %v14219_v47  ;;  %5021 = vmatmul.bf16.gmra.mxu3 %v14221_v42 }
 0xa3b   : > { %8673 = vmatmul.msk.bf16.gmra.mxu2 %vm4235_vm0, %v14236_v7 }
 0xa3c   : > { %4869 = vperm.xlu1 %9848, %v4855_v28   ;;  %10176 = vrot.lane.b32.xlu0 %v10150_v40, %s16095_s25 }
 0xa3d   : > { %10186 = vrot.lane.b32.xlu2 %v14123_v41, %s16095_s25  ;;  %v4858_v41 = vld [vmem:[%s15946_s11 + $0x20] sm:$0xff]  ;;  %s10817_s25 = scalar_lea.hbm %s16132_s17, 4 }
 0xa44   : > { %4884 = vperm.xlu1 %9848, %v4858_v41   ;;  %4864 = vperm.xlu0 %9677, %v4854_v15  }
 0xa45   : > { %4874 = vperm.xlu2 %9849, %v4856_v51  }
 0xa47   : > { %4997 = vmatmul.bf16.gmra.mxu1 %v14267_v29  ;;  %5026 = vmatmul.bf16.gmra.mxu3 %v14269_v35 }
 0xa4b   : > { %8674 = vmatmul.msk.bf16.gmra.mxu2 %vm4235_vm0, %v14279_v10 }
 0xa4c   : > { %4894 = vperm.xlu1 %9848, %v4860_v54   ;;  %4879 = vperm.xlu0 %9677, %v4857_v33  }
 0xa4d   : > { %4889 = vperm.xlu2 %9849, %v4859_v61  }
 0xa4e   : > { %v10117_v63 = vpop.permute.xlu2 %10116 }
 0xa4f   : > { %v10119_v46 = vunpack.i.h.bf16 %v10117_v63  ;;  %v10118_v11 = vunpack.i.l.bf16 %v10117_v63 }
 0xa51   : > { %v5263_v0 = vpack.c.bf16 %v10119_v46, %v10118_v11  ;;  %v5250_v11 = vpack.c.bf16 %v14161_v32, %v14143_v38 }
 0xa55   : > { %4899 = vperm.xlu2 %9849, %v4861_v34  }
 0xa66   : > { %v10112_v19 = vpop.permute.xlu1 %10111 }
 0xa67   : > { %v10114_v16 = vunpack.i.h.bf16 %v10112_v19  ;;  %v10113_v25 = vunpack.i.l.bf16 %v10112_v19 }
 0xa69   : > { %v5255_v5 = vpack.c.bf16 %v10114_v16, %v10113_v25 }
 0xa77   : > { %v10122_v53 = vpop.permute.xlu2 %10121 }
 0xa78   : > { %v10124_v44 = vunpack.i.h.bf16 %v10122_v53  ;;  %v10123_v39 = vunpack.i.l.bf16 %v10122_v53 }
 0xa7a   : > { %v5256_v57 = vpack.c.bf16 %v10124_v44, %v10123_v39 }
 0xa7c   : > { %5267 = vmatpush.bf16.msra.mxu0 %v5256_v57 }
 0xa7f   : > { %v10127_v12 = vpop.permute.xlu2 %10126 }
 0xa80   : > { %5268 = vmatpush.bf16.msra.mxu0 %v5255_v5  ;;  %v10129_v8 = vunpack.i.h.bf16 %v10127_v12  ;;  %v10128_v27 = vunpack.i.l.bf16 %v10127_v12 }
 0xa82   : > { %v5253_v26 = vpack.c.bf16 %v10129_v8, %v10128_v27 }
 0xa87   : > { %v10167_v49 = vpop.permute.xlu2 %10166 }
 0xa88   : > { %v10169_v33 = vunpack.i.h.bf16 %v10167_v49  ;;  %v10168_v61 = vunpack.i.l.bf16 %v10167_v49 }
 0xa8a   : > { %v5260_v25 = vpack.c.bf16 %v10169_v33, %v10168_v61 }
 0xa8e   : > { %v10152_v60 = vpop.permute.xlu1 %10151  ;;  %v10132_v37 = vpop.permute.xlu0 %10131 }
 0xa8f   : > { %v10134_v56 = vunpack.i.h.bf16 %v10132_v37  ;;  %v10133_v62 = vunpack.i.l.bf16 %v10132_v37  ;;  %v10172_v55 = vpop.permute.xlu2 %10171  ;;  %v10154_v2 = vunpack.i.h.bf16 %v10152_v60  ;;  %v10153_v24 = vunpack.i.l.bf16 %v10152_v60 }
 0xa90   : > { %v10174_v1 = vunpack.i.h.bf16 %v10172_v55  ;;  %v10173_v59 = vunpack.i.l.bf16 %v10172_v55 }
 0xa91   : > { %v5264_v23 = vpack.c.bf16 %v10134_v56, %v10133_v62  ;;  %v5262_v20 = vpack.c.bf16 %v10154_v2, %v10153_v24 }
 0xa92   : > { %v5266_v40 = vpack.c.bf16 %v10174_v1, %v10173_v59 }
 0xa93   : > { %5296 = vmatpush.bf16.msra.mxu1 %v5264_v23 }
 0xa94   : > { %5331 = vmatpush.bf16.msrb.mxu3 %v5266_v40  ;;  %v14295_v36 = vpop.f32.mrf.mxu1 }
 0xa96   : > { %v10157_v4 = vpop.permute.xlu1 %10156  ;;  %v10137_v3 = vpop.permute.xlu0 %10136 }
 0xa97   : > { %v10139_v45 = vunpack.i.h.bf16 %v10137_v3  ;;  %v10138_v43 = vunpack.i.l.bf16 %v10137_v3  ;;  %5297 = vmatpush.bf16.msra.mxu1 %v5263_v0  ;;  %v10159_v22 = vunpack.i.h.bf16 %v10157_v4  ;;  %v10158_v30 = vunpack.i.l.bf16 %v10157_v4  ;;  %v10187_v59 = vpop.permute.xlu2 %10186 }
 0xa98   : > { %v5249_v0 = vpack.c.bf16 %v14119_v50, %v14117_v17  ;;  %v10189_v4 = vunpack.i.h.bf16 %v10187_v59  ;;  %v10188_v3 = vunpack.i.l.bf16 %v10187_v59 }
 0xa99   : > { %v5254_v13 = vpack.c.bf16 %v10139_v45, %v10138_v43  ;;  %v5252_v54 = vpack.c.bf16 %v10159_v22, %v10158_v30 }
 0xa9a   : > { %v14297_v28 = vpop.f32.mrf.mxu3  ;;  %v5257_v32 = vpack.c.bf16 %v10189_v4, %v10188_v3 }
 0xa9b   : > { %5269 = vmatpush.bf16.msra.mxu0 %v5254_v13  ;;  %5298 = vmatpush.bf16.msra.mxu1 %v5262_v20 }
 0xa9c   : > { %v4985_v52 = vpop.f32.mrf.mxu1 }
 0xa9e   : > { %v14299_v41 = vpop.f32.mrf.mxu2  ;;  %v10162_v15 = vpop.permute.xlu1 %10161 }
 0xa9f   : > { %v10142_v51 = vpop.permute.xlu0 %10141  ;;  %5270 = vmatpush.bf16.msra.mxu0 %v5253_v26  ;;  %v10164_v53 = vunpack.i.h.bf16 %v10162_v15  ;;  %v10163_v44 = vunpack.i.l.bf16 %v10162_v15  ;;  %v14313_v20 = vpop.permute.xlu2 %4874 }
 0xaa0   : > { %v10144_v31 = vunpack.i.h.bf16 %v10142_v51  ;;  %v10143_v58 = vunpack.i.l.bf16 %v10142_v51 }
 0xaa1   : > { %v5259_v49 = vpack.c.bf16 %v10164_v53, %v10163_v44 }
 0xaa2   : > { %v5014_v34 = vpop.f32.mrf.mxu3  ;;  %v5261_v63 = vpack.c.bf16 %v10144_v31, %v10143_v58 }
 0xaa3   : > { %5271 = vmatpush.bf16.msra.mxu0 %v5252_v54 }
 0xaa4   : > { %5299 = vmatpush.bf16.msra.mxu1 %v5261_v63  ;;  %v4988_v19 = vpop.f32.mrf.mxu1 }
 0xaa5   : > { %v4989_v15 = vadd.f32 %v4988_v19, %v14313_v20 }
 0xaa6   : > { %v5043_v39 = vpop.f32.mrf.mxu2  ;;  %v10182_v16 = vpop.permute.xlu1 %10181 }
 0xaa7   : > { %v10184_v57 = vunpack.i.h.bf16 %v10182_v16  ;;  %v10183_v5 = vunpack.i.l.bf16 %v10182_v16  ;;  %v10147_v12 = vpop.permute.xlu0 %10146  ;;  %v14335_v33 = vpop.permute.xlu2 %4889 }
 0xaa8   : > { %v10149_v60 = vunpack.i.h.bf16 %v10147_v12  ;;  %v10148_v37 = vunpack.i.l.bf16 %v10147_v12  ;;  %5300 = vmatpush.bf16.msra.mxu1 %v5260_v25 }
 0xaa9   : > { %v5265_v56 = vpack.c.bf16 %v10184_v57, %v10183_v5 }
 0xaaa   : > { %v5017_v62 = vpop.f32.mrf.mxu3  ;;  %v5251_v55 = vpack.c.bf16 %v10149_v60, %v10148_v37 }
 0xaab   : > { %5332 = vmatpush.bf16.msrb.mxu3 %v5265_v56  ;;  %v5018_v58 = vadd.f32 %v5017_v62, %v4989_v15 }
 0xaac   : > { %5272 = vmatpush.bf16.msra.mxu0 %v5251_v55  ;;  %5301 = vmatpush.bf16.msra.mxu1 %v5259_v49  ;;  %v4990_v1 = vpop.f32.mrf.mxu1 }
 0xaae   : > { %v5046_v46 = vpop.f32.mrf.mxu2  ;;  %8675 = vmatmul.msk.bf16.vlgmr.msrb.gmra.mxu3 %vm4235_vm0, %v14159_v14  ;;  %v14305_v23 = vpop.permute.xlu1 %4869 }
 0xaaf   : > { %v10177_v40 = vpop.permute.xlu0 %10176  ;;  %v4986_v45 = vadd.f32 %v4985_v52, %v14305_v23  ;;  %v14337_v61 = vadd.f32 %v5046_v46, %v5018_v58  ;;  %v14354_v46 = vpop.permute.xlu2 %4899 }
 0xab0   : > { %v10179_v2 = vunpack.i.h.bf16 %v10177_v40  ;;  %v10178_v24 = vunpack.i.l.bf16 %v10177_v40  ;;  %5273 = vmatpush.bf16.msra.mxu0 %v5250_v11 }
 0xab1   : > { %v5015_v14 = vadd.f32 %v5014_v34, %v4986_v45  ;;  %v5063_v16 = vmax.f32 %v14337_v61, 0.0 }
 0xab2   : > { %v5258_v43 = vpack.c.bf16 %v10179_v2, %v10178_v24  ;;  %v5019_v8 = vpop.f32.mrf.mxu3 }
 0xab3   : > { %v14317_v50 = vadd.f32 %v5043_v39, %v5015_v14 }
 0xab4   : > { %5274 = vmatpush.bf16.msra.mxu0 %v5249_v0  ;;  %5302 = vmatpush.bf16.msra.mxu1 %v5258_v43  ;;  %v4993_v38 = vpop.f32.mrf.mxu1 }
 0xab6   : > { %v5048_v27 = vpop.f32.mrf.mxu2  ;;  %v14326_v51 = vpop.permute.xlu1 %4884 }
 0xab7   : > { %v14310_v13 = vpop.permute.xlu0 %4864  ;;  %5275 = vmatmul.bf16.vlgmr.msra.gmra.mxu0 %v14147_v18  ;;  %v5062_v18 = vmax.f32 %v14317_v50, 0.0  ;;  %v4994_v54 = vadd.f32 %v4993_v38, %v14326_v51 }
 0xab8   : > { %v4984_v17 = vadd.f32 %v14295_v36, %v14310_v13  ;;  %5303 = vmatpush.bf16.msra.mxu1 %v5257_v32 }
 0xaba   : > { %v5013_v52 = vadd.f32 %v14297_v28, %v4984_v17  ;;  %v5022_v22 = vpop.f32.mrf.mxu3 }
 0xabb   : > { %5304 = vmatmul.bf16.vlgmr.msra.gmra.mxu1 %v14149_v21  ;;  %v5023_v19 = vadd.f32 %v5022_v22, %v4994_v54 }
 0xabc   : > { %v14322_v30 = vadd.f32 %v14299_v41, %v5013_v52  ;;  %v4995_v26 = vpop.f32.mrf.mxu1 }
 0xabd   : > { %v4996_v53 = vadd.f32 %v4995_v26, %v14335_v33 }
 0xabe   : > { %v5061_v36 = vmax.f32 %v14322_v30, 0.0  ;;  %v5051_v31 = vpop.f32.mrf.mxu2  ;;  %8676 = vmatmul.msk.bf16.gmra.mxu3 %vm4235_vm0, %v14198_v48 }
 0xabf   : > { %v14331_v28 = vpop.permute.xlu0 %4879  ;;  %v14341_v44 = vadd.f32 %v5051_v31, %v5023_v19 }
 0xac0   : > { %v4991_v21 = vadd.f32 %v4990_v1, %v14331_v28  ;;  %v10190_v41 = vpack.i.bf16 %v5062_v18, %v5061_v36  ;;  %v14351_v1 = vpop.permute.xlu1 %4894 }
 0xac1   : > { %v5065_v37 = vmax.f32 %v14341_v44, 0.0 }
 0xac2   : > { %v5020_v34 = vadd.f32 %v5019_v8, %v4991_v21  ;;  %10191 = vrot.lane.b32.xlu0 %v10190_v41, %s16056_s21  ;;  %v5024_v63 = vpop.f32.mrf.mxu3 }
 0xac3   : > { %v5025_v39 = vadd.f32 %v5024_v63, %v4996_v53 }
 0xac4   : > { %v5049_v48 = vadd.f32 %v5048_v27, %v5020_v34  ;;  %v4998_v57 = vpop.f32.mrf.mxu1 }
 0xac6   : > { %v5064_v25 = vmax.f32 %v5049_v48, 0.0  ;;  %v5053_v5 = vpop.f32.mrf.mxu2 }
 0xac7   : > { %v5054_v12 = vadd.f32 %v5053_v5, %v5025_v39  ;;  %5280 = vmatmul.bf16.gmra.mxu0 %v14182_v6  ;;  %v4999_v6 = vadd.f32 %v4998_v57, %v14351_v1 }
 0xac8   : > { %v10195_v60 = vpack.i.bf16 %v5064_v25, %v5063_v16 }
 0xac9   : > { %v5066_v56 = vmax.f32 %v5054_v12, 0.0 }
 0xaca   : > { %10196 = vrot.lane.b32.xlu0 %v10195_v60, %s16056_s21  ;;  %v5027_v62 = vpop.f32.mrf.mxu3 }
 0xacb   : > { %v10200_v55 = vpack.i.bf16 %v5066_v56, %v5065_v37  ;;  %5309 = vmatmul.bf16.gmra.mxu1 %v14184_v9  ;;  %v5028_v40 = vadd.f32 %v5027_v62, %v4999_v6 }
 0xacc   : > { %v5000_v59 = vpop.f32.mrf.mxu1 }
 0xacd   : > { %10201 = vrot.lane.b32.xlu1 %v10200_v55, %s16056_s21  ;;  %v5001_v2 = vadd.f32 %v5000_v59, %v14354_v46 }
 0xace   : > { %v5056_v49 = vpop.f32.mrf.mxu2  ;;  %8677 = vmatmul.msk.bf16.gmra.mxu3 %vm4235_vm0, %v14236_v7 }
 0xacf   : > { %v14357_v24 = vadd.f32 %v5056_v49, %v5028_v40 }
 0xad1   : > { %v5067_v7 = vmax.f32 %v14357_v24, 0.0 }
 0xad2   : > { %v5029_v11 = vpop.f32.mrf.mxu3 }
 0xad3   : > { %v5030_v9 = vadd.f32 %v5029_v11, %v5001_v2 }
 0xad6   : > { %v5058_v0 = vpop.f32.mrf.mxu2 }
 0xad7   : > { %v5059_v4 = vadd.f32 %v5058_v0, %v5030_v9  ;;  %5285 = vmatmul.bf16.gmra.mxu0 %v14219_v47 }
 0xad9   : > { %v5068_v3 = vmax.f32 %v5059_v4, 0.0 }
 0xadb   : > { %v10210_v45 = vpack.i.bf16 %v5068_v3, %v5067_v7  ;;  %5314 = vmatmul.bf16.gmra.mxu1 %v14221_v42 }
 0xadd   : > { %10211 = vrot.lane.b32.xlu0 %v10210_v45, %s16056_s21 }
 0xade   : > { %8678 = vmatmul.msk.bf16.gmra.mxu3 %vm4235_vm0, %v14279_v10 }
 0xae7   : > { %5290 = vmatmul.bf16.gmra.mxu0 %v14267_v29 }
 0xaeb   : > { %5319 = vmatmul.bf16.gmra.mxu1 %v14269_v35 }
 0xb31   : > { %v5334_v43 = vpop.f32.mrf.mxu3 }
 0xb34   : > { %v10192_v8 = vpop.permute.xlu0 %10191  ;;  %v5276_v38 = vpop.f32.mrf.mxu0 }
 0xb35   : > { %v10194_v32 = vunpack.i.h.bf16 %v10192_v8  ;;  %v10193_v47 = vunpack.i.l.bf16 %v10192_v8  ;;  %v5277_v35 = vadd.f32 %v5276_v38, %v14310_v13 }
 0xb37   : > { %v14367_v14 = vmax.f32 %v5062_v18, %v10194_v32  ;;  %v14369_v27 = vmax.f32 %v5061_v36, %v10193_v47 }
 0xb38   : > { %v5305_v17 = vpop.f32.mrf.mxu1 }
 0xb39   : > { %v10205_v42 = vpack.i.bf16 %v14367_v14, %v14369_v27  ;;  %v5336_v50 = vpop.f32.mrf.mxu3  ;;  %v5306_v30 = vadd.f32 %v5305_v17, %v5277_v35 }
 0xb3b   : > { %10206 = vrot.lane.b32.xlu2 %v10205_v42, %s10880_s0  ;;  %v14386_v63 = vadd.f32 %v5334_v43, %v5306_v30 }
 0xb3c   : > { %v10197_v10 = vpop.permute.xlu0 %10196  ;;  %v5278_v29 = vpop.f32.mrf.mxu0 }
 0xb3d   : > { %v10199_v52 = vunpack.i.h.bf16 %v10197_v10  ;;  %v10198_v22 = vunpack.i.l.bf16 %v10197_v10  ;;  %v5279_v18 = vadd.f32 %v5278_v29, %v14305_v23  ;;  %v5354_v44 = vmax.f32 %v14386_v63, 0.0 }
 0xb3f   : > { %v14375_v26 = vmax.f32 %v5064_v25, %v10199_v52  ;;  %v14377_v15 = vmax.f32 %v5063_v16, %v10198_v22  ;;  %v10202_v36 = vpop.permute.xlu1 %10201 }
 0xb40   : > { %v10204_v31 = vunpack.i.h.bf16 %v10202_v36  ;;  %v10203_v58 = vunpack.i.l.bf16 %v10202_v36  ;;  %v5307_v21 = vpop.f32.mrf.mxu1 }
 0xb41   : > { %v10215_v41 = vpack.i.bf16 %v14375_v26, %v14377_v15  ;;  %v5308_v54 = vadd.f32 %v5307_v21, %v5279_v18  ;;  %v5339_v61 = vpop.f32.mrf.mxu3 }
 0xb42   : > { %v14382_v34 = vmax.f32 %v5066_v56, %v10204_v31  ;;  %v14384_v13 = vmax.f32 %v5065_v37, %v10203_v58 }
 0xb43   : > { %v14388_v19 = vadd.f32 %v5336_v50, %v5308_v54  ;;  %10216 = vrot.lane.b32.xlu1 %v10215_v41, %s10880_s0 }
 0xb44   : > { %v10220_v23 = vpack.i.bf16 %v14382_v34, %v14384_v13  ;;  %v5281_v53 = vpop.f32.mrf.mxu0 }
 0xb45   : > { %v5355_v48 = vmax.f32 %v14388_v19, 0.0  ;;  %v5282_v57 = vadd.f32 %v5281_v53, %v14313_v20 }
 0xb46   : > { %10221 = vrot.lane.b32.xlu2 %v10220_v23, %s10880_s0 }
 0xb47   : > { %v10230_v16 = vpack.i.bf16 %v5355_v48, %v5354_v44 }
 0xb48   : > { %v5310_v39 = vpop.f32.mrf.mxu1 }
 0xb49   : > { %v5341_v25 = vpop.f32.mrf.mxu3  ;;  %v5311_v12 = vadd.f32 %v5310_v39, %v5282_v57 }
 0xb4b   : > { %10231 = vrot.lane.b32.xlu1 %v10230_v16, %s16056_s21  ;;  %v14403_v49 = vadd.f32 %v5339_v61, %v5311_v12 }
 0xb4c   : > { %v5283_v5 = vpop.f32.mrf.mxu0 }
 0xb4d   : > { %v5284_v60 = vadd.f32 %v5283_v5, %v14331_v28  ;;  %v5356_v9 = vmax.f32 %v14403_v49, 0.0 }
 0xb4f   : > { %v10212_v37 = vpop.permute.xlu0 %10211 }
 0xb50   : > { %v10214_v56 = vunpack.i.h.bf16 %v10212_v37  ;;  %v10213_v62 = vunpack.i.l.bf16 %v10212_v37  ;;  %v5312_v55 = vpop.f32.mrf.mxu1 }
 0xb51   : > { %v5313_v59 = vadd.f32 %v5312_v55, %v5284_v60  ;;  %v5344_v24 = vpop.f32.mrf.mxu3 }
 0xb52   : > { %v14405_v6 = vmax.f32 %v5068_v3, %v10214_v56  ;;  %v14407_v11 = vmax.f32 %v5067_v7, %v10213_v62  ;;  %v5452_v7 = vld [vmem:[%s15947_s12 + $0x8] sm:$0xf] }
 0xb53   : > { %v5342_v40 = vadd.f32 %v5341_v25, %v5313_v59  ;;  %v5458_v3 = vunpack.c.l.b16 %v5452_v7  ;;  %v9163_v25 = vld [vmem:[%s15947_s12] sm:$0xff] }
 0xb54   : > { %v10225_v20 = vpack.i.bf16 %v14405_v6, %v14407_v11  ;;  %v5286_v2 = vpop.f32.mrf.mxu0 }
 0xb55   : > { %v5357_v28 = vmax.f32 %v5342_v40, 0.0  ;;  %v5287_v45 = vadd.f32 %v5286_v2, %v14326_v51  ;;  %v5460_v8 = vpack.c.b16 %v5458_v3, %v5458_v3 }
 0xb56   : > { %10226 = vrot.lane.b32.xlu0 %v10225_v20, %s10880_s0 }
 0xb57   : > { %v10235_v0 = vpack.i.bf16 %v5357_v28, %v5356_v9  ;;  %v5488_v47 = vsel %vm973_vm1, %v5460_v8, 0 }
 0xb58   : > { %v5315_v4 = vpop.f32.mrf.mxu1  ;;  %5496 = vmatpush.bf16.msra.mxu2 %v5488_v47 }
 0xb59   : > { %10236 = vrot.lane.b32.xlu2 %v10235_v0, %s16056_s21  ;;  %v5316_v38 = vadd.f32 %v5315_v4, %v5287_v45  ;;  %v5346_v32 = vpop.f32.mrf.mxu3 }
 0xb5b   : > { %v14420_v50 = vadd.f32 %v5344_v24, %v5316_v38 }
 0xb5c   : > { %v5288_v43 = vpop.f32.mrf.mxu0  ;;  %5497 = vmatpush.bf16.msra.mxu2 %v9163_v25 }
 0xb5d   : > { %v5289_v17 = vadd.f32 %v5288_v43, %v14335_v33  ;;  %v5358_v52 = vmax.f32 %v14420_v50, 0.0 }
 0xb60   : > { %v5317_v42 = vpop.f32.mrf.mxu1 }
 0xb61   : > { %v5318_v10 = vadd.f32 %v5317_v42, %v5289_v17  ;;  %v5349_v22 = vpop.f32.mrf.mxu3 }
 0xb63   : > { %v14422_v29 = vadd.f32 %v5346_v32, %v5318_v10 }
 0xb64   : > { %v5291_v35 = vpop.f32.mrf.mxu0 }
 0xb65   : > { %v5359_v51 = vmax.f32 %v14422_v29, 0.0  ;;  %v5292_v33 = vadd.f32 %v5291_v35, %v14351_v1 }
 0xb67   : > { %v10240_v30 = vpack.i.bf16 %v5359_v51, %v5358_v52 }
 0xb68   : > { %v5320_v18 = vpop.f32.mrf.mxu1 }
 0xb69   : > { %10241 = vrot.lane.b32.xlu0 %v10240_v30, %s16056_s21  ;;  %v5321_v31 = vadd.f32 %v5320_v18, %v5292_v33  ;;  %v5351_v41 = vpop.f32.mrf.mxu3 }
 0xb6b   : > { %v5350_v54 = vadd.f32 %v5349_v22, %v5321_v31 }
 0xb6c   : > { %v5293_v36 = vpop.f32.mrf.mxu0 }
 0xb6d   : > { %v5294_v58 = vadd.f32 %v5293_v36, %v14354_v46  ;;  %v5360_v53 = vmax.f32 %v5350_v54, 0.0 }
 0xb70   : > { %v5322_v21 = vpop.f32.mrf.mxu1 }
 0xb71   : > { %v5323_v61 = vadd.f32 %v5322_v21, %v5294_v58 }
 0xb73   : > { %v5352_v23 = vadd.f32 %v5351_v41, %v5323_v61 }
 0xb75   : > { %v5361_v39 = vmax.f32 %v5352_v23, 0.0 }
 0xb77   : > { %v10250_v16 = vpack.i.bf16 %v5361_v39, %v5360_v53 }
 0xb79   : > { %10251 = vrot.lane.b32.xlu2 %v10250_v16, %s16056_s21 }
 0xb95   : > { %v10207_v1 = vpop.permute.xlu2 %10206 }
 0xb96   : > { %v10209_v57 = vunpack.i.h.bf16 %v10207_v1  ;;  %v10208_v5 = vunpack.i.l.bf16 %v10207_v1 }
 0xb98   : > { %v5142_v46 = vmax.f32 %v14367_v14, %v10209_v57  ;;  %v5141_v12 = vmax.f32 %v14369_v27, %v10208_v5 }
 0xb9a   : > { %v5442_v60 = vpack.c.bf16 %v5142_v46, %v5141_v12 }
 0xb9c   : > { %8683 = vmatmul.msk.bf16.vlgmr.msra.gmra.mxu2 %vm5462_vm4, %v5442_v60 }
 0xba0   : > { %v10222_v37 = vpop.permute.xlu2 %10221 }
 0xba1   : > { %v10223_v43 = vunpack.i.l.bf16 %v10222_v37 }
 0xbb3   : > { %v10237_v56 = vpop.permute.xlu2 %10236 }
 0xbb4   : > { %v10239_v62 = vunpack.i.h.bf16 %v10237_v56  ;;  %v10238_v55 = vunpack.i.l.bf16 %v10237_v56 }
 0xbb5   : > { %v10217_v49 = vpop.permute.xlu1 %10216 }
 0xbb6   : > { %v5397_v59 = vmax.f32 %v5357_v28, %v10239_v62  ;;  %v5396_v40 = vmax.f32 %v5356_v9, %v10238_v55  ;;  %v10219_v20 = vunpack.i.h.bf16 %v10217_v49  ;;  %v10218_v2 = vunpack.i.l.bf16 %v10217_v49 }
 0xbb7   : > { %v10224_v28 = vunpack.i.h.bf16 %v10222_v37 }
 0xbb8   : > { %v10255_v24 = vpack.i.bf16 %v5397_v59, %v5396_v40  ;;  %v5144_v0 = vmax.f32 %v14375_v26, %v10219_v20  ;;  %v5143_v14 = vmax.f32 %v14377_v15, %v10218_v2  ;;  %v5145_v15 = vmax.f32 %v14384_v13, %v10223_v43 }
 0xbb9   : > { %v5146_v26 = vmax.f32 %v14382_v34, %v10224_v28 }
 0xbba   : > { %v5443_v4 = vpack.c.bf16 %v5144_v0, %v5143_v14  ;;  %10256 = vrot.lane.b32.xlu0 %v10255_v24, %s10880_s0 }
 0xbbb   : > { %v5444_v38 = vpack.c.bf16 %v5146_v26, %v5145_v15 }
 0xbbc   : > { %8684 = vmatmul.msk.bf16.gmra.mxu2 %vm5462_vm4, %v5443_v4 }
 0xbbd   : > { %v10232_v27 = vpop.permute.xlu1 %10231 }
 0xbbe   : > { %v10234_v7 = vunpack.i.h.bf16 %v10232_v27  ;;  %v10233_v3 = vunpack.i.l.bf16 %v10232_v27 }
 0xbc0   : > { %v5395_v45 = vmax.f32 %v5355_v48, %v10234_v7  ;;  %v5394_v9 = vmax.f32 %v5354_v44, %v10233_v3 }
 0xbc2   : > { %v10245_v8 = vpack.i.bf16 %v5395_v45, %v5394_v9 }
 0xbc4   : > { %10246 = vrot.lane.b32.xlu1 %v10245_v8, %s10880_s0 }
 0xbc8   : > { %v10227_v32 = vpop.permute.xlu0 %10226 }
 0xbc9   : > { %v10229_v47 = vunpack.i.h.bf16 %v10227_v32  ;;  %v10228_v17 = vunpack.i.l.bf16 %v10227_v32 }
 0xbcb   : > { %v5148_v63 = vmax.f32 %v14405_v6, %v10229_v47  ;;  %v5147_v44 = vmax.f32 %v14407_v11, %v10228_v17 }
 0xbcc   : > { %8685 = vmatmul.msk.bf16.gmra.mxu2 %vm5462_vm4, %v5444_v38 }
 0xbcd   : > { %v5445_v30 = vpack.c.bf16 %v5148_v63, %v5147_v44 }
 0xbd3   : > { %v10252_v19 = vpop.permute.xlu2 %10251 }
 0xbd4   : > { %v10254_v48 = vunpack.i.h.bf16 %v10252_v19  ;;  %v10253_v42 = vunpack.i.l.bf16 %v10252_v19 }
 0xbd6   : > { %v5401_v10 = vmax.f32 %v5361_v39, %v10254_v48  ;;  %v5400_v35 = vmax.f32 %v5360_v53, %v10253_v42 }
 0xbd8   : > { %v10265_v22 = vpack.i.bf16 %v5401_v10, %v5400_v35 }
 0xbda   : > { %10266 = vrot.lane.b32.xlu2 %v10265_v22, %s10880_s0 }
 0xbdb   : > { %v10242_v34 = vpop.permute.xlu0 %10241 }
 0xbdc   : > { %v10244_v13 = vunpack.i.h.bf16 %v10242_v34  ;;  %v10243_v18 = vunpack.i.l.bf16 %v10242_v34  ;;  %8686 = vmatmul.msk.bf16.gmra.mxu2 %vm5462_vm4, %v5445_v30 }
 0xbde   : > { %v5399_v33 = vmax.f32 %v5359_v51, %v10244_v13  ;;  %v5398_v36 = vmax.f32 %v5358_v52, %v10243_v18 }
 0xbe0   : > { %v10260_v6 = vpack.i.bf16 %v5399_v33, %v5398_v36 }
 0xbe2   : > { %10261 = vrot.lane.b32.xlu1 %v10260_v6, %s10880_s0 }
 0xc1f   : > { %v14461_v11 = vpop.f32.mrf.mxu2 }
 0xc27   : > { %v14463_v58 = vpop.f32.mrf.mxu2 }
 0xc28   : > { %v14511_v27 = vpack.i.bf16 %v14463_v58, %v14461_v11 }
 0xc2c   : > { %v10257_v51 = vpop.permute.xlu0 %10256 }
 0xc2d   : > { %v10259_v50 = vunpack.i.h.bf16 %v10257_v51  ;;  %v10258_v52 = vunpack.i.l.bf16 %v10257_v51 }
 0xc2f   : > { %v5437_v53 = vmax.f32 %v5397_v59, %v10259_v50  ;;  %v5436_v39 = vmax.f32 %v5396_v40, %v10258_v52 }
 0xc31   : > { %v5447_v25 = vpack.c.bf16 %v5437_v53, %v5436_v39 }
 0xc34   : > { %v10267_v49 = vpop.permute.xlu2 %10266 }
 0xc35   : > { %v10269_v40 = vunpack.i.h.bf16 %v10267_v49  ;;  %v10268_v20 = vunpack.i.l.bf16 %v10267_v49 }
 0xc36   : > { %v10247_v31 = vpop.permute.xlu1 %10246 }
 0xc37   : > { %v10249_v21 = vunpack.i.h.bf16 %v10247_v31  ;;  %v10248_v41 = vunpack.i.l.bf16 %v10247_v31  ;;  %v5441_v2 = vmax.f32 %v5401_v10, %v10269_v40  ;;  %v5440_v24 = vmax.f32 %v5400_v35, %v10268_v20 }
 0xc39   : > { %v5435_v54 = vmax.f32 %v5395_v45, %v10249_v21  ;;  %v5434_v61 = vmax.f32 %v5394_v9, %v10248_v41  ;;  %v5449_v4 = vpack.c.bf16 %v5441_v2, %v5440_v24 }
 0xc3b   : > { %v5446_v23 = vpack.c.bf16 %v5435_v54, %v5434_v61 }
 0xc3d   : > { %8687 = vmatmul.msk.bf16.gmra.mxu2 %vm5462_vm4, %v5446_v23 }
 0xc3f   : > { %v14466_v29 = vpop.f32.mrf.mxu2 }
 0xc47   : > { %v14468_v16 = vpop.f32.mrf.mxu2 }
 0xc48   : > { %v14486_v59 = vpack.i.bf16 %v14468_v16, %v14466_v29 }
 0xc4d   : > { %8688 = vmatmul.msk.bf16.gmra.mxu2 %vm5462_vm4, %v5447_v25 }
 0xc4f   : > { %v14471_v1 = vpop.f32.mrf.mxu2 }
 0xc54   : > { %v10262_v57 = vpop.permute.xlu1 %10261 }
 0xc55   : > { %v10264_v5 = vunpack.i.h.bf16 %v10262_v57  ;;  %v10263_v46 = vunpack.i.l.bf16 %v10262_v57 }
 0xc57   : > { %v5439_v12 = vmax.f32 %v5399_v33, %v10264_v5  ;;  %v5438_v60 = vmax.f32 %v5398_v36, %v10263_v46  ;;  %v14473_v37 = vpop.f32.mrf.mxu2 }
 0xc58   : > { %v14477_v56 = vpack.i.bf16 %v14473_v37, %v14471_v1 }
 0xc59   : > { %v5448_v62 = vpack.c.bf16 %v5439_v12, %v5438_v60 }
 0xc5a   : > { %10271 = vrot.lane.b32.xlu2 %v14477_v56, %s16056_s21 }
 0xc5d   : > { %8689 = vmatmul.msk.bf16.gmra.mxu2 %vm5462_vm4, %v5448_v62 }
 0xc5f   : > { %v14482_v55 = vpop.f32.mrf.mxu2 }
 0xc62   : > { %10296 = vrot.lane.b32.xlu2 %v14486_v59, %s16019_s29 }
 0xc67   : > { %v14490_v0 = vpop.f32.mrf.mxu2 }
 0xc68   : > { %v14494_v14 = vpack.i.bf16 %v14490_v0, %v14482_v55  ;;  %v5742_v49 = vpack.c.bf16 %v14490_v0, %v14482_v55  ;;  %v5740_v0 = vpack.c.bf16 %v14468_v16, %v14466_v29  ;;  %v9166_v29 = vld [vmem:[%s15948_s13 + $0x10] sm:$0xf0]  ;;  %v9164_v16 = vld [vmem:[%s15948_s13 + $0x4] sm:$0xf] }
 0xc6a   : > { %10316 = vrot.lane.b32.xlu2 %v14494_v14, %s16053_s19  ;;  %10276 = vrot.lane.b32.xlu0 %v14494_v14, %s16056_s21 }
 0xc6b   : > { %10286 = vrot.lane.b32.xlu1 %v14494_v14, %s16019_s29 }
 0xc6d   : > { %8690 = vmatmul.msk.bf16.gmra.mxu2 %vm5462_vm4, %v5449_v4 }
 0xc72   : > { %10321 = vrot.lane.b32.xlu2 %v14486_v59, %s16053_s19  ;;  %10281 = vrot.lane.b32.xlu0 %v14477_v56, %s16019_s29 }
 0xc73   : > { %10291 = vrot.lane.b32.xlu1 %v14486_v59, %s16056_s21 }
 0xc7a   : > { %10341 = vrot.lane.b32.xlu2 %v14486_v59, %s10880_s0  ;;  %10301 = vrot.lane.b32.xlu0 %v14511_v27, %s16056_s21 }
 0xc7b   : > { %10306 = vrot.lane.b32.xlu1 %v14511_v27, %s16019_s29 }
 0xc82   : > { %10356 = vrot.lane.b32.xlu2 %v14477_v56, %s16017_s23  ;;  %10311 = vrot.lane.b32.xlu0 %v14477_v56, %s16053_s19 }
 0xc83   : > { %10331 = vrot.lane.b32.xlu1 %v14494_v14, %s10880_s0 }
 0xc8a   : > { %10386 = vrot.lane.b32.xlu2 %v14494_v14, %s10887_s26  ;;  %10326 = vrot.lane.b32.xlu0 %v14477_v56, %s10880_s0 }
 0xc8b   : > { %10336 = vrot.lane.b32.xlu1 %v14511_v27, %s16053_s19 }
 0xc92   : > { %10346 = vrot.lane.b32.xlu0 %v14511_v27, %s10880_s0 }
 0xc93   : > { %10351 = vrot.lane.b32.xlu1 %v14494_v14, %s16017_s23 }
 0xc9a   : > { %10361 = vrot.lane.b32.xlu0 %v14486_v59, %s16017_s23 }
 0xc9b   : > { %10366 = vrot.lane.b32.xlu1 %v14511_v27, %s16017_s23 }
 0xca2   : > { %10371 = vrot.lane.b32.xlu0 %v14477_v56, %s10887_s26 }
 0xca3   : > { %10376 = vrot.lane.b32.xlu1 %v14486_v59, %s10887_s26 }
 0xcaa   : > { %10381 = vrot.lane.b32.xlu0 %v14511_v27, %s10887_s26 }
 0xcb4   : > { %v10272_v9 = vpop.permute.xlu2 %10271 }
 0xcb5   : > { %v10274_v17 = vunpack.i.h.bf16 %v10272_v9  ;;  %v10273_v19 = vunpack.i.l.bf16 %v10272_v9 }
 0xcb7   : > { %v5745_v10 = vpack.c.bf16 %v10274_v17, %v10273_v19 }
 0xcbc   : > { %v10297_v48 = vpop.permute.xlu2 %10296 }
 0xcbd   : > { %v10299_v33 = vunpack.i.h.bf16 %v10297_v48  ;;  %v10298_v36 = vunpack.i.l.bf16 %v10297_v48 }
 0xcbf   : > { %v5752_v61 = vpack.c.bf16 %v10299_v33, %v10298_v36 }
 0xcc0   : > { %v14545_v7 = vpop.f32.mrf.mxu2 }
 0xcc4   : > { %v10317_v41 = vpop.permute.xlu2 %10316 }
 0xcc5   : > { %v10319_v57 = vunpack.i.h.bf16 %v10317_v41  ;;  %v10318_v5 = vunpack.i.l.bf16 %v10317_v41 }
 0xcc7   : > { %v5750_v40 = vpack.c.bf16 %v10319_v57, %v10318_v5  ;;  %v9171_v57 = vld [vmem:[%s15948_s13 + $0x38] sm:$0xf0]  ;;  %v9169_v5 = vld [vmem:[%s15948_s13 + $0x2c] sm:$0xf] }
 0xcc8   : > { %v14547_v3 = vpop.f32.mrf.mxu2 }
 0xcc9   : > { %v14577_v60 = vpack.i.bf16 %v14547_v3, %v14545_v7 }
 0xccc   : > { %v10322_v62 = vpop.permute.xlu2 %10321 }
 0xcd0   : > { %v14549_v45 = vpop.f32.mrf.mxu2 }
 0xcd4   : > { %v10342_v17 = vpop.permute.xlu2 %10341 }
 0xcd8   : > { %v14551_v28 = vpop.f32.mrf.mxu2 }
 0xcd9   : > { %v14555_v43 = vpack.i.bf16 %v14551_v28, %v14549_v45 }
 0xcdb   : > { %10406 = vrot.lane.b32.xlu0 %v14555_v43, %s16056_s21 }
 0xcdc   : > { %v10277_v8 = vpop.permute.xlu0 %10276 }
 0xcdd   : > { %v10279_v26 = vunpack.i.h.bf16 %v10277_v8  ;;  %v10278_v15 = vunpack.i.l.bf16 %v10277_v8  ;;  %v10287_v38 = vpop.permute.xlu1 %10286 }
 0xcde   : > { %v10289_v32 = vunpack.i.h.bf16 %v10287_v38  ;;  %v10288_v47 = vunpack.i.l.bf16 %v10287_v38  ;;  %v10324_v38 = vunpack.i.h.bf16 %v10322_v62 }
 0xcdf   : > { %v5746_v42 = vpack.c.bf16 %v10279_v26, %v10278_v15  ;;  %v5741_v15 = vpack.c.bf16 %v14473_v37, %v14471_v1 }
 0xce0   : > { %v5754_v63 = vpack.c.bf16 %v10289_v32, %v10288_v47  ;;  %v14559_v44 = vpop.f32.mrf.mxu2  ;;  %v10323_v32 = vunpack.i.l.bf16 %v10322_v62 }
 0xce1   : > { %6143 = vmatpush.bf16.msrb.mxu0 %v5746_v42 }
 0xce2   : > { %6192 = vmatpush.bf16.msrb.mxu1 %v5754_v63  ;;  %v5748_v1 = vpack.c.bf16 %v10324_v38, %v10323_v32  ;;  %v8693_v63 = vld [vmem:[%s15948_s13] sm:$0xf]  ;;  %v9167_v38 = vld [vmem:[%s15948_s13 + $0x18] sm:$0xf0] }
 0xce3   : > { %10421 = vrot.lane.b32.xlu0 %v14486_v59, %s16096_s27  ;;  %v14615_v36 = vor.u32 %v9166_v29, %v8693_v63  ;;  %v8733_v63 = vld [vmem:[%s15948_s13 + $0x50] sm:$0xf] }
 0xce4   : > { %v10282_v35 = vpop.permute.xlu0 %10281 }
 0xce5   : > { %v10284_v22 = vunpack.i.h.bf16 %v10282_v35  ;;  %v10283_v30 = vunpack.i.l.bf16 %v10282_v35  ;;  %v10292_v34 = vpop.permute.xlu1 %10291  ;;  %6144 = vmatpush.bf16.msrb.mxu0 %v5745_v10 }
 0xce6   : > { %v10294_v13 = vunpack.i.h.bf16 %v10292_v34  ;;  %v10293_v18 = vunpack.i.l.bf16 %v10292_v34  ;;  %v5739_v34 = vpack.c.bf16 %v14463_v58, %v14461_v11 }
 0xce7   : > { %v5753_v6 = vpack.c.bf16 %v10284_v22, %v10283_v30  ;;  %v8695_v22 = vld [vmem:[%s15948_s13 + $0x14] sm:$0xf0] }
 0xce8   : > { %v5744_v31 = vpack.c.bf16 %v10294_v13, %v10293_v18  ;;  %v14563_v21 = vpop.f32.mrf.mxu2  ;;  %v10344_v13 = vunpack.i.h.bf16 %v10342_v17  ;;  %v10343_v18 = vunpack.i.l.bf16 %v10342_v17 }
 0xce9   : > { %6193 = vmatpush.bf16.msrb.mxu1 %v5753_v6  ;;  %v14567_v54 = vpack.i.bf16 %v14563_v21, %v14559_v44  ;;  %v14617_v6 = vor.u32 %v9164_v16, %v8695_v22 }
 0xcea   : > { %6145 = vmatpush.bf16.msrb.mxu0 %v5744_v31  ;;  %v5760_v31 = vpack.c.bf16 %v10344_v13, %v10343_v18 }
 0xceb   : > { %10436 = vrot.lane.b32.xlu0 %v14477_v56, %s16097_s20  ;;  %10391 = vrot.lane.b32.xlu1 %v14567_v54, %s16056_s21 }
 0xcec   : > { %v10302_v23 = vpop.permute.xlu0 %10301 }
 0xced   : > { %v10304_v51 = vunpack.i.h.bf16 %v10302_v23  ;;  %v10303_v50 = vunpack.i.l.bf16 %v10302_v23  ;;  %v10307_v52 = vpop.permute.xlu1 %10306  ;;  %6194 = vmatpush.bf16.msrb.mxu1 %v5752_v61 }
 0xcee   : > { %v10309_v53 = vunpack.i.h.bf16 %v10307_v52  ;;  %v10308_v39 = vunpack.i.l.bf16 %v10307_v52 }
 0xcef   : > { %v5743_v25 = vpack.c.bf16 %v10304_v51, %v10303_v50  ;;  %v10357_v50 = vpop.permute.xlu2 %10356 }
 0xcf0   : > { %v5751_v46 = vpack.c.bf16 %v10309_v53, %v10308_v39  ;;  %v14573_v12 = vpop.f32.mrf.mxu2  ;;  %v10358_v52 = vunpack.i.l.bf16 %v10357_v50 }
 0xcf1   : > { %6146 = vmatpush.bf16.msrb.mxu0 %v5743_v25  ;;  %v8713_v25 = vld [vmem:[%s15948_s13 + $0x28] sm:$0xf] }
 0xcf2   : > { %6195 = vmatpush.bf16.msrb.mxu1 %v5751_v46  ;;  %v8715_v46 = vld [vmem:[%s15948_s13 + $0x3c] sm:$0xf0] }
 0xcf3   : > { %10461 = vrot.lane.b32.xlu0 %v14577_v60, %s16019_s29  ;;  %10411 = vrot.lane.b32.xlu1 %v14477_v56, %s16096_s27 }
 0xcf4   : > { %v10312_v20 = vpop.permute.xlu0 %10311 }
 0xcf5   : > { %v10314_v2 = vunpack.i.h.bf16 %v10312_v20  ;;  %v10313_v24 = vunpack.i.l.bf16 %v10312_v20  ;;  %v10332_v4 = vpop.permute.xlu1 %10331  ;;  %6147 = vmatpush.bf16.msrb.mxu0 %v5742_v49 }
 0xcf6   : > { %v10334_v9 = vunpack.i.h.bf16 %v10332_v4  ;;  %v10333_v8 = vunpack.i.l.bf16 %v10332_v4  ;;  %6196 = vmatpush.bf16.msrb.mxu1 %v5750_v40 }
 0xcf7   : > { %v5749_v26 = vpack.c.bf16 %v10314_v2, %v10313_v24  ;;  %v14645_v2 = vor.u32 %v9171_v57, %v8713_v25  ;;  %v14647_v24 = vor.u32 %v9169_v5, %v8715_v46  ;;  %v8773_v57 = vld [vmem:[%s15948_s13 + $0xa0] sm:$0xf]  ;;  %v9186_v5 = vld [vmem:[%s15948_s13 + $0xb0] sm:$0xf0]  ;;  %v9184_v46 = vld [vmem:[%s15948_s13 + $0xa4] sm:$0xf] }
 0xcf8   : > { %v5762_v47 = vpack.c.bf16 %v10334_v9, %v10333_v8  ;;  %v14587_v56 = vpop.f32.mrf.mxu2 }
 0xcf9   : > { %6148 = vmatpush.bf16.msrb.mxu0 %v5741_v15  ;;  %v14591_v55 = vpack.i.bf16 %v14587_v56, %v14573_v12  ;;  %v8701_v15 = vld [vmem:[%s15948_s13 + $0x8] sm:$0xf] }
 0xcfa   : > { %6197 = vmatpush.bf16.msrb.mxu1 %v5749_v26  ;;  %6241 = vmatpush.bf16.msra.mxu2 %v5762_v47  ;;  %v10387_v26 = vpop.permute.xlu2 %10386 }
 0xcfb   : > { %9212 = vmatpush.bf16.msra.mxu3 %v5762_v47  ;;  %10426 = vrot.lane.b32.xlu1 %v14494_v14, %s16097_s20  ;;  %v10389_v47 = vunpack.i.h.bf16 %v10387_v26 }
 0xcfc   : > { %10471 = vrot.lane.b32.xlu0 %v14591_v55, %s16019_s29  ;;  %10396 = vrot.lane.b32.xlu2 %v14591_v55, %s16056_s21  ;;  %v10327_v37 = vpop.permute.xlu0 %10326 }
 0xcfd   : > { %v10329_v19 = vunpack.i.h.bf16 %v10327_v37  ;;  %v10328_v48 = vunpack.i.l.bf16 %v10327_v37  ;;  %v10337_v42 = vpop.permute.xlu1 %10336  ;;  %6149 = vmatpush.bf16.msrb.mxu0 %v5740_v0  ;;  %v10388_v0 = vunpack.i.l.bf16 %v10387_v26  ;;  %v14663_v37 = vor.u32 %v9167_v38, %v8701_v15  ;;  %v8793_v38 = vld [vmem:[%s15948_s13 + $0xc8] sm:$0xf] }
 0xcfe   : > { %v10339_v10 = vunpack.i.h.bf16 %v10337_v42  ;;  %v10338_v35 = vunpack.i.l.bf16 %v10337_v42  ;;  %6198 = vmatpush.bf16.msrb.mxu1 %v5748_v1 }
 0xcff   : > { %v5761_v30 = vpack.c.bf16 %v10329_v19, %v10328_v48  ;;  %v5770_v17 = vpack.c.bf16 %v10389_v47, %v10388_v0  ;;  %v9197_v47 = vld [vmem:[%s15948_s13 + $0x108] sm:$0xf0] }
 0xd00   : > { %v5747_v33 = vpack.c.bf16 %v10339_v10, %v10338_v35  ;;  %v9176_v10 = vld [vmem:[%s15948_s13 + $0x60] sm:$0xf0]  ;;  %v9174_v35 = vld [vmem:[%s15948_s13 + $0x54] sm:$0xf]  ;;  %v9189_v0 = vld [vmem:[%s15948_s13 + $0xcc] sm:$0xf] }
 0xd01   : > { %6150 = vmatpush.bf16.msrb.mxu0 %v5739_v34  ;;  %6242 = vmatpush.bf16.msra.mxu2 %v5761_v30  ;;  %v14684_v34 = vor.u32 %v9176_v10, %v8733_v63 }
 0xd02   : > { %6199 = vmatpush.bf16.msrb.mxu1 %v5747_v33  ;;  %9213 = vmatpush.bf16.msra.mxu3 %v5761_v30 }
 0xd03   : > { %10441 = vrot.lane.b32.xlu1 %v14486_v59, %s16097_s20 }
 0xd04   : > { %10476 = vrot.lane.b32.xlu0 %v14555_v43, %s16053_s19  ;;  %10401 = vrot.lane.b32.xlu2 %v14494_v14, %s16096_s27  ;;  %v10347_v11 = vpop.permute.xlu0 %10346  ;;  %v10359_v14 = vunpack.i.h.bf16 %v10357_v50  ;;  %v8755_v50 = vld [vmem:[%s15948_s13 + $0x8c] sm:$0xf0] }
 0xd05   : > { %v10349_v58 = vunpack.i.h.bf16 %v10347_v11  ;;  %v10348_v41 = vunpack.i.l.bf16 %v10347_v11  ;;  %v10352_v61 = vpop.permute.xlu1 %10351  ;;  %6151 = vmatmul.bf16.vlgmr.msrb.gmra.mxu0 %v14615_v36  ;;  %6200 = vmatmul.bf16.vlgmr.msrb.gmra.mxu1 %v14617_v6  ;;  %v8721_v11 = vld [vmem:[%s15948_s13 + $0x30] sm:$0xf] }
 0xd06   : > { %6243 = vmatpush.bf16.msra.mxu2 %v5760_v31  ;;  %9214 = vmatpush.bf16.msra.mxu3 %v5760_v31  ;;  %v10354_v51 = vunpack.i.h.bf16 %v10352_v61  ;;  %v10353_v59 = vunpack.i.l.bf16 %v10352_v61  ;;  %v5757_v62 = vpack.c.bf16 %v10359_v14, %v10358_v52 }
 0xd07   : > { %v5759_v23 = vpack.c.bf16 %v10349_v58, %v10348_v41  ;;  %v9172_v58 = vld [vmem:[%s15948_s13 + $0x40] sm:$0xf0] }
 0xd08   : > { %v5758_v53 = vpack.c.bf16 %v10354_v51, %v10353_v59  ;;  %v14702_v61 = vor.u32 %v9172_v58, %v8721_v11  ;;  %v9181_v51 = vld [vmem:[%s15948_s13 + $0x88] sm:$0xf0]  ;;  %v9179_v59 = vld [vmem:[%s15948_s13 + $0x7c] sm:$0xf] }
 0xd09   : > { %v14725_v52 = vor.u32 %v9179_v59, %v8755_v50 }
 0xd0a   : > { %6244 = vmatpush.bf16.msra.mxu2 %v5759_v23  ;;  %9215 = vmatpush.bf16.msra.mxu3 %v5759_v23  ;;  %v8753_v23 = vld [vmem:[%s15948_s13 + $0x78] sm:$0xf] }
 0xd0b   : > { %10451 = vrot.lane.b32.xlu1 %v14567_v54, %s16019_s29  ;;  %v14723_v14 = vor.u32 %v9181_v51, %v8753_v23  ;;  %v9196_v23 = vld [vmem:[%s15948_s13 + $0x100] sm:$0xf0]  ;;  %v8815_v51 = vld [vmem:[%s15948_s13 + $0x104] sm:$0xf0] }
 0xd0c   : > { %10486 = vrot.lane.b32.xlu0 %v14567_v54, %s10880_s0  ;;  %10416 = vrot.lane.b32.xlu2 %v14577_v60, %s16056_s21  ;;  %v10362_v39 = vpop.permute.xlu0 %10361 }
 0xd0d   : > { %v10364_v49 = vunpack.i.h.bf16 %v10362_v39  ;;  %v10363_v40 = vunpack.i.l.bf16 %v10362_v39  ;;  %v10367_v20 = vpop.permute.xlu1 %10366  ;;  %v9177_v39 = vld [vmem:[%s15948_s13 + $0x68] sm:$0xf0] }
 0xd0e   : > { %6245 = vmatpush.bf16.msra.mxu2 %v5758_v53  ;;  %9216 = vmatpush.bf16.msra.mxu3 %v5758_v53  ;;  %v10369_v9 = vunpack.i.h.bf16 %v10367_v20  ;;  %v10368_v8 = vunpack.i.l.bf16 %v10367_v20  ;;  %v8741_v53 = vld [vmem:[%s15948_s13 + $0x58] sm:$0xf] }
 0xd0f   : > { %v5756_v4 = vpack.c.bf16 %v10364_v49, %v10363_v40  ;;  %v14741_v25 = vor.u32 %v9177_v39, %v8741_v53  ;;  %v5825_v49 = vld [vmem:[%s15949_s14 + $0x10] sm:$0xff]  ;;  %v14765_v40 = vor.u32 %v9186_v5, %v8773_v57 }
 0xd10   : > { %v5755_v1 = vpack.c.bf16 %v10369_v9, %v10368_v8  ;;  %v9182_v9 = vld [vmem:[%s15948_s13 + $0x90] sm:$0xf0]  ;;  %v5828_v8 = vld [vmem:[%s15949_s14 + $0x28] sm:$0xff] }
 0xd11   : > { %v5829_v5 = vld [vmem:[%s15949_s14 + $0x30] sm:$0xff] }
 0xd12   : > { %6246 = vmatpush.bf16.msra.mxu2 %v5757_v62  ;;  %9217 = vmatpush.bf16.msra.mxu3 %v5757_v62  ;;  %v8775_v62 = vld [vmem:[%s15948_s13 + $0xb4] sm:$0xf0] }
 0xd13   : > { %10491 = vrot.lane.b32.xlu1 %v14555_v43, %s10880_s0  ;;  %v14767_v20 = vor.u32 %v9184_v46, %v8775_v62 }
 0xd14   : > { %10496 = vrot.lane.b32.xlu0 %v14577_v60, %s10880_s0  ;;  %10431 = vrot.lane.b32.xlu2 %v14511_v27, %s16096_s27  ;;  %v10372_v32 = vpop.permute.xlu0 %10371 }
 0xd15   : > { %6156 = vmatmul.bf16.gmra.mxu0 %v14645_v2  ;;  %6205 = vmatmul.bf16.gmra.mxu1 %v14647_v24  ;;  %v10374_v19 = vunpack.i.h.bf16 %v10372_v32  ;;  %v10373_v48 = vunpack.i.l.bf16 %v10372_v32  ;;  %v10377_v42 = vpop.permute.xlu1 %10376  ;;  %v8821_v32 = vld [vmem:[%s15948_s13 + $0xf8] sm:$0xf] }
 0xd16   : > { %6247 = vmatpush.bf16.msra.mxu2 %v5756_v4  ;;  %9218 = vmatpush.bf16.msra.mxu3 %v5756_v4  ;;  %v10379_v16 = vunpack.i.h.bf16 %v10377_v42  ;;  %v10378_v22 = vunpack.i.l.bf16 %v10377_v42  ;;  %v8761_v4 = vld [vmem:[%s15948_s13 + $0x80] sm:$0xf] }
 0xd17   : > { %v5769_v29 = vpack.c.bf16 %v10374_v19, %v10373_v48  ;;  %v14784_v26 = vor.u32 %v9182_v9, %v8761_v4  ;;  %v5823_v19 = vld [vmem:[%s15949_s14] sm:$0xff] }
 0xd18   : > { %v5768_v18 = vpack.c.bf16 %v10379_v16, %v10378_v22 }
 0xd1a   : > { %6248 = vmatpush.bf16.msra.mxu2 %v5755_v1  ;;  %9219 = vmatpush.bf16.msra.mxu3 %v5755_v1  ;;  %v8795_v1 = vld [vmem:[%s15948_s13 + $0xdc] sm:$0xf0] }
 0xd1b   : > { %10501 = vrot.lane.b32.xlu1 %v14591_v55, %s16053_s19  ;;  %v14817_v42 = vor.u32 %v9189_v0, %v8795_v1 }
 0xd1c   : > { %10516 = vrot.lane.b32.xlu0 %v14555_v43, %s10887_s26  ;;  %10446 = vrot.lane.b32.xlu2 %v14511_v27, %s16097_s20  ;;  %v8735_v27 = vld [vmem:[%s15948_s13 + $0x64] sm:$0xf0]  ;;  %v10382_v30 = vpop.permute.xlu0 %10381 }
 0xd1d   : > { %6249 = vmatmul.bf16.vlgmr.msra.gmra.mxu2 %v14663_v37  ;;  %v14686_v13 = vor.u32 %v9174_v35, %v8735_v27  ;;  %v10384_v33 = vunpack.i.h.bf16 %v10382_v30  ;;  %v10383_v31 = vunpack.i.l.bf16 %v10382_v30  ;;  %v8781_v35 = vld [vmem:[%s15948_s13 + $0xa8] sm:$0xf]  ;;  %v9187_v27 = vld [vmem:[%s15948_s13 + $0xb8] sm:$0xf0] }
 0xd1e   : > { %6290 = vmatpush.bf16.msra.mxu2 %v5770_v17  ;;  %v14809_v17 = vor.u32 %v9197_v47, %v8821_v32  ;;  %v14832_v30 = vor.u32 %v9187_v27, %v8781_v35  ;;  %v8801_v47 = vld [vmem:[%s15948_s13 + $0xd0] sm:$0xf]  ;;  %v5831_v35 = vld [vmem:[%s15949_s14 + $0x40] sm:$0xff] }
 0xd1f   : > { %v5767_v41 = vpack.c.bf16 %v10384_v33, %v10383_v31  ;;  %v8813_v31 = vld [vmem:[%s15948_s13 + $0xf0] sm:$0xf] }
 0xd20   : > { %16099 = vst [vmem:[#allocation12_spill] sm:$0xff] %v14809_v17  ;;  %6279 = vmatmul.bf16.vlgmr.msra.gmra.mxu3 %v14809_v17  ;;  %v14854_v62 = vor.u32 %v9196_v23, %v8813_v31  ;;  %v9201_v23 = vld [vmem:[%s15948_s13 + $0x128] sm:$0xf0] }
 0xd22   : > { %6291 = vmatpush.bf16.msra.mxu2 %v5769_v29 }
 0xd23   : > { %10506 = vrot.lane.b32.xlu1 %v14591_v55, %s10880_s0 }
 0xd24   : > { %10531 = vrot.lane.b32.xlu0 %v14555_v43, %s16098_s18  ;;  %10456 = vrot.lane.b32.xlu2 %v14555_v43, %s16019_s29  ;;  %s16107_s29 = smov 124  }
 0xd25   : > { %6161 = vmatmul.bf16.gmra.mxu0 %v14684_v34  ;;  %6210 = vmatmul.bf16.gmra.mxu1 %v14686_v13 }
 0xd26   : > { %6292 = vmatpush.bf16.msra.mxu2 %v5768_v18 }
 0xd2a   : > { %6293 = vmatpush.bf16.msra.mxu2 %v5767_v41 }
 0xd2b   : > { %10511 = vrot.lane.b32.xlu1 %v14567_v54, %s10887_s26 }
 0xd2c   : > { %10536 = vrot.lane.b32.xlu0 %v14577_v60, %s16098_s18  ;;  %10466 = vrot.lane.b32.xlu2 %v14567_v54, %s16053_s19 }
 0xd2d   : > { %6254 = vmatmul.bf16.gmra.mxu2 %v14702_v61 }
 0xd33   : > { %10521 = vrot.lane.b32.xlu1 %v14567_v54, %s16098_s18 }
 0xd34   : > { %10566 = vrot.lane.b32.xlu0 %v14555_v43, %s16096_s27  ;;  %10481 = vrot.lane.b32.xlu2 %v14577_v60, %s16053_s19  ;;  %s7577_s19 = scalar_lea.hbm %s16132_s17, %s11030_s24 }
 0xd35   : > { %6166 = vmatmul.bf16.gmra.mxu0 %v14723_v14  ;;  %6215 = vmatmul.bf16.gmra.mxu1 %v14725_v52  ;;  %s7581_s1 = sshll.u32 %s7577_s19, 4  ;;  %s7582_s1 = int_to_ptr.hbm [resolvable:$true] %s7581_s1 }
 0xd36   : > { %s10811_s0 = sshra.s32 %s7582_s1, 4  ;;  %s10812_s0 = int_to_ptr.hbm [resolvable:$true] %s10811_s0 }
 0xd37   : > { %s10813_s3 = scalar_lea.hbm %s10812_s0, 2  ;;  %p10818_p0 = scmp.lt.s32.totalorder %s10812_s0, %s16132_s17 }
 0xd38   : > { %p10814_p11 = scmp.ne.s32.totalorder %s10812_s0, %s10813_s3  ;;  %p10819_p1 = scmp.lt.s32.totalorder %s10817_s25, %s10813_s3 }
 0xd3a   : > { %p10815_p12 = pnand %p10814_p11, %p11020_p5  ;;  %p10820_p2 = por %p10819_p1, %p10818_p0 }
 0xd3b   : > { %10551 = vrot.lane.b32.xlu1 %v14591_v55, %s16096_s27 }
 0xd3c   : > { %10586 = vrot.lane.b32.xlu0 %v14577_v60, %s16097_s20  ;;  %10526 = vrot.lane.b32.xlu2 %v14577_v60, %s10887_s26  ;;  %p10816_p13 = pneg %p10815_p12 }
 0xd3d   : > { %6259 = vmatmul.bf16.gmra.mxu2 %v14741_v25 }
 0xd3e   : > { %p10821_p3 = pnand %p10820_p2, %p10816_p13 }
 0xd43   : > { %10556 = vrot.lane.b32.xlu1 %v14567_v54, %s16096_s27 }
 0xd44   : > { %5851 = vperm.xlu0 %9677, %v5825_v49   ;;  %10541 = vrot.lane.b32.xlu2 %v14591_v55, %s10887_s26  ;;  %s569_s26 = sand.u32 1, %s10851_s28  }
 0xd45   : > { %6171 = vmatmul.bf16.gmra.mxu0 %v14765_v40  ;;  %6220 = vmatmul.bf16.gmra.mxu1 %v14767_v20  ;;  %s7645_s23 = sshll.u32 %s569_s26, 1 }
 0xd4b   : > { %10571 = vrot.lane.b32.xlu1 %v14555_v43, %s16097_s20  ;;  %v9191_v43 = vld [vmem:[%s15948_s13 + $0xd8] sm:$0xf0] }
 0xd4c   : > { %5866 = vperm.xlu0 %9677, %v5828_v8   ;;  %10546 = vrot.lane.b32.xlu2 %v14591_v55, %s16098_s18  ;;  %v14815_v48 = vor.u32 %v9191_v43, %v8793_v38  ;;  %v9192_v43 = vld [vmem:[%s15948_s13 + $0xe0] sm:$0xf0]  ;;  %s16134_s18 = sld [smem:[#allocation26_spill]] }
 0xd4d   : > { %6264 = vmatmul.bf16.gmra.mxu2 %v14784_v26  ;;  %v10407_v15 = vpop.permute.xlu0 %10406 }
 0xd4e   : > { %v10409_v53 = vunpack.i.h.bf16 %v10407_v15  ;;  %v10408_v39 = vunpack.i.l.bf16 %v10407_v15 }
 0xd50   : > { %v6769_v4 = vpack.c.bf16 %v10409_v53, %v10408_v39 }
 0xd53   : > { %5841 = vperm.xlu1 %9848, %v5823_v19  }
 0xd54   : > { %10561 = vrot.lane.b32.xlu2 %v14567_v54, %s16097_s20  ;;  %v5826_v54 = vld [vmem:[%s15949_s14 + $0x18] sm:$0xff] }
 0xd55   : > { %6176 = vmatmul.bf16.gmra.mxu0 %v14815_v48  ;;  %6225 = vmatmul.bf16.gmra.mxu1 %v14817_v42  ;;  %v10422_v63 = vpop.permute.xlu0 %10421 }
 0xd56   : > { %v10397_v10 = vpop.permute.xlu2 %10396  ;;  %v10424_v1 = vunpack.i.h.bf16 %v10422_v63  ;;  %v10423_v19 = vunpack.i.l.bf16 %v10422_v63 }
 0xd57   : > { %v10399_v29 = vunpack.i.h.bf16 %v10397_v10  ;;  %v10398_v16 = vunpack.i.l.bf16 %v10397_v10 }
 0xd59   : > { %v6771_v22 = vpack.c.bf16 %v10399_v29, %v10398_v16  ;;  %v5824_v29 = vld [vmem:[%s15949_s14 + $0x8] sm:$0xff]  ;;  %v14876_v16 = vor.u32 %v9192_v43, %v8801_v47 }
 0xd5b   : > { %6800 = vmatpush.bf16.msra.mxu1 %v6771_v22  ;;  %5856 = vperm.xlu1 %9848, %v5826_v54   ;;  %v5764_v54 = vpack.c.bf16 %v10424_v1, %v10423_v19  ;;  %v6767_v22 = vpack.c.bf16 %v14587_v56, %v14573_v12  ;;  %v9199_v12 = vld [vmem:[%s15948_s13 + $0x11c] sm:$0xf]  ;;  %v8835_v56 = vld [vmem:[%s15948_s13 + $0x12c] sm:$0xf0] }
 0xd5c   : > { %10576 = vrot.lane.b32.xlu2 %v14591_v55, %s16097_s20  ;;  %v9194_v55 = vld [vmem:[%s15948_s13 + $0xf4] sm:$0xf]  ;;  %v14911_v47 = vor.u32 %v9199_v12, %v8835_v56 }
 0xd5d   : > { %6269 = vmatmul.bf16.gmra.mxu2 %v14832_v30  ;;  %v14837_v18 = vpop.permute.xlu0 %10436  ;;  %v10392_v33 = vpop.permute.xlu1 %10391  ;;  %v14856_v49 = vor.u32 %v9194_v55, %v8815_v51 }
 0xd5e   : > { %v10394_v11 = vunpack.i.h.bf16 %v10392_v33  ;;  %v10393_v58 = vunpack.i.l.bf16 %v10392_v33  ;;  %v10402_v41 = vpop.permute.xlu2 %10401  ;;  %v10439_v53 = vunpack.i.h.bf16 %v14837_v18  ;;  %v10438_v39 = vunpack.i.l.bf16 %v14837_v18  ;;  %v5827_v18 = vld [vmem:[%s15949_s14 + $0x20] sm:$0xff] }
 0xd5f   : > { %v10404_v59 = vunpack.i.h.bf16 %v10402_v41  ;;  %v10403_v50 = vunpack.i.l.bf16 %v10402_v41  ;;  %v8833_v41 = vld [vmem:[%s15948_s13 + $0x118] sm:$0xf] }
 0xd60   : > { %v6770_v57 = vpack.c.bf16 %v10394_v11, %v10393_v58 }
 0xd61   : > { %v5766_v46 = vpack.c.bf16 %v10404_v59, %v10403_v50 }
 0xd62   : > { %6801 = vmatpush.bf16.msra.mxu1 %v6770_v57 }
 0xd63   : > { %6294 = vmatpush.bf16.msra.mxu2 %v5766_v46  ;;  %5871 = vperm.xlu1 %9848, %v5829_v5   ;;  %v8841_v5 = vld [vmem:[%s15948_s13 + $0x120] sm:$0xf]  ;;  %v9202_v46 = vld [vmem:[%s15948_s13 + $0x130] sm:$0xf0] }
 0xd64   : > { %10581 = vrot.lane.b32.xlu2 %v14577_v60, %s16096_s27  ;;  %v14913_v43 = vor.u32 %v9202_v46, %v8841_v5  ;;  %s571_s27 = scalar_lea.vmem [#allocation2], %s7645_s23 }
 0xd65   : > { %6181 = vmatmul.bf16.gmra.mxu0 %v14854_v62  ;;  %6230 = vmatmul.bf16.gmra.mxu1 %v14856_v49  ;;  %v14862_v9 = vpop.permute.xlu0 %10461  ;;  %v10412_v8 = vpop.permute.xlu1 %10411  ;;  %s7579_s30 = sshll.u32 %s571_s27, 4  ;;  %s7580_s30 = int_to_ptr.vmem [resolvable:$true] %s7579_s30 }
 0xd66   : > { %v10414_v15 = vunpack.i.h.bf16 %v10412_v8  ;;  %v10413_v38 = vunpack.i.l.bf16 %v10412_v8  ;;  %v10417_v32 = vpop.permute.xlu2 %10416  ;;  %6802 = vmatpush.bf16.msra.mxu1 %v6769_v4  ;;  %16100 = vst [vmem:[#allocation13_spill] sm:$0xff] %v14913_v43  ;;  %6284 = vmatmul.bf16.gmra.mxu3 %v14913_v43 }
 0xd67   : > { %v10419_v60 = vunpack.i.h.bf16 %v10417_v32  ;;  %v10418_v0 = vunpack.i.l.bf16 %v10417_v32  ;;  %v14906_v32 = vor.u32 %v9201_v23, %v8833_v41 }
 0xd68   : > { %v5765_v10 = vpack.c.bf16 %v10414_v15, %v10413_v38  ;;  %v6766_v15 = vpack.c.bf16 %v14563_v21, %v14559_v44  ;;  %v5833_v38 = vld [vmem:[%s15949_s14 + $0x50] sm:$0xff]  ;;  %v6765_v21 = vpack.c.bf16 %v14551_v28, %v14549_v45 }
 0xd69   : > { %v6768_v27 = vpack.c.bf16 %v10419_v60, %v10418_v0  ;;  %v5773_v60 = vpack.c.bf16 %v10439_v53, %v10438_v39  ;;  %v5832_v53 = vld [vmem:[%s15949_s14 + $0x48] sm:$0xff]  ;;  %v10464_v39 = vunpack.i.h.bf16 %v14862_v9 }
 0xd6a   : > { %6295 = vmatpush.bf16.msra.mxu2 %v5765_v10 }
 0xd6b   : > { %6803 = vmatpush.bf16.msra.mxu1 %v6768_v27  ;;  %5881 = vperm.xlu1 %9848, %v5831_v35   ;;  %v9165_v35 = vld [vmem:[%s15948_s13 + $0xc] sm:$0xf]  ;;  %v8703_v27 = vld [vmem:[%s15948_s13 + $0x1c] sm:$0xf0] }
 0xd6c   : > { %5846 = vperm.xlu2 %9849, %v5824_v29  }
 0xd6d   : > { %6274 = vmatmul.bf16.gmra.mxu2 %v14876_v16  ;;  %v10427_v63 = vpop.permute.xlu1 %10426 }
 0xd6e   : > { %v10429_v33 = vunpack.i.h.bf16 %v10427_v63  ;;  %v10428_v31 = vunpack.i.l.bf16 %v10427_v63  ;;  %v10472_v11 = vpop.permute.xlu0 %10471  ;;  %v10432_v58 = vpop.permute.xlu2 %10431  ;;  %6296 = vmatpush.bf16.msra.mxu2 %v5764_v54  ;;  %v6764_v54 = vpack.c.bf16 %v14547_v3, %v14545_v7  ;;  %v14930_v63 = vor.u32 %v9165_v35, %v8703_v27  ;;  %v8709_v7 = vld [vmem:[%s15948_s13 + $0x10] sm:$0xf]  ;;  %v9168_v3 = vld [vmem:[%s15948_s13 + $0x20] sm:$0xf0]  ;;  %v8729_v27 = vld [vmem:[%s15948_s13 + $0x38] sm:$0xf] }
 0xd6f   : > { %v10474_v55 = vunpack.i.h.bf16 %v10472_v11  ;;  %v10473_v51 = vunpack.i.l.bf16 %v10472_v11  ;;  %v10434_v59 = vunpack.i.h.bf16 %v10432_v58  ;;  %v10433_v50 = vunpack.i.l.bf16 %v10432_v58  ;;  %6804 = vmatpush.bf16.msra.mxu1 %v6767_v22  ;;  %v5830_v22 = vld [vmem:[%s15949_s14 + $0x38] sm:$0xff] }
 0xd70   : > { %v5774_v57 = vpack.c.bf16 %v10429_v33, %v10428_v31 }
 0xd71   : > { %v6779_v4 = vpack.c.bf16 %v10474_v55, %v10473_v51  ;;  %v5763_v8 = vpack.c.bf16 %v10434_v59, %v10433_v50  ;;  %v14944_v50 = vor.u32 %v9168_v3, %v8709_v7 }
 0xd72   : > { %6343 = vmatpush.bf16.msra.mxu0 %v5774_v57  ;;  %v10463_v57 = vunpack.i.l.bf16 %v14862_v9  ;;  %v8723_v9 = vld [vmem:[%s15948_s13 + $0x44] sm:$0xf0] }
 0xd73   : > { %6297 = vmatpush.bf16.msra.mxu2 %v5763_v8  ;;  %6805 = vmatpush.bf16.msra.mxu1 %v6766_v15  ;;  %v9170_v15 = vld [vmem:[%s15948_s13 + $0x34] sm:$0xf] }
 0xd74   : > { %6849 = vmatpush.bf16.msrb.mxu3 %v6779_v4  ;;  %5891 = vperm.xlu1 %9848, %v5833_v38   ;;  %v6776_v38 = vpack.c.bf16 %v10464_v39, %v10463_v57  ;;  %v9175_v39 = vld [vmem:[%s15948_s13 + $0x5c] sm:$0xf] }
 0xd75   : > { %5861 = vperm.xlu2 %9849, %v5827_v18   ;;  %6186 = vmatmul.bf16.gmra.mxu0 %v14906_v32  ;;  %v10442_v44 = vpop.permute.xlu1 %10441  ;;  %v14968_v18 = vor.u32 %v9170_v15, %v8723_v9 }
 0xd76   : > { %6235 = vmatmul.bf16.gmra.mxu1 %v14911_v47  ;;  %v10444_v0 = vunpack.i.h.bf16 %v10442_v44  ;;  %v10443_v1 = vunpack.i.l.bf16 %v10442_v44  ;;  %v14919_v19 = vpop.permute.xlu0 %10476  ;;  %v10447_v10 = vpop.permute.xlu2 %10446  ;;  %6344 = vmatpush.bf16.msra.mxu0 %v5773_v60 }
 0xd77   : > { %6806 = vmatpush.bf16.msra.mxu1 %v6765_v21  ;;  %v10449_v28 = vunpack.i.h.bf16 %v10447_v10  ;;  %v10448_v29 = vunpack.i.l.bf16 %v10447_v10 }
 0xd78   : > { %v5772_v45 = vpack.c.bf16 %v10444_v0, %v10443_v1 }
 0xd79   : > { %v5771_v33 = vpack.c.bf16 %v10449_v28, %v10448_v29 }
 0xd7a   : > { %6345 = vmatpush.bf16.msra.mxu0 %v5772_v45  ;;  %v9173_v45 = vld [vmem:[%s15948_s13 + $0x48] sm:$0xf0] }
 0xd7b   : > { %6807 = vmatpush.bf16.msra.mxu1 %v6764_v54 }
 0xd7d   : > { %5876 = vperm.xlu2 %9849, %v5830_v22   ;;  %6298 = vmatmul.bf16.vlgmr.msra.gmra.mxu2 %v14930_v63  ;;  %v10452_v31 = vpop.permute.xlu1 %10451  ;;  %v14986_v22 = vor.u32 %v9173_v45, %v8729_v27 }
 0xd7e   : > { %v10454_v11 = vunpack.i.h.bf16 %v10452_v31  ;;  %v10453_v58 = vunpack.i.l.bf16 %v10452_v31  ;;  %v14936_v41 = vpop.permute.xlu0 %10486  ;;  %v10457_v23 = vpop.permute.xlu2 %10456  ;;  %6346 = vmatpush.bf16.msra.mxu0 %v5771_v33 }
 0xd7f   : > { %v10459_v51 = vunpack.i.h.bf16 %v10457_v23  ;;  %v10458_v59 = vunpack.i.l.bf16 %v10457_v23  ;;  %v10478_v23 = vunpack.i.l.bf16 %v14919_v19 }
 0xd80   : > { %v6778_v55 = vpack.c.bf16 %v10454_v11, %v10453_v58  ;;  %v5835_v11 = vld [vmem:[%s15949_s14 + $0x60] sm:$0xff]  ;;  %v10479_v58 = vunpack.i.h.bf16 %v14919_v19  ;;  %v8743_v19 = vld [vmem:[%s15948_s13 + $0x6c] sm:$0xf0] }
 0xd81   : > { %v6777_v5 = vpack.c.bf16 %v10459_v51, %v10458_v59 }
 0xd82   : > { %v14946_v12 = vpop.f32.mrf.mxu0  ;;  %v14948_v56 = vpop.f32.mrf.mxu1  ;;  %6850 = vmatpush.bf16.msrb.mxu3 %v6778_v55  ;;  %v6773_v57 = vpack.c.bf16 %v10479_v58, %v10478_v23 }
 0xd85   : > { %5886 = vperm.xlu2 %9849, %v5832_v53   ;;  %8851 = vmatmul.msk.bf16.vlgmr.msra.gmra.mxu0 %vm3214_vm10, %v14944_v50  ;;  %v14957_v46 = vpop.permute.xlu1 %10491 }
 0xd86   : > { %6808 = vmatmul.bf16.vlgmr.msra.gmra.mxu1 %v14615_v36  ;;  %v14960_v4 = vpop.permute.xlu0 %10496  ;;  %v10467_v8 = vpop.permute.xlu2 %10466  ;;  %6851 = vmatpush.bf16.msrb.mxu3 %v6777_v5  ;;  %v5834_v36 = vld [vmem:[%s15949_s14 + $0x58] sm:$0xff]  ;;  %v10489_v5 = vunpack.i.h.bf16 %v14936_v41  ;;  %v10493_v27 = vunpack.i.l.bf16 %v14957_v46 }
 0xd87   : > { %v10469_v28 = vunpack.i.h.bf16 %v10467_v8  ;;  %v10468_v29 = vunpack.i.l.bf16 %v10467_v8  ;;  %v10499_v23 = vunpack.i.h.bf16 %v14960_v4 }
 0xd89   : > { %v6774_v7 = vpack.c.bf16 %v10469_v28, %v10468_v29  ;;  %v8749_v29 = vld [vmem:[%s15948_s13 + $0x60] sm:$0xf] }
 0xd8a   : > { %v14970_v60 = vpop.f32.mrf.mxu0  ;;  %v14972_v44 = vpop.f32.mrf.mxu1  ;;  %6852 = vmatpush.bf16.msrb.mxu3 %v6776_v38  ;;  %v15012_v38 = vor.u32 %v9175_v39, %v8743_v19 }
 0xd8d   : > { %5896 = vperm.xlu2 %9849, %v5834_v36   ;;  %6303 = vmatmul.bf16.gmra.mxu2 %v14968_v18  ;;  %v10502_v21 = vpop.permute.xlu1 %10501 }
 0xd8e   : > { %v10504_v0 = vunpack.i.h.bf16 %v10502_v21  ;;  %v10503_v1 = vunpack.i.l.bf16 %v10502_v21  ;;  %v14978_v10 = vpop.permute.xlu0 %10516  ;;  %v10482_v35 = vpop.permute.xlu2 %10481 }
 0xd8f   : > { %v10484_v8 = vunpack.i.h.bf16 %v10482_v35  ;;  %v10483_v15 = vunpack.i.l.bf16 %v10482_v35 }
 0xd90   : > { %v6775_v54 = vpack.c.bf16 %v10504_v0, %v10503_v1  ;;  %v10494_v1 = vunpack.i.h.bf16 %v14957_v46 }
 0xd91   : > { %v6772_v45 = vpack.c.bf16 %v10484_v8, %v10483_v15  ;;  %v10519_v8 = vunpack.i.h.bf16 %v14978_v10 }
 0xd92   : > { %v14988_v33 = vpop.f32.mrf.mxu0  ;;  %v14990_v31 = vpop.f32.mrf.mxu1  ;;  %6853 = vmatpush.bf16.msrb.mxu3 %v6775_v54  ;;  %v9178_v54 = vld [vmem:[%s15948_s13 + $0x70] sm:$0xf0]  ;;  %v6785_v46 = vpack.c.bf16 %v10494_v1, %v10493_v27 }
 0xd93   : > { %v15034_v19 = vor.u32 %v9178_v54, %v8749_v29 }
 0xd95   : > { %5901 = vperm.xlu2 %9849, %v5835_v11   ;;  %8852 = vmatmul.msk.bf16.gmra.mxu0 %vm3214_vm10, %v14986_v22  ;;  %v10507_v3 = vpop.permute.xlu1 %10506 }
 0xd96   : > { %6813 = vmatmul.bf16.gmra.mxu1 %v14645_v2  ;;  %v10509_v55 = vunpack.i.h.bf16 %v10507_v3  ;;  %v10508_v51 = vunpack.i.l.bf16 %v10507_v3  ;;  %v15000_v59 = vpop.permute.xlu0 %10531  ;;  %v15002_v53 = vpop.permute.xlu2 %10526  ;;  %6854 = vmatpush.bf16.msrb.mxu3 %v6774_v7  ;;  %v10488_v2 = vunpack.i.l.bf16 %v14936_v41  ;;  %v10498_v7 = vunpack.i.l.bf16 %v14960_v4 }
 0xd97   : > { %v10518_v4 = vunpack.i.l.bf16 %v14978_v10 }
 0xd98   : > { %v6787_v9 = vpack.c.bf16 %v10509_v55, %v10508_v51  ;;  %v6786_v0 = vpack.c.bf16 %v10489_v5, %v10488_v2  ;;  %v6784_v2 = vpack.c.bf16 %v10499_v23, %v10498_v7 }
 0xd9a   : > { %v15014_v36 = vpop.f32.mrf.mxu0  ;;  %v15016_v21 = vpop.f32.mrf.mxu1  ;;  %6855 = vmatpush.bf16.msrb.mxu3 %v6773_v57  ;;  %6898 = vmatpush.bf16.msra.mxu2 %v6787_v9 }
 0xd9d   : > { %6308 = vmatmul.bf16.gmra.mxu2 %v15012_v38  ;;  %v10512_v41 = vpop.permute.xlu1 %10511 }
 0xd9e   : > { %v15021_v28 = vpop.permute.xlu0 %10536  ;;  %v10542_v35 = vpop.permute.xlu2 %10541  ;;  %6856 = vmatpush.bf16.msrb.mxu3 %v6772_v45  ;;  %6899 = vmatpush.bf16.msra.mxu2 %v6786_v0  ;;  %v10514_v55 = vunpack.i.h.bf16 %v10512_v41  ;;  %v10513_v51 = vunpack.i.l.bf16 %v10512_v41  ;;  %v8763_v0 = vld [vmem:[%s15948_s13 + $0x94] sm:$0xf0]  ;;  %v6793_v41 = vpack.c.bf16 %v10519_v8, %v10518_v4 }
 0xd9f   : > { %v10544_v11 = vunpack.i.h.bf16 %v10542_v35  ;;  %v10543_v58 = vunpack.i.l.bf16 %v10542_v35  ;;  %v10529_v35 = vunpack.i.h.bf16 %v15002_v53 }
 0xda0   : > { %v15031_v3 = vpop.f32.mrf.mxu2  ;;  %v6794_v15 = vpack.c.bf16 %v10514_v55, %v10513_v51  ;;  %v10534_v55 = vunpack.i.h.bf16 %v15000_v59  ;;  %v10533_v51 = vunpack.i.l.bf16 %v15000_v59 }
 0xda1   : > { %v6795_v39 = vpack.c.bf16 %v10544_v11, %v10543_v58  ;;  %6857 = vmatmul.bf16.vlgmr.msrb.gmra.mxu3 %v14617_v6  ;;  %v9180_v6 = vld [vmem:[%s15948_s13 + $0x84] sm:$0xf]  ;;  %v10528_v11 = vunpack.i.l.bf16 %v15002_v53 }
 0xda2   : > { %v15036_v57 = vpop.f32.mrf.mxu0  ;;  %v15038_v5 = vpop.f32.mrf.mxu1  ;;  %6900 = vmatpush.bf16.msra.mxu2 %v6785_v46  ;;  %v15056_v54 = vor.u32 %v9180_v6, %v8763_v0  ;;  %v8769_v6 = vld [vmem:[%s15948_s13 + $0x88] sm:$0xf]  ;;  %v9183_v0 = vld [vmem:[%s15948_s13 + $0x98] sm:$0xf0] }
 0xda3   : > { %6947 = vmatpush.bf16.msrb.mxu0 %v6795_v39  ;;  %v6792_v39 = vpack.c.bf16 %v10529_v35, %v10528_v11  ;;  %v15077_v35 = vor.u32 %v9183_v0, %v8769_v6 }
 0xda5   : > { %8853 = vmatmul.msk.bf16.gmra.mxu0 %vm3214_vm10, %v15034_v19  ;;  %v10522_v9 = vpop.permute.xlu1 %10521 }
 0xda6   : > { %6818 = vmatmul.bf16.gmra.mxu1 %v14684_v34  ;;  %v15051_v1 = vpop.permute.xlu0 %10566  ;;  %v10547_v27 = vpop.permute.xlu2 %10546  ;;  %6901 = vmatpush.bf16.msra.mxu2 %v6784_v2  ;;  %v10524_v58 = vunpack.i.h.bf16 %v10522_v9  ;;  %v10523_v46 = vunpack.i.l.bf16 %v10522_v9 }
 0xda7   : > { %v10549_v10 = vunpack.i.h.bf16 %v10547_v27  ;;  %v10548_v45 = vunpack.i.l.bf16 %v10547_v27  ;;  %6948 = vmatpush.bf16.msrb.mxu0 %v6794_v15  ;;  %v10569_v6 = vunpack.i.h.bf16 %v15051_v1  ;;  %v10568_v0 = vunpack.i.l.bf16 %v15051_v1 }
 0xda8   : > { %v15054_v29 = vpop.f32.mrf.mxu2  ;;  %v6782_v2 = vpack.c.bf16 %v10524_v58, %v10523_v46 }
 0xda9   : > { %v6783_v23 = vpack.c.bf16 %v10549_v10, %v10548_v45  ;;  %v6781_v10 = vpack.c.bf16 %v10534_v55, %v10533_v51  ;;  %v10539_v45 = vunpack.i.h.bf16 %v15021_v28  ;;  %v9185_v55 = vld [vmem:[%s15948_s13 + $0xac] sm:$0xf] }
 0xdaa   : > { %v15059_v34 = vpop.f32.mrf.mxu0  ;;  %v15061_v7 = vpop.f32.mrf.mxu1 }
 0xdab   : > { %6902 = vmatpush.bf16.msra.mxu2 %v6783_v23  ;;  %6949 = vmatpush.bf16.msrb.mxu0 %v6793_v41  ;;  %v10538_v41 = vunpack.i.l.bf16 %v15021_v28 }
 0xdad   : > { %6313 = vmatmul.bf16.gmra.mxu2 %v15056_v54  ;;  %v10552_v8 = vpop.permute.xlu1 %10551  ;;  %v6780_v46 = vpack.c.bf16 %v10539_v45, %v10538_v41 }
 0xdae   : > { %v10554_v4 = vunpack.i.h.bf16 %v10552_v8  ;;  %v10553_v53 = vunpack.i.l.bf16 %v10552_v8  ;;  %v15066_v15 = vpop.permute.xlu0 %10586  ;;  %v10562_v9 = vpop.permute.xlu2 %10561 }
 0xdaf   : > { %6903 = vmatpush.bf16.msra.mxu2 %v6782_v2  ;;  %6950 = vmatpush.bf16.msrb.mxu0 %v6792_v39  ;;  %v10563_v41 = vunpack.i.l.bf16 %v10562_v9 }
 0xdb0   : > { %v6791_v59 = vpack.c.bf16 %v10554_v4, %v10553_v53  ;;  %v6255_v27 = vpop.f32.mrf.mxu2 }
 0xdb1   : > { %6862 = vmatmul.bf16.gmra.mxu3 %v14647_v24  ;;  %v8783_v24 = vld [vmem:[%s15948_s13 + $0xbc] sm:$0xf0] }
 0xdb2   : > { %v15079_v11 = vpop.f32.mrf.mxu0  ;;  %v15081_v58 = vpop.f32.mrf.mxu1  ;;  %v15100_v45 = vor.u32 %v9185_v55, %v8783_v24 }
 0xdb3   : > { %6904 = vmatpush.bf16.msra.mxu2 %v6781_v10  ;;  %6951 = vmatpush.bf16.msrb.mxu0 %v6791_v59 }
 0xdb5   : > { %8854 = vmatmul.msk.bf16.gmra.mxu0 %vm3214_vm10, %v15077_v35  ;;  %v10557_v23 = vpop.permute.xlu1 %10556 }
 0xdb6   : > { %6823 = vmatmul.bf16.gmra.mxu1 %v14723_v14  ;;  %v10559_v28 = vunpack.i.h.bf16 %v10557_v23  ;;  %v10558_v51 = vunpack.i.l.bf16 %v10557_v23  ;;  %v15092_v39 = vpop.permute.xlu0 %5851  ;;  %v10577_v2 = vpop.permute.xlu2 %10576  ;;  %v10564_v14 = vunpack.i.h.bf16 %v10562_v9  ;;  %v9188_v9 = vld [vmem:[%s15948_s13 + $0xc0] sm:$0xf0] }
 0xdb7   : > { %v6158_v8 = vadd.f32 %v14988_v33, %v15092_v39  ;;  %v10579_v4 = vunpack.i.h.bf16 %v10577_v2  ;;  %v10578_v53 = vunpack.i.l.bf16 %v10577_v2  ;;  %6905 = vmatpush.bf16.msra.mxu2 %v6780_v46  ;;  %v6789_v2 = vpack.c.bf16 %v10569_v6, %v10568_v0 }
 0xdb8   : > { %v6790_v59 = vpack.c.bf16 %v10559_v28, %v10558_v51  ;;  %v15098_v10 = vpop.f32.mrf.mxu2  ;;  %v6798_v1 = vpack.c.bf16 %v10564_v14, %v10563_v41  ;;  %v10589_v6 = vunpack.i.h.bf16 %v15066_v15  ;;  %v10588_v0 = vunpack.i.l.bf16 %v15066_v15 }
 0xdb9   : > { %v6207_v23 = vadd.f32 %v14990_v31, %v6158_v8  ;;  %v6799_v43 = vpack.c.bf16 %v10579_v4, %v10578_v53  ;;  %v8789_v31 = vld [vmem:[%s15948_s13 + $0xb0] sm:$0xf] }
 0xdba   : > { %v15103_v17 = vpop.f32.mrf.mxu0  ;;  %v15105_v33 = vpop.f32.mrf.mxu1  ;;  %6952 = vmatpush.bf16.msrb.mxu0 %v6790_v59  ;;  %v15121_v14 = vor.u32 %v9188_v9, %v8789_v31 }
 0xdbb   : > { %7000 = vmatpush.bf16.msrb.mxu1 %v6799_v43  ;;  %v15107_v46 = vadd.f32 %v6255_v27, %v6207_v23 }
 0xdbd   : > { %6318 = vmatmul.bf16.gmra.mxu2 %v15100_v45  ;;  %v10572_v28 = vpop.permute.xlu1 %10571 }
 0xdbe   : > { %v10574_v55 = vunpack.i.h.bf16 %v10572_v28  ;;  %v10573_v24 = vunpack.i.l.bf16 %v10572_v28  ;;  %v10582_v51 = vpop.permute.xlu2 %10581  ;;  %6953 = vmatpush.bf16.msrb.mxu0 %v6789_v2  ;;  %v15116_v4 = vpop.permute.xlu0 %5866 }
 0xdbf   : > { %v10584_v43 = vunpack.i.h.bf16 %v10582_v51  ;;  %v10583_v27 = vunpack.i.l.bf16 %v10582_v51  ;;  %7001 = vmatpush.bf16.msrb.mxu1 %v6798_v1  ;;  %v6165_v2 = vadd.f32 %v15059_v34, %v15116_v4  ;;  %v6796_v1 = vpack.c.bf16 %v10589_v6, %v10588_v0  ;;  %v8803_v34 = vld [vmem:[%s15948_s13 + $0xe4] sm:$0xf0] }
 0xdc0   : > { %v6797_v8 = vpack.c.bf16 %v10574_v55, %v10573_v24  ;;  %v6260_v53 = vpop.f32.mrf.mxu2  ;;  %v9190_v55 = vld [vmem:[%s15948_s13 + $0xd4] sm:$0xf] }
 0xdc1   : > { %v6788_v59 = vpack.c.bf16 %v10584_v43, %v10583_v27  ;;  %6867 = vmatmul.bf16.gmra.mxu3 %v14686_v13  ;;  %v6214_v51 = vadd.f32 %v15061_v7, %v6165_v2  ;;  %v15149_v43 = vor.u32 %v9190_v55, %v8803_v34  ;;  %v9193_v7 = vld [vmem:[%s15948_s13 + $0xe8] sm:$0xf0] }
 0xdc2   : > { %v6172_v41 = vpop.f32.mrf.mxu0  ;;  %v15123_v23 = vpop.f32.mrf.mxu1 }
 0xdc3   : > { %6954 = vmatpush.bf16.msrb.mxu0 %v6788_v59  ;;  %7002 = vmatpush.bf16.msrb.mxu1 %v6797_v8 }
 0xdc5   : > { %8855 = vmatmul.msk.bf16.gmra.mxu0 %vm3214_vm10, %v15121_v14  ;;  %v15129_v28 = vpop.permute.xlu1 %5841 }
 0xdc6   : > { %6828 = vmatmul.bf16.gmra.mxu1 %v14765_v40  ;;  %v6153_v13 = vadd.f32 %v14946_v12, %v15129_v28  ;;  %v15134_v15 = vpop.permute.xlu2 %5846 }
 0xdc7   : > { %v6155_v24 = vadd.f32 %v14970_v60, %v15134_v15  ;;  %7003 = vmatpush.bf16.msrb.mxu1 %v6796_v1 }
 0xdc8   : > { %v6202_v40 = vadd.f32 %v14948_v56, %v6153_v13  ;;  %v6262_v31 = vpop.f32.mrf.mxu2 }
 0xdc9   : > { %v6204_v12 = vadd.f32 %v14972_v44, %v6155_v24  ;;  %v15147_v9 = vadd.f32 %v6262_v31, %v6214_v51  ;;  %v8809_v44 = vld [vmem:[%s15948_s13 + $0xd8] sm:$0xf] }
 0xdca   : > { %v6174_v27 = vpop.f32.mrf.mxu0  ;;  %v6223_v8 = vpop.f32.mrf.mxu1  ;;  %v15152_v6 = vadd.f32 %v15031_v3, %v6202_v40  ;;  %v15174_v1 = vor.u32 %v9193_v7, %v8809_v44 }
 0xdcb   : > { %v15155_v0 = vadd.f32 %v15054_v29, %v6204_v12 }
 0xdcd   : > { %6323 = vmatmul.bf16.gmra.mxu2 %v15149_v43  ;;  %v15158_v60 = vpop.permute.xlu1 %5856 }
 0xdce   : > { %v6160_v56 = vadd.f32 %v15014_v36, %v15158_v60 }
 0xdcf   : > { %v15168_v3 = vpop.permute.xlu2 %5861 }
 0xdd0   : > { %v6209_v29 = vadd.f32 %v15016_v21, %v6160_v56  ;;  %v6163_v59 = vadd.f32 %v15036_v57, %v15168_v3  ;;  %v6265_v2 = vpop.f32.mrf.mxu2  ;;  %v9195_v57 = vld [vmem:[%s15948_s13 + $0xfc] sm:$0xf] }
 0xdd1   : > { %6872 = vmatmul.bf16.gmra.mxu3 %v14725_v52 }
 0xdd2   : > { %v6212_v36 = vadd.f32 %v15038_v5, %v6163_v59  ;;  %v6177_v13 = vpop.f32.mrf.mxu0  ;;  %v6226_v55 = vpop.f32.mrf.mxu1  ;;  %v15178_v34 = vadd.f32 %v15098_v10, %v6209_v29  ;;  %v8823_v5 = vld [vmem:[%s15948_s13 + $0x10c] sm:$0xf0] }
 0xdd4   : > { %v15180_v24 = vadd.f32 %v6260_v53, %v6212_v36 }
 0xdd5   : > { %8856 = vmatmul.msk.bf16.gmra.mxu0 %vm3214_vm10, %v15174_v1  ;;  %v15184_v21 = vpop.permute.xlu1 %5871 }
 0xdd6   : > { %6833 = vmatmul.bf16.gmra.mxu1 %v14815_v48  ;;  %v6168_v52 = vadd.f32 %v15079_v11, %v15184_v21  ;;  %v15200_v48 = vor.u32 %v9195_v57, %v8823_v5 }
 0xdd7   : > { %v15195_v10 = vpop.permute.xlu2 %5876 }
 0xdd8   : > { %v6217_v53 = vadd.f32 %v15081_v58, %v6168_v52  ;;  %v6170_v51 = vadd.f32 %v15103_v17, %v15195_v10  ;;  %v6267_v40 = vpop.f32.mrf.mxu2  ;;  %v8829_v17 = vld [vmem:[%s15948_s13 + $0x100] sm:$0xf] }
 0xdda   : > { %v6219_v11 = vadd.f32 %v15105_v33, %v6170_v51  ;;  %v6179_v31 = vpop.f32.mrf.mxu0  ;;  %v6228_v12 = vpop.f32.mrf.mxu1  ;;  %v15203_v56 = vadd.f32 %v6265_v2, %v6217_v53  ;;  %v9198_v33 = vld [vmem:[%s15948_s13 + $0x110] sm:$0xf0] }
 0xddb   : > { %v15222_v52 = vor.u32 %v9198_v33, %v8829_v17 }
 0xddc   : > { %v15205_v44 = vadd.f32 %v6267_v40, %v6219_v11 }
 0xddd   : > { %6328 = vmatmul.bf16.gmra.mxu2 %v15200_v48  ;;  %v15208_v7 = vpop.permute.xlu1 %5881 }
 0xdde   : > { %v6173_v58 = vadd.f32 %v6172_v41, %v15208_v7 }
 0xddf   : > { %v15217_v29 = vpop.permute.xlu2 %5886 }
 0xde0   : > { %v6175_v59 = vadd.f32 %v6174_v27, %v15217_v29  ;;  %v6222_v2 = vadd.f32 %v15123_v23, %v6173_v58  ;;  %v6270_v36 = vpop.f32.mrf.mxu2  ;;  %v9200_v23 = vld [vmem:[%s15948_s13 + $0x124] sm:$0xf] }
 0xde1   : > { %6877 = vmatmul.bf16.gmra.mxu3 %v14767_v20  ;;  %v8843_v20 = vld [vmem:[%s15948_s13 + $0x134] sm:$0xf0] }
 0xde2   : > { %v15224_v41 = vadd.f32 %v6270_v36, %v6222_v2  ;;  %v6182_v57 = vpop.f32.mrf.mxu0  ;;  %v6231_v5 = vpop.f32.mrf.mxu1  ;;  %v6224_v53 = vadd.f32 %v6223_v8, %v6175_v59 }
 0xde5   : > { %8857 = vmatmul.msk.bf16.gmra.mxu0 %vm3214_vm10, %v15222_v52 }
 0xde6   : > { %6838 = vmatmul.bf16.gmra.mxu1 %v14854_v62  ;;  %v15229_v51 = vpop.permute.xlu1 %5891  ;;  %v15243_v62 = vor.u32 %v9200_v23, %v8843_v20 }
 0xde7   : > { %16101 = vst [vmem:[#allocation14_spill] sm:$0xff] %v15229_v51  ;;  %v6178_v27 = vadd.f32 %v6177_v13, %v15229_v51  ;;  %v15238_v40 = vpop.permute.xlu2 %5896  ;;  %v8849_v13 = vld [vmem:[%s15948_s13 + $0x128] sm:$0xf] }
 0xde8   : > { %16102 = vst [vmem:[#allocation15_spill] sm:$0xff] %v15238_v40  ;;  %v6180_v8 = vadd.f32 %v6179_v31, %v15238_v40  ;;  %v6272_v11 = vpop.f32.mrf.mxu2  ;;  %v9203_v31 = vld [vmem:[%s15948_s13 + $0x138] sm:$0xf0] }
 0xde9   : > { %v15241_v58 = vadd.f32 %v6272_v11, %v6224_v53  ;;  %v6227_v17 = vadd.f32 %v6226_v55, %v6178_v27 }
 0xdea   : > { %v15245_v33 = vpop.f32.mrf.mxu0  ;;  %v15247_v59 = vpop.f32.mrf.mxu1  ;;  %v6229_v2 = vadd.f32 %v6228_v12, %v6180_v8  ;;  %v15262_v12 = vor.u32 %v9203_v31, %v8849_v13 }
 0xded   : > { %6333 = vmatmul.bf16.gmra.mxu2 %v15243_v62 }
 0xdef   : > { %v15256_v36 = vpop.permute.xlu2 %5901 }
 0xdf0   : > { %16103 = vst [vmem:[#allocation16_spill] sm:$0xff] %v15256_v36  ;;  %v6183_v53 = vadd.f32 %v6182_v57, %v15256_v36  ;;  %v6275_v55 = vpop.f32.mrf.mxu2 }
 0xdf1   : > { %v15259_v23 = vadd.f32 %v6275_v55, %v6227_v17  ;;  %6882 = vmatmul.bf16.gmra.mxu3 %v14817_v42 }
 0xdf2   : > { %v15264_v20 = vpop.f32.mrf.mxu0  ;;  %v15266_v27 = vadd.f32 %v6231_v5, %v6183_v53 }
 0xdf3   : > { %v15268_v8 = vpop.f32.mrf.mxu1 }
 0xdf5   : > { %8858 = vmatmul.msk.bf16.gmra.mxu0 %vm3214_vm10, %v15262_v12 }
 0xdf6   : > { %6843 = vmatmul.bf16.gmra.mxu1 %v14906_v32 }
 0xdf8   : > { %v6277_v11 = vpop.f32.mrf.mxu2 }
 0xdf9   : > { %v15273_v57 = vadd.f32 %v6277_v11, %v6229_v2 }
 0xdfa   : > { %v15275_v17 = vpop.f32.mrf.mxu0 }
 0xdfb   : > { %v15277_v55 = vpop.f32.mrf.mxu1 }
 0xdfd   : > { %6906 = vmatmul.bf16.vlgmr.msra.gmra.mxu2 %v14663_v37 }
 0xe00   : > { %v6299_v42 = vpop.f32.mrf.mxu2 }
 0xe01   : > { %6887 = vmatmul.bf16.gmra.mxu3 %v14856_v49  ;;  %v6300_v53 = vadd.f32 %v6299_v42, %v15152_v6 }
 0xe02   : > { %v6348_v5 = vpop.f32.mrf.mxu0 }
 0xe03   : > { %v6809_v13 = vpop.f32.mrf.mxu1  ;;  %v15288_v2 = vadd.f32 %v6348_v5, %v6300_v53 }
 0xe04   : > { %v15282_v31 = vadd.f32 %v6809_v13, %v15129_v28 }
 0xe05   : > { %6955 = vmatmul.bf16.vlgmr.msrb.gmra.mxu0 %v14930_v63  ;;  %v6388_v49 = vmax.f32 %v15288_v2, 0.0 }
 0xe06   : > { %8859 = vmatmul.msk.bf16.vlgmr.msrb.gmra.mxu1 %vm3214_vm10, %v14944_v50 }
 0xe08   : > { %v6301_v32 = vpop.f32.mrf.mxu2 }
 0xe09   : > { %v6302_v37 = vadd.f32 %v6301_v32, %v15155_v0 }
 0xe0a   : > { %v6350_v11 = vpop.f32.mrf.mxu0 }
 0xe0b   : > { %v15291_v36 = vadd.f32 %v6350_v11, %v6302_v37 }
 0xe0d   : > { %v6389_v28 = vmax.f32 %v15291_v36, 0.0  ;;  %6911 = vmatmul.bf16.gmra.mxu2 %v14702_v61 }
 0xe0f   : > { %v10590_v63 = vpack.i.bf16 %v6389_v28, %v6388_v49 }
 0xe10   : > { %v6304_v50 = vpop.f32.mrf.mxu2 }
 0xe11   : > { %10591 = vrot.lane.b32.xlu0 %v10590_v63, %s16056_s21  ;;  %6892 = vmatmul.bf16.gmra.mxu3 %v14911_v47  ;;  %v6305_v0 = vadd.f32 %v6304_v50, %v15107_v46 }
 0xe12   : > { %v6353_v6 = vpop.f32.mrf.mxu0 }
 0xe13   : > { %v15306_v61 = vadd.f32 %v6353_v6, %v6305_v0 }
 0xe15   : > { %6960 = vmatmul.bf16.gmra.mxu0 %v14968_v18  ;;  %v6390_v32 = vmax.f32 %v15306_v61, 0.0 }
 0xe16   : > { %8860 = vmatmul.msk.bf16.gmra.mxu1 %vm3214_vm10, %v14986_v22 }
 0xe18   : > { %v6306_v42 = vpop.f32.mrf.mxu2 }
 0xe19   : > { %v6307_v5 = vadd.f32 %v6306_v42, %v15178_v34  ;;  %v16104_v42 = vld [vmem:[#allocation12_spill] sm:$0xff] }
 0xe1a   : > { %v6355_v13 = vpop.f32.mrf.mxu0 }
 0xe1b   : > { %v15309_v53 = vadd.f32 %v6355_v13, %v6307_v5 }
 0xe1d   : > { %v6391_v47 = vmax.f32 %v15309_v53, 0.0  ;;  %6916 = vmatmul.bf16.gmra.mxu2 %v14741_v25 }
 0xe1f   : > { %v10595_v18 = vpack.i.bf16 %v6391_v47, %v6390_v32 }
 0xe20   : > { %v6309_v22 = vpop.f32.mrf.mxu2 }
 0xe21   : > { %10596 = vrot.lane.b32.xlu0 %v10595_v18, %s16056_s21  ;;  %v6310_v34 = vadd.f32 %v6309_v22, %v15180_v24  ;;  %v16105_v18 = vld [vmem:[#allocation13_spill] sm:$0xff] }
 0xe22   : > { %v6358_v46 = vpop.f32.mrf.mxu0 }
 0xe23   : > { %v15323_v11 = vadd.f32 %v6358_v46, %v6310_v34 }
 0xe25   : > { %6965 = vmatmul.bf16.gmra.mxu0 %v15012_v38  ;;  %v6392_v6 = vmax.f32 %v15323_v11, 0.0 }
 0xe26   : > { %8861 = vmatmul.msk.bf16.gmra.mxu1 %vm3214_vm10, %v15034_v19  ;;  %v15336_v19 = vpop.f32.mrf.mxu1 }
 0xe28   : > { %v6311_v37 = vpop.f32.mrf.mxu2 }
 0xe29   : > { %v6312_v25 = vadd.f32 %v6311_v37, %v15147_v9  ;;  %v5836_v9 = vld [vmem:[%s15949_s14 + $0x68] sm:$0xff] }
 0xe2a   : > { %v6360_v63 = vpop.f32.mrf.mxu0 }
 0xe2b   : > { %v15326_v50 = vadd.f32 %v6360_v63, %v6312_v25 }
 0xe2d   : > { %v6393_v0 = vmax.f32 %v15326_v50, 0.0  ;;  %6921 = vmatmul.bf16.gmra.mxu2 %v14784_v26  ;;  %v5837_v26 = vld [vmem:[%s15949_s14 + $0x70] sm:$0xff] }
 0xe2e   : > { %v15348_v24 = vpop.f32.mrf.mxu1 }
 0xe2f   : > { %v10600_v38 = vpack.i.bf16 %v6393_v0, %v6392_v6 }
 0xe30   : > { %v6314_v5 = vpop.f32.mrf.mxu2 }
 0xe31   : > { %10601 = vrot.lane.b32.xlu0 %v10600_v38, %s16056_s21 }
 0xe35   : > { %6970 = vmatmul.bf16.gmra.mxu0 %v15056_v54 }
 0xe36   : > { %8862 = vmatmul.msk.bf16.gmra.mxu1 %vm3214_vm10, %v15077_v35  ;;  %v15353_v54 = vpop.f32.mrf.mxu1 }
 0xe39   : > { %5906 = vperm.xlu0 %9677, %v5836_v9   ;;  %v6315_v9 = vadd.f32 %v6314_v5, %v15203_v56 }
 0xe3d   : > { %6926 = vmatmul.bf16.gmra.mxu2 %v14832_v30 }
 0xe3e   : > { %v15356_v35 = vpop.f32.mrf.mxu1 }
 0xe41   : > { %5911 = vperm.xlu0 %9677, %v5837_v26  }
 0xe45   : > { %6975 = vmatmul.bf16.gmra.mxu0 %v15100_v45  ;;  %v6363_v45 = vpop.f32.mrf.mxu0 }
 0xe46   : > { %8863 = vmatmul.msk.bf16.gmra.mxu1 %vm3214_vm10, %v15121_v14  ;;  %v15361_v30 = vpop.f32.mrf.mxu1 }
 0xe4d   : > { %6931 = vmatmul.bf16.gmra.mxu2 %v14876_v16  ;;  %v6316_v16 = vpop.f32.mrf.mxu2  ;;  %v6365_v13 = vpop.f32.mrf.mxu0 }
 0xe4e   : > { %v15367_v14 = vpop.f32.mrf.mxu1  ;;  %v6317_v37 = vadd.f32 %v6316_v16, %v15205_v44  ;;  %v15393_v16 = vadd.f32 %v6363_v45, %v6315_v9 }
 0xe50   : > { %v16024_v36 = vmax.f32 %v15393_v16, 0.0 }
 0xe55   : > { %6980 = vmatmul.bf16.gmra.mxu0 %v15149_v43  ;;  %v6368_v22 = vpop.f32.mrf.mxu0 }
 0xe56   : > { %8864 = vmatmul.msk.bf16.gmra.mxu1 %vm3214_vm10, %v15174_v1  ;;  %v15370_v43 = vpop.f32.mrf.mxu1  ;;  %v6319_v1 = vpop.f32.mrf.mxu2 }
 0xe5d   : > { %6936 = vmatmul.bf16.gmra.mxu2 %v16104_v42  ;;  %v6370_v34 = vpop.f32.mrf.mxu0  ;;  %v15389_v42 = vadd.f32 %v6365_v13, %v6317_v37 }
 0xe5e   : > { %v15375_v46 = vpop.f32.mrf.mxu1 }
 0xe5f   : > { %16106 = vst [vmem:[#allocation12_spill] sm:$0xff] %v15375_v46  ;;  %v16029_v56 = vmax.f32 %v15389_v42, 0.0 }
 0xe61   : > { %v10610_v2 = vpack.i.bf16 %v16029_v56, %v16024_v36 }
 0xe65   : > { %6985 = vmatmul.bf16.gmra.mxu0 %v15200_v48  ;;  %v6321_v48 = vpop.f32.mrf.mxu2 }
 0xe66   : > { %8865 = vmatmul.msk.bf16.gmra.mxu1 %vm3214_vm10, %v15222_v52  ;;  %v15378_v38 = vpop.f32.mrf.mxu1  ;;  %v6322_v45 = vadd.f32 %v6321_v48, %v15241_v58  ;;  %v5838_v58 = vld [vmem:[%s15949_s14 + $0x78] sm:$0xff] }
 0xe6d   : > { %6941 = vmatmul.bf16.gmra.mxu2 %v16105_v18  ;;  %v6324_v26 = vpop.f32.mrf.mxu2  ;;  %v6373_v18 = vpop.f32.mrf.mxu0 }
 0xe6e   : > { %v6325_v9 = vadd.f32 %v6324_v26, %v15259_v23 }
 0xe75   : > { %6990 = vmatmul.bf16.gmra.mxu0 %v15243_v62 }
 0xe76   : > { %8866 = vmatmul.msk.bf16.gmra.mxu1 %vm3214_vm10, %v15262_v12 }
 0xe83   : > { %v10592_v52 = vpop.permute.xlu0 %10591 }
 0xe84   : > { %v10594_v25 = vunpack.i.h.bf16 %v10592_v52  ;;  %v10593_v63 = vunpack.i.l.bf16 %v10592_v52 }
 0xe86   : > { %v15383_v62 = vmax.f32 %v6389_v28, %v10594_v25  ;;  %v15387_v12 = vmax.f32 %v6388_v49, %v10593_v63  ;;  %v15398_v28 = vpop.f32.mrf.mxu1  ;;  %v6326_v49 = vpop.f32.mrf.mxu2  ;;  %v6320_v63 = vadd.f32 %v6319_v1, %v15224_v41 }
 0xe87   : > { %16108 = vst [vmem:[#allocation13_spill] sm:$0xff] %v15398_v28  ;;  %v6327_v13 = vadd.f32 %v6326_v49, %v15273_v57  ;;  %v6375_v25 = vpop.f32.mrf.mxu0  ;;  %v15420_v57 = vadd.f32 %v6370_v34, %v6322_v45 }
 0xe88   : > { %v10605_v44 = vpack.i.bf16 %v15383_v62, %v15387_v12  ;;  %v15428_v53 = vadd.f32 %v6368_v22, %v6320_v63 }
 0xe89   : > { %v15422_v48 = vadd.f32 %v6375_v25, %v6327_v13  ;;  %v16031_v61 = vmax.f32 %v15420_v57, 0.0 }
 0xe8a   : > { %10606 = vrot.lane.b32.xlu1 %v10605_v44, %s16107_s29  ;;  %v16030_v1 = vmax.f32 %v15428_v53, 0.0 }
 0xe8c   : > { %v10620_v26 = vpack.i.bf16 %v16031_v61, %v16030_v1 }
 0xe8e   : > { %v15426_v23 = vpop.f32.mrf.mxu1 }
 0xe8f   : > { %16109 = vst [vmem:[#allocation17_spill] sm:$0xff] %v15426_v23  ;;  %v6378_v63 = vpop.f32.mrf.mxu0 }
 0xe92   : > { %10611 = vrot.lane.b32.xlu1 %v10610_v2, %s16056_s21 }
 0xe93   : > { %v10597_v5 = vpop.permute.xlu0 %10596 }
 0xe94   : > { %v10599_v52 = vunpack.i.h.bf16 %v10597_v5  ;;  %v10598_v37 = vunpack.i.l.bf16 %v10597_v5 }
 0xe96   : > { %v15411_v44 = vmax.f32 %v6391_v47, %v10599_v52  ;;  %v15415_v36 = vmax.f32 %v6390_v32, %v10598_v37  ;;  %v15430_v47 = vadd.f32 %v6373_v18, %v6325_v9  ;;  %v16026_v32 = vmax.f32 %v15422_v48, 0.0  ;;  %v15447_v18 = vpop.f32.mrf.mxu1  ;;  %v6280_v52 = vpop.f32.mrf.mxu3 }
 0xe97   : > { %16110 = vst [vmem:[#allocation18_spill] sm:$0xff] %v15447_v18  ;;  %v6329_v37 = vpop.f32.mrf.mxu2 }
 0xe98   : > { %v10615_v41 = vpack.i.bf16 %v15411_v44, %v15415_v36  ;;  %v16025_v34 = vmax.f32 %v15430_v47, 0.0 }
 0xe9a   : > { %10616 = vrot.lane.b32.xlu2 %v10615_v41, %s16107_s29  ;;  %5916 = vperm.xlu1 %9848, %v5838_v58   ;;  %v10630_v22 = vpack.i.bf16 %v16026_v32, %v16025_v34  ;;  %v6281_v41 = vadd.f32 %v6280_v52, %v15266_v27  ;;  %v6380_v34 = vpop.f32.mrf.mxu0 }
 0xe9e   : > { %v6841_v9 = vpop.f32.mrf.mxu1 }
 0xea2   : > { %10621 = vrot.lane.b32.xlu2 %v10620_v26, %s16056_s21  ;;  %10631 = vrot.lane.b32.xlu1 %v10630_v22, %s16056_s21  ;;  %v6330_v26 = vadd.f32 %v6329_v37, %v6281_v41  ;;  %v15478_v37 = vpop.f32.mrf.mxu0 }
 0xea3   : > { %v10602_v2 = vpop.permute.xlu0 %10601 }
 0xea4   : > { %v10604_v49 = vunpack.i.h.bf16 %v10602_v2  ;;  %v10603_v5 = vunpack.i.l.bf16 %v10602_v2  ;;  %v6331_v2 = vpop.f32.mrf.mxu2 }
 0xea6   : > { %v15451_v45 = vmax.f32 %v6393_v0, %v10604_v49  ;;  %v15455_v13 = vmax.f32 %v6392_v6, %v10603_v5  ;;  %v6282_v6 = vpop.f32.mrf.mxu3  ;;  %v15465_v49 = vadd.f32 %v6378_v63, %v6330_v26 }
 0xea8   : > { %v10625_v25 = vpack.i.bf16 %v15451_v45, %v15455_v13 }
 0xeaa   : > { %10626 = vrot.lane.b32.xlu0 %v10625_v25, %s16107_s29  ;;  %v16027_v25 = vmax.f32 %v15465_v49, 0.0 }
 0xeab   : > { %v5907_v58 = vpop.permute.xlu0 %5906 }
 0xeac   : > { %v6185_v50 = vadd.f32 %v15245_v33, %v5907_v58  ;;  %v15462_v0 = vadd.f32 %v6841_v9, %v5907_v58  ;;  %v15476_v52 = vpop.f32.mrf.mxu2  ;;  %v15485_v9 = vpop.f32.mrf.mxu1 }
 0xead   : > { %16112 = vst [vmem:[#allocation20_spill] sm:$0xff] %v15485_v9 }
 0xeae   : > { %16111 = vst [vmem:[#allocation19_spill] sm:$0xff] %v15462_v0  ;;  %v6234_v11 = vadd.f32 %v15247_v59, %v6185_v50  ;;  %v6285_v59 = vpop.f32.mrf.mxu3  ;;  %v15490_v50 = vpop.f32.mrf.mxu0 }
 0xeb0   : > { %v6283_v22 = vadd.f32 %v6282_v6, %v6234_v11 }
 0xeb2   : > { %v6332_v5 = vadd.f32 %v6331_v2, %v6283_v22 }
 0xeb4   : > { %v15467_v32 = vadd.f32 %v6380_v34, %v6332_v5  ;;  %v7237_v34 = vld [vmem:[%s15950_s15] sm:$0xf]  ;;  %v15488_v41 = vpop.f32.mrf.mxu2  ;;  %v15492_v11 = vpop.f32.mrf.mxu1  ;;  %v6812_v5 = vadd.f32 %v15336_v19, %v15134_v15  ;;  %v16114_v15 = vmax.f32 %v15420_v57, 0.0 }
 0xeb5   : > { %v7288_v58 = vsel %vm973_vm1, %v7237_v34, 0  ;;  %16113 = vst [vmem:[#allocation21_spill] sm:$0xff] %v15492_v11  ;;  %vm7238_vm1 = vcmask 64512  }
 0xeb6   : > { %v16028_v27 = vmax.f32 %v15467_v32, 0.0  ;;  %v15480_v63 = vpop.f32.mrf.mxu3  ;;  %7297 = vmatpush.bf16.msra.mxu3 %v7288_v58  ;;  %v6956_v22 = vpop.f32.mrf.mxu0 }
 0xeb8   : > { %v10640_v33 = vpack.i.bf16 %v16028_v27, %v16027_v25 }
 0xeba   : > { %10641 = vrot.lane.b32.xlu0 %v10640_v33, %s16056_s21 }
 0xebc   : > { %v6907_v6 = vpop.f32.mrf.mxu2  ;;  %v7005_v33 = vpop.f32.mrf.mxu1 }
 0xebe   : > { %v6858_v26 = vpop.f32.mrf.mxu3  ;;  %v6958_v61 = vpop.f32.mrf.mxu0 }
 0xebf   : > { %v6859_v34 = vadd.f32 %v6858_v26, %v15282_v31 }
 0xec1   : > { %v6908_v58 = vadd.f32 %v6907_v6, %v6859_v34 }
 0xec3   : > { %v6957_v40 = vadd.f32 %v6956_v22, %v6908_v58 }
 0xec4   : > { %v6909_v27 = vpop.f32.mrf.mxu2  ;;  %v7007_v46 = vpop.f32.mrf.mxu1 }
 0xec6   : > { %v6860_v2 = vpop.f32.mrf.mxu3  ;;  %v6961_v6 = vpop.f32.mrf.mxu0 }
 0xec7   : > { %v6861_v56 = vadd.f32 %v6860_v2, %v6812_v5  ;;  %v16115_v2 = vmax.f32 %v15428_v53, 0.0 }
 0xec9   : > { %v6910_v1 = vadd.f32 %v6909_v27, %v6861_v56 }
 0xecb   : > { %v6959_v9 = vadd.f32 %v6958_v61, %v6910_v1  ;;  %v15507_v61 = vpop.permute.xlu0 %5911 }
 0xecc   : > { %v6188_v53 = vadd.f32 %v15264_v20, %v15507_v61  ;;  %v16117_v20 = vmax.f32 %v15393_v16, 0.0 }
 0xece   : > { %v6863_v1 = vpop.f32.mrf.mxu3 }
 0xef4   : > { %v10617_v25 = vpop.permute.xlu2 %10616 }
 0xef5   : > { %v10618_v34 = vunpack.i.l.bf16 %v10617_v25 }
 0xefc   : > { %v10622_v0 = vpop.permute.xlu2 %10621  ;;  %v10607_v18 = vpop.permute.xlu1 %10606 }
 0xefd   : > { %v10624_v28 = vunpack.i.h.bf16 %v10622_v0  ;;  %v10623_v11 = vunpack.i.l.bf16 %v10622_v0  ;;  %v10609_v51 = vunpack.i.h.bf16 %v10607_v18  ;;  %v10608_v23 = vunpack.i.l.bf16 %v10607_v18 }
 0xefe   : > { %v15509_v0 = vadd.f32 %v7007_v46, %v6959_v9  ;;  %v6237_v9 = vadd.f32 %v15268_v8, %v6188_v53  ;;  %v6865_v8 = vpop.f32.mrf.mxu3 }
 0xeff   : > { %v15499_v19 = vmax.f32 %v16114_v15, %v10624_v28  ;;  %v15503_v5 = vmax.f32 %v16115_v2, %v10623_v11  ;;  %v6549_v31 = vmax.f32 %v15383_v62, %v10609_v51  ;;  %v6548_v56 = vmax.f32 %v15387_v12, %v10608_v23  ;;  %v6912_v51 = vpop.f32.mrf.mxu2 }
 0xf00   : > { %v15513_v28 = vadd.f32 %v7005_v33, %v6957_v40  ;;  %v7046_v12 = vmax.f32 %v15509_v0, 0.0  ;;  %v16116_v40 = vmax.f32 %v15389_v42, 0.0  ;;  %v10619_v33 = vunpack.i.h.bf16 %v10617_v25  ;;  %v7010_v42 = vpop.f32.mrf.mxu1 }
 0xf01   : > { %v10645_v18 = vpack.i.bf16 %v15499_v19, %v15503_v5  ;;  %v7221_v57 = vpack.c.bf16 %v6549_v31, %v6548_v56  ;;  %v6286_v15 = vadd.f32 %v6285_v59, %v6237_v9  ;;  %v6817_v2 = vadd.f32 %v15353_v54, %v15158_v60 }
 0xf02   : > { %v7045_v27 = vmax.f32 %v15513_v28, 0.0  ;;  %v6551_v31 = vmax.f32 %v15411_v44, %v10619_v33  ;;  %v6550_v56 = vmax.f32 %v15415_v36, %v10618_v34  ;;  %v6815_v59 = vadd.f32 %v15348_v24, %v15092_v39  ;;  %v6963_v44 = vpop.f32.mrf.mxu0 }
 0xf03   : > { %10646 = vrot.lane.b32.xlu1 %v10645_v18, %s16107_s29  ;;  %8867 = vmatmul.msk.bf16.vlgmr.msra.gmra.mxu3 %vm7238_vm1, %v7221_v57  ;;  %v6866_v57 = vadd.f32 %v6865_v8, %v6817_v2  ;;  %v6335_v53 = vadd.f32 %v15476_v52, %v6286_v15 }
 0xf04   : > { %v10612_v62 = vpop.permute.xlu1 %10611  ;;  %v10660_v22 = vpack.i.bf16 %v7046_v12, %v7045_v27  ;;  %v7222_v9 = vpack.c.bf16 %v6551_v31, %v6550_v56 }
 0xf05   : > { %v10614_v23 = vunpack.i.h.bf16 %v10612_v62  ;;  %v10613_v46 = vunpack.i.l.bf16 %v10612_v62  ;;  %v15552_v36 = vadd.f32 %v15478_v37, %v6335_v53  ;;  %v16119_v37 = vmax.f32 %v15430_v47, 0.0 }
 0xf07   : > { %v15524_v26 = vmax.f32 %v16116_v40, %v10614_v23  ;;  %v15528_v11 = vmax.f32 %v16117_v20, %v10613_v46  ;;  %v6914_v18 = vpop.f32.mrf.mxu2  ;;  %v6864_v23 = vadd.f32 %v6863_v1, %v6815_v59 }
 0xf08   : > { %v6915_v46 = vadd.f32 %v6914_v18, %v6866_v57  ;;  %v7012_v20 = vpop.f32.mrf.mxu1 }
 0xf09   : > { %v10635_v58 = vpack.i.bf16 %v15524_v26, %v15528_v11  ;;  %v6913_v54 = vadd.f32 %v6912_v51, %v6864_v23  ;;  %v6822_v23 = vadd.f32 %v15361_v30, %v15116_v4  ;;  %v16121_v4 = vmax.f32 %v15465_v49, 0.0 }
 0xf0a   : > { %v6964_v24 = vadd.f32 %v6963_v44, %v6915_v46  ;;  %v6966_v18 = vpop.f32.mrf.mxu0 }
 0xf0b   : > { %10661 = vrot.lane.b32.xlu1 %v10660_v22, %s16056_s21  ;;  %10636 = vrot.lane.b32.xlu2 %v10635_v58, %s16107_s29  ;;  %v6962_v40 = vadd.f32 %v6961_v6, %v6913_v54  ;;  %v6868_v6 = vpop.f32.mrf.mxu3 }
 0xf0c   : > { %v15538_v16 = vpop.permute.xlu1 %5916  ;;  %v15569_v34 = vadd.f32 %v7012_v20, %v6964_v24  ;;  %v16120_v20 = vmax.f32 %v15467_v32, 0.0 }
 0xf0d   : > { %v6190_v25 = vadd.f32 %v15275_v17, %v15538_v16  ;;  %v15577_v58 = vadd.f32 %v7010_v42, %v6962_v40 }
 0xf0e   : > { %v7048_v15 = vmax.f32 %v15569_v34, 0.0 }
 0xf0f   : > { %v6239_v62 = vadd.f32 %v15277_v55, %v6190_v25  ;;  %v6917_v47 = vpop.f32.mrf.mxu2  ;;  %v7047_v56 = vmax.f32 %v15577_v58, 0.0 }
 0xf11   : > { %v6288_v60 = vadd.f32 %v15480_v63, %v6239_v62  ;;  %v16118_v63 = vmax.f32 %v15422_v48, 0.0  ;;  %v10670_v42 = vpack.i.bf16 %v7048_v15, %v7047_v56  ;;  %v7015_v62 = vpop.f32.mrf.mxu1 }
 0xf12   : > { %v6968_v54 = vpop.f32.mrf.mxu0 }
 0xf13   : > { %v6337_v17 = vadd.f32 %v15488_v41, %v6288_v60  ;;  %8868 = vmatmul.msk.bf16.gmra.mxu3 %vm7238_vm1, %v7222_v9  ;;  %v6402_v41 = vmax.f32 %v15552_v36, 0.0  ;;  %v6870_v53 = vpop.f32.mrf.mxu3 }
 0xf14   : > { %v10632_v39 = vpop.permute.xlu1 %10631 }
 0xf15   : > { %v15557_v52 = vadd.f32 %v15490_v50, %v6337_v17  ;;  %v10634_v55 = vunpack.i.h.bf16 %v10632_v39  ;;  %v10633_v1 = vunpack.i.l.bf16 %v10632_v39 }
 0xf17   : > { %v15561_v51 = vmax.f32 %v16118_v63, %v10634_v55  ;;  %v15565_v22 = vmax.f32 %v16119_v37, %v10633_v1  ;;  %v6403_v33 = vmax.f32 %v15557_v52, 0.0  ;;  %v6919_v46 = vpop.f32.mrf.mxu2 }
 0xf19   : > { %v10655_v50 = vpack.i.bf16 %v15561_v51, %v15565_v22  ;;  %v10650_v48 = vpack.i.bf16 %v6403_v33, %v6402_v41  ;;  %v7017_v1 = vpop.f32.mrf.mxu1 }
 0xf1b   : > { %10656 = vrot.lane.b32.xlu0 %v10655_v50, %s16107_s29  ;;  %10651 = vrot.lane.b32.xlu2 %v10650_v48, %s16056_s21  ;;  %v6873_v49 = vpop.f32.mrf.mxu3 }
 0xf1c   : > { %v10627_v8 = vpop.permute.xlu0 %10626 }
 0xf1d   : > { %v10629_v2 = vunpack.i.h.bf16 %v10627_v8  ;;  %v10628_v31 = vunpack.i.l.bf16 %v10627_v8 }
 0xf1f   : > { %v6553_v25 = vmax.f32 %v15451_v45, %v10629_v2  ;;  %v6552_v59 = vmax.f32 %v15455_v13, %v10628_v31  ;;  %v6820_v45 = vadd.f32 %v15356_v35, %v15168_v3  ;;  %v6871_v13 = vadd.f32 %v6870_v53, %v6822_v23 }
 0xf21   : > { %v7223_v57 = vpack.c.bf16 %v6553_v25, %v6552_v59  ;;  %v6869_v9 = vadd.f32 %v6868_v6, %v6820_v45  ;;  %v6920_v60 = vadd.f32 %v6919_v46, %v6871_v13  ;;  %v6922_v6 = vpop.f32.mrf.mxu2  ;;  %v7020_v8 = vpop.f32.mrf.mxu1 }
 0xf23   : > { %10671 = vrot.lane.b32.xlu0 %v10670_v42, %s16056_s21  ;;  %8869 = vmatmul.msk.bf16.gmra.mxu3 %vm7238_vm1, %v7223_v57  ;;  %v6918_v44 = vadd.f32 %v6917_v47, %v6869_v9  ;;  %v6969_v39 = vadd.f32 %v6968_v54, %v6920_v60  ;;  %v6971_v47 = vpop.f32.mrf.mxu0  ;;  %v6875_v2 = vpop.f32.mrf.mxu3 }
 0xf25   : > { %v6967_v40 = vadd.f32 %v6966_v18, %v6918_v44  ;;  %v15603_v3 = vadd.f32 %v7017_v1, %v6969_v39 }
 0xf27   : > { %v15607_v37 = vadd.f32 %v7015_v62, %v6967_v40  ;;  %v7050_v50 = vmax.f32 %v15603_v3, 0.0 }
 0xf29   : > { %v7049_v48 = vmax.f32 %v15607_v37, 0.0  ;;  %v6924_v31 = vpop.f32.mrf.mxu2  ;;  %v7022_v59 = vpop.f32.mrf.mxu1 }
 0xf2b   : > { %v10680_v32 = vpack.i.bf16 %v7050_v50, %v7049_v48  ;;  %v6973_v25 = vpop.f32.mrf.mxu0  ;;  %v6878_v18 = vpop.f32.mrf.mxu3 }
 0xf2c   : > { %v10642_v17 = vpop.permute.xlu0 %10641 }
 0xf2d   : > { %v10644_v24 = vunpack.i.h.bf16 %v10642_v17  ;;  %v10643_v55 = vunpack.i.l.bf16 %v10642_v17  ;;  %v6827_v17 = vadd.f32 %v15370_v43, %v15195_v10 }
 0xf2f   : > { %v15597_v63 = vmax.f32 %v16120_v20, %v10644_v24  ;;  %v15601_v30 = vmax.f32 %v16121_v4, %v10643_v55  ;;  %v6825_v24 = vadd.f32 %v15367_v14, %v15184_v21  ;;  %v6876_v55 = vadd.f32 %v6875_v2, %v6827_v17  ;;  %v16122_v14 = vld [vmem:[#allocation12_spill] sm:$0xff] }
 0xf30   : > { %v6830_v2 = vadd.f32 %v16122_v14, %v15208_v7 }
 0xf31   : > { %v10665_v35 = vpack.i.bf16 %v15597_v63, %v15601_v30  ;;  %v6927_v42 = vpop.f32.mrf.mxu2  ;;  %v15617_v53 = vpop.f32.mrf.mxu1  ;;  %v6874_v20 = vadd.f32 %v6873_v49, %v6825_v24 }
 0xf33   : > { %10666 = vrot.lane.b32.xlu2 %v10665_v35, %s16107_s29  ;;  %v6976_v57 = vpop.f32.mrf.mxu0  ;;  %v6880_v23 = vpop.f32.mrf.mxu3  ;;  %v6923_v4 = vadd.f32 %v6922_v6, %v6874_v20  ;;  %v6832_v35 = vadd.f32 %v15378_v38, %v15217_v29 }
 0xf39   : > { %v6929_v46 = vpop.f32.mrf.mxu2  ;;  %v7027_v39 = vpop.f32.mrf.mxu1 }
 0xf3b   : > { %10681 = vrot.lane.b32.xlu2 %v10680_v32, %s16056_s21  ;;  %v6978_v54 = vpop.f32.mrf.mxu0  ;;  %v15626_v1 = vpop.f32.mrf.mxu3 }
 0xf41   : > { %v15628_v40 = vpop.f32.mrf.mxu2  ;;  %v15636_v49 = vpop.f32.mrf.mxu1 }
 0xf65   : > { %v10637_v62 = vpop.permute.xlu2 %10636 }
 0xf66   : > { %v10639_v45 = vunpack.i.h.bf16 %v10637_v62  ;;  %v10638_v13 = vunpack.i.l.bf16 %v10637_v62 }
 0xf68   : > { %v6555_v9 = vmax.f32 %v15524_v26, %v10639_v45  ;;  %v6554_v60 = vmax.f32 %v15528_v11, %v10638_v13  ;;  %v6925_v26 = vadd.f32 %v6924_v31, %v6876_v55  ;;  %v15630_v11 = vpop.f32.mrf.mxu0 }
 0xf6a   : > { %v7224_v44 = vpack.c.bf16 %v6555_v9, %v6554_v60  ;;  %v6974_v32 = vadd.f32 %v6973_v25, %v6925_v26  ;;  %v6881_v9 = vadd.f32 %v6880_v23, %v6832_v35  ;;  %v6972_v60 = vadd.f32 %v6971_v47, %v6923_v4  ;;  %v6934_v47 = vpop.f32.mrf.mxu2  ;;  %v7032_v26 = vpop.f32.mrf.mxu1 }
 0xf6b   : > { %v6879_v25 = vadd.f32 %v6878_v18, %v6830_v2 }
 0xf6c   : > { %8870 = vmatmul.msk.bf16.gmra.mxu3 %vm7238_vm1, %v7224_v44  ;;  %v6885_v44 = vpop.f32.mrf.mxu3  ;;  %v15648_v17 = vadd.f32 %v7022_v59, %v6974_v32  ;;  %v6930_v7 = vadd.f32 %v6929_v46, %v6881_v9  ;;  %v15652_v24 = vadd.f32 %v7020_v8, %v6972_v60  ;;  %v16125_v9 = vld [vmem:[#allocation14_spill] sm:$0xff]  ;;  %v16126_v60 = vld [vmem:[#allocation13_spill] sm:$0xff] }
 0xf6e   : > { %v7052_v52 = vmax.f32 %v15648_v17, 0.0  ;;  %v7051_v46 = vmax.f32 %v15652_v24, 0.0 }
 0xf75   : > { %v10647_v62 = vpop.permute.xlu1 %10646  ;;  %v10652_v10 = vpop.permute.xlu2 %10651 }
 0xf76   : > { %v10649_v43 = vunpack.i.h.bf16 %v10647_v62  ;;  %v10648_v45 = vunpack.i.l.bf16 %v10647_v62  ;;  %v10654_v13 = vunpack.i.h.bf16 %v10652_v10  ;;  %v10653_v21 = vunpack.i.l.bf16 %v10652_v10  ;;  %v7035_v62 = vpop.f32.mrf.mxu1  ;;  %v16124_v10 = vld [vmem:[#allocation17_spill] sm:$0xff] }
 0xf78   : > { %v6557_v6 = vmax.f32 %v15499_v19, %v10649_v43  ;;  %v6556_v31 = vmax.f32 %v15503_v5, %v10648_v45  ;;  %v15642_v29 = vmax.f32 %v6403_v33, %v10654_v13  ;;  %v15646_v38 = vmax.f32 %v6402_v41, %v10653_v21  ;;  %v6983_v33 = vpop.f32.mrf.mxu0 }
 0xf79   : > { %v6928_v5 = vadd.f32 %v6927_v42, %v6879_v25  ;;  %v6979_v41 = vadd.f32 %v6978_v54, %v6930_v7  ;;  %v10690_v42 = vpack.i.bf16 %v7052_v52, %v7051_v46  ;;  %v16128_v25 = vld [vmem:[#allocation18_spill] sm:$0xff] }
 0xf7a   : > { %v7225_v23 = vpack.c.bf16 %v6557_v6, %v6556_v31  ;;  %v10675_v19 = vpack.i.bf16 %v15642_v29, %v15646_v38  ;;  %v6835_v6 = vadd.f32 %v16126_v60, %v16125_v9  ;;  %v16127_v31 = vld [vmem:[#allocation16_spill] sm:$0xff] }
 0xf7b   : > { %v6977_v55 = vadd.f32 %v6976_v57, %v6928_v5  ;;  %v15670_v54 = vadd.f32 %v7027_v39, %v6979_v41  ;;  %v6888_v57 = vpop.f32.mrf.mxu3  ;;  %v6840_v7 = vadd.f32 %v16128_v25, %v16127_v31  ;;  %v16130_v25 = vld [vmem:[#allocation21_spill] sm:$0xff] }
 0xf7c   : > { %10676 = vrot.lane.b32.xlu1 %v10675_v19, %s16107_s29  ;;  %8871 = vmatmul.msk.bf16.gmra.mxu3 %vm7238_vm1, %v7225_v23  ;;  %v16129_v19 = vld [vmem:[#allocation19_spill] sm:$0xff] }
 0xf7d   : > { %v10662_v36 = vpop.permute.xlu1 %10661  ;;  %v15675_v0 = vadd.f32 %v15617_v53, %v6977_v55  ;;  %v7054_v28 = vmax.f32 %v15670_v54, 0.0  ;;  %v16123_v53 = vld [vmem:[#allocation15_spill] sm:$0xff] }
 0xf7e   : > { %v10664_v59 = vunpack.i.h.bf16 %v10662_v36  ;;  %v10663_v18 = vunpack.i.l.bf16 %v10662_v36  ;;  %v6837_v43 = vadd.f32 %v16124_v10, %v16123_v53 }
 0xf80   : > { %v15660_v20 = vmax.f32 %v7046_v12, %v10664_v59  ;;  %v15664_v8 = vmax.f32 %v7045_v27, %v10663_v18  ;;  %v6937_v12 = vpop.f32.mrf.mxu2  ;;  %v7053_v27 = vmax.f32 %v15675_v0, 0.0  ;;  %v6986_v35 = vpop.f32.mrf.mxu0  ;;  %v6886_v23 = vadd.f32 %v6885_v44, %v6837_v43 }
 0xf81   : > { %v6884_v59 = vadd.f32 %v15626_v1, %v6835_v6  ;;  %v6889_v18 = vadd.f32 %v6888_v57, %v6840_v7  ;;  %v6847_v7 = vadd.f32 %v16130_v25, %v15538_v16 }
 0xf82   : > { %v10685_v4 = vpack.i.bf16 %v15660_v20, %v15664_v8  ;;  %v10700_v39 = vpack.i.bf16 %v7054_v28, %v7053_v27  ;;  %v6935_v55 = vadd.f32 %v6934_v47, %v6886_v23  ;;  %v7037_v47 = vpop.f32.mrf.mxu1 }
 0xf83   : > { %v6890_v32 = vpop.f32.mrf.mxu3  ;;  %v6933_v53 = vadd.f32 %v15628_v40, %v6884_v59  ;;  %v6938_v10 = vadd.f32 %v6937_v12, %v6889_v18 }
 0xf84   : > { %10686 = vrot.lane.b32.xlu0 %v10685_v4, %s16107_s29  ;;  %10691 = vrot.lane.b32.xlu1 %v10690_v42, %s16056_s21  ;;  %v6891_v5 = vadd.f32 %v6890_v32, %v16129_v19 }
 0xf85   : > { %v6982_v1 = vadd.f32 %v15630_v11, %v6933_v53  ;;  %v6987_v57 = vadd.f32 %v6986_v35, %v6938_v10 }
 0xf87   : > { %v15724_v3 = vadd.f32 %v15636_v49, %v6982_v1 }
 0xf88   : > { %v6939_v21 = vpop.f32.mrf.mxu2  ;;  %v6988_v4 = vpop.f32.mrf.mxu0 }
 0xf89   : > { %v6940_v42 = vadd.f32 %v6939_v21, %v6891_v5  ;;  %v7055_v60 = vmax.f32 %v15724_v3, 0.0 }
 0xf8b   : > { %v6989_v44 = vadd.f32 %v6988_v4, %v6940_v42 }
 0xf8c   : > { %10701 = vrot.lane.b32.xlu0 %v10700_v39, %s16056_s21 }
 0xf8d   : > { %v10657_v45 = vpop.permute.xlu0 %10656  ;;  %v10667_v13 = vpop.permute.xlu2 %10666  ;;  %v15717_v11 = vadd.f32 %v7037_v47, %v6989_v44 }
 0xf8e   : > { %v10659_v14 = vunpack.i.h.bf16 %v10657_v45  ;;  %v10658_v2 = vunpack.i.l.bf16 %v10657_v45  ;;  %v6984_v45 = vadd.f32 %v6983_v33, %v6935_v55  ;;  %v7040_v55 = vpop.f32.mrf.mxu1 }
 0xf90   : > { %v6559_v36 = vmax.f32 %v15561_v51, %v10659_v14  ;;  %v6558_v41 = vmax.f32 %v15565_v22, %v10658_v2  ;;  %v15715_v2 = vadd.f32 %v7032_v26, %v6984_v45  ;;  %v6942_v31 = vpop.f32.mrf.mxu2  ;;  %v6991_v23 = vpop.f32.mrf.mxu0 }
 0xf92   : > { %v7226_v39 = vpack.c.bf16 %v6559_v36, %v6558_v41  ;;  %v7056_v37 = vmax.f32 %v15715_v2, 0.0  ;;  %v16131_v41 = vld [vmem:[#allocation20_spill] sm:$0xff] }
 0xf93   : > { %v6845_v59 = vadd.f32 %v16131_v41, %v15507_v61 }
 0xf94   : > { %8872 = vmatmul.msk.bf16.gmra.mxu3 %vm7238_vm1, %v7226_v39  ;;  %v10710_v49 = vpack.i.bf16 %v7056_v37, %v7055_v60 }
 0xf95   : > { %v10672_v43 = vpop.permute.xlu0 %10671  ;;  %v10682_v32 = vpop.permute.xlu2 %10681 }
 0xf96   : > { %v10674_v9 = vunpack.i.h.bf16 %v10672_v43  ;;  %v10673_v51 = vunpack.i.l.bf16 %v10672_v43  ;;  %v10684_v14 = vunpack.i.h.bf16 %v10682_v32  ;;  %v10683_v22 = vunpack.i.l.bf16 %v10682_v32  ;;  %v7042_v1 = vpop.f32.mrf.mxu1 }
 0xf98   : > { %v15701_v21 = vmax.f32 %v7048_v15, %v10674_v9  ;;  %v15705_v40 = vmax.f32 %v7047_v56, %v10673_v51  ;;  %v15709_v33 = vmax.f32 %v7050_v50, %v10684_v14  ;;  %v15713_v12 = vmax.f32 %v7049_v48, %v10683_v22  ;;  %v6944_v42 = vpop.f32.mrf.mxu2  ;;  %v6993_v16 = vpop.f32.mrf.mxu0 }
 0xf99   : > { %v10669_v15 = vunpack.i.h.bf16 %v10667_v13  ;;  %v10668_v56 = vunpack.i.l.bf16 %v10667_v13  ;;  %v15726_v50 = vadd.f32 %v7035_v62, %v6987_v57  ;;  %v7058_v48 = vmax.f32 %v15717_v11, 0.0 }
 0xf9a   : > { %v10695_v34 = vpack.i.bf16 %v15701_v21, %v15705_v40  ;;  %v10705_v58 = vpack.i.bf16 %v15709_v33, %v15713_v12 }
 0xf9b   : > { %v6561_v26 = vmax.f32 %v15597_v63, %v10669_v15  ;;  %v6560_v35 = vmax.f32 %v15601_v30, %v10668_v56  ;;  %v7057_v13 = vmax.f32 %v15726_v50, 0.0  ;;  %v6893_v63 = vpop.f32.mrf.mxu3 }
 0xf9c   : > { %10696 = vrot.lane.b32.xlu2 %v10695_v34, %s16107_s29  ;;  %10706 = vrot.lane.b32.xlu1 %v10705_v58, %s16107_s29  ;;  %v6894_v45 = vadd.f32 %v6893_v63, %v6845_v59 }
 0xf9d   : > { %v10720_v62 = vpack.i.bf16 %v7058_v48, %v7057_v13  ;;  %v7227_v6 = vpack.c.bf16 %v6561_v26, %v6560_v35 }
 0xf9e   : > { %v6943_v43 = vadd.f32 %v6942_v31, %v6894_v45 }
 0xfa0   : > { %v6992_v57 = vadd.f32 %v6991_v23, %v6943_v43 }
 0xfa2   : > { %v15766_v56 = vadd.f32 %v7040_v55, %v6992_v57 }
 0xfa3   : > { %v6895_v30 = vpop.f32.mrf.mxu3 }
 0xfa4   : > { %10711 = vrot.lane.b32.xlu2 %v10710_v49, %s16056_s21  ;;  %10721 = vrot.lane.b32.xlu1 %v10720_v62, %s16056_s21  ;;  %v6896_v18 = vadd.f32 %v6895_v30, %v6847_v7  ;;  %v7059_v25 = vmax.f32 %v15766_v56, 0.0 }
 0xfa5   : > { %8873 = vmatmul.msk.bf16.gmra.mxu3 %vm7238_vm1, %v7227_v6 }
 0xfa6   : > { %v6945_v44 = vadd.f32 %v6944_v42, %v6896_v18 }
 0xfa8   : > { %v6994_v61 = vadd.f32 %v6993_v16, %v6945_v44 }
 0xfaa   : > { %v15760_v47 = vadd.f32 %v7042_v1, %v6994_v61 }
 0xfab   : > { %v15749_v53 = vpop.f32.mrf.mxu3 }
 0xfac   : > { %v7060_v35 = vmax.f32 %v15760_v47, 0.0 }
 0xfb3   : > { %v15762_v2 = vpop.f32.mrf.mxu3 }
 0xfbb   : > { %v15791_v0 = vpop.f32.mrf.mxu3 }
 0xfee   : > { %v10677_v19 = vpop.permute.xlu1 %10676 }
 0xfef   : > { %v10679_v5 = vunpack.i.h.bf16 %v10677_v19  ;;  %v10678_v36 = vunpack.i.l.bf16 %v10677_v19 }
 0xff1   : > { %v6563_v4 = vmax.f32 %v15642_v29, %v10679_v5  ;;  %v6562_v39 = vmax.f32 %v15646_v38, %v10678_v36 }
 0xff3   : > { %v7228_v10 = vpack.c.bf16 %v6563_v4, %v6562_v39 }
 0xff5   : > { %8874 = vmatmul.msk.bf16.gmra.mxu3 %vm7238_vm1, %v7228_v10 }
 0xff6   : > { %v10687_v32 = vpop.permute.xlu0 %10686  ;;  %v10697_v9 = vpop.permute.xlu2 %10696 }
 0xff7   : > { %v10692_v51 = vpop.permute.xlu1 %10691  ;;  %v10689_v34 = vunpack.i.h.bf16 %v10687_v32  ;;  %v10688_v58 = vunpack.i.l.bf16 %v10687_v32 }
 0xff8   : > { %v10694_v14 = vunpack.i.h.bf16 %v10692_v51  ;;  %v10693_v22 = vunpack.i.l.bf16 %v10692_v51 }
 0xff9   : > { %v7206_v49 = vmax.f32 %v15660_v20, %v10689_v34  ;;  %v7205_v62 = vmax.f32 %v15664_v8, %v10688_v58  ;;  %v10730_v8 = vpack.i.bf16 %v7060_v35, %v7059_v25 }
 0xffa   : > { %v15754_v29 = vmax.f32 %v7052_v52, %v10694_v14  ;;  %v15758_v38 = vmax.f32 %v7051_v46, %v10693_v22 }
 0xffb   : > { %v7229_v54 = vpack.c.bf16 %v7206_v49, %v7205_v62 }
 0xffc   : > { %v10715_v15 = vpack.i.bf16 %v15754_v29, %v15758_v38 }
 0xffe   : > { %10716 = vrot.lane.b32.xlu0 %v10715_v15, %s16107_s29  ;;  %v10702_v17 = vpop.permute.xlu0 %10701  ;;  %v10712_v52 = vpop.permute.xlu2 %10711 }
 0xfff   : > { %v10704_v3 = vunpack.i.h.bf16 %v10702_v17  ;;  %v10703_v26 = vunpack.i.l.bf16 %v10702_v17  ;;  %v10714_v24 = vunpack.i.h.bf16 %v10712_v52  ;;  %v10713_v46 = vunpack.i.l.bf16 %v10712_v52 }
0x1001   : > { %v15774_v6 = vmax.f32 %v7054_v28, %v10704_v3  ;;  %v15778_v63 = vmax.f32 %v7053_v27, %v10703_v26  ;;  %v15780_v31 = vmax.f32 %v7056_v37, %v10714_v24  ;;  %v15782_v30 = vmax.f32 %v7055_v60, %v10713_v46  ;;  %v15795_v60 = vpop.f32.mrf.mxu3 }
0x1002   : > { %v10699_v28 = vunpack.i.h.bf16 %v10697_v9  ;;  %v10698_v27 = vunpack.i.l.bf16 %v10697_v9 }
0x1003   : > { %v10725_v7 = vpack.i.bf16 %v15774_v6, %v15778_v63  ;;  %v10735_v20 = vpack.i.bf16 %v15780_v31, %v15782_v30 }
0x1004   : > { %v7208_v23 = vmax.f32 %v15701_v21, %v10699_v28  ;;  %v7207_v19 = vmax.f32 %v15705_v40, %v10698_v27 }
0x1005   : > { %10726 = vrot.lane.b32.xlu2 %v10725_v7, %s16107_s29  ;;  %10736 = vrot.lane.b32.xlu1 %v10735_v20, %s16107_s29 }
0x1006   : > { %10731 = vrot.lane.b32.xlu0 %v10730_v8, %s16056_s21  ;;  %8875 = vmatmul.msk.bf16.gmra.mxu3 %vm7238_vm1, %v7229_v54  ;;  %v7230_v5 = vpack.c.bf16 %v7208_v23, %v7207_v19  ;;  %s10888_s21 = smov 1  }
0x1009   : > { %v15804_v42 = vpop.f32.mrf.mxu3 }
0x100e   : > { %v10707_v37 = vpop.permute.xlu1 %10706 }
0x100f   : > { %v10709_v39 = vunpack.i.h.bf16 %v10707_v37  ;;  %v10708_v10 = vunpack.i.l.bf16 %v10707_v37 }
0x1011   : > { %v7210_v21 = vmax.f32 %v15709_v33, %v10709_v39  ;;  %v7209_v40 = vmax.f32 %v15713_v12, %v10708_v10  ;;  %v15809_v45 = vpop.f32.mrf.mxu3 }
0x1013   : > { %v7231_v44 = vpack.c.bf16 %v7210_v21, %v7209_v40 }
0x1016   : > { %8876 = vmatmul.msk.bf16.gmra.mxu3 %vm7238_vm1, %v7230_v5  ;;  %v10722_v36 = vpop.permute.xlu1 %10721 }
0x1017   : > { %v10724_v41 = vunpack.i.h.bf16 %v10722_v36  ;;  %v10723_v59 = vunpack.i.l.bf16 %v10722_v36 }
0x1019   : > { %v7138_v18 = vmax.f32 %v7058_v48, %v10724_v41  ;;  %v7137_v55 = vmax.f32 %v7057_v13, %v10723_v59  ;;  %v15812_v11 = vpop.f32.mrf.mxu3 }
0x101b   : > { %v10740_v4 = vpack.i.bf16 %v7138_v18, %v7137_v55 }
0x101d   : > { %10741 = vrot.lane.b32.xlu2 %v10740_v4, %s16107_s29 }
0x1021   : > { %v15814_v50 = vpop.f32.mrf.mxu3 }
0x1026   : > { %8877 = vmatmul.msk.bf16.gmra.mxu3 %vm7238_vm1, %v7231_v44 }
0x1029   : > { %v15816_v48 = vpop.f32.mrf.mxu3 }
0x1031   : > { %v15818_v13 = vpop.f32.mrf.mxu3 }
0x1039   : > { %v15820_v16 = vpop.f32.mrf.mxu3 }
0x1041   : > { %v15822_v43 = vpop.f32.mrf.mxu3 }
0x1049   : > { %v15824_v33 = vpop.f32.mrf.mxu3 }
0x1051   : > { %v15826_v12 = vpop.f32.mrf.mxu3 }
0x105f   : > { %v10727_v58 = vpop.permute.xlu2 %10726 }
0x1060   : > { %v10729_v17 = vunpack.i.h.bf16 %v10727_v58  ;;  %v10728_v52 = vunpack.i.l.bf16 %v10727_v58 }
0x1070   : > { %v10717_v32 = vpop.permute.xlu0 %10716 }
0x1071   : > { %v10719_v9 = vunpack.i.h.bf16 %v10717_v32  ;;  %v10718_v51 = vunpack.i.l.bf16 %v10717_v32 }
0x1073   : > { %v7212_v61 = vmax.f32 %v15754_v29, %v10719_v9  ;;  %v7211_v14 = vmax.f32 %v15758_v38, %v10718_v51  ;;  %v7214_v29 = vmax.f32 %v15774_v6, %v10729_v17  ;;  %v7213_v38 = vmax.f32 %v15778_v63, %v10728_v52 }
0x1075   : > { %v7232_v22 = vpack.c.bf16 %v7212_v61, %v7211_v14  ;;  %v7233_v24 = vpack.c.bf16 %v7214_v29, %v7213_v38 }
0x1077   : > { %8878 = vmatmul.msk.bf16.gmra.mxu3 %vm7238_vm1, %v7232_v22  ;;  %v10737_v49 = vpop.permute.xlu1 %10736  ;;  %v10742_v6 = vpop.permute.xlu2 %10741 }
0x1078   : > { %v10732_v1 = vpop.permute.xlu0 %10731  ;;  %v15831_v57 = vpop.f32.mrf.mxu3  ;;  %v10739_v62 = vunpack.i.h.bf16 %v10737_v49  ;;  %v10738_v7 = vunpack.i.l.bf16 %v10737_v49  ;;  %v10744_v27 = vunpack.i.h.bf16 %v10742_v6  ;;  %v10743_v63 = vunpack.i.l.bf16 %v10742_v6  ;;  %v9211_v49 = vld [vmem:[%s15951_s16 + $0x38] sm:$0xff] }
0x1079   : > { %v10734_v47 = vunpack.i.h.bf16 %v10732_v1  ;;  %v10733_v34 = vunpack.i.l.bf16 %v10732_v1  ;;  %7552 = vmatpush.bf16.msra.mxu2 %v9211_v49 }
0x107a   : > { %v7218_v37 = vmax.f32 %v7138_v18, %v10744_v27  ;;  %v7217_v23 = vmax.f32 %v7137_v55, %v10743_v63 }
0x107b   : > { %v7140_v15 = vmax.f32 %v7060_v35, %v10734_v47  ;;  %v7139_v56 = vmax.f32 %v7059_v25, %v10733_v34  ;;  %v7216_v35 = vmax.f32 %v15780_v31, %v10739_v62  ;;  %v7215_v25 = vmax.f32 %v15782_v30, %v10738_v7 }
0x107c   : > { %v7235_v36 = vpack.c.bf16 %v7218_v37, %v7217_v23 }
0x107d   : > { %v10745_v3 = vpack.i.bf16 %v7140_v15, %v7139_v56  ;;  %v7234_v54 = vpack.c.bf16 %v7216_v35, %v7215_v25  ;;  %v9210_v25 = vld [vmem:[%s15951_s16 + $0x30] sm:$0xff] }
0x107f   : > { %10746 = vrot.lane.b32.xlu0 %v10745_v3, %s16107_s29 }
0x1080   : > { %v15834_v26 = vpop.f32.mrf.mxu3 }
0x1087   : > { %8879 = vmatmul.msk.bf16.gmra.mxu3 %vm7238_vm1, %v7233_v24 }
0x1089   : > { %v7339_v46 = vpop.f32.mrf.mxu3 }
0x1091   : > { %v7341_v20 = vpop.f32.mrf.mxu3 }
0x1092   : > { %v10785_v8 = vpack.i.bf16 %v7341_v20, %v7339_v46 }
0x1097   : > { %8880 = vmatmul.msk.bf16.gmra.mxu3 %vm7238_vm1, %v7234_v54 }
0x1099   : > { %v7344_v28 = vpop.f32.mrf.mxu3 }
0x10a1   : > { %v7346_v19 = vpop.f32.mrf.mxu3 }
0x10a2   : > { %v10780_v5 = vpack.i.bf16 %v7346_v19, %v7344_v28 }
0x10a7   : > { %8881 = vmatmul.msk.bf16.gmra.mxu3 %vm7238_vm1, %v7235_v36 }
0x10a9   : > { %v7349_v41 = vpop.f32.mrf.mxu3 }
0x10b1   : > { %v7351_v59 = vpop.f32.mrf.mxu3 }
0x10b2   : > { %v10775_v22 = vpack.i.bf16 %v7351_v59, %v7349_v41 }
0x10f1   : > { %v10747_v31 = vpop.permute.xlu0 %10746 }
0x10f2   : > { %v10749_v30 = vunpack.i.h.bf16 %v10747_v31  ;;  %v10748_v4 = vunpack.i.l.bf16 %v10747_v31 }
0x10f4   : > { %v7220_v39 = vmax.f32 %v7140_v15, %v10749_v30  ;;  %v7219_v10 = vmax.f32 %v7139_v56, %v10748_v4 }
0x10f6   : > { %v7236_v21 = vpack.c.bf16 %v7220_v39, %v7219_v10 }
0x10f8   : > { %8882 = vmatmul.msk.bf16.gmra.mxu3 %vm7238_vm1, %v7236_v21 }
0x10fa   : > { %v7354_v40 = vpop.f32.mrf.mxu3 }
0x1102   : > { %v7356_v44 = vpop.f32.mrf.mxu3 }
0x1103   : > { %v10770_v34 = vpack.i.bf16 %v7356_v44, %v7354_v40 }
0x110a   : > { %v7359_v32 = vpop.f32.mrf.mxu3 }
0x1112   : > { %v7361_v18 = vpop.f32.mrf.mxu3 }
0x1113   : > { %v10765_v55 = vpack.i.bf16 %v7361_v18, %v7359_v32 }
0x111a   : > { %v7364_v9 = vpop.f32.mrf.mxu3 }
0x1122   : > { %v7366_v51 = vpop.f32.mrf.mxu3 }
0x1123   : > { %v10760_v61 = vpack.i.bf16 %v7366_v51, %v7364_v9 }
0x1125   : > { %10761 = vrot.lane.b32.xlu0 %v10760_v61, %s10888_s21 }
0x112a   : > { %v7369_v14 = vpop.f32.mrf.mxu3 }
0x112d   : > { %10776 = vrot.lane.b32.xlu0 %v10775_v22, %s10888_s21 }
0x1132   : > { %v7371_v1 = vpop.f32.mrf.mxu3 }
0x1133   : > { %v10755_v47 = vpack.i.bf16 %v7371_v1, %v7369_v14  ;;  %v9204_v14 = vld [vmem:[%s15951_s16] sm:$0xff] }
0x1135   : > { %10756 = vrot.lane.b32.xlu2 %v10755_v47, %s10888_s21 }
0x113d   : > { %10771 = vrot.lane.b32.xlu2 %v10770_v34, %s10888_s21 }
0x1145   : > { %10786 = vrot.lane.b32.xlu2 %v10785_v8, %s10888_s21 }
0x117b   : > { %v7374_v58 = vpop.f32.mrf.mxu3 }
0x1183   : > { %v7376_v15 = vpop.f32.mrf.mxu3 }
0x1184   : > { %v10750_v56 = vpack.i.bf16 %v7376_v15, %v7374_v58 }
0x1186   : > { %10751 = vrot.lane.b32.xlu1 %v10750_v56, %s10888_s21 }
0x118e   : > { %10766 = vrot.lane.b32.xlu1 %v10765_v55, %s10888_s21 }
0x118f   : > { %v10757_v17 = vpop.permute.xlu2 %10756 }
0x1190   : > { %v10759_v3 = vunpack.i.h.bf16 %v10757_v17  ;;  %v10758_v29 = vunpack.i.l.bf16 %v10757_v17 }
0x1192   : > { %v7456_v54 = vsel %vm7443_vm5, %v15824_v33, %v10758_v29  ;;  %v7457_v28 = vsel %vm7443_vm5, %v15826_v12, %v10759_v3  ;;  %v9208_v12 = vld [vmem:[%s15951_s16 + $0x20] sm:$0xff] }
0x1196   : > { %10781 = vrot.lane.b32.xlu1 %v10780_v5, %s10888_s21  ;;  %s7567_s21 = scalar_lea.sflag [#allocation3], %s569_s26 }
0x1197   : > { %v10762_v46 = vpop.permute.xlu0 %10761  ;;  %v10772_v33 = vpop.permute.xlu2 %10771 }
0x1198   : > { %v10764_v20 = vunpack.i.h.bf16 %v10762_v46  ;;  %v10763_v8 = vunpack.i.l.bf16 %v10762_v46  ;;  %v10774_v5 = vunpack.i.h.bf16 %v10772_v33  ;;  %v10773_v36 = vunpack.i.l.bf16 %v10772_v33 }
0x119a   : > { %v7454_v37 = vsel %vm7443_vm5, %v15820_v16, %v10763_v8  ;;  %v7455_v23 = vsel %vm7443_vm5, %v15822_v43, %v10764_v20  ;;  %v9207_v43 = vld [vmem:[%s15951_s16 + $0x18] sm:$0xff]  ;;  %v7450_v39 = vsel %vm7443_vm5, %v15812_v11, %v10773_v36  ;;  %v7451_v10 = vsel %vm7443_vm5, %v15814_v50, %v10774_v5  ;;  %v9205_v50 = vld [vmem:[%s15951_s16 + $0x8] sm:$0xff] }
0x119b   : > { %v7465_v19 = vpack.c.bf16 %v7455_v23, %v7454_v37  ;;  %v7463_v21 = vpack.c.bf16 %v7451_v10, %v7450_v39 }
0x119f   : > { %v10777_v16 = vpop.permute.xlu0 %10776  ;;  %v10787_v11 = vpop.permute.xlu2 %10786 }
0x11a0   : > { %v10779_v30 = vunpack.i.h.bf16 %v10777_v16  ;;  %v10778_v4 = vunpack.i.l.bf16 %v10777_v16  ;;  %v10789_v9 = vunpack.i.h.bf16 %v10787_v11  ;;  %v10788_v51 = vunpack.i.l.bf16 %v10787_v11 }
0x11a2   : > { %v7448_v32 = vsel %vm7443_vm5, %v15804_v42, %v10778_v4  ;;  %v7449_v18 = vsel %vm7443_vm5, %v15809_v45, %v10779_v30  ;;  %v7444_v22 = vsel %vm7443_vm5, %v15749_v53, %v10788_v51  ;;  %v7445_v1 = vsel %vm7443_vm5, %v15762_v2, %v10789_v9  ;;  %v10790_v53 = vld [vmem:[%s16134_s18] ss:$0 sm:$0xff] }
0x11a3   : > { %v7462_v55 = vpack.c.bf16 %v7449_v18, %v7448_v32  ;;  %v7460_v47 = vpack.c.bf16 %v7445_v1, %v7444_v22 }
0x11f8   : > { %v10752_v52 = vpop.permute.xlu1 %10751 }
0x11f9   : > { %v10754_v38 = vunpack.i.h.bf16 %v10752_v52  ;;  %v10753_v24 = vunpack.i.l.bf16 %v10752_v52 }
0x11fb   : > { %v7458_v62 = vsel %vm7443_vm5, %v15831_v57, %v10753_v24  ;;  %v7459_v7 = vsel %vm7443_vm5, %v15834_v26, %v10754_v38  ;;  %v7466_v57 = vpack.c.bf16 %v7457_v28, %v7456_v54  ;;  %v9209_v26 = vld [vmem:[%s15951_s16 + $0x28] sm:$0xff] }
0x11fc   : > { %v7467_v35 = vpack.c.bf16 %v7459_v7, %v7458_v62 }
0x11fe   : > { %9223 = vmatpush.lsf.bf16.msrb.mxu2 %v7467_v35 }
0x1200   : > { %v10767_v6 = vpop.permute.xlu1 %10766 }
0x1201   : > { %v10769_v27 = vunpack.i.h.bf16 %v10767_v6  ;;  %v10768_v63 = vunpack.i.l.bf16 %v10767_v6 }
0x1202   : > { %7553 = vmatpush.bf16.msra.mxu2 %v9210_v25 }
0x1203   : > { %v7452_v41 = vsel %vm7443_vm5, %v15816_v48, %v10768_v63  ;;  %v7453_v31 = vsel %vm7443_vm5, %v15818_v13, %v10769_v27  ;;  %v9206_v13 = vld [vmem:[%s15951_s16 + $0x10] sm:$0xff] }
0x1204   : > { %v7464_v59 = vpack.c.bf16 %v7453_v31, %v7452_v41 }
0x1206   : > { %9224 = vmatpush.lsf.bf16.msrb.mxu2 %v7466_v57 }
0x1208   : > { %v10782_v48 = vpop.permute.xlu1 %10781 }
0x1209   : > { %v10784_v40 = vunpack.i.h.bf16 %v10782_v48  ;;  %v10783_v44 = vunpack.i.l.bf16 %v10782_v48 }
0x120a   : > { %7554 = vmatpush.bf16.msra.mxu2 %v9209_v26 }
0x120b   : > { %v7446_v61 = vsel %vm7443_vm5, %v15791_v0, %v10783_v44  ;;  %v7447_v42 = vsel %vm7443_vm5, %v15795_v60, %v10784_v40 }
0x120c   : > { %v7461_v45 = vpack.c.bf16 %v7447_v42, %v7446_v61 }
0x120e   : > { %9225 = vmatpush.lsf.bf16.msrb.mxu2 %v7465_v19 }
0x1212   : > { %7555 = vmatpush.bf16.msra.mxu2 %v9208_v12 }
0x1216   : > { %9226 = vmatpush.lsf.bf16.msrb.mxu2 %v7464_v59 }
0x121a   : > { %7556 = vmatpush.bf16.msra.mxu2 %v9207_v43 }
0x121e   : > { %9227 = vmatpush.lsf.bf16.msrb.mxu2 %v7463_v21 }
0x1222   : > { %7557 = vmatpush.bf16.msra.mxu2 %v9206_v13 }
0x1226   : > { %9228 = vmatpush.lsf.bf16.msrb.mxu2 %v7462_v55 }
0x122a   : > { %7558 = vmatpush.bf16.msra.mxu2 %v9205_v50 }
0x122e   : > { %9229 = vmatpush.lsf.bf16.msrb.mxu2 %v7461_v45 }
0x1232   : > { %7559 = vmatpush.bf16.msra.mxu2 %v9204_v14 }
0x1236   : > { %9230 = vmatpush.lsf.bf16.msrb.mxu2 %v7460_v47 }
0x1238   : > { %9231 = vllmr.2.mxu2 }
0x1259   : > { %9232 = vmatmul.lmr.bf16.vlgmr.msra.gmra.2.mxu2 }
0x1261   : > { %9233 = vmatmul.lmr.bf16.gmra.2.mxu2 }
0x12dc   : > { %v7561_v2 = vpop.f32.mrf.mxu2 }
0x12dd   : > { %v7562_v0 = vadd.f32 %v10790_v53, %v7561_v2 }
0x12df   : > { %7565 = vst [vmem:[%s571_s27] sm:$0x3] %v7562_v0 }
0x12e0   : > { %10824 = shalt.err (!%p10821_p3)
}
0x12e1   : > { %9235 = dma.vmem_to_hbm [thread:$0]  (%p11020_p5), %s7580_s30, 32, %s7582_s1, %s7567_s21  }
0x12e4   : > { %v7563_v60 = vpop.f32.mrf.mxu2 }
0x12e5 PF: > { %s16135_s26 = sld [smem:[#allocation7_spill]] }
0x12e6   : > { %s16136_s19 = sld [smem:[#allocation5_spill]] }
0x12eb   : > { %p9241_p4 = scmp.ge.s32.totalorder %s16135_s26, 2 }
0x12ec   : > { %s7593_s18 = sand.u32 1, %s16136_s19  }
0x12ed   : > { %p9238_p7 = pnand %p9241_p4, %p11024_p6  ;;  %s7594_s27 = scalar_lea.sflag [#allocation3], %s7593_s18 }
0x12ef   : > { %p9239_p8 = pneg %p9238_p7 }
0x12f1   : > { %10842 = dma.done.wait (%p9239_p8), %s7594_s27, 32  }
0x12f2   : > { %10844 = vsyncadd (%p9239_p8), %s7594_s27, 4294967264  ;;  %s16138_s30 = sld [smem:[#allocation8_spill]]  ;;  %s16141_s27 = smov %s10851_s28 }
0x12f3   : > { %s16139_s3 = sld [smem:[#allocation6_spill]] }
0x12f4   : > { %s16140_s29 = sld [smem:[#allocation9_spill]] }
0x12f8   : > { %p28_p9 = scmp.ge.s32.totalorder %s16138_s30, 4  }
0x12f9   : > { %s16142_s28 = smov %s16139_s3 }
0x12fa   :  { %30 = sbr.rel (!%p28_p9) target bundleno = 10 (0xa), region = 128 }
0x12ff   :  { %7600 = vsyncpa [#allocation3], 1 }
0x1300   :  { %7602 = vsyncpa [#allocation3 + $0x1], 1 }

</bundles_post_ra>
